<compile_context>
chip_gen: v7x
topology: tpu7x:2x2x1
jax: 0.10.0
libtpu: 0.0.40
codegen_flags: <defaults>
</compile_context>

<pallas_src>
import functools
import math

import jax
import jax.numpy as jnp
import numpy as np
from jax.experimental import pallas as pl
from jax.experimental.pallas import tpu as pltpu

NUM_GROUPS = 32
EPS = 1e-6


def _pick_tile(s: int, target: int) -> int:
    """Largest multiple-of-8 divisor of s that is <= target (or s itself)."""
    if s <= target:
        return s
    for t in range(target, 7, -1):
        if s % t == 0 and t % 8 == 0:
            return t
    return s  # fall back to a single full-S tile (e.g. prime S)


# ---------------------------------------------------------------------------
# pass 1: GroupNorm(32) statistics -> per-batch per-channel scale / shift
# ---------------------------------------------------------------------------
def _stats_kernel(x_ref, gmat_ref, gmat_t_ref, gamma_ref, beta_ref,
                  scale_ref, shift_ref, sum_sc, sq_sc, *, inv_n):
    si = pl.program_id(1)

    @pl.when(si == 0)
    def _():
        sum_sc[...] = jnp.zeros(sum_sc.shape, jnp.float32)
        sq_sc[...] = jnp.zeros(sq_sc.shape, jnp.float32)

    x = x_ref[0]                                               # (TS, C) f32
    sum_sc[...] += jnp.sum(x, axis=0, keepdims=True)           # (1, C)
    sq_sc[...] += jnp.sum(x * x, axis=0, keepdims=True)        # (1, C)

    @pl.when(si == pl.num_programs(1) - 1)
    def _():
        gmat = gmat_ref[...]                                   # (C, G) one-hot channel->group
        grp_sum = jnp.dot(sum_sc[...], gmat, preferred_element_type=jnp.float32)  # (1, G)
        grp_sq = jnp.dot(sq_sc[...], gmat, preferred_element_type=jnp.float32)    # (1, G)
        mean_g = grp_sum * inv_n
        # clamp: E[x^2] - E[x]^2 can go slightly negative in f32
        var_g = jnp.maximum(grp_sq * inv_n - mean_g * mean_g, 0.0)
        inv_g = jax.lax.rsqrt(var_g + EPS)
        mean_c = jnp.dot(mean_g, gmat_t_ref[...], preferred_element_type=jnp.float32)  # (1, C)
        inv_c = jnp.dot(inv_g, gmat_t_ref[...], preferred_element_type=jnp.float32)    # (1, C)
        scale_c = gamma_ref[...] * inv_c
        shift_c = beta_ref[...] - mean_c * scale_c
        scale_ref[0] = scale_c
        shift_ref[0] = shift_c


# ---------------------------------------------------------------------------
# pass 2: normalize + q/k/v 1x1 convs (bf16 MXU operands, f32 accumulation)
# ---------------------------------------------------------------------------
def _qkv_kernel(x_ref, scale_ref, shift_ref,
                wq_ref, bq_ref, wk_ref, bk_ref, wv_ref, bv_ref,
                q_ref, k_ref, v_ref):
    xn = x_ref[0] * scale_ref[0] + shift_ref[0]                # (TS, C) f32
    xnb = xn.astype(jnp.bfloat16)
    q = jnp.dot(xnb, wq_ref[...], preferred_element_type=jnp.float32) + bq_ref[...]
    k = jnp.dot(xnb, wk_ref[...], preferred_element_type=jnp.float32) + bk_ref[...]
    v = jnp.dot(xnb, wv_ref[...], preferred_element_type=jnp.float32) + bv_ref[...]
    q_ref[0] = q.astype(jnp.bfloat16)
    k_ref[0] = k.astype(jnp.bfloat16)
    v_ref[0] = v.astype(jnp.bfloat16)


# ---------------------------------------------------------------------------
# pass 3: flash attention over S tiles + proj_out + residual (post-norm x)
# ---------------------------------------------------------------------------
def _flash_kernel(x_ref, scale_ref, shift_ref, q_ref, k_ref, v_ref, wp_ref, bp_ref,
                  o_ref, m_sc, l_sc, acc_sc):
    kv = pl.program_id(2)

    @pl.when(kv == 0)
    def _():
        m_sc[...] = jnp.full(m_sc.shape, -jnp.inf, jnp.float32)
        l_sc[...] = jnp.zeros(l_sc.shape, jnp.float32)
        acc_sc[...] = jnp.zeros(acc_sc.shape, jnp.float32)

    q = q_ref[0]                                               # (TQ, C)  bf16, 1/sqrt(C) pre-folded
    k = k_ref[0]                                               # (TKV, C) bf16
    # q @ k^T without an in-kernel transpose (contract on the channel axis of both)
    s = jax.lax.dot_general(q, k, (((1,), (1,)), ((), ())),
                            preferred_element_type=jnp.float32)   # (TQ, TKV) f32

    m_prev = m_sc[...]
    m_new = jnp.maximum(m_prev, jnp.max(s, axis=-1, keepdims=True))
    alpha = jnp.exp(m_prev - m_new)
    p = jnp.exp(s - m_new)                                     # un-normalized probs
    l_sc[...] = alpha * l_sc[...] + jnp.sum(p, axis=-1, keepdims=True)
    acc_sc[...] = alpha * acc_sc[...] + jnp.dot(
        p.astype(jnp.bfloat16), v_ref[0], preferred_element_type=jnp.float32)
    m_sc[...] = m_new

    @pl.when(kv == pl.num_programs(2) - 1)
    def _():
        # softmax denominator applied once after the PV matmuls (EUP reciprocal)
        h = acc_sc[...] * pl.reciprocal(l_sc[...], approx=True)      # (TQ, C) f32
        xn_q = x_ref[0] * scale_ref[0] + shift_ref[0]                # residual = normalized x
        proj = jnp.dot(h.astype(jnp.bfloat16), wp_ref[...],
                       preferred_element_type=jnp.float32) + bp_ref[...]
        o_ref[0] = (xn_q + proj).astype(o_ref.dtype)


# ---------------------------------------------------------------------------
# wrapper
# ---------------------------------------------------------------------------
def attn_block_4d(x_bchw, params):
    gamma, beta, wq, bq, wk, bk, wv, bv, wp, bp = params
    B, C, H, W = x_bchw.shape
    assert C % NUM_GROUPS == 0, "GroupNorm(32) requires channels divisible by 32"
    S = H * W
    G = NUM_GROUPS

    # NCHW -> (B, S, C): channels on lanes, spatial positions on sublanes.
    x_bsc = jnp.transpose(x_bchw, (0, 2, 3, 1)).reshape(B, S, C).astype(jnp.float32)

    # One-hot channel->group membership matrix (and its transpose) for GroupNorm.
    group_ids = jnp.arange(C) // (C // G)
    gmat = jax.nn.one_hot(group_ids, G, dtype=jnp.float32)         # (C, G)
    gmat_t = jnp.transpose(gmat)                                   # (G, C)

    # Fold the 1/sqrt(C) attention scale into the q projection (weights AND bias),
    # and ship MXU operands as bf16 (all accumulation / elementwise stays f32).
    qscale = 1.0 / math.sqrt(C)
    wq_b = (wq * qscale).astype(jnp.bfloat16)
    bq_s = (bq * qscale).astype(jnp.float32)
    wk_b = wk.astype(jnp.bfloat16)
    wv_b = wv.astype(jnp.bfloat16)
    wp_b = wp.astype(jnp.bfloat16)

    TS = _pick_tile(S, 512)        # GroupNorm-stats / qkv-projection row tile
    TQ = _pick_tile(S, 256)        # attention q tile (matches 256-wide MXU on v6e/v7x)
    TKV = _pick_tile(S, 256)       # attention kv tile
    NS, NQ, NKV = S // TS, S // TQ, S // TKV
    inv_n = 1.0 / float(S * (C // G))

    # ---- pass 1: GroupNorm statistics -> per-channel scale/shift ----
    scale_c, shift_c = pl.pallas_call(
        functools.partial(_stats_kernel, inv_n=inv_n),
        out_shape=(jax.ShapeDtypeStruct((B, 1, C), jnp.float32),
                   jax.ShapeDtypeStruct((B, 1, C), jnp.float32)),
        grid=(B, NS),
        in_specs=[
            pl.BlockSpec((1, TS, C), lambda b, s: (b, s, 0)),   # x
            pl.BlockSpec((C, G), lambda b, s: (0, 0)),          # gmat
            pl.BlockSpec((G, C), lambda b, s: (0, 0)),          # gmat^T
            pl.BlockSpec((1, C), lambda b, s: (0, 0)),          # gamma
            pl.BlockSpec((1, C), lambda b, s: (0, 0)),          # beta
        ],
        out_specs=(pl.BlockSpec((1, 1, C), lambda b, s: (b, 0, 0)),
                   pl.BlockSpec((1, 1, C), lambda b, s: (b, 0, 0))),
        scratch_shapes=[pltpu.VMEM((1, C), jnp.float32),
                        pltpu.VMEM((1, C), jnp.float32)],
        compiler_params=pltpu.CompilerParams(
            dimension_semantics=("parallel", "arbitrary")),
    )(x_bsc, gmat, gmat_t, gamma, beta)

    # ---- pass 2: normalize + q/k/v projections ----
    q_bsc, k_bsc, v_bsc = pl.pallas_call(
        _qkv_kernel,
        out_shape=(jax.ShapeDtypeStruct((B, S, C), jnp.bfloat16),) * 3,
        grid=(B, NS),
        in_specs=[
            pl.BlockSpec((1, TS, C), lambda b, s: (b, s, 0)),   # x
            pl.BlockSpec((1, 1, C), lambda b, s: (b, 0, 0)),    # scale
            pl.BlockSpec((1, 1, C), lambda b, s: (b, 0, 0)),    # shift
            pl.BlockSpec((C, C), lambda b, s: (0, 0)),          # wq (scaled, bf16)
            pl.BlockSpec((1, C), lambda b, s: (0, 0)),          # bq (scaled)
            pl.BlockSpec((C, C), lambda b, s: (0, 0)),          # wk
            pl.BlockSpec((1, C), lambda b, s: (0, 0)),          # bk
            pl.BlockSpec((C, C), lambda b, s: (0, 0)),          # wv
            pl.BlockSpec((1, C), lambda b, s: (0, 0)),          # bv
        ],
        out_specs=(pl.BlockSpec((1, TS, C), lambda b, s: (b, s, 0)),) * 3,
        compiler_params=pltpu.CompilerParams(
            dimension_semantics=("parallel", "parallel")),
    )(x_bsc, scale_c, shift_c, wq_b, bq_s, wk_b, bk, wv_b, bv)

    # ---- pass 3: flash attention + proj_out + residual ----
    # NOTE: kv is the innermost (reduction) axis; batch + q-tile axes are parallel so
    # v7x's two TensorCores get work even at tiny batch.  Output aliases x_bsc's buffer.
    out_bsc = pl.pallas_call(
        _flash_kernel,
        out_shape=jax.ShapeDtypeStruct((B, S, C), jnp.float32),
        grid=(B, NQ, NKV),
        in_specs=[
            pl.BlockSpec((1, TQ, C), lambda b, qi, kv: (b, qi, 0)),   # x (for residual)
            pl.BlockSpec((1, 1, C), lambda b, qi, kv: (b, 0, 0)),     # scale
            pl.BlockSpec((1, 1, C), lambda b, qi, kv: (b, 0, 0)),     # shift
            pl.BlockSpec((1, TQ, C), lambda b, qi, kv: (b, qi, 0)),   # q
            pl.BlockSpec((1, TKV, C), lambda b, qi, kv: (b, kv, 0)),  # k
            pl.BlockSpec((1, TKV, C), lambda b, qi, kv: (b, kv, 0)),  # v
            pl.BlockSpec((C, C), lambda b, qi, kv: (0, 0)),           # wp (bf16)
            pl.BlockSpec((1, C), lambda b, qi, kv: (0, 0)),           # bp
        ],
        out_specs=pl.BlockSpec((1, TQ, C), lambda b, qi, kv: (b, qi, 0)),
        scratch_shapes=[pltpu.VMEM((TQ, 1), jnp.float32),    # running max
                        pltpu.VMEM((TQ, 1), jnp.float32),    # running denom
                        pltpu.VMEM((TQ, C), jnp.float32)],   # running output acc
        input_output_aliases={0: 0},   # reuse x_bsc's HBM buffer for the output
        compiler_params=pltpu.CompilerParams(
            dimension_semantics=("parallel", "parallel", "arbitrary")),
    )(x_bsc, scale_c, shift_c, q_bsc, k_bsc, v_bsc, wp_b, bp)

    # (B, S, C) -> NCHW
    return jnp.transpose(out_bsc.reshape(B, H, W, C), (0, 3, 1, 2))


# ---------------------------------------------------------------------------
# pure-JAX reference mirroring the PyTorch forward (f32)
# ---------------------------------------------------------------------------
def attn_block_4d_reference(x_bchw, params):
    gamma, beta, wq, bq, wk, bk, wv, bv, wp, bp = params
    B, C, H, W = x_bchw.shape
    G = NUM_GROUPS
    xg = x_bchw.reshape(B, G, C // G, H, W)
    mean = xg.mean(axis=(2, 3, 4), keepdims=True)
    var = xg.var(axis=(2, 3, 4), keepdims=True)
    xn = (xg - mean) / jnp.sqrt(var + EPS)
    xn = xn.reshape(B, C, H, W) * gamma.reshape(1, C, 1, 1) + beta.reshape(1, C, 1, 1)
    xs = jnp.transpose(xn, (0, 2, 3, 1)).reshape(B, H * W, C)
    q = xs @ wq + bq
    k = xs @ wk + bk
    v = xs @ wv + bv
    s = (q @ jnp.swapaxes(k, -1, -2)) / jnp.sqrt(jnp.float32(C))
    p = jax.nn.softmax(s, axis=-1)
    h = p @ v
    out = xs + h @ wp + bp           # residual is the normalized x (x was reassigned)
    return jnp.transpose(out.reshape(B, H, W, C), (0, 3, 1, 2))


def make_params(key, C):
    ks = jax.random.split(key, 10)
    scale = 1.0 / math.sqrt(C)
    # 1x1 conv weights stored as (C_in, C_out), i.e. torch weight[:, :, 0, 0].T
    gamma = 1.0 + 0.1 * jax.random.normal(ks[0], (1, C), jnp.float32)
    beta = 0.1 * jax.random.normal(ks[1], (1, C), jnp.float32)
    wq = scale * jax.random.normal(ks[2], (C, C), jnp.float32)
    bq = 0.05 * jax.random.normal(ks[3], (1, C), jnp.float32)
    wk = scale * jax.random.normal(ks[4], (C, C), jnp.float32)
    bk = 0.05 * jax.random.normal(ks[5], (1, C), jnp.float32)
    wv = scale * jax.random.normal(ks[6], (C, C), jnp.float32)
    bv = 0.05 * jax.random.normal(ks[7], (1, C), jnp.float32)
    wp = scale * jax.random.normal(ks[8], (C, C), jnp.float32)
    bp = 0.05 * jax.random.normal(ks[9], (1, C), jnp.float32)
    return (gamma, beta, wq, bq, wk, bk, wv, bv, wp, bp)


if __name__ == "__main__":
    key = jax.random.PRNGKey(0)
    kx, kp = jax.random.split(key)

    # Small, but large enough to exercise the multi-tile flash path (S=1024 -> 4 kv tiles)
    # and the multi-tile GroupNorm stats path; C=128 keeps output stores lane-dense.
    B, C, H, W = 2, 128, 32, 32
    x = jax.random.normal(kx, (B, C, H, W), jnp.float32)
    params = make_params(kp, C)

    attn = jax.jit(attn_block_4d)
    out = jax.block_until_ready(attn(x, params))
    ref = jax.block_until_ready(attn_block_4d_reference(x, params))

    # bf16 MXU operands + approx reciprocal -> compare with loosened tolerances
    np.testing.assert_allclose(np.asarray(out), np.asarray(ref), rtol=3e-2, atol=3e-2)
    print("KERNEL_OK")
</pallas_src>

<mosaic_0001>
module attributes {stable_mosaic.version = 11 : i64} {
  func.func @_qkv_kernel(%arg0: i32, %arg1: i32, %arg2: memref<1x512x128xf32, #tpu.memory_space<vmem>>, %arg3: memref<1x1x128xf32, #tpu.memory_space<vmem>>, %arg4: memref<1x1x128xf32, #tpu.memory_space<vmem>>, %arg5: memref<128x128xbf16, #tpu.memory_space<vmem>>, %arg6: memref<1x128xf32, #tpu.memory_space<vmem>>, %arg7: memref<128x128xbf16, #tpu.memory_space<vmem>>, %arg8: memref<1x128xf32, #tpu.memory_space<vmem>>, %arg9: memref<128x128xbf16, #tpu.memory_space<vmem>>, %arg10: memref<1x128xf32, #tpu.memory_space<vmem>>, %arg11: memref<1x512x128xbf16, #tpu.memory_space<vmem>>, %arg12: memref<1x512x128xbf16, #tpu.memory_space<vmem>>, %arg13: memref<1x512x128xbf16, #tpu.memory_space<vmem>>) attributes {dimension_semantics = [#tpu.dimension_semantics<parallel>, #tpu.dimension_semantics<parallel>], iteration_bounds = array<i64: 2, 2>, scalar_prefetch = 0 : i64, scratch_operands = 0 : i64, tpu.core_type = #tpu.core_type<tc>, window_params = [{transform_indices = @transform_0, window_bounds = array<i64: 1, 512, 128>}, {transform_indices = @transform_1, window_bounds = array<i64: 1, 1, 128>}, {transform_indices = @transform_2, window_bounds = array<i64: 1, 1, 128>}, {pipeline_mode = #tpu.pipeline_mode<synchronous>, transform_indices = @transform_3, window_bounds = array<i64: 128, 128>}, {pipeline_mode = #tpu.pipeline_mode<synchronous>, transform_indices = @transform_4, window_bounds = array<i64: 1, 128>}, {pipeline_mode = #tpu.pipeline_mode<synchronous>, transform_indices = @transform_5, window_bounds = array<i64: 128, 128>}, {pipeline_mode = #tpu.pipeline_mode<synchronous>, transform_indices = @transform_6, window_bounds = array<i64: 1, 128>}, {pipeline_mode = #tpu.pipeline_mode<synchronous>, transform_indices = @transform_7, window_bounds = array<i64: 128, 128>}, {pipeline_mode = #tpu.pipeline_mode<synchronous>, transform_indices = @transform_8, window_bounds = array<i64: 1, 128>}, {transform_indices = @transform_9, window_bounds = array<i64: 1, 512, 128>}, {transform_indices = @transform_10, window_bounds = array<i64: 1, 512, 128>}, {transform_indices = @transform_11, window_bounds = array<i64: 1, 512, 128>}]} {
    %c0 = arith.constant 0 : index
    %c0_0 = arith.constant 0 : index
    %c0_1 = arith.constant 0 : index
    %0 = vector.load %arg2[%c0, %c0_0, %c0_1] : memref<1x512x128xf32, #tpu.memory_space<vmem>>, vector<1x512x128xf32>
    %1 = vector.shape_cast %0 : vector<1x512x128xf32> to vector<512x128xf32>
    %c0_2 = arith.constant 0 : index
    %c0_3 = arith.constant 0 : index
    %c0_4 = arith.constant 0 : index
    %2 = vector.load %arg3[%c0_2, %c0_3, %c0_4] : memref<1x1x128xf32, #tpu.memory_space<vmem>>, vector<1x1x128xf32>
    %3 = vector.shape_cast %2 : vector<1x1x128xf32> to vector<1x128xf32>
    %4 = vector.broadcast %3 : vector<1x128xf32> to vector<512x128xf32>
    %5 = arith.mulf %1, %4 : vector<512x128xf32>
    %c0_5 = arith.constant 0 : index
    %c0_6 = arith.constant 0 : index
    %c0_7 = arith.constant 0 : index
    %6 = vector.load %arg4[%c0_5, %c0_6, %c0_7] : memref<1x1x128xf32, #tpu.memory_space<vmem>>, vector<1x1x128xf32>
    %7 = vector.shape_cast %6 : vector<1x1x128xf32> to vector<1x128xf32>
    %8 = vector.broadcast %7 : vector<1x128xf32> to vector<512x128xf32>
    %9 = arith.addf %5, %8 : vector<512x128xf32>
    %10 = arith.truncf %9 : vector<512x128xf32> to vector<512x128xbf16>
    %c0_8 = arith.constant 0 : index
    %c0_9 = arith.constant 0 : index
    %11 = vector.load %arg5[%c0_8, %c0_9] : memref<128x128xbf16, #tpu.memory_space<vmem>>, vector<128x128xbf16>
    %cst = arith.constant dense<0.000000e+00> : vector<512x128xf32>
    %12 = tpu.matmul %10, %11, %cst {dimension_numbers = #tpu.dot_dimension_numbers<[1], [0], [0], [1], [0, 0, 1, 1], [], []>} : vector<512x128xbf16>, vector<128x128xbf16>, vector<512x128xf32> -> vector<512x128xf32>
    %c0_10 = arith.constant 0 : index
    %c0_11 = arith.constant 0 : index
    %13 = vector.load %arg6[%c0_10, %c0_11] : memref<1x128xf32, #tpu.memory_space<vmem>>, vector<1x128xf32>
    %14 = vector.broadcast %13 : vector<1x128xf32> to vector<512x128xf32>
    %15 = arith.addf %12, %14 : vector<512x128xf32>
    %c0_12 = arith.constant 0 : index
    %c0_13 = arith.constant 0 : index
    %16 = vector.load %arg7[%c0_12, %c0_13] : memref<128x128xbf16, #tpu.memory_space<vmem>>, vector<128x128xbf16>
    %cst_14 = arith.constant dense<0.000000e+00> : vector<512x128xf32>
    %17 = tpu.matmul %10, %16, %cst_14 {dimension_numbers = #tpu.dot_dimension_numbers<[1], [0], [0], [1], [0, 0, 1, 1], [], []>} : vector<512x128xbf16>, vector<128x128xbf16>, vector<512x128xf32> -> vector<512x128xf32>
    %c0_15 = arith.constant 0 : index
    %c0_16 = arith.constant 0 : index
    %18 = vector.load %arg8[%c0_15, %c0_16] : memref<1x128xf32, #tpu.memory_space<vmem>>, vector<1x128xf32>
    %19 = vector.broadcast %18 : vector<1x128xf32> to vector<512x128xf32>
    %20 = arith.addf %17, %19 : vector<512x128xf32>
    %c0_17 = arith.constant 0 : index
    %c0_18 = arith.constant 0 : index
    %21 = vector.load %arg9[%c0_17, %c0_18] : memref<128x128xbf16, #tpu.memory_space<vmem>>, vector<128x128xbf16>
    %cst_19 = arith.constant dense<0.000000e+00> : vector<512x128xf32>
    %22 = tpu.matmul %10, %21, %cst_19 {dimension_numbers = #tpu.dot_dimension_numbers<[1], [0], [0], [1], [0, 0, 1, 1], [], []>} : vector<512x128xbf16>, vector<128x128xbf16>, vector<512x128xf32> -> vector<512x128xf32>
    %c0_20 = arith.constant 0 : index
    %c0_21 = arith.constant 0 : index
    %23 = vector.load %arg10[%c0_20, %c0_21] : memref<1x128xf32, #tpu.memory_space<vmem>>, vector<1x128xf32>
    %24 = vector.broadcast %23 : vector<1x128xf32> to vector<512x128xf32>
    %25 = arith.addf %22, %24 : vector<512x128xf32>
    %26 = arith.truncf %15 : vector<512x128xf32> to vector<512x128xbf16>
    %c0_22 = arith.constant 0 : index
    %c0_23 = arith.constant 0 : index
    %c0_24 = arith.constant 0 : index
    %27 = vector.load %arg11[%c0_22, %c0_23, %c0_24] : memref<1x512x128xbf16, #tpu.memory_space<vmem>>, vector<1x512x128xbf16>
    %28 = vector.shape_cast %27 : vector<1x512x128xbf16> to vector<512x128xbf16>
    %29 = vector.shape_cast %26 : vector<512x128xbf16> to vector<1x512x128xbf16>
    tpu.vector_store %arg11[%c0_22, %c0_23, %c0_24], %29 {strides = array<i32>} : memref<1x512x128xbf16, #tpu.memory_space<vmem>>, vector<1x512x128xbf16>,
    %30 = arith.truncf %20 : vector<512x128xf32> to vector<512x128xbf16>
    %c0_25 = arith.constant 0 : index
    %c0_26 = arith.constant 0 : index
    %c0_27 = arith.constant 0 : index
    %31 = vector.load %arg12[%c0_25, %c0_26, %c0_27] : memref<1x512x128xbf16, #tpu.memory_space<vmem>>, vector<1x512x128xbf16>
    %32 = vector.shape_cast %31 : vector<1x512x128xbf16> to vector<512x128xbf16>
    %33 = vector.shape_cast %30 : vector<512x128xbf16> to vector<1x512x128xbf16>
    tpu.vector_store %arg12[%c0_25, %c0_26, %c0_27], %33 {strides = array<i32>} : memref<1x512x128xbf16, #tpu.memory_space<vmem>>, vector<1x512x128xbf16>,
    %34 = arith.truncf %25 : vector<512x128xf32> to vector<512x128xbf16>
    %c0_28 = arith.constant 0 : index
    %c0_29 = arith.constant 0 : index
    %c0_30 = arith.constant 0 : index
    %35 = vector.load %arg13[%c0_28, %c0_29, %c0_30] : memref<1x512x128xbf16, #tpu.memory_space<vmem>>, vector<1x512x128xbf16>
    %36 = vector.shape_cast %35 : vector<1x512x128xbf16> to vector<512x128xbf16>
    %37 = vector.shape_cast %34 : vector<512x128xbf16> to vector<1x512x128xbf16>
    tpu.vector_store %arg13[%c0_28, %c0_29, %c0_30], %37 {strides = array<i32>} : memref<1x512x128xbf16, #tpu.memory_space<vmem>>, vector<1x512x128xbf16>,
    return
  }
  func.func @transform_0(%arg0: i32, %arg1: i32) -> (i32, i32, i32) {
    %c0_i32 = arith.constant 0 : i32
    %c0_i32_0 = arith.constant 0 : i32
    return %arg0, %arg1, %c0_i32 : i32, i32, i32
  }
  func.func @transform_1(%arg0: i32, %arg1: i32) -> (i32, i32, i32) {
    %c0_i32 = arith.constant 0 : i32
    %c0_i32_0 = arith.constant 0 : i32
    %c0_i32_1 = arith.constant 0 : i32
    return %arg0, %c0_i32, %c0_i32_0 : i32, i32, i32
  }
  func.func @transform_2(%arg0: i32, %arg1: i32) -> (i32, i32, i32) {
    %c0_i32 = arith.constant 0 : i32
    %c0_i32_0 = arith.constant 0 : i32
    %c0_i32_1 = arith.constant 0 : i32
    return %arg0, %c0_i32, %c0_i32_0 : i32, i32, i32
  }
  func.func @transform_3(%arg0: i32, %arg1: i32) -> (i32, i32) {
    %c0_i32 = arith.constant 0 : i32
    %c0_i32_0 = arith.constant 0 : i32
    %c0_i32_1 = arith.constant 0 : i32
    return %c0_i32, %c0_i32_0 : i32, i32
  }
  func.func @transform_4(%arg0: i32, %arg1: i32) -> (i32, i32) {
    %c0_i32 = arith.constant 0 : i32
    %c0_i32_0 = arith.constant 0 : i32
    %c0_i32_1 = arith.constant 0 : i32
    return %c0_i32, %c0_i32_0 : i32, i32
  }
  func.func @transform_5(%arg0: i32, %arg1: i32) -> (i32, i32) {
    %c0_i32 = arith.constant 0 : i32
    %c0_i32_0 = arith.constant 0 : i32
    %c0_i32_1 = arith.constant 0 : i32
    return %c0_i32, %c0_i32_0 : i32, i32
  }
  func.func @transform_6(%arg0: i32, %arg1: i32) -> (i32, i32) {
    %c0_i32 = arith.constant 0 : i32
    %c0_i32_0 = arith.constant 0 : i32
    %c0_i32_1 = arith.constant 0 : i32
    return %c0_i32, %c0_i32_0 : i32, i32
  }
  func.func @transform_7(%arg0: i32, %arg1: i32) -> (i32, i32) {
    %c0_i32 = arith.constant 0 : i32
    %c0_i32_0 = arith.constant 0 : i32
    %c0_i32_1 = arith.constant 0 : i32
    return %c0_i32, %c0_i32_0 : i32, i32
  }
  func.func @transform_8(%arg0: i32, %arg1: i32) -> (i32, i32) {
    %c0_i32 = arith.constant 0 : i32
    %c0_i32_0 = arith.constant 0 : i32
    %c0_i32_1 = arith.constant 0 : i32
    return %c0_i32, %c0_i32_0 : i32, i32
  }
  func.func @transform_9(%arg0: i32, %arg1: i32) -> (i32, i32, i32) {
    %c0_i32 = arith.constant 0 : i32
    %c0_i32_0 = arith.constant 0 : i32
    return %arg0, %arg1, %c0_i32 : i32, i32, i32
  }
  func.func @transform_10(%arg0: i32, %arg1: i32) -> (i32, i32, i32) {
    %c0_i32 = arith.constant 0 : i32
    %c0_i32_0 = arith.constant 0 : i32
    return %arg0, %arg1, %c0_i32 : i32, i32, i32
  }
  func.func @transform_11(%arg0: i32, %arg1: i32) -> (i32, i32, i32) {
    %c0_i32 = arith.constant 0 : i32
    %c0_i32_0 = arith.constant 0 : i32
    return %arg0, %arg1, %c0_i32 : i32, i32, i32
  }
}

module attributes {stable_mosaic.version = 11 : i64} {
  func.func @_stats_kernel(%arg0: i32, %arg1: i32, %arg2: memref<1x512x128xf32, #tpu.memory_space<vmem>>, %arg3: memref<128x32xf32, #tpu.memory_space<vmem>>, %arg4: memref<32x128xf32, #tpu.memory_space<vmem>>, %arg5: memref<1x128xf32, #tpu.memory_space<vmem>>, %arg6: memref<1x128xf32, #tpu.memory_space<vmem>>, %arg7: memref<1x1x128xf32, #tpu.memory_space<vmem>>, %arg8: memref<1x1x128xf32, #tpu.memory_space<vmem>>, %arg9: memref<1x128xf32, #tpu.memory_space<vmem>>, %arg10: memref<1x128xf32, #tpu.memory_space<vmem>>) attributes {dimension_semantics = [#tpu.dimension_semantics<parallel>, #tpu.dimension_semantics<arbitrary>], iteration_bounds = array<i64: 2, 2>, scalar_prefetch = 0 : i64, scratch_operands = 2 : i64, tpu.core_type = #tpu.core_type<tc>, window_params = [{transform_indices = @transform_0, window_bounds = array<i64: 1, 512, 128>}, {pipeline_mode = #tpu.pipeline_mode<synchronous>, transform_indices = @transform_1, window_bounds = array<i64: 128, 32>}, {pipeline_mode = #tpu.pipeline_mode<synchronous>, transform_indices = @transform_2, window_bounds = array<i64: 32, 128>}, {pipeline_mode = #tpu.pipeline_mode<synchronous>, transform_indices = @transform_3, window_bounds = array<i64: 1, 128>}, {pipeline_mode = #tpu.pipeline_mode<synchronous>, transform_indices = @transform_4, window_bounds = array<i64: 1, 128>}, {transform_indices = @transform_5, window_bounds = array<i64: 1, 1, 128>}, {transform_indices = @transform_6, window_bounds = array<i64: 1, 1, 128>}]} {
    %c0_i32 = arith.constant 0 : i32
    %0 = arith.cmpi eq, %arg1, %c0_i32 : i32
    %1 = arith.extui %0 : i1 to i32
    %c0_i32_0 = arith.constant 0 : i32
    %2 = arith.cmpi ne, %1, %c0_i32_0 : i32
    scf.if %2 {
      %cst_13 = arith.constant 0.000000e+00 : f32
      %19 = vector.broadcast %cst_13 : f32 to vector<1x128xf32>
      %c0_14 = arith.constant 0 : index
      %c0_15 = arith.constant 0 : index
      %20 = vector.load %arg9[%c0_14, %c0_15] : memref<1x128xf32, #tpu.memory_space<vmem>>, vector<1x128xf32>
      tpu.vector_store %arg9[%c0_14, %c0_15], %19 {strides = array<i32>} : memref<1x128xf32, #tpu.memory_space<vmem>>, vector<1x128xf32>,
      %cst_16 = arith.constant 0.000000e+00 : f32
      %21 = vector.broadcast %cst_16 : f32 to vector<1x128xf32>
      %c0_17 = arith.constant 0 : index
      %c0_18 = arith.constant 0 : index
      %22 = vector.load %arg10[%c0_17, %c0_18] : memref<1x128xf32, #tpu.memory_space<vmem>>, vector<1x128xf32>
      tpu.vector_store %arg10[%c0_17, %c0_18], %21 {strides = array<i32>} : memref<1x128xf32, #tpu.memory_space<vmem>>, vector<1x128xf32>,
    } else {
    }
    %c0 = arith.constant 0 : index
    %c0_1 = arith.constant 0 : index
    %c0_2 = arith.constant 0 : index
    %3 = vector.load %arg2[%c0, %c0_1, %c0_2] : memref<1x512x128xf32, #tpu.memory_space<vmem>>, vector<1x512x128xf32>
    %4 = vector.shape_cast %3 : vector<1x512x128xf32> to vector<512x128xf32>
    %c0_3 = arith.constant 0 : index
    %c0_4 = arith.constant 0 : index
    %5 = vector.load %arg9[%c0_3, %c0_4] : memref<1x128xf32, #tpu.memory_space<vmem>>, vector<1x128xf32>
    %cst = arith.constant dense<0.000000e+00> : vector<128xf32>
    %6 = vector.multi_reduction <add>, %4, %cst [0] : vector<512x128xf32> to vector<128xf32>
    %7 = vector.shape_cast %6 : vector<128xf32> to vector<1x128xf32>
    %8 = arith.addf %5, %7 : vector<1x128xf32>
    %c0_5 = arith.constant 0 : index
    %c0_6 = arith.constant 0 : index
    %9 = vector.load %arg9[%c0_5, %c0_6] : memref<1x128xf32, #tpu.memory_space<vmem>>, vector<1x128xf32>
    tpu.vector_store %arg9[%c0_5, %c0_6], %8 {strides = array<i32>} : memref<1x128xf32, #tpu.memory_space<vmem>>, vector<1x128xf32>,
    %c0_7 = arith.constant 0 : index
    %c0_8 = arith.constant 0 : index
    %10 = vector.load %arg10[%c0_7, %c0_8] : memref<1x128xf32, #tpu.memory_space<vmem>>, vector<1x128xf32>
    %11 = arith.mulf %4, %4 : vector<512x128xf32>
    %cst_9 = arith.constant dense<0.000000e+00> : vector<128xf32>
    %12 = vector.multi_reduction <add>, %11, %cst_9 [0] : vector<512x128xf32> to vector<128xf32>
    %13 = vector.shape_cast %12 : vector<128xf32> to vector<1x128xf32>
    %14 = arith.addf %10, %13 : vector<1x128xf32>
    %c0_10 = arith.constant 0 : index
    %c0_11 = arith.constant 0 : index
    %15 = vector.load %arg10[%c0_10, %c0_11] : memref<1x128xf32, #tpu.memory_space<vmem>>, vector<1x128xf32>
    tpu.vector_store %arg10[%c0_10, %c0_11], %14 {strides = array<i32>} : memref<1x128xf32, #tpu.memory_space<vmem>>, vector<1x128xf32>,
    %c1_i32 = arith.constant 1 : i32
    %16 = arith.cmpi eq, %arg1, %c1_i32 : i32
    %17 = arith.extui %16 : i1 to i32
    %c0_i32_12 = arith.constant 0 : i32
    %18 = arith.cmpi ne, %17, %c0_i32_12 : i32
    scf.if %18 {
      %c0_13 = arith.constant 0 : index
      %c0_14 = arith.constant 0 : index
      %19 = vector.load %arg3[%c0_13, %c0_14] : memref<128x32xf32, #tpu.memory_space<vmem>>, vector<128x32xf32>
      %c0_15 = arith.constant 0 : index
      %c0_16 = arith.constant 0 : index
      %20 = vector.load %arg9[%c0_15, %c0_16] : memref<1x128xf32, #tpu.memory_space<vmem>>, vector<1x128xf32>
      %cst_17 = arith.constant dense<0.000000e+00> : vector<1x32xf32>
      %21 = tpu.matmul %20, %19, %cst_17 {dimension_numbers = #tpu.dot_dimension_numbers<[1], [0], [0], [1], [0, 0, 1, 1], [], []>} : vector<1x128xf32>, vector<128x32xf32>, vector<1x32xf32> -> vector<1x32xf32>
      %c0_18 = arith.constant 0 : index
      %c0_19 = arith.constant 0 : index
      %22 = vector.load %arg10[%c0_18, %c0_19] : memref<1x128xf32, #tpu.memory_space<vmem>>, vector<1x128xf32>
      %cst_20 = arith.constant dense<0.000000e+00> : vector<1x32xf32>
      %23 = tpu.matmul %22, %19, %cst_20 {dimension_numbers = #tpu.dot_dimension_numbers<[1], [0], [0], [1], [0, 0, 1, 1], [], []>} : vector<1x128xf32>, vector<128x32xf32>, vector<1x32xf32> -> vector<1x32xf32>
      %cst_21 = arith.constant 2.44140625E-4 : f32
      %24 = vector.broadcast %cst_21 : f32 to vector<1x32xf32>
      %25 = arith.mulf %21, %24 : vector<1x32xf32>
      %cst_22 = arith.constant 2.44140625E-4 : f32
      %26 = vector.broadcast %cst_22 : f32 to vector<1x32xf32>
      %27 = arith.mulf %23, %26 : vector<1x32xf32>
      %28 = arith.mulf %25, %25 : vector<1x32xf32>
      %29 = arith.subf %27, %28 : vector<1x32xf32>
      %cst_23 = arith.constant 0.000000e+00 : f32
      %30 = vector.broadcast %cst_23 : f32 to vector<1x32xf32>
      %31 = arith.maximumf %29, %30 : vector<1x32xf32>
      %cst_24 = arith.constant 9.99999997E-7 : f32
      %32 = vector.broadcast %cst_24 : f32 to vector<1x32xf32>
      %33 = arith.addf %31, %32 : vector<1x32xf32>
      %34 = math.rsqrt %33 : vector<1x32xf32>
      %c0_25 = arith.constant 0 : index
      %c0_26 = arith.constant 0 : index
      %35 = vector.load %arg4[%c0_25, %c0_26] : memref<32x128xf32, #tpu.memory_space<vmem>>, vector<32x128xf32>
      %cst_27 = arith.constant dense<0.000000e+00> : vector<1x128xf32>
      %36 = tpu.matmul %25, %35, %cst_27 {dimension_numbers = #tpu.dot_dimension_numbers<[1], [0], [0], [1], [0, 0, 1, 1], [], []>} : vector<1x32xf32>, vector<32x128xf32>, vector<1x128xf32> -> vector<1x128xf32>
      %c0_28 = arith.constant 0 : index
      %c0_29 = arith.constant 0 : index
      %37 = vector.load %arg4[%c0_28, %c0_29] : memref<32x128xf32, #tpu.memory_space<vmem>>, vector<32x128xf32>
      %cst_30 = arith.constant dense<0.000000e+00> : vector<1x128xf32>
      %38 = tpu.matmul %34, %37, %cst_30 {dimension_numbers = #tpu.dot_dimension_numbers<[1], [0], [0], [1], [0, 0, 1, 1], [], []>} : vector<1x32xf32>, vector<32x128xf32>, vector<1x128xf32> -> vector<1x128xf32>
      %c0_31 = arith.constant 0 : index
      %c0_32 = arith.constant 0 : index
      %39 = vector.load %arg5[%c0_31, %c0_32] : memref<1x128xf32, #tpu.memory_space<vmem>>, vector<1x128xf32>
      %40 = arith.mulf %39, %38 : vector<1x128xf32>
      %c0_33 = arith.constant 0 : index
      %c0_34 = arith.constant 0 : index
      %41 = vector.load %arg6[%c0_33, %c0_34] : memref<1x128xf32, #tpu.memory_space<vmem>>, vector<1x128xf32>
      %42 = arith.mulf %36, %40 : vector<1x128xf32>
      %43 = arith.subf %41, %42 : vector<1x128xf32>
      %c0_35 = arith.constant 0 : index
      %c0_36 = arith.constant 0 : index
      %c0_37 = arith.constant 0 : index
      %44 = vector.load %arg7[%c0_35, %c0_36, %c0_37] : memref<1x1x128xf32, #tpu.memory_space<vmem>>, vector<1x1x128xf32>
      %45 = vector.shape_cast %44 : vector<1x1x128xf32> to vector<1x128xf32>
      %46 = vector.shape_cast %40 : vector<1x128xf32> to vector<1x1x128xf32>
      tpu.vector_store %arg7[%c0_35, %c0_36, %c0_37], %46 {strides = array<i32>} : memref<1x1x128xf32, #tpu.memory_space<vmem>>, vector<1x1x128xf32>,
      %c0_38 = arith.constant 0 : index
      %c0_39 = arith.constant 0 : index
      %c0_40 = arith.constant 0 : index
      %47 = vector.load %arg8[%c0_38, %c0_39, %c0_40] : memref<1x1x128xf32, #tpu.memory_space<vmem>>, vector<1x1x128xf32>
      %48 = vector.shape_cast %47 : vector<1x1x128xf32> to vector<1x128xf32>
      %49 = vector.shape_cast %43 : vector<1x128xf32> to vector<1x1x128xf32>
      tpu.vector_store %arg8[%c0_38, %c0_39, %c0_40], %49 {strides = array<i32>} : memref<1x1x128xf32, #tpu.memory_space<vmem>>, vector<1x1x128xf32>,
    } else {
    }
    return
  }
  func.func @transform_0(%arg0: i32, %arg1: i32) -> (i32, i32, i32) {
    %c0_i32 = arith.constant 0 : i32
    %c0_i32_0 = arith.constant 0 : i32
    return %arg0, %arg1, %c0_i32 : i32, i32, i32
  }
  func.func @transform_1(%arg0: i32, %arg1: i32) -> (i32, i32) {
    %c0_i32 = arith.constant 0 : i32
    %c0_i32_0 = arith.constant 0 : i32
    %c0_i32_1 = arith.constant 0 : i32
    return %c0_i32, %c0_i32_0 : i32, i32
  }
  func.func @transform_2(%arg0: i32, %arg1: i32) -> (i32, i32) {
    %c0_i32 = arith.constant 0 : i32
    %c0_i32_0 = arith.constant 0 : i32
    %c0_i32_1 = arith.constant 0 : i32
    return %c0_i32, %c0_i32_0 : i32, i32
  }
  func.func @transform_3(%arg0: i32, %arg1: i32) -> (i32, i32) {
    %c0_i32 = arith.constant 0 : i32
    %c0_i32_0 = arith.constant 0 : i32
    %c0_i32_1 = arith.constant 0 : i32
    return %c0_i32, %c0_i32_0 : i32, i32
  }
  func.func @transform_4(%arg0: i32, %arg1: i32) -> (i32, i32) {
    %c0_i32 = arith.constant 0 : i32
    %c0_i32_0 = arith.constant 0 : i32
    %c0_i32_1 = arith.constant 0 : i32
    return %c0_i32, %c0_i32_0 : i32, i32
  }
  func.func @transform_5(%arg0: i32, %arg1: i32) -> (i32, i32, i32) {
    %c0_i32 = arith.constant 0 : i32
    %c0_i32_0 = arith.constant 0 : i32
    %c0_i32_1 = arith.constant 0 : i32
    return %arg0, %c0_i32, %c0_i32_0 : i32, i32, i32
  }
  func.func @transform_6(%arg0: i32, %arg1: i32) -> (i32, i32, i32) {
    %c0_i32 = arith.constant 0 : i32
    %c0_i32_0 = arith.constant 0 : i32
    %c0_i32_1 = arith.constant 0 : i32
    return %arg0, %c0_i32, %c0_i32_0 : i32, i32, i32
  }
}

module attributes {stable_mosaic.version = 11 : i64} {
  func.func @_flash_kernel(%arg0: i32, %arg1: i32, %arg2: i32, %arg3: memref<1x256x128xf32, #tpu.memory_space<vmem>>, %arg4: memref<1x1x128xf32, #tpu.memory_space<vmem>>, %arg5: memref<1x1x128xf32, #tpu.memory_space<vmem>>, %arg6: memref<1x256x128xbf16, #tpu.memory_space<vmem>>, %arg7: memref<1x256x128xbf16, #tpu.memory_space<vmem>>, %arg8: memref<1x256x128xbf16, #tpu.memory_space<vmem>>, %arg9: memref<128x128xbf16, #tpu.memory_space<vmem>>, %arg10: memref<1x128xf32, #tpu.memory_space<vmem>>, %arg11: memref<1x256x128xf32, #tpu.memory_space<vmem>>, %arg12: memref<256x1xf32, #tpu.memory_space<vmem>>, %arg13: memref<256x1xf32, #tpu.memory_space<vmem>>, %arg14: memref<256x128xf32, #tpu.memory_space<vmem>>) attributes {dimension_semantics = [#tpu.dimension_semantics<parallel>, #tpu.dimension_semantics<parallel>, #tpu.dimension_semantics<arbitrary>], iteration_bounds = array<i64: 2, 4, 4>, scalar_prefetch = 0 : i64, scratch_operands = 3 : i64, tpu.core_type = #tpu.core_type<tc>, window_params = [{transform_indices = @transform_0, window_bounds = array<i64: 1, 256, 128>}, {transform_indices = @transform_1, window_bounds = array<i64: 1, 1, 128>}, {transform_indices = @transform_2, window_bounds = array<i64: 1, 1, 128>}, {transform_indices = @transform_3, window_bounds = array<i64: 1, 256, 128>}, {transform_indices = @transform_4, window_bounds = array<i64: 1, 256, 128>}, {transform_indices = @transform_5, window_bounds = array<i64: 1, 256, 128>}, {pipeline_mode = #tpu.pipeline_mode<synchronous>, transform_indices = @transform_6, window_bounds = array<i64: 128, 128>}, {pipeline_mode = #tpu.pipeline_mode<synchronous>, transform_indices = @transform_7, window_bounds = array<i64: 1, 128>}, {transform_indices = @transform_8, window_bounds = array<i64: 1, 256, 128>}]} {
    %c0_i32 = arith.constant 0 : i32
    %0 = arith.cmpi eq, %arg2, %c0_i32 : i32
    %1 = arith.extui %0 : i1 to i32
    %c0_i32_0 = arith.constant 0 : i32
    %2 = arith.cmpi ne, %1, %c0_i32_0 : i32
    scf.if %2 {
      %cst_25 = arith.constant 0xFF800000 : f32
      %36 = vector.broadcast %cst_25 : f32 to vector<256x1xf32>
      %c0_26 = arith.constant 0 : index
      %c0_27 = arith.constant 0 : index
      %37 = vector.load %arg12[%c0_26, %c0_27] : memref<256x1xf32, #tpu.memory_space<vmem>>, vector<256x1xf32>
      tpu.vector_store %arg12[%c0_26, %c0_27], %36 {strides = array<i32>} : memref<256x1xf32, #tpu.memory_space<vmem>>, vector<256x1xf32>,
      %cst_28 = arith.constant 0.000000e+00 : f32
      %38 = vector.broadcast %cst_28 : f32 to vector<256x1xf32>
      %c0_29 = arith.constant 0 : index
      %c0_30 = arith.constant 0 : index
      %39 = vector.load %arg13[%c0_29, %c0_30] : memref<256x1xf32, #tpu.memory_space<vmem>>, vector<256x1xf32>
      tpu.vector_store %arg13[%c0_29, %c0_30], %38 {strides = array<i32>} : memref<256x1xf32, #tpu.memory_space<vmem>>, vector<256x1xf32>,
      %cst_31 = arith.constant 0.000000e+00 : f32
      %40 = vector.broadcast %cst_31 : f32 to vector<256x128xf32>
      %c0_32 = arith.constant 0 : index
      %c0_33 = arith.constant 0 : index
      %41 = vector.load %arg14[%c0_32, %c0_33] : memref<256x128xf32, #tpu.memory_space<vmem>>, vector<256x128xf32>
      tpu.vector_store %arg14[%c0_32, %c0_33], %40 {strides = array<i32>} : memref<256x128xf32, #tpu.memory_space<vmem>>, vector<256x128xf32>,
    } else {
    }
    %c0 = arith.constant 0 : index
    %c0_1 = arith.constant 0 : index
    %c0_2 = arith.constant 0 : index
    %3 = vector.load %arg6[%c0, %c0_1, %c0_2] : memref<1x256x128xbf16, #tpu.memory_space<vmem>>, vector<1x256x128xbf16>
    %4 = vector.shape_cast %3 : vector<1x256x128xbf16> to vector<256x128xbf16>
    %c0_3 = arith.constant 0 : index
    %c0_4 = arith.constant 0 : index
    %c0_5 = arith.constant 0 : index
    %5 = vector.load %arg7[%c0_3, %c0_4, %c0_5] : memref<1x256x128xbf16, #tpu.memory_space<vmem>>, vector<1x256x128xbf16>
    %6 = vector.shape_cast %5 : vector<1x256x128xbf16> to vector<256x128xbf16>
    %cst = arith.constant dense<0.000000e+00> : vector<256x256xf32>
    %7 = tpu.matmul %4, %6, %cst {dimension_numbers = #tpu.dot_dimension_numbers<[1], [1], [0], [0], [0, 0, 1, 0], [], []>} : vector<256x128xbf16>, vector<256x128xbf16>, vector<256x256xf32> -> vector<256x256xf32>
    %c0_6 = arith.constant 0 : index
    %c0_7 = arith.constant 0 : index
    %8 = vector.load %arg12[%c0_6, %c0_7] : memref<256x1xf32, #tpu.memory_space<vmem>>, vector<256x1xf32>
    %cst_8 = arith.constant dense<0xFF800000> : vector<256xf32>
    %9 = vector.multi_reduction <maximumf>, %7, %cst_8 [1] : vector<256x256xf32> to vector<256xf32>
    %10 = vector.shape_cast %9 : vector<256xf32> to vector<256x1xf32>
    %11 = arith.maximumf %8, %10 : vector<256x1xf32>
    %12 = arith.subf %8, %11 : vector<256x1xf32>
    %13 = math.exp %12 : vector<256x1xf32>
    %14 = vector.broadcast %11 : vector<256x1xf32> to vector<256x256xf32>
    %15 = arith.subf %7, %14 : vector<256x256xf32>
    %16 = math.exp %15 : vector<256x256xf32>
    %c0_9 = arith.constant 0 : index
    %c0_10 = arith.constant 0 : index
    %17 = vector.load %arg13[%c0_9, %c0_10] : memref<256x1xf32, #tpu.memory_space<vmem>>, vector<256x1xf32>
    %18 = arith.mulf %13, %17 : vector<256x1xf32>
    %cst_11 = arith.constant dense<0.000000e+00> : vector<256xf32>
    %19 = vector.multi_reduction <add>, %16, %cst_11 [1] : vector<256x256xf32> to vector<256xf32>
    %20 = vector.shape_cast %19 : vector<256xf32> to vector<256x1xf32>
    %21 = arith.addf %18, %20 : vector<256x1xf32>
    %c0_12 = arith.constant 0 : index
    %c0_13 = arith.constant 0 : index
    %22 = vector.load %arg13[%c0_12, %c0_13] : memref<256x1xf32, #tpu.memory_space<vmem>>, vector<256x1xf32>
    tpu.vector_store %arg13[%c0_12, %c0_13], %21 {strides = array<i32>} : memref<256x1xf32, #tpu.memory_space<vmem>>, vector<256x1xf32>,
    %c0_14 = arith.constant 0 : index
    %c0_15 = arith.constant 0 : index
    %23 = vector.load %arg14[%c0_14, %c0_15] : memref<256x128xf32, #tpu.memory_space<vmem>>, vector<256x128xf32>
    %24 = vector.broadcast %13 : vector<256x1xf32> to vector<256x128xf32>
    %25 = arith.mulf %24, %23 : vector<256x128xf32>
    %26 = arith.truncf %16 : vector<256x256xf32> to vector<256x256xbf16>
    %c0_16 = arith.constant 0 : index
    %c0_17 = arith.constant 0 : index
    %c0_18 = arith.constant 0 : index
    %27 = vector.load %arg8[%c0_16, %c0_17, %c0_18] : memref<1x256x128xbf16, #tpu.memory_space<vmem>>, vector<1x256x128xbf16>
    %28 = vector.shape_cast %27 : vector<1x256x128xbf16> to vector<256x128xbf16>
    %cst_19 = arith.constant dense<0.000000e+00> : vector<256x128xf32>
    %29 = tpu.matmul %26, %28, %cst_19 {dimension_numbers = #tpu.dot_dimension_numbers<[1], [0], [0], [1], [0, 0, 1, 1], [], []>} : vector<256x256xbf16>, vector<256x128xbf16>, vector<256x128xf32> -> vector<256x128xf32>
    %30 = arith.addf %25, %29 : vector<256x128xf32>
    %c0_20 = arith.constant 0 : index
    %c0_21 = arith.constant 0 : index
    %31 = vector.load %arg14[%c0_20, %c0_21] : memref<256x128xf32, #tpu.memory_space<vmem>>, vector<256x128xf32>
    tpu.vector_store %arg14[%c0_20, %c0_21], %30 {strides = array<i32>} : memref<256x128xf32, #tpu.memory_space<vmem>>, vector<256x128xf32>,
    %c0_22 = arith.constant 0 : index
    %c0_23 = arith.constant 0 : index
    %32 = vector.load %arg12[%c0_22, %c0_23] : memref<256x1xf32, #tpu.memory_space<vmem>>, vector<256x1xf32>
    tpu.vector_store %arg12[%c0_22, %c0_23], %11 {strides = array<i32>} : memref<256x1xf32, #tpu.memory_space<vmem>>, vector<256x1xf32>,
    %c3_i32 = arith.constant 3 : i32
    %33 = arith.cmpi eq, %arg2, %c3_i32 : i32
    %34 = arith.extui %33 : i1 to i32
    %c0_i32_24 = arith.constant 0 : i32
    %35 = arith.cmpi ne, %34, %c0_i32_24 : i32
    scf.if %35 {
      %c0_25 = arith.constant 0 : index
      %c0_26 = arith.constant 0 : index
      %36 = vector.load %arg14[%c0_25, %c0_26] : memref<256x128xf32, #tpu.memory_space<vmem>>, vector<256x128xf32>
      %c0_27 = arith.constant 0 : index
      %c0_28 = arith.constant 0 : index
      %37 = vector.load %arg13[%c0_27, %c0_28] : memref<256x1xf32, #tpu.memory_space<vmem>>, vector<256x1xf32>
      %38 = tpu.reciprocal %37 {approx = true} : vector<256x1xf32> -> vector<256x1xf32>
      %39 = vector.broadcast %38 : vector<256x1xf32> to vector<256x128xf32>
      %40 = arith.mulf %36, %39 : vector<256x128xf32>
      %c0_29 = arith.constant 0 : index
      %c0_30 = arith.constant 0 : index
      %c0_31 = arith.constant 0 : index
      %41 = vector.load %arg3[%c0_29, %c0_30, %c0_31] : memref<1x256x128xf32, #tpu.memory_space<vmem>>, vector<1x256x128xf32>
      %42 = vector.shape_cast %41 : vector<1x256x128xf32> to vector<256x128xf32>
      %c0_32 = arith.constant 0 : index
      %c0_33 = arith.constant 0 : index
      %c0_34 = arith.constant 0 : index
      %43 = vector.load %arg4[%c0_32, %c0_33, %c0_34] : memref<1x1x128xf32, #tpu.memory_space<vmem>>, vector<1x1x128xf32>
      %44 = vector.shape_cast %43 : vector<1x1x128xf32> to vector<1x128xf32>
      %45 = vector.broadcast %44 : vector<1x128xf32> to vector<256x128xf32>
      %46 = arith.mulf %42, %45 : vector<256x128xf32>
      %c0_35 = arith.constant 0 : index
      %c0_36 = arith.constant 0 : index
      %c0_37 = arith.constant 0 : index
      %47 = vector.load %arg5[%c0_35, %c0_36, %c0_37] : memref<1x1x128xf32, #tpu.memory_space<vmem>>, vector<1x1x128xf32>
      %48 = vector.shape_cast %47 : vector<1x1x128xf32> to vector<1x128xf32>
      %49 = vector.broadcast %48 : vector<1x128xf32> to vector<256x128xf32>
      %50 = arith.addf %46, %49 : vector<256x128xf32>
      %51 = arith.truncf %40 : vector<256x128xf32> to vector<256x128xbf16>
      %c0_38 = arith.constant 0 : index
      %c0_39 = arith.constant 0 : index
      %52 = vector.load %arg9[%c0_38, %c0_39] : memref<128x128xbf16, #tpu.memory_space<vmem>>, vector<128x128xbf16>
      %cst_40 = arith.constant dense<0.000000e+00> : vector<256x128xf32>
      %53 = tpu.matmul %51, %52, %cst_40 {dimension_numbers = #tpu.dot_dimension_numbers<[1], [0], [0], [1], [0, 0, 1, 1], [], []>} : vector<256x128xbf16>, vector<128x128xbf16>, vector<256x128xf32> -> vector<256x128xf32>
      %c0_41 = arith.constant 0 : index
      %c0_42 = arith.constant 0 : index
      %54 = vector.load %arg10[%c0_41, %c0_42] : memref<1x128xf32, #tpu.memory_space<vmem>>, vector<1x128xf32>
      %55 = vector.broadcast %54 : vector<1x128xf32> to vector<256x128xf32>
      %56 = arith.addf %53, %55 : vector<256x128xf32>
      %57 = arith.addf %50, %56 : vector<256x128xf32>
      %c0_43 = arith.constant 0 : index
      %c0_44 = arith.constant 0 : index
      %c0_45 = arith.constant 0 : index
      %58 = vector.load %arg11[%c0_43, %c0_44, %c0_45] : memref<1x256x128xf32, #tpu.memory_space<vmem>>, vector<1x256x128xf32>
      %59 = vector.shape_cast %58 : vector<1x256x128xf32> to vector<256x128xf32>
      %60 = vector.shape_cast %57 : vector<256x128xf32> to vector<1x256x128xf32>
      tpu.vector_store %arg11[%c0_43, %c0_44, %c0_45], %60 {strides = array<i32>} : memref<1x256x128xf32, #tpu.memory_space<vmem>>, vector<1x256x128xf32>,
    } else {
    }
    return
  }
  func.func @transform_0(%arg0: i32, %arg1: i32, %arg2: i32) -> (i32, i32, i32) {
    %c0_i32 = arith.constant 0 : i32
    %c0_i32_0 = arith.constant 0 : i32
    return %arg0, %arg1, %c0_i32 : i32, i32, i32
  }
  func.func @transform_1(%arg0: i32, %arg1: i32, %arg2: i32) -> (i32, i32, i32) {
    %c0_i32 = arith.constant 0 : i32
    %c0_i32_0 = arith.constant 0 : i32
    %c0_i32_1 = arith.constant 0 : i32
    return %arg0, %c0_i32, %c0_i32_0 : i32, i32, i32
  }
  func.func @transform_2(%arg0: i32, %arg1: i32, %arg2: i32) -> (i32, i32, i32) {
    %c0_i32 = arith.constant 0 : i32
    %c0_i32_0 = arith.constant 0 : i32
    %c0_i32_1 = arith.constant 0 : i32
    return %arg0, %c0_i32, %c0_i32_0 : i32, i32, i32
  }
  func.func @transform_3(%arg0: i32, %arg1: i32, %arg2: i32) -> (i32, i32, i32) {
    %c0_i32 = arith.constant 0 : i32
    %c0_i32_0 = arith.constant 0 : i32
    return %arg0, %arg1, %c0_i32 : i32, i32, i32
  }
  func.func @transform_4(%arg0: i32, %arg1: i32, %arg2: i32) -> (i32, i32, i32) {
    %c0_i32 = arith.constant 0 : i32
    %c0_i32_0 = arith.constant 0 : i32
    return %arg0, %arg2, %c0_i32 : i32, i32, i32
  }
  func.func @transform_5(%arg0: i32, %arg1: i32, %arg2: i32) -> (i32, i32, i32) {
    %c0_i32 = arith.constant 0 : i32
    %c0_i32_0 = arith.constant 0 : i32
    return %arg0, %arg2, %c0_i32 : i32, i32, i32
  }
  func.func @transform_6(%arg0: i32, %arg1: i32, %arg2: i32) -> (i32, i32) {
    %c0_i32 = arith.constant 0 : i32
    %c0_i32_0 = arith.constant 0 : i32
    %c0_i32_1 = arith.constant 0 : i32
    return %c0_i32, %c0_i32_0 : i32, i32
  }
  func.func @transform_7(%arg0: i32, %arg1: i32, %arg2: i32) -> (i32, i32) {
    %c0_i32 = arith.constant 0 : i32
    %c0_i32_0 = arith.constant 0 : i32
    %c0_i32_1 = arith.constant 0 : i32
    return %c0_i32, %c0_i32_0 : i32, i32
  }
  func.func @transform_8(%arg0: i32, %arg1: i32, %arg2: i32) -> (i32, i32, i32) {
    %c0_i32 = arith.constant 0 : i32
    %c0_i32_0 = arith.constant 0 : i32
    return %arg0, %arg1, %c0_i32 : i32, i32, i32
  }
}

</mosaic_0001>

<bundles_post_ra>
// kernel: attn_block_4d.3
= control target key start
LH: loop header
LB: loop body
LE: loop exit
PB: predicated region body
PF: predicated region fallthrough
CT: control target
= control target key end

     0   :  { %s1314_s21 = smov 0   ;;  %s1316_s22 = smov 0   ;;  %s1548_s0 = inlined_call_operand.vmem [shape: f32[2,1024,128], index: 0, kind: input, shape index: {}]   ;;  %s1549_s1 = inlined_call_operand.vmem [shape: f32[128,32], index: 1, kind: input, shape index: {}]   ;;  %s1550_s2 = inlined_call_operand.vmem [shape: f32[32,128], index: 2, kind: input, shape index: {}]   ;;  %s1551_s3 = inlined_call_operand.vmem [shape: f32[1,128], index: 3, kind: input, shape index: {}]   ;;  %s1552_s4 = inlined_call_operand.vmem [shape: f32[1,128], index: 4, kind: input, shape index: {}]   ;;  %s1553_s5 = inlined_call_operand.vmem [shape: f32[2,1,128], index: 5, kind: output, shape index: {0}]   ;;  %s1554_s6 = inlined_call_operand.vmem [shape: f32[2,1,128], index: 6, kind: output, shape index: {1}]  }
   0x1   :  { %s1318_s23 = smov 0   ;;  %s1320_s24 = smov 0  }
   0x2   :  { %s1322_s25 = smov 0  }
   0x3 LB: > { %s26_s26 = sadd.s32 1, %s1265_s23  ;;  %s29_s27 = sadd.s32 1, %s1269_s24  ;;  %s1273_s25 = sphi %s1322_s25, %s17_s25   ;;  %s1269_s24 = sphi %s1320_s24, %s1558_s24   ;;  %s1265_s23 = sphi %s1318_s23, %s1557_s23   ;;  %s1261_s22 = sphi %s1316_s22, %s1556_s22   ;;  %s1257_s21 = sphi %s1314_s21, %s1555_s21  }
   0x4   : > { %p27_p0 = scmp.ge.s32.totalorder %s26_s26, 2  ;;  %p983_p1 = scmp.ge.s32.totalorder %s1273_s25, 1 }
   0x5   : > { %p234_p2 = scmp.lt.s32.totalorder %s1273_s25, 5 }
   0x6   : > { %s1560_s26 = smov (%p27_p0, %s26_s26), 0  ;;  %s1562_s27 = smov (!%p27_p0, %s29_s27), %s1269_s24 }
   0x7   : > { %p235_p3 = pnand %p983_p1, %p234_p2  ;;  %p31_p4 = scmp.ge.s32.totalorder %s1562_s27, 2 }
   0x8   : > { %s984_s28 = sshll.u32 (!%p235_p3), %s1257_s21, 6  ;;  %p270_p5 = scmp.lt.s32.totalorder (!%p235_p3), %s1261_s22, 1 }
   0x9   : > { %s1564_s27 = smov (%p31_p4, %s1562_s27), 0  ;;  %238 = sbr.rel (%p235_p3) target bundleno = 627 (0x273), region = 40 }
   0xa   : > { %p272_p6 = scmp.lt.s32.totalorder (!%p235_p3), %s984_s28, 127  ;;  %p987_p7 = scmp.ne.s32.totalorder (!%p235_p3), %s1257_s21, 0 }
  0x10   : > { %s1566_s22 = smov (!%p270_p5, %s1261_s22), 1  ;;  %s1568_s28 = smov (!%p272_p6, %s984_s28), 127 }
  0x11   : > { %s985_s29 = sshll.u32 %s1566_s22, 7  ;;  %s281_s8 = scalar_lea.vmem %s1553_s5, %s1566_s22  ;;  %v1275_v0 = vmov (!%p987_p7), 0.0  }
  0x12   : > { %s275_s9 = sadd.s32 %s985_s29, %s1568_s28  ;;  %s284_s12 = scalar_lea.vmem %s1554_s6, %s1566_s22  ;;  %289 = vst [vmem:[#allocation2] sm:$0x1] (!%p987_p7), %v1275_v0  ;;  %290 = vst [vmem:[#allocation3] sm:$0x1] (!%p987_p7), %v1275_v0 }
  0x13   : > { %s986_s13 = sshll.u32 %s275_s9, 3  ;;  %288 = sbr.rel (%p987_p7) target bundleno = 26 (0x1a), region = 44 }
  0x14   : > { %s1361_s16 = scalar_lea.vmem %s1548_s0, %s986_s13 }
  0x1a PF: > { %v291_v1 = vld [vmem:[%s1361_s16] sm:$0xff]  ;;  %v292_v2 = vld [vmem:[%s1361_s16 + $0x8] sm:$0xff]  ;;  %v293_v3 = vld [vmem:[%s1361_s16 + $0x10] sm:$0xff]  ;;  %p988_p8 = scmp.ne.s32.totalorder %s1257_s21, 1 }
  0x1b   : > { %v294_v4 = vld [vmem:[%s1361_s16 + $0x18] sm:$0xff]  ;;  %v356_v5 = vadd.f32 %v292_v2, %v291_v1  ;;  %v428_v6 = vmul.f32 %v291_v1, %v291_v1  ;;  %v429_v7 = vmul.f32 %v292_v2, %v292_v2  ;;  %v430_v8 = vmul.f32 %v293_v3, %v293_v3  ;;  %v295_v9 = vld [vmem:[%s1361_s16 + $0x20] sm:$0xff]  ;;  %v296_v13 = vld [vmem:[%s1361_s16 + $0x28] sm:$0xff] }
  0x1c   : > { %v431_v11 = vmul.f32 %v294_v4, %v294_v4  ;;  %v432_v15 = vmul.f32 %v295_v9, %v295_v9  ;;  %v297_v17 = vld [vmem:[%s1361_s16 + $0x30] sm:$0xff]  ;;  %v433_v19 = vmul.f32 %v296_v13, %v296_v13  ;;  %v298_v21 = vld [vmem:[%s1361_s16 + $0x38] sm:$0xff]  ;;  %v299_v25 = vld [vmem:[%s1361_s16 + $0x40] sm:$0xff]  ;;  %vm1277_vm0 = vmmov (!%p988_p8), 0  }
  0x1d   : > { %v357_v10 = vadd.f32 %v356_v5, %v293_v3  ;;  %v492_v12 = vadd.f32 %v429_v7, %v428_v6  ;;  %v434_v23 = vmul.f32 %v297_v17, %v297_v17  ;;  %v435_v27 = vmul.f32 %v298_v21, %v298_v21  ;;  %v300_v29 = vld [vmem:[%s1361_s16 + $0x48] sm:$0xff]  ;;  %v301_v33 = vld [vmem:[%s1361_s16 + $0x50] sm:$0xff]  ;;  %v302_v37 = vld [vmem:[%s1361_s16 + $0x58] sm:$0xff] }
  0x1e   : > { %v436_v31 = vmul.f32 %v299_v25, %v299_v25  ;;  %v437_v35 = vmul.f32 %v300_v29, %v300_v29  ;;  %v438_v39 = vmul.f32 %v301_v33, %v301_v33  ;;  %v303_v41 = vld [vmem:[%s1361_s16 + $0x60] sm:$0xff]  ;;  %v439_v43 = vmul.f32 %v302_v37, %v302_v37  ;;  %v304_v45 = vld [vmem:[%s1361_s16 + $0x68] sm:$0xff]  ;;  %v305_v49 = vld [vmem:[%s1361_s16 + $0x70] sm:$0xff] }
  0x1f   : > { %v358_v14 = vadd.f32 %v357_v10, %v294_v4  ;;  %v493_v16 = vadd.f32 %v492_v12, %v430_v8  ;;  %v440_v47 = vmul.f32 %v303_v41, %v303_v41  ;;  %v441_v51 = vmul.f32 %v304_v45, %v304_v45  ;;  %v306_v53 = vld [vmem:[%s1361_s16 + $0x78] sm:$0xff]  ;;  %v307_v57 = vld [vmem:[%s1361_s16 + $0x80] sm:$0xff]  ;;  %v308_v61 = vld [vmem:[%s1361_s16 + $0x88] sm:$0xff] }
  0x20   : > { %v442_v55 = vmul.f32 %v305_v49, %v305_v49  ;;  %v443_v59 = vmul.f32 %v306_v53, %v306_v53  ;;  %v444_v63 = vmul.f32 %v307_v57, %v307_v57  ;;  %v309_v1 = vld [vmem:[%s1361_s16 + $0x90] sm:$0xff]  ;;  %v445_v3 = vmul.f32 %v308_v61, %v308_v61  ;;  %v310_v5 = vld [vmem:[%s1361_s16 + $0x98] sm:$0xff] }
  0x21   : > { %v359_v18 = vadd.f32 %v358_v14, %v295_v9  ;;  %v494_v20 = vadd.f32 %v493_v16, %v431_v11  ;;  %v446_v7 = vmul.f32 %v309_v1, %v309_v1  ;;  %v311_v9 = vld [vmem:[%s1361_s16 + $0xa0] sm:$0xff]  ;;  %v447_v11 = vmul.f32 %v310_v5, %v310_v5 }
  0x22   : > { %vm736_vm1 = vcmask (!%p988_p8), 261120  }
  0x23   : > { %v360_v22 = vadd.f32 %v359_v18, %v296_v13  ;;  %v495_v24 = vadd.f32 %v494_v20, %v432_v15  ;;  %v312_v13 = vld [vmem:[%s1361_s16 + $0xa8] sm:$0xff]  ;;  %v448_v15 = vmul.f32 %v311_v9, %v311_v9 }
  0x25   : > { %v361_v26 = vadd.f32 %v360_v22, %v297_v17  ;;  %v496_v28 = vadd.f32 %v495_v24, %v433_v19  ;;  %v313_v17 = vld [vmem:[%s1361_s16 + $0xb0] sm:$0xff]  ;;  %v449_v19 = vmul.f32 %v312_v13, %v312_v13 }
  0x27   : > { %v362_v30 = vadd.f32 %v361_v26, %v298_v21  ;;  %v497_v32 = vadd.f32 %v496_v28, %v434_v23  ;;  %v314_v21 = vld [vmem:[%s1361_s16 + $0xb8] sm:$0xff]  ;;  %v450_v23 = vmul.f32 %v313_v17, %v313_v17 }
  0x29   : > { %v363_v34 = vadd.f32 %v362_v30, %v299_v25  ;;  %v498_v36 = vadd.f32 %v497_v32, %v435_v27  ;;  %v315_v25 = vld [vmem:[%s1361_s16 + $0xc0] sm:$0xff]  ;;  %v451_v27 = vmul.f32 %v314_v21, %v314_v21 }
  0x2b   : > { %v364_v38 = vadd.f32 %v363_v34, %v300_v29  ;;  %v499_v40 = vadd.f32 %v498_v36, %v436_v31  ;;  %v316_v29 = vld [vmem:[%s1361_s16 + $0xc8] sm:$0xff]  ;;  %v452_v31 = vmul.f32 %v315_v25, %v315_v25 }
  0x2d   : > { %v365_v42 = vadd.f32 %v364_v38, %v301_v33  ;;  %v500_v44 = vadd.f32 %v499_v40, %v437_v35  ;;  %v317_v33 = vld [vmem:[%s1361_s16 + $0xd0] sm:$0xff]  ;;  %v453_v35 = vmul.f32 %v316_v29, %v316_v29 }
  0x2f   : > { %v366_v46 = vadd.f32 %v365_v42, %v302_v37  ;;  %v501_v48 = vadd.f32 %v500_v44, %v438_v39  ;;  %v318_v37 = vld [vmem:[%s1361_s16 + $0xd8] sm:$0xff]  ;;  %v454_v39 = vmul.f32 %v317_v33, %v317_v33 }
  0x31   : > { %v367_v50 = vadd.f32 %v366_v46, %v303_v41  ;;  %v502_v52 = vadd.f32 %v501_v48, %v439_v43  ;;  %v319_v41 = vld [vmem:[%s1361_s16 + $0xe0] sm:$0xff]  ;;  %v455_v43 = vmul.f32 %v318_v37, %v318_v37 }
  0x33   : > { %v368_v54 = vadd.f32 %v367_v50, %v304_v45  ;;  %v503_v56 = vadd.f32 %v502_v52, %v440_v47  ;;  %v320_v45 = vld [vmem:[%s1361_s16 + $0xe8] sm:$0xff]  ;;  %v456_v47 = vmul.f32 %v319_v41, %v319_v41 }
  0x35   : > { %v369_v58 = vadd.f32 %v368_v54, %v305_v49  ;;  %v504_v60 = vadd.f32 %v503_v56, %v441_v51  ;;  %v321_v49 = vld [vmem:[%s1361_s16 + $0xf0] sm:$0xff]  ;;  %v457_v51 = vmul.f32 %v320_v45, %v320_v45 }
  0x37   : > { %v370_v62 = vadd.f32 %v369_v58, %v306_v53  ;;  %v505_v0 = vadd.f32 %v504_v60, %v442_v55  ;;  %v322_v53 = vld [vmem:[%s1361_s16 + $0xf8] sm:$0xff]  ;;  %v458_v55 = vmul.f32 %v321_v49, %v321_v49 }
  0x39   : > { %v371_v2 = vadd.f32 %v370_v62, %v307_v57  ;;  %v506_v4 = vadd.f32 %v505_v0, %v443_v59  ;;  %v323_v57 = vld [vmem:[%s1361_s16 + $0x100] sm:$0xff]  ;;  %v459_v59 = vmul.f32 %v322_v53, %v322_v53 }
  0x3b   : > { %v372_v6 = vadd.f32 %v371_v2, %v308_v61  ;;  %v507_v8 = vadd.f32 %v506_v4, %v444_v63  ;;  %v324_v61 = vld [vmem:[%s1361_s16 + $0x108] sm:$0xff]  ;;  %v460_v63 = vmul.f32 %v323_v57, %v323_v57 }
  0x3d   : > { %v373_v10 = vadd.f32 %v372_v6, %v309_v1  ;;  %v508_v12 = vadd.f32 %v507_v8, %v445_v3  ;;  %v325_v1 = vld [vmem:[%s1361_s16 + $0x110] sm:$0xff]  ;;  %v461_v3 = vmul.f32 %v324_v61, %v324_v61 }
  0x3f   : > { %v374_v14 = vadd.f32 %v373_v10, %v310_v5  ;;  %v509_v16 = vadd.f32 %v508_v12, %v446_v7  ;;  %v326_v5 = vld [vmem:[%s1361_s16 + $0x118] sm:$0xff]  ;;  %v462_v7 = vmul.f32 %v325_v1, %v325_v1 }
  0x41   : > { %v375_v18 = vadd.f32 %v374_v14, %v311_v9  ;;  %v510_v20 = vadd.f32 %v509_v16, %v447_v11  ;;  %v327_v9 = vld [vmem:[%s1361_s16 + $0x120] sm:$0xff]  ;;  %v463_v11 = vmul.f32 %v326_v5, %v326_v5 }
  0x43   : > { %v376_v22 = vadd.f32 %v375_v18, %v312_v13  ;;  %v511_v24 = vadd.f32 %v510_v20, %v448_v15  ;;  %v328_v13 = vld [vmem:[%s1361_s16 + $0x128] sm:$0xff]  ;;  %v464_v15 = vmul.f32 %v327_v9, %v327_v9 }
  0x45   : > { %v377_v26 = vadd.f32 %v376_v22, %v313_v17  ;;  %v512_v28 = vadd.f32 %v511_v24, %v449_v19  ;;  %v329_v17 = vld [vmem:[%s1361_s16 + $0x130] sm:$0xff]  ;;  %v465_v19 = vmul.f32 %v328_v13, %v328_v13 }
  0x47   : > { %v378_v30 = vadd.f32 %v377_v26, %v314_v21  ;;  %v513_v32 = vadd.f32 %v512_v28, %v450_v23  ;;  %v330_v21 = vld [vmem:[%s1361_s16 + $0x138] sm:$0xff]  ;;  %v466_v23 = vmul.f32 %v329_v17, %v329_v17 }
  0x49   : > { %v379_v34 = vadd.f32 %v378_v30, %v315_v25  ;;  %v514_v36 = vadd.f32 %v513_v32, %v451_v27  ;;  %v331_v25 = vld [vmem:[%s1361_s16 + $0x140] sm:$0xff]  ;;  %v467_v27 = vmul.f32 %v330_v21, %v330_v21 }
  0x4b   : > { %v380_v38 = vadd.f32 %v379_v34, %v316_v29  ;;  %v515_v40 = vadd.f32 %v514_v36, %v452_v31  ;;  %v332_v29 = vld [vmem:[%s1361_s16 + $0x148] sm:$0xff]  ;;  %v468_v31 = vmul.f32 %v331_v25, %v331_v25 }
  0x4d   : > { %v381_v42 = vadd.f32 %v380_v38, %v317_v33  ;;  %v516_v44 = vadd.f32 %v515_v40, %v453_v35  ;;  %v333_v33 = vld [vmem:[%s1361_s16 + $0x150] sm:$0xff]  ;;  %v469_v35 = vmul.f32 %v332_v29, %v332_v29 }
  0x4f   : > { %v382_v46 = vadd.f32 %v381_v42, %v318_v37  ;;  %v517_v48 = vadd.f32 %v516_v44, %v454_v39  ;;  %v334_v37 = vld [vmem:[%s1361_s16 + $0x158] sm:$0xff]  ;;  %v470_v39 = vmul.f32 %v333_v33, %v333_v33 }
  0x51   : > { %v383_v50 = vadd.f32 %v382_v46, %v319_v41  ;;  %v518_v52 = vadd.f32 %v517_v48, %v455_v43  ;;  %v335_v41 = vld [vmem:[%s1361_s16 + $0x160] sm:$0xff]  ;;  %v471_v43 = vmul.f32 %v334_v37, %v334_v37 }
  0x53   : > { %v384_v54 = vadd.f32 %v383_v50, %v320_v45  ;;  %v519_v56 = vadd.f32 %v518_v52, %v456_v47  ;;  %v336_v45 = vld [vmem:[%s1361_s16 + $0x168] sm:$0xff]  ;;  %v472_v47 = vmul.f32 %v335_v41, %v335_v41 }
  0x55   : > { %v385_v58 = vadd.f32 %v384_v54, %v321_v49  ;;  %v520_v60 = vadd.f32 %v519_v56, %v457_v51  ;;  %v337_v49 = vld [vmem:[%s1361_s16 + $0x170] sm:$0xff]  ;;  %v473_v51 = vmul.f32 %v336_v45, %v336_v45 }
  0x57   : > { %v386_v62 = vadd.f32 %v385_v58, %v322_v53  ;;  %v521_v0 = vadd.f32 %v520_v60, %v458_v55  ;;  %v338_v53 = vld [vmem:[%s1361_s16 + $0x178] sm:$0xff]  ;;  %v474_v55 = vmul.f32 %v337_v49, %v337_v49 }
  0x59   : > { %v387_v2 = vadd.f32 %v386_v62, %v323_v57  ;;  %v522_v4 = vadd.f32 %v521_v0, %v459_v59  ;;  %v339_v57 = vld [vmem:[%s1361_s16 + $0x180] sm:$0xff]  ;;  %v475_v59 = vmul.f32 %v338_v53, %v338_v53 }
  0x5b   : > { %v388_v6 = vadd.f32 %v387_v2, %v324_v61  ;;  %v523_v8 = vadd.f32 %v522_v4, %v460_v63  ;;  %v340_v61 = vld [vmem:[%s1361_s16 + $0x188] sm:$0xff]  ;;  %v476_v63 = vmul.f32 %v339_v57, %v339_v57 }
  0x5d   : > { %v389_v10 = vadd.f32 %v388_v6, %v325_v1  ;;  %v524_v12 = vadd.f32 %v523_v8, %v461_v3  ;;  %v341_v1 = vld [vmem:[%s1361_s16 + $0x190] sm:$0xff]  ;;  %v477_v3 = vmul.f32 %v340_v61, %v340_v61 }
  0x5f   : > { %v390_v14 = vadd.f32 %v389_v10, %v326_v5  ;;  %v525_v16 = vadd.f32 %v524_v12, %v462_v7  ;;  %v342_v5 = vld [vmem:[%s1361_s16 + $0x198] sm:$0xff]  ;;  %v478_v7 = vmul.f32 %v341_v1, %v341_v1 }
  0x61   : > { %v391_v18 = vadd.f32 %v390_v14, %v327_v9  ;;  %v526_v20 = vadd.f32 %v525_v16, %v463_v11  ;;  %v343_v9 = vld [vmem:[%s1361_s16 + $0x1a0] sm:$0xff]  ;;  %v479_v11 = vmul.f32 %v342_v5, %v342_v5 }
  0x63   : > { %v392_v22 = vadd.f32 %v391_v18, %v328_v13  ;;  %v527_v24 = vadd.f32 %v526_v20, %v464_v15  ;;  %v344_v13 = vld [vmem:[%s1361_s16 + $0x1a8] sm:$0xff]  ;;  %v480_v15 = vmul.f32 %v343_v9, %v343_v9 }
  0x65   : > { %v393_v26 = vadd.f32 %v392_v22, %v329_v17  ;;  %v528_v28 = vadd.f32 %v527_v24, %v465_v19  ;;  %v345_v17 = vld [vmem:[%s1361_s16 + $0x1b0] sm:$0xff]  ;;  %v481_v19 = vmul.f32 %v344_v13, %v344_v13 }
  0x67   : > { %v394_v30 = vadd.f32 %v393_v26, %v330_v21  ;;  %v529_v32 = vadd.f32 %v528_v28, %v466_v23  ;;  %v346_v21 = vld [vmem:[%s1361_s16 + $0x1b8] sm:$0xff]  ;;  %v482_v23 = vmul.f32 %v345_v17, %v345_v17 }
  0x69   : > { %v395_v34 = vadd.f32 %v394_v30, %v331_v25  ;;  %v530_v36 = vadd.f32 %v529_v32, %v467_v27  ;;  %v347_v25 = vld [vmem:[%s1361_s16 + $0x1c0] sm:$0xff]  ;;  %v483_v27 = vmul.f32 %v346_v21, %v346_v21 }
  0x6b   : > { %v396_v38 = vadd.f32 %v395_v34, %v332_v29  ;;  %v531_v40 = vadd.f32 %v530_v36, %v468_v31  ;;  %v348_v29 = vld [vmem:[%s1361_s16 + $0x1c8] sm:$0xff]  ;;  %v484_v31 = vmul.f32 %v347_v25, %v347_v25 }
  0x6d   : > { %v397_v42 = vadd.f32 %v396_v38, %v333_v33  ;;  %v532_v44 = vadd.f32 %v531_v40, %v469_v35  ;;  %v349_v33 = vld [vmem:[%s1361_s16 + $0x1d0] sm:$0xff]  ;;  %v485_v35 = vmul.f32 %v348_v29, %v348_v29 }
  0x6f   : > { %v398_v46 = vadd.f32 %v397_v42, %v334_v37  ;;  %v533_v48 = vadd.f32 %v532_v44, %v470_v39  ;;  %v350_v37 = vld [vmem:[%s1361_s16 + $0x1d8] sm:$0xff]  ;;  %v486_v39 = vmul.f32 %v349_v33, %v349_v33 }
  0x71   : > { %v399_v50 = vadd.f32 %v398_v46, %v335_v41  ;;  %v534_v52 = vadd.f32 %v533_v48, %v471_v43  ;;  %v351_v41 = vld [vmem:[%s1361_s16 + $0x1e0] sm:$0xff]  ;;  %v487_v43 = vmul.f32 %v350_v37, %v350_v37 }
  0x73   : > { %v400_v54 = vadd.f32 %v399_v50, %v336_v45  ;;  %v535_v56 = vadd.f32 %v534_v52, %v472_v47  ;;  %v352_v45 = vld [vmem:[%s1361_s16 + $0x1e8] sm:$0xff]  ;;  %v488_v47 = vmul.f32 %v351_v41, %v351_v41 }
  0x75   : > { %v401_v58 = vadd.f32 %v400_v54, %v337_v49  ;;  %v536_v60 = vadd.f32 %v535_v56, %v473_v51  ;;  %v353_v49 = vld [vmem:[%s1361_s16 + $0x1f0] sm:$0xff]  ;;  %v489_v51 = vmul.f32 %v352_v45, %v352_v45 }
  0x77   : > { %v402_v62 = vadd.f32 %v401_v58, %v338_v53  ;;  %v537_v0 = vadd.f32 %v536_v60, %v474_v55  ;;  %v354_v53 = vld [vmem:[%s1361_s16 + $0x1f8] sm:$0xff]  ;;  %v490_v55 = vmul.f32 %v353_v49, %v353_v49 }
  0x78   : > { %v491_v58 = vmul.f32 %v354_v53, %v354_v53 }
  0x79   : > { %v403_v2 = vadd.f32 %v402_v62, %v339_v57  ;;  %v538_v4 = vadd.f32 %v537_v0, %v475_v59 }
  0x7b   : > { %v404_v6 = vadd.f32 %v403_v2, %v340_v61  ;;  %v539_v8 = vadd.f32 %v538_v4, %v476_v63 }
  0x7d   : > { %v405_v10 = vadd.f32 %v404_v6, %v341_v1  ;;  %v540_v12 = vadd.f32 %v539_v8, %v477_v3 }
  0x7f   : > { %v406_v14 = vadd.f32 %v405_v10, %v342_v5  ;;  %v541_v16 = vadd.f32 %v540_v12, %v478_v7  ;;  %v355_v7 = vld [vmem:[#allocation2] sm:$0x1]  ;;  %v427_v12 = vld [vmem:[#allocation3] sm:$0x1] }
  0x81   : > { %v407_v18 = vadd.f32 %v406_v14, %v343_v9  ;;  %v542_v20 = vadd.f32 %v541_v16, %v479_v11  ;;  %v568_v16 = vld [vmem:[%s1549_s1 + $0x8] sm:$0xff] (!%p988_p8) }
  0x83   : > { %v408_v22 = vadd.f32 %v407_v18, %v344_v13  ;;  %v543_v24 = vadd.f32 %v542_v20, %v480_v15  ;;  %v567_v15 = vld [vmem:[%s1549_s1] sm:$0xff] (!%p988_p8)  ;;  %v1276_v18 = vmov (!%p988_p8), 0.0|0.0   ;;  %v570_v20 = vld [vmem:[%s1549_s1 + $0x18] sm:$0xff] (!%p988_p8) }
  0x84   : > { %1129 = vmatprep.subr.bf16.mxu0 (!%p988_p8), %v1276_v18  ;;  %1153 = vmatprep.subr.bf16.mxu1 (!%p988_p8), %v1276_v18 }
  0x85   : > { %v409_v26 = vadd.f32 %v408_v22, %v345_v17  ;;  %v544_v28 = vadd.f32 %v543_v24, %v481_v19  ;;  %v569_v17 = vld [vmem:[%s1549_s1 + $0x10] sm:$0xff] (!%p988_p8)  ;;  %v1130_v19 = vpack.c.bf16 (!%p988_p8), %v568_v16, %v567_v15  ;;  %v572_v24 = vld [vmem:[%s1549_s1 + $0x28] sm:$0xff] (!%p988_p8) }
  0x86   : > { %v1133_v22 = vpack.c.bf16 (!%p988_p8), %v570_v20, %v569_v17 }
  0x87   : > { %v410_v30 = vadd.f32 %v409_v26, %v346_v21  ;;  %v545_v32 = vadd.f32 %v544_v28, %v482_v23  ;;  %v1278_v21 = vmov (!%p988_p8), 0.0   ;;  %1131 = vmatpush3.bf16.msra.mxu0 (!%p988_p8), %v1130_v19  ;;  %1155 = vmatpush3.bf16.msra.mxu1 (!%p988_p8), %v1130_v19  ;;  %v571_v23 = vld [vmem:[%s1549_s1 + $0x20] sm:$0xff] (!%p988_p8)  ;;  %v573_v26 = vld [vmem:[%s1549_s1 + $0x30] sm:$0xff] (!%p988_p8) }
  0x88   : > { %1069 = vmatprep.mubr.msk.f32.mxu0 (!%p988_p8), %vm1277_vm0, %v1278_v21  ;;  %1104 = vmatprep.mubr.msk.f32.mxu1 (!%p988_p8), %vm1277_vm0, %v1278_v21 }
  0x89   : > { %v411_v34 = vadd.f32 %v410_v30, %v347_v25  ;;  %v546_v36 = vadd.f32 %v545_v32, %v483_v27  ;;  %1132 = vmatprep.subr.bf16.mxu0 (!%p988_p8), %v1276_v18  ;;  %1156 = vmatprep.subr.bf16.mxu1 (!%p988_p8), %v1276_v18  ;;  %v1136_v25 = vpack.c.bf16 (!%p988_p8), %v572_v24, %v571_v23  ;;  %v574_v27 = vld [vmem:[%s1549_s1 + $0x38] sm:$0xff] (!%p988_p8)  ;;  %v576_v30 = vld [vmem:[%s1549_s1 + $0x48] sm:$0xff] (!%p988_p8)  ;;  %v577_v32 = vld [vmem:[%s1549_s1 + $0x50] sm:$0xff] (!%p988_p8) }
  0x8a   : > { %v1139_v28 = vpack.c.bf16 (!%p988_p8), %v574_v27, %v573_v26 }
  0x8b   : > { %v412_v38 = vadd.f32 %v411_v34, %v348_v29  ;;  %v547_v40 = vadd.f32 %v546_v36, %v484_v31  ;;  %1134 = vmatpush3.bf16.msra.mxu0 (!%p988_p8), %v1133_v22  ;;  %1158 = vmatpush3.bf16.msra.mxu1 (!%p988_p8), %v1133_v22  ;;  %v575_v29 = vld [vmem:[%s1549_s1 + $0x40] sm:$0xff] (!%p988_p8)  ;;  %v580_v36 = vld [vmem:[%s1549_s1 + $0x68] sm:$0xff] (!%p988_p8) }
  0x8c   : > { %1135 = vmatprep.subr.bf16.mxu0 (!%p988_p8), %v1276_v18  ;;  %1159 = vmatprep.subr.bf16.mxu1 (!%p988_p8), %v1276_v18  ;;  %v1142_v31 = vpack.c.bf16 (!%p988_p8), %v576_v30, %v575_v29 }
  0x8d   : > { %v413_v42 = vadd.f32 %v412_v38, %v349_v33  ;;  %v548_v44 = vadd.f32 %v547_v40, %v485_v35  ;;  %v578_v33 = vld [vmem:[%s1549_s1 + $0x58] sm:$0xff] (!%p988_p8)  ;;  %v579_v35 = vld [vmem:[%s1549_s1 + $0x60] sm:$0xff] (!%p988_p8)  ;;  %v581_v38 = vld [vmem:[%s1549_s1 + $0x70] sm:$0xff] (!%p988_p8) }
  0x8e   : > { %v1145_v34 = vpack.c.bf16 (!%p988_p8), %v578_v33, %v577_v32 }
  0x8f   : > { %v414_v46 = vadd.f32 %v413_v42, %v350_v37  ;;  %v549_v48 = vadd.f32 %v548_v44, %v486_v39  ;;  %1137 = vmatpush3.bf16.msra.mxu0 (!%p988_p8), %v1136_v25  ;;  %1161 = vmatpush3.bf16.msra.mxu1 (!%p988_p8), %v1136_v25  ;;  %v1148_v37 = vpack.c.bf16 (!%p988_p8), %v580_v36, %v579_v35  ;;  %v582_v39 = vld [vmem:[%s1549_s1 + $0x78] sm:$0xff] (!%p988_p8)  ;;  %v733_v42 = vld [vmem:[%s1550_s2 + $0x8] sm:$0xff] (!%p988_p8) }
  0x90   : > { %1138 = vmatprep.subr.bf16.mxu0 (!%p988_p8), %v1276_v18  ;;  %1162 = vmatprep.subr.bf16.mxu1 (!%p988_p8), %v1276_v18  ;;  %v1151_v40 = vpack.c.bf16 (!%p988_p8), %v582_v39, %v581_v38 }
  0x91   : > { %v415_v50 = vadd.f32 %v414_v46, %v351_v41  ;;  %v550_v52 = vadd.f32 %v549_v48, %v487_v43  ;;  %v732_v41 = vld [vmem:[%s1550_s2] sm:$0xff] (!%p988_p8)  ;;  %v734_v46 = vld [vmem:[%s1550_s2 + $0x10] sm:$0xff] (!%p988_p8) }
  0x93   : > { %v416_v54 = vadd.f32 %v415_v50, %v352_v45  ;;  %v551_v56 = vadd.f32 %v550_v52, %v488_v47  ;;  %1140 = vmatpush3.bf16.msra.mxu0 (!%p988_p8), %v1139_v28  ;;  %1164 = vmatpush3.bf16.msra.mxu1 (!%p988_p8), %v1139_v28  ;;  %v1178_v45 = vpack.c.bf16 (!%p988_p8), %v733_v42, %v732_v41  ;;  %v735_v47 = vld [vmem:[%s1550_s2 + $0x18] sm:$0xff] (!%p988_p8) }
  0x94   : > { %1141 = vmatprep.subr.bf16.mxu0 (!%p988_p8), %v1276_v18  ;;  %1165 = vmatprep.subr.bf16.mxu1 (!%p988_p8), %v1276_v18  ;;  %v1181_v48 = vpack.c.bf16 (!%p988_p8), %v735_v47, %v734_v46 }
  0x95   : > { %v417_v57 = vadd.f32 %v416_v54, %v353_v49  ;;  %v552_v59 = vadd.f32 %v551_v56, %v489_v51 }
  0x97   : > { %v418_v60 = vadd.f32 %v417_v57, %v354_v53  ;;  %v553_v61 = vadd.f32 %v552_v59, %v490_v55  ;;  %1143 = vmatpush3.bf16.msra.mxu0 (!%p988_p8), %v1142_v31  ;;  %1167 = vmatpush3.bf16.msra.mxu1 (!%p988_p8), %v1142_v31 }
  0x98   : > { %1144 = vmatprep.subr.bf16.mxu0 (!%p988_p8), %v1276_v18  ;;  %1168 = vmatprep.subr.bf16.mxu1 (!%p988_p8), %v1276_v18 }
  0x99   : > { %v419_v62 = vrot.slane %v418_v60, 4  ;;  %v554_v63 = vadd.f32 %v553_v61, %v491_v58 }
  0x9b   : > { %v420_v0 = vadd.f32 %v419_v62, %v418_v60  ;;  %v555_v1 = vrot.slane %v554_v63, 4  ;;  %1146 = vmatpush3.bf16.msra.mxu0 (!%p988_p8), %v1145_v34  ;;  %1170 = vmatpush3.bf16.msra.mxu1 (!%p988_p8), %v1145_v34  ;;  %v883_v62 = vld [vmem:[%s1551_s3] sm:$0x1] (!%p988_p8) }
  0x9c   : > { %1147 = vmatprep.subr.bf16.mxu0 (!%p988_p8), %v1276_v18  ;;  %1171 = vmatprep.subr.bf16.mxu1 (!%p988_p8), %v1276_v18 }
  0x9d   : > { %v421_v2 = vrot.slane %v420_v0, 2  ;;  %v556_v3 = vadd.f32 %v555_v1, %v554_v63 }
  0x9f   : > { %v422_v4 = vadd.f32 %v421_v2, %v420_v0  ;;  %v557_v5 = vrot.slane %v556_v3, 2  ;;  %1149 = vmatpush3.bf16.msra.mxu0 (!%p988_p8), %v1148_v37  ;;  %1173 = vmatpush3.bf16.msra.mxu1 (!%p988_p8), %v1148_v37  ;;  %v885_v2 = vld [vmem:[%s1552_s4] sm:$0x1] (!%p988_p8) }
  0xa0   : > { %1150 = vmatprep.subr.bf16.mxu0 (!%p988_p8), %v1276_v18  ;;  %1174 = vmatprep.subr.bf16.mxu1 (!%p988_p8), %v1276_v18 }
  0xa1   : > { %v423_v6 = vrot.slane %v422_v4, 1  ;;  %v558_v8 = vadd.f32 %v557_v5, %v556_v3 }
  0xa3   : > { %v424_v9 = vadd.f32 %v423_v6, %v422_v4  ;;  %v559_v10 = vrot.slane %v558_v8, 1  ;;  %566 = sbr.rel (%p988_p8) target bundleno = 627 (0x273), region = 48  ;;  %1152 = vmatpush3.bf16.msra.mxu0 (!%p988_p8), %v1151_v40  ;;  %1176 = vmatpush3.bf16.msra.mxu1 (!%p988_p8), %v1151_v40 }
  0xa4   : > { %1177 = vmatprep.subr.bf16.mxu0 (!%p988_p8), %v1276_v18  ;;  %1183 = vmatprep.subr.bf16.mxu1 (!%p988_p8), %v1276_v18 }
  0xa5   : > { %v425_v11 = vadd.f32 %v424_v9, %v355_v7  ;;  %v560_v13 = vadd.f32 %v559_v10, %v558_v8 }
  0xa7   : > { %426 = vst [vmem:[#allocation2] sm:$0x1] %v425_v11  ;;  %v561_v14 = vadd.f32 %v560_v13, %v427_v12 }
  0xa9   : > { %562 = vst [vmem:[#allocation3] sm:$0x1] %v561_v14 }
  0xae   : > { %v583_v43 = vld [vmem:[#allocation2] sm:$0x1] }
  0xaf   : > { %1070 = vmatmul.mubr.f32.vlgmr.msra.gmra.mrb[0].mxu0 %v583_v43 }
  0xb0   : > { %v654_v44 = vld [vmem:[#allocation3] sm:$0x1]  ;;  %1179 = vmatpush3.bf16.msra.mxu0 %v1178_v45  ;;  %1115 = vmatprep.mubr.msk.f32.mxu0 %vm1277_vm0, %v1278_v21 }
  0xb1   : > { %1105 = vmatmul.mubr.f32.vlgmr.msra.gmra.mrb[0].mxu1 %v654_v44  ;;  %1180 = vmatprep.subr.bf16.mxu0 %v1276_v18 }
  0xb2   : > { %1185 = vmatpush3.bf16.msra.mxu1 %v1178_v45  ;;  %1126 = vmatprep.mubr.msk.f32.mxu1 %vm1277_vm0, %v1278_v21 }
  0xb3   : > { %1186 = vmatprep.subr.bf16.mxu1 %v1276_v18 }
  0xb4   : > { %1182 = vmatpush3.bf16.msra.mxu0 %v1181_v48 }
  0xb6   : > { %1188 = vmatpush3.bf16.msra.mxu1 %v1181_v48 }
 0x182   : > { %v650_v49 = vpop.f32.mrb[0].mxu0 }
 0x183   : > { %v725_v51 = vmul.f32 0.00024414063, %v650_v49  ;;  %v1071_v52 = vpop.f32.mrb[1].mxu0 }
 0x184   : > { %v721_v50 = vpop.f32.mrb[0].mxu1 }
 0x185   : > { %v726_v53 = vmul.f32 0.00024414063, %v721_v50  ;;  %v1106_v54 = vpop.f32.mrb[1].mxu1  ;;  %v727_v55 = vmul.f32 %v725_v51, %v725_v51  ;;  %1116 = vmatmul.mubr.msk.f32.vlgmr.msra.gmra.mrb[2].mxu0 %vm736_vm1, %v725_v51 }
 0x187   : > { %v728_v56 = vsub.f32 %v726_v53, %v727_v55 }
 0x189   : > { %v729_v57 = vmax.f32 %v728_v56, 0.0 }
 0x18b   : > { %v730_v58 = vadd.f32 1e-06, %v729_v57 }
 0x18d   : > { %1233 = vrsqrt.f32 %v730_v58 }
 0x197   : > { %v1234_v59 = vpop.eup %1233 }
 0x198   : > { %1127 = vmatmul.mubr.msk.f32.vlgmr.msra.gmra.mrb[2].mxu1 %vm736_vm1, %v1234_v59 }
 0x258   : > { %v806_v60 = vpop.f32.mrb[2].mxu0 }
 0x259   : > { %v1117_v61 = vpop.f32.mrb[3].mxu0 }
 0x26b   : > { %v879_v63 = vpop.f32.mrb[2].mxu1 }
 0x26c   : > { %v884_v0 = vmul.f32 %v883_v62, %v879_v63  ;;  %v1128_v1 = vpop.f32.mrb[3].mxu1 }
 0x26e   : > { %v886_v3 = vmul.f32 %v884_v0, %v806_v60  ;;  %888 = vst [vmem:[%s281_s8] sm:$0x1] %v884_v0 }
 0x270   : > { %v887_v4 = vsub.f32 %v885_v2, %v886_v3 }
 0x272   : > { %889 = vst [vmem:[%s284_s12] sm:$0x1] %v887_v4 }
 0x273 PF: > { %s17_s25 = sadd.s32 1, %s1273_s25   ;;  %s1555_s21 = smov %s1265_s23 }
 0x274   : > { %p14_p9 = scmp.ge.s32.totalorder %s17_s25, 6   ;;  %s1556_s22 = smov %s1269_s24 }
 0x275   : > { %s1557_s23 = smov %s1560_s26  ;;  %s1558_s24 = smov %s1564_s27 }
 0x276   :  { %16 = sbr.rel (!%p14_p9) target bundleno = 3 (0x3), region = 90 }

// kernel: attn_block_4d.4
= control target key start
LH: loop header
LB: loop body
LE: loop exit
PB: predicated region body
PF: predicated region fallthrough
CT: control target
= control target key end

     0   :  { %s4533_s17 = smov 0   ;;  %s4535_s18 = smov 0   ;;  %s5341_s0 = inlined_call_operand.vmem [shape: f32[2,1024,128], index: 0, kind: input, shape index: {}]   ;;  %s5342_s1 = inlined_call_operand.vmem [shape: f32[2,1,128], index: 1, kind: input, shape index: {}]   ;;  %s5343_s2 = inlined_call_operand.vmem [shape: f32[2,1,128], index: 2, kind: input, shape index: {}]   ;;  %s5344_s3 = inlined_call_operand.vmem [shape: bf16[128,128], index: 3, kind: input, shape index: {}]   ;;  %s5345_s4 = inlined_call_operand.vmem [shape: f32[1,128], index: 4, kind: input, shape index: {}]   ;;  %s5346_s5 = inlined_call_operand.vmem [shape: bf16[128,128], index: 5, kind: input, shape index: {}]   ;;  %s5347_s6 = inlined_call_operand.vmem [shape: f32[1,128], index: 6, kind: input, shape index: {}]   ;;  %s5348_s7 = inlined_call_operand.vmem [shape: bf16[128,128], index: 7, kind: input, shape index: {}]   ;;  %s5349_s8 = inlined_call_operand.vmem [shape: f32[1,128], index: 8, kind: input, shape index: {}]   ;;  %s5350_s9 = inlined_call_operand.vmem [shape: bf16[2,1024,128], index: 9, kind: output, shape index: {0}]   ;;  %s5351_s10 = inlined_call_operand.vmem [shape: bf16[2,1024,128], index: 10, kind: output, shape index: {1}]   ;;  %s5352_s11 = inlined_call_operand.vmem [shape: bf16[2,1024,128], index: 11, kind: output, shape index: {2}]  }
   0x1   :  { %s4537_s19 = smov 0   ;;  %s4539_s20 = smov 0  }
   0x2   :  { %s4541_s21 = smov 0  }
   0x3 LB: > { %s31_s22 = sadd.s32 1, %s4463_s19  ;;  %s34_s23 = sadd.s32 1, %s4467_s20  ;;  %s4471_s21 = sphi %s4541_s21, %s22_s21   ;;  %s4467_s20 = sphi %s4539_s20, %s5358_s20   ;;  %s4463_s19 = sphi %s4537_s19, %s5357_s19   ;;  %s4459_s18 = sphi %s4535_s18, %s5356_s18   ;;  %s4455_s17 = sphi %s4533_s17, %s5355_s17  }
   0x4   : > { %p32_p0 = scmp.ge.s32.totalorder %s31_s22, 2  ;;  %p2992_p1 = scmp.ge.s32.totalorder %s4471_s21, 1 }
   0x5   : > { %p383_p2 = scmp.lt.s32.totalorder %s4471_s21, 5 }
   0x6   : > { %s5360_s22 = smov (%p32_p0, %s31_s22), 0  ;;  %s5362_s23 = smov (!%p32_p0, %s34_s23), %s4467_s20 }
   0x7   : > { %p384_p3 = pnand %p2992_p1, %p383_p2  ;;  %p36_p4 = scmp.ge.s32.totalorder %s5362_s23, 2 }
   0x8   : > { %v4409_v0 = vld [vmem:[%s5344_s3] sm:$0xff] (!%p384_p3)   ;;  %s2993_s26 = sshll.u32 (!%p384_p3), %s4455_s17, 6  ;;  %v4410_v1 = vld [vmem:[%s5344_s3 + $0x8] sm:$0xff] (!%p384_p3)   ;;  %p456_p5 = scmp.lt.s32.totalorder (!%p384_p3), %s4459_s18, 1  ;;  %v4411_v2 = vld [vmem:[%s5344_s3 + $0x10] sm:$0xff] (!%p384_p3)  }
   0x9   : > { %s5364_s23 = smov (%p36_p4, %s5362_s23), 0  ;;  %387 = sbr.rel (%p384_p3) target bundleno = 446 (0x1be), region = 56 }
   0xa   : > { %5353 = sst [smem:[#allocation2_spill]] %s5364_s23  ;;  %4113 = vmatprep.subr.bf16.mxu0 (!%p384_p3), %v4409_v0  ;;  %4353 = vmatprep.subr.bf16.mxu1 (!%p384_p3), %v4409_v0  ;;  %p458_p6 = scmp.lt.s32.totalorder (!%p384_p3), %s2993_s26, 127  ;;  %v4412_v3 = vld [vmem:[%s5344_s3 + $0x18] sm:$0xff] (!%p384_p3)   ;;  %v4413_v14 = vld [vmem:[%s5344_s3 + $0x20] sm:$0xff] (!%p384_p3)   ;;  %v4414_v23 = vld [vmem:[%s5344_s3 + $0x28] sm:$0xff] (!%p384_p3)  }
   0xb   : > { %4114 = vmatpush3.bf16.msra.mxu0 (!%p384_p3), %v4409_v0  ;;  %4361 = vmatpush3.bf16.msra.mxu1 (!%p384_p3), %v4409_v0  ;;  %v4415_v25 = vld [vmem:[%s5344_s3 + $0x30] sm:$0xff] (!%p384_p3)   ;;  %v4416_v49 = vld [vmem:[%s5344_s3 + $0x38] sm:$0xff] (!%p384_p3)  }
   0xc   : > { %4115 = vmatprep.subr.bf16.mxu0 (!%p384_p3), %v4410_v1  ;;  %4354 = vmatprep.subr.bf16.mxu1 (!%p384_p3), %v4410_v1 }
   0xf   : > { %4116 = vmatpush3.bf16.msra.mxu0 (!%p384_p3), %v4410_v1  ;;  %4362 = vmatpush3.bf16.msra.mxu1 (!%p384_p3), %v4410_v1  ;;  %v4417_v1 = vld [vmem:[%s5346_s5] sm:$0xff] (!%p384_p3)  }
  0x10   : > { %s5366_s18 = smov (!%p456_p5, %s4459_s18), 1  ;;  %s5368_s26 = smov (!%p458_p6, %s2993_s26), 127  ;;  %4117 = vmatprep.subr.bf16.mxu0 %v4411_v2  ;;  %4355 = vmatprep.subr.bf16.mxu1 %v4411_v2 }
  0x11   : > { %s2994_s12 = sshll.u32 %s5366_s18, 7  ;;  %s467_s15 = scalar_lea.vmem %s5342_s1, %s5366_s18 }
  0x12   : > { %s4578_s16 = sadd.s32 %s2994_s12, %s5368_s26  ;;  %s470_s25 = scalar_lea.vmem %s5343_s2, %s5366_s18  ;;  %v4592_v4 = vld [vmem:[%s467_s15] ss:$0 sm:$0xff] }
  0x13   : > { %s2995_s29 = sshll.u32 %s4578_s16, 3  ;;  %v4594_v5 = vld [vmem:[%s470_s25] ss:$0 sm:$0xff]  ;;  %4118 = vmatpush3.bf16.msra.mxu0 %v4411_v2  ;;  %4363 = vmatpush3.bf16.msra.mxu1 %v4411_v2  ;;  %s5008_s26 = sshll.u32 %s4578_s16, 2 }
  0x14   : > { %s4590_s13 = scalar_lea.vmem %s5341_s0, %s2995_s29  ;;  %4119 = vmatprep.subr.bf16.mxu0 %v4412_v3  ;;  %4356 = vmatprep.subr.bf16.mxu1 %v4412_v3  ;;  %v4418_v2 = vld [vmem:[%s5348_s7] sm:$0xff]   ;;  %s5020_s14 = scalar_lea.vmem %s5350_s9, %s5008_s26 }
  0x15   : > { %v502_v6 = vld [vmem:[%s4590_s13] sm:$0xff]  ;;  %v503_v7 = vld [vmem:[%s4590_s13 + $0x8] sm:$0xff]  ;;  %v504_v21 = vld [vmem:[%s4590_s13 + $0x10] sm:$0xff]  ;;  %s5132_s29 = scalar_lea.vmem %s5351_s10, %s5008_s26 }
  0x16   : > { %v534_v8 = vld [vmem:[%s4590_s13 + $0x100] sm:$0xff]  ;;  %v573_v9 = vmul.f32 %v4592_v4, %v502_v6  ;;  %v574_v10 = vmul.f32 %v4592_v4, %v503_v7  ;;  %v535_v11 = vld [vmem:[%s4590_s13 + $0x108] sm:$0xff]  ;;  %v505_v22 = vld [vmem:[%s4590_s13 + $0x18] sm:$0xff]  ;;  %v575_v26 = vmul.f32 %v4592_v4, %v504_v21 }
  0x17   : > { %v605_v12 = vmul.f32 %v4592_v4, %v534_v8  ;;  %v606_v13 = vmul.f32 %v4592_v4, %v535_v11  ;;  %4120 = vmatpush3.bf16.msra.mxu0 %v4412_v3  ;;  %4364 = vmatpush3.bf16.msra.mxu1 %v4412_v3  ;;  %v536_v24 = vld [vmem:[%s4590_s13 + $0x110] sm:$0xff]  ;;  %v576_v27 = vmul.f32 %v4592_v4, %v505_v22  ;;  %v537_v28 = vld [vmem:[%s4590_s13 + $0x118] sm:$0xff]  ;;  %v506_v29 = vld [vmem:[%s4590_s13 + $0x20] sm:$0xff] }
  0x18   : > { %v644_v15 = vadd.f32 %v4594_v5, %v573_v9  ;;  %v645_v16 = vadd.f32 %v4594_v5, %v574_v10  ;;  %4121 = vmatprep.subr.bf16.mxu0 %v4413_v14  ;;  %4357 = vmatprep.subr.bf16.mxu1 %v4413_v14  ;;  %v507_v30 = vld [vmem:[%s4590_s13 + $0x28] sm:$0xff]  ;;  %v538_v31 = vld [vmem:[%s4590_s13 + $0x120] sm:$0xff]  ;;  %v508_v33 = vld [vmem:[%s4590_s13 + $0x30] sm:$0xff]  ;;  %v607_v36 = vmul.f32 %v4592_v4, %v536_v24 }
  0x19   : > { %v676_v17 = vadd.f32 %v4594_v5, %v605_v12  ;;  %v677_v18 = vadd.f32 %v4594_v5, %v606_v13  ;;  %v539_v32 = vld [vmem:[%s4590_s13 + $0x128] sm:$0xff]  ;;  %v509_v34 = vld [vmem:[%s4590_s13 + $0x38] sm:$0xff]  ;;  %v540_v35 = vld [vmem:[%s4590_s13 + $0x130] sm:$0xff]  ;;  %v646_v38 = vadd.f32 %v4594_v5, %v575_v26  ;;  %v647_v39 = vadd.f32 %v4594_v5, %v576_v27 }
  0x1a   : > { %v4611_v19 = vpack.c.bf16 %v645_v16, %v644_v15  ;;  %v541_v37 = vld [vmem:[%s4590_s13 + $0x138] sm:$0xff]  ;;  %v608_v40 = vmul.f32 %v4592_v4, %v537_v28  ;;  %v577_v41 = vmul.f32 %v4592_v4, %v506_v29  ;;  %v510_v42 = vld [vmem:[%s4590_s13 + $0x40] sm:$0xff]  ;;  %v511_v43 = vld [vmem:[%s4590_s13 + $0x48] sm:$0xff]  ;;  %v578_v44 = vmul.f32 %v4592_v4, %v507_v30 }
  0x1b   : > { %v4613_v20 = vpack.c.bf16 %v677_v18, %v676_v17  ;;  %4122 = vmatpush3.bf16.msra.mxu0 %v4413_v14  ;;  %4365 = vmatpush3.bf16.msra.mxu1 %v4413_v14  ;;  %v609_v45 = vmul.f32 %v4592_v4, %v538_v31  ;;  %v610_v46 = vmul.f32 %v4592_v4, %v539_v32  ;;  %v542_v47 = vld [vmem:[%s4590_s13 + $0x140] sm:$0xff]  ;;  %v543_v48 = vld [vmem:[%s4590_s13 + $0x148] sm:$0xff]  ;;  %v512_v61 = vld [vmem:[%s4590_s13 + $0x50] sm:$0xff] }
  0x1c   : > { %4129 = vmatprep.mubr.bf16.mxu0 %v4611_v19  ;;  %4123 = vmatprep.subr.bf16.mxu0 %v4414_v23  ;;  %v579_v50 = vmul.f32 %v4592_v4, %v508_v33  ;;  %v580_v51 = vmul.f32 %v4592_v4, %v509_v34  ;;  %v611_v52 = vmul.f32 %v4592_v4, %v540_v35  ;;  %v513_v8 = vld [vmem:[%s4590_s13 + $0x58] sm:$0xff]  ;;  %v544_v13 = vld [vmem:[%s4590_s13 + $0x150] sm:$0xff]  ;;  %v4419_v21 = vld [vmem:[%s5346_s5 + $0x8] sm:$0xff]  }
  0x1d   : > { %4161 = vmatprep.mubr.bf16.mxu1 %v4613_v20  ;;  %4358 = vmatprep.subr.bf16.mxu1 %v4414_v23  ;;  %v678_v53 = vadd.f32 %v4594_v5, %v607_v36  ;;  %v612_v54 = vmul.f32 %v4592_v4, %v541_v37  ;;  %v581_v55 = vmul.f32 %v4592_v4, %v510_v42  ;;  %v545_v18 = vld [vmem:[%s4590_s13 + $0x158] sm:$0xff]  ;;  %v4420_v22 = vld [vmem:[%s5348_s7 + $0x8] sm:$0xff]   ;;  %v514_v24 = vld [vmem:[%s4590_s13 + $0x60] sm:$0xff] }
  0x1e   : > { %v582_v56 = vmul.f32 %v4592_v4, %v511_v43  ;;  %v679_v57 = vadd.f32 %v4594_v5, %v608_v40  ;;  %v648_v58 = vadd.f32 %v4594_v5, %v577_v41  ;;  %v613_v59 = vmul.f32 %v4592_v4, %v542_v47  ;;  %v515_v27 = vld [vmem:[%s4590_s13 + $0x68] sm:$0xff]  ;;  %v546_v28 = vld [vmem:[%s4590_s13 + $0x160] sm:$0xff]  ;;  %v516_v34 = vld [vmem:[%s4590_s13 + $0x70] sm:$0xff] }
  0x1f   : > { %4124 = vmatpush3.bf16.msra.mxu0 %v4414_v23  ;;  %4366 = vmatpush3.bf16.msra.mxu1 %v4414_v23  ;;  %v614_v60 = vmul.f32 %v4592_v4, %v543_v48  ;;  %v649_v62 = vadd.f32 %v4594_v5, %v578_v44  ;;  %v680_v63 = vadd.f32 %v4594_v5, %v609_v45  ;;  %v547_v29 = vld [vmem:[%s4590_s13 + $0x168] sm:$0xff]  ;;  %v517_v35 = vld [vmem:[%s4590_s13 + $0x78] sm:$0xff]  ;;  %v548_v36 = vld [vmem:[%s4590_s13 + $0x170] sm:$0xff] }
  0x20   : > { %4125 = vmatprep.subr.bf16.mxu0 %v4415_v25  ;;  %4359 = vmatprep.subr.bf16.mxu1 %v4415_v25  ;;  %v681_v0 = vadd.f32 %v4594_v5, %v610_v46  ;;  %v650_v3 = vadd.f32 %v4594_v5, %v579_v50  ;;  %v651_v6 = vadd.f32 %v4594_v5, %v580_v51  ;;  %v4421_v40 = vld [vmem:[%s5346_s5 + $0x10] sm:$0xff]   ;;  %v549_v42 = vld [vmem:[%s4590_s13 + $0x178] sm:$0xff]  ;;  %v518_v43 = vld [vmem:[%s4590_s13 + $0x80] sm:$0xff] }
  0x21   : > { %v682_v7 = vadd.f32 %v4594_v5, %v611_v52  ;;  %v683_v9 = vadd.f32 %v4594_v5, %v612_v54  ;;  %v652_v10 = vadd.f32 %v4594_v5, %v581_v55  ;;  %v653_v11 = vadd.f32 %v4594_v5, %v582_v56  ;;  %v4422_v41 = vld [vmem:[%s5348_s7 + $0x10] sm:$0xff]   ;;  %v519_v47 = vld [vmem:[%s4590_s13 + $0x88] sm:$0xff]  ;;  %v550_v51 = vld [vmem:[%s4590_s13 + $0x180] sm:$0xff] }
  0x22   : > { %v583_v12 = vmul.f32 %v4592_v4, %v512_v61  ;;  %v4682_v14 = vpack.c.bf16 %v647_v39, %v646_v38  ;;  %v4684_v15 = vpack.c.bf16 %v679_v57, %v678_v53  ;;  %v684_v16 = vadd.f32 %v4594_v5, %v613_v59  ;;  %v551_v52 = vld [vmem:[%s4590_s13 + $0x188] sm:$0xff] }
  0x23   : > { %4126 = vmatpush3.bf16.msra.mxu0 %v4415_v25  ;;  %4367 = vmatpush3.bf16.msra.mxu1 %v4415_v25  ;;  %v685_v17 = vadd.f32 %v4594_v5, %v614_v60  ;;  %v584_v23 = vmul.f32 %v4592_v4, %v513_v8  ;;  %v4697_v25 = vpack.c.bf16 %v649_v62, %v648_v58 }
  0x24   : > { %4127 = vmatprep.subr.bf16.mxu0 %v4416_v49  ;;  %4360 = vmatprep.subr.bf16.mxu1 %v4416_v49  ;;  %v4699_v26 = vpack.c.bf16 %v681_v0, %v680_v63  ;;  %v4704_v30 = vpack.c.bf16 %v651_v6, %v650_v3  ;;  %v4706_v31 = vpack.c.bf16 %v683_v9, %v682_v7  ;;  %v520_v63 = vld [vmem:[%s4590_s13 + $0x90] sm:$0xff]  ;;  %v521_v3 = vld [vmem:[%s4590_s13 + $0x98] sm:$0xff] }
  0x25   : > { %v4708_v32 = vpack.c.bf16 %v653_v11, %v652_v10  ;;  %v4711_v33 = vadd.f32 %v4594_v5, %v583_v12  ;;  %v4718_v37 = vpack.c.bf16 %v685_v17, %v684_v16  ;;  %v615_v38 = vmul.f32 %v4592_v4, %v544_v13  ;;  %v4423_v10 = vld [vmem:[%s5346_s5 + $0x18] sm:$0xff]   ;;  %v552_v17 = vld [vmem:[%s4590_s13 + $0x190] sm:$0xff] }
  0x26   : > { %v616_v39 = vmul.f32 %v4592_v4, %v545_v18  ;;  %v655_v44 = vadd.f32 %v4594_v5, %v584_v23  ;;  %v585_v45 = vmul.f32 %v4592_v4, %v514_v24  ;;  %v586_v46 = vmul.f32 %v4592_v4, %v515_v27  ;;  %v4424_v11 = vld [vmem:[%s5348_s7 + $0x18] sm:$0xff]   ;;  %v4425_v24 = vld [vmem:[%s5346_s5 + $0x20] sm:$0xff]  }
  0x27   : > { %4128 = vmatpush3.bf16.msra.mxu0 %v4416_v49  ;;  %4368 = vmatpush3.bf16.msra.mxu1 %v4416_v49  ;;  %v617_v48 = vmul.f32 %v4592_v4, %v546_v28  ;;  %v618_v49 = vmul.f32 %v4592_v4, %v547_v29  ;;  %v587_v50 = vmul.f32 %v4592_v4, %v516_v34  ;;  %v553_v18 = vld [vmem:[%s4590_s13 + $0x198] sm:$0xff]  ;;  %v4426_v27 = vld [vmem:[%s5348_s7 + $0x20] sm:$0xff]   ;;  %v528_v29 = vld [vmem:[%s4590_s13 + $0xd0] sm:$0xff] }
  0x28   : > { %4193 = vmatprep.subr.bf16.mxu1 %v4417_v1  ;;  %4273 = vmatprep.subr.bf16.mxu0 %v4418_v2  ;;  %v588_v53 = vmul.f32 %v4592_v4, %v517_v35  ;;  %v619_v54 = vmul.f32 %v4592_v4, %v548_v36  ;;  %v620_v55 = vmul.f32 %v4592_v4, %v549_v42  ;;  %v522_v28 = vld [vmem:[%s4590_s13 + $0xa0] sm:$0xff] }
  0x29   : > { %v686_v56 = vadd.f32 %v4594_v5, %v615_v38  ;;  %v687_v57 = vadd.f32 %v4594_v5, %v616_v39  ;;  %v589_v58 = vmul.f32 %v4592_v4, %v518_v43  ;;  %v590_v59 = vmul.f32 %v4592_v4, %v519_v47  ;;  %v529_v38 = vld [vmem:[%s4590_s13 + $0xd8] sm:$0xff]  ;;  %v560_v47 = vld [vmem:[%s4590_s13 + $0x1d0] sm:$0xff] }
  0x2a   : > { %4130 = vmatmul.mubr.bf16.vlgmr.msra.gmra.mrb[0].mxu0 %v4682_v14  ;;  %4162 = vmatmul.mubr.bf16.vlgmr.msra.gmra.mrb[0].mxu1 %v4684_v15  ;;  %v656_v60 = vadd.f32 %v4594_v5, %v585_v45  ;;  %v621_v61 = vmul.f32 %v4592_v4, %v550_v51  ;;  %v622_v62 = vmul.f32 %v4592_v4, %v551_v52  ;;  %v554_v45 = vld [vmem:[%s4590_s13 + $0x1a0] sm:$0xff]  ;;  %v555_v51 = vld [vmem:[%s4590_s13 + $0x1a8] sm:$0xff] }
  0x2b   : > { %4194 = vmatpush3.bf16.msra.mxu1 %v4417_v1  ;;  %4274 = vmatpush3.bf16.msra.mxu0 %v4418_v2  ;;  %v657_v0 = vadd.f32 %v4594_v5, %v586_v46  ;;  %v688_v1 = vadd.f32 %v4594_v5, %v617_v48  ;;  %v689_v2 = vadd.f32 %v4594_v5, %v618_v49 }
  0x2c   : > { %4133 = vmatprep.mubr.bf16.mxu0 %v4697_v25  ;;  %4165 = vmatprep.mubr.bf16.mxu1 %v4699_v26  ;;  %v658_v6 = vadd.f32 %v4594_v5, %v587_v50  ;;  %v659_v7 = vadd.f32 %v4594_v5, %v588_v53  ;;  %v690_v8 = vadd.f32 %v4594_v5, %v619_v54  ;;  %v561_v53 = vld [vmem:[%s4590_s13 + $0x1d8] sm:$0xff]  ;;  %v530_v54 = vld [vmem:[%s4590_s13 + $0xe0] sm:$0xff] }
  0x2d   : > { %4195 = vmatprep.subr.bf16.mxu1 %v4419_v21  ;;  %4275 = vmatprep.subr.bf16.mxu0 %v4420_v22  ;;  %v691_v9 = vadd.f32 %v4594_v5, %v620_v55  ;;  %v660_v12 = vadd.f32 %v4594_v5, %v589_v58  ;;  %v661_v13 = vadd.f32 %v4594_v5, %v590_v59  ;;  %v531_v58 = vld [vmem:[%s4590_s13 + $0xe8] sm:$0xff] }
  0x2e   : > { %v591_v16 = vmul.f32 %v4592_v4, %v520_v63  ;;  %v592_v23 = vmul.f32 %v4592_v4, %v521_v3  ;;  %v4787_v34 = vpack.c.bf16 %v655_v44, %v4711_v33  ;;  %v4789_v35 = vpack.c.bf16 %v687_v57, %v686_v56  ;;  %v523_v33 = vld [vmem:[%s4590_s13 + $0xa8] sm:$0xff] }
  0x2f   : > { %4196 = vmatpush3.bf16.msra.mxu1 %v4419_v21  ;;  %4276 = vmatpush3.bf16.msra.mxu0 %v4420_v22  ;;  %v692_v21 = vadd.f32 %v4594_v5, %v621_v61  ;;  %v693_v22 = vadd.f32 %v4594_v5, %v622_v62  ;;  %v4791_v36 = vpack.c.bf16 %v657_v0, %v656_v60  ;;  %v4427_v60 = vld [vmem:[%s5346_s5 + $0x28] sm:$0xff]   ;;  %v562_v0 = vld [vmem:[%s4590_s13 + $0x1e0] sm:$0xff] }
  0x30   : > { %4197 = vmatprep.subr.bf16.mxu1 %v4421_v40  ;;  %4277 = vmatprep.subr.bf16.mxu0 %v4422_v41  ;;  %v4794_v39 = vpack.c.bf16 %v689_v2, %v688_v1  ;;  %v4796_v42 = vpack.c.bf16 %v659_v7, %v658_v6  ;;  %v4798_v43 = vpack.c.bf16 %v691_v9, %v690_v8  ;;  %v4428_v61 = vld [vmem:[%s5348_s7 + $0x28] sm:$0xff]   ;;  %v532_v7 = vld [vmem:[%s4590_s13 + $0xf0] sm:$0xff] }
  0x31   : > { %v4801_v44 = vpack.c.bf16 %v661_v13, %v660_v12  ;;  %v599_v46 = vmul.f32 %v4592_v4, %v528_v29  ;;  %v4810_v48 = vpack.c.bf16 %v693_v22, %v692_v21  ;;  %v4813_v49 = vadd.f32 %v4594_v5, %v592_v23  ;;  %v563_v6 = vld [vmem:[%s4590_s13 + $0x1e8] sm:$0xff]  ;;  %v564_v12 = vld [vmem:[%s4590_s13 + $0x1f0] sm:$0xff] }
  0x32   : > { %4134 = vmatmul.mubr.bf16.gmra.mrb[4].mxu0 %v4704_v30  ;;  %4166 = vmatmul.mubr.bf16.gmra.mrb[4].mxu1 %v4706_v31  ;;  %v624_v50 = vmul.f32 %v4592_v4, %v553_v18  ;;  %v600_v52 = vmul.f32 %v4592_v4, %v529_v38  ;;  %v593_v55 = vmul.f32 %v4592_v4, %v522_v28  ;;  %v565_v18 = vld [vmem:[%s4590_s13 + $0x1f8] sm:$0xff]  ;;  %v4429_v21 = vld [vmem:[%s5346_s5 + $0x30] sm:$0xff]  }
  0x33   : > { %4137 = vmatprep.mubr.bf16.mxu0 %v4708_v32  ;;  %4169 = vmatprep.mubr.bf16.mxu1 %v4718_v37  ;;  %v594_v56 = vmul.f32 %v4592_v4, %v523_v33  ;;  %v670_v57 = vadd.f32 %v4594_v5, %v599_v46  ;;  %v625_v59 = vmul.f32 %v4592_v4, %v554_v45  ;;  %v4430_v22 = vld [vmem:[%s5348_s7 + $0x30] sm:$0xff]  }
  0x34   : > { %4198 = vmatpush3.bf16.msra.mxu1 %v4421_v40  ;;  %4278 = vmatpush3.bf16.msra.mxu0 %v4422_v41  ;;  %v4804_v40 = vadd.f32 %v4594_v5, %v591_v16  ;;  %v623_v41 = vmul.f32 %v4592_v4, %v552_v17  ;;  %v671_v62 = vadd.f32 %v4594_v5, %v600_v52 }
  0x35   : > { %4199 = vmatprep.subr.bf16.mxu1 %v4423_v10  ;;  %4279 = vmatprep.subr.bf16.mxu0 %v4424_v11  ;;  %v631_v63 = vmul.f32 %v4592_v4, %v560_v47  ;;  %v626_v1 = vmul.f32 %v4592_v4, %v555_v51  ;;  %v632_v2 = vmul.f32 %v4592_v4, %v561_v53 }
  0x36   : > { %v601_v3 = vmul.f32 %v4592_v4, %v530_v54  ;;  %v4843_v8 = vpack.c.bf16 %v671_v62, %v670_v57  ;;  %v633_v17 = vmul.f32 %v4592_v4, %v562_v0  ;;  %v635_v33 = vmul.f32 %v4592_v4, %v564_v12  ;;  %v525_v0 = vld [vmem:[%s4590_s13 + $0xb8] sm:$0xff]  ;;  %v558_v12 = vld [vmem:[%s4590_s13 + $0x1c0] sm:$0xff] }
  0x37   : > { %v702_v9 = vadd.f32 %v4594_v5, %v631_v63  ;;  %v703_v13 = vadd.f32 %v4594_v5, %v632_v2  ;;  %v636_v51 = vmul.f32 %v4592_v4, %v565_v18  ;;  %v694_v52 = vadd.f32 %v4594_v5, %v623_v41  ;;  %v4431_v41 = vld [vmem:[%s5346_s5 + $0x38] sm:$0xff]   ;;  %v524_v63 = vld [vmem:[%s4590_s13 + $0xb0] sm:$0xff] }
  0x38   : > { %4200 = vmatpush3.bf16.msra.mxu1 %v4423_v10  ;;  %4280 = vmatpush3.bf16.msra.mxu0 %v4424_v11  ;;  %v602_v10 = vmul.f32 %v4592_v4, %v531_v58  ;;  %v533_v11 = vld [vmem:[%s4590_s13 + $0xf8] sm:$0xff]  ;;  %v672_v16 = vadd.f32 %v4594_v5, %v601_v3  ;;  %v704_v29 = vadd.f32 %v4594_v5, %v633_v17 }
  0x39   : > { %4201 = vmatprep.subr.bf16.mxu1 %v4425_v24  ;;  %4281 = vmatprep.subr.bf16.mxu0 %v4426_v27  ;;  %v4862_v28 = vpack.c.bf16 %v703_v13, %v702_v9  ;;  %v604_v38 = vmul.f32 %v4592_v4, %v533_v11  ;;  %v706_v54 = vadd.f32 %v4594_v5, %v635_v33  ;;  %v557_v9 = vld [vmem:[%s4590_s13 + $0x1b8] sm:$0xff]  ;;  %v559_v13 = vld [vmem:[%s4590_s13 + $0x1c8] sm:$0xff] }
  0x3a   : > { %4138 = vmatmul.mubr.bf16.gmra.mrb[8].mxu0 %v4787_v34  ;;  %4170 = vmatmul.mubr.bf16.gmra.mrb[8].mxu1 %v4789_v35  ;;  %v673_v23 = vadd.f32 %v4594_v5, %v602_v10  ;;  %v695_v57 = vadd.f32 %v4594_v5, %v624_v50  ;;  %v707_v62 = vadd.f32 %v4594_v5, %v636_v51  ;;  %v526_v10 = vld [vmem:[%s4590_s13 + $0xc0] sm:$0xff] }
  0x3b   : > { %4141 = vmatprep.mubr.bf16.mxu0 %v4791_v36  ;;  %4173 = vmatprep.mubr.bf16.mxu1 %v4794_v39  ;;  %v675_v53 = vadd.f32 %v4594_v5, %v604_v38  ;;  %v664_v50 = vadd.f32 %v4594_v5, %v593_v55  ;;  %v696_v3 = vadd.f32 %v4594_v5, %v625_v59 }
  0x3c   : > { %4202 = vmatpush3.bf16.msra.mxu1 %v4425_v24  ;;  %4282 = vmatpush3.bf16.msra.mxu0 %v4426_v27  ;;  %v634_v24 = vmul.f32 %v4592_v4, %v563_v6  ;;  %v603_v27 = vmul.f32 %v4592_v4, %v532_v7  ;;  %v4867_v45 = vpack.c.bf16 %v673_v23, %v672_v16  ;;  %v556_v7 = vld [vmem:[%s4590_s13 + $0x1b0] sm:$0xff] }
  0x3d   : > { %4203 = vmatprep.subr.bf16.mxu1 %v4427_v60  ;;  %4283 = vmatprep.subr.bf16.mxu0 %v4428_v61  ;;  %v697_v6 = vadd.f32 %v4594_v5, %v626_v1  ;;  %v4900_v11 = vpack.c.bf16 %v707_v62, %v706_v54  ;;  %v4904_v55 = vpack.c.bf16 %v4813_v49, %v4804_v40 }
  0x3e   : > { %v705_v46 = vadd.f32 %v4594_v5, %v634_v24  ;;  %v674_v47 = vadd.f32 %v4594_v5, %v603_v27  ;;  %v4909_v16 = vpack.c.bf16 %v695_v57, %v694_v52  ;;  %v595_v59 = vmul.f32 %v4592_v4, %v524_v63 }
  0x3f   : > { %v596_v1 = vmul.f32 %v4592_v4, %v525_v0  ;;  %v627_v18 = vmul.f32 %v4592_v4, %v556_v7  ;;  %v628_v23 = vmul.f32 %v4592_v4, %v557_v9  ;;  %v597_v40 = vmul.f32 %v4592_v4, %v526_v10 }
  0x40   : > { %4204 = vmatpush3.bf16.msra.mxu1 %v4427_v60  ;;  %4284 = vmatpush3.bf16.msra.mxu0 %v4428_v61  ;;  %v4876_v58 = vpack.c.bf16 %v705_v46, %v704_v29  ;;  %v4432_v60 = vld [vmem:[%s5348_s7 + $0x38] sm:$0xff]   ;;  %v665_v61 = vadd.f32 %v4594_v5, %v594_v56  ;;  %v4891_v2 = vpack.c.bf16 %v675_v53, %v674_v47  ;;  %v527_v56 = vld [vmem:[%s4590_s13 + $0xc8] sm:$0xff]  ;;  %s5138_s13 = scalar_lea.vmem %s5352_s11, %s5008_s26 }
  0x41   : > { %4205 = vmatprep.subr.bf16.mxu1 %v4429_v21  ;;  %4285 = vmatprep.subr.bf16.mxu0 %v4430_v22  ;;  %v4916_v49 = vpack.c.bf16 %v697_v6, %v696_v3  ;;  %v630_v24 = vmul.f32 %v4592_v4, %v559_v13  ;;  %v666_v27 = vadd.f32 %v4594_v5, %v595_v59 }
  0x42   : > { %4142 = vmatmul.mubr.bf16.gmra.mrb[12].mxu0 %v4796_v42  ;;  %4174 = vmatmul.mubr.bf16.gmra.mrb[12].mxu1 %v4798_v43  ;;  %v718_v17 = vpack.c.bf16 %v665_v61, %v664_v50  ;;  %v667_v29 = vadd.f32 %v4594_v5, %v596_v1  ;;  %v698_v38 = vadd.f32 %v4594_v5, %v627_v18 }
  0x43   : > { %4145 = vmatprep.mubr.bf16.mxu0 %v4801_v44  ;;  %4177 = vmatprep.mubr.bf16.mxu1 %v4810_v48  ;;  %v699_v33 = vadd.f32 %v4594_v5, %v628_v23  ;;  %v668_v46 = vadd.f32 %v4594_v5, %v597_v40  ;;  %v701_v51 = vadd.f32 %v4594_v5, %v630_v24 }
  0x44   : > { %4206 = vmatpush3.bf16.msra.mxu1 %v4429_v21  ;;  %4286 = vmatpush3.bf16.msra.mxu0 %v4430_v22  ;;  %v598_v21 = vmul.f32 %v4592_v4, %v527_v56  ;;  %v629_v22 = vmul.f32 %v4592_v4, %v558_v12  ;;  %v719_v52 = vpack.c.bf16 %v667_v29, %v666_v27 }
  0x45   : > { %4207 = vmatprep.subr.bf16.mxu1 %v4431_v41  ;;  %4287 = vmatprep.subr.bf16.mxu0 %v4432_v60  ;;  %v4932_v53 = vpack.c.bf16 %v699_v33, %v698_v38 }
  0x46   : > { %v669_v4 = vadd.f32 %v4594_v5, %v598_v21  ;;  %v700_v47 = vadd.f32 %v4594_v5, %v629_v22 }
  0x48   : > { %4208 = vmatpush3.bf16.msra.mxu1 %v4431_v41  ;;  %4288 = vmatpush3.bf16.msra.mxu0 %v4432_v60  ;;  %v720_v54 = vpack.c.bf16 %v669_v4, %v668_v46  ;;  %v4934_v57 = vpack.c.bf16 %v701_v51, %v700_v47 }
  0x4a   : > { %4146 = vmatmul.mubr.bf16.gmra.mrb[16].mxu0 %v4904_v55  ;;  %4178 = vmatmul.mubr.bf16.gmra.mrb[16].mxu1 %v4909_v16 }
  0x4b   : > { %4149 = vmatprep.mubr.bf16.mxu0 %v718_v17  ;;  %4181 = vmatprep.mubr.bf16.mxu1 %v4916_v49 }
  0x52   : > { %4150 = vmatmul.mubr.bf16.gmra.mrb[20].mxu0 %v719_v52  ;;  %4182 = vmatmul.mubr.bf16.gmra.mrb[20].mxu1 %v4932_v53 }
  0x53   : > { %4153 = vmatprep.mubr.bf16.mxu0 %v720_v54  ;;  %4185 = vmatprep.mubr.bf16.mxu1 %v4934_v57 }
  0x5a   : > { %4154 = vmatmul.mubr.bf16.gmra.mrb[24].mxu0 %v4843_v8  ;;  %4186 = vmatmul.mubr.bf16.gmra.mrb[24].mxu1 %v4862_v28 }
  0x5b   : > { %4157 = vmatprep.mubr.bf16.mxu0 %v4867_v45  ;;  %4189 = vmatprep.mubr.bf16.mxu1 %v4876_v58 }
  0x62   : > { %4158 = vmatmul.mubr.bf16.gmra.mrb[28].mxu0 %v4891_v2  ;;  %4190 = vmatmul.mubr.bf16.gmra.mrb[28].mxu1 %v4900_v11 }
  0x63   : > { %4209 = vmatprep.mubr.bf16.mxu1 %v4611_v19  ;;  %4289 = vmatprep.mubr.bf16.mxu0 %v4611_v19  ;;  %v5005_v19 = vld [vmem:[%s5345_s4] ss:$0 sm:$0xff] }
  0x6a   : > { %4210 = vmatmul.mubr.bf16.vlgmr.msra.gmra.mrb[32].mxu1 %v4682_v14  ;;  %4290 = vmatmul.mubr.bf16.vlgmr.msra.gmra.mrb[32].mxu0 %v4682_v14 }
  0x6b   : > { %4213 = vmatprep.mubr.bf16.mxu1 %v4697_v25  ;;  %4293 = vmatprep.mubr.bf16.mxu0 %v4697_v25 }
  0x72   : > { %4214 = vmatmul.mubr.bf16.gmra.mrb[36].mxu1 %v4704_v30  ;;  %4294 = vmatmul.mubr.bf16.gmra.mrb[36].mxu0 %v4704_v30 }
  0x73   : > { %4217 = vmatprep.mubr.bf16.mxu1 %v4708_v32  ;;  %4297 = vmatprep.mubr.bf16.mxu0 %v4708_v32 }
  0x7a   : > { %4218 = vmatmul.mubr.bf16.gmra.mrb[40].mxu1 %v4787_v34  ;;  %4298 = vmatmul.mubr.bf16.gmra.mrb[40].mxu0 %v4787_v34 }
  0x7b   : > { %4221 = vmatprep.mubr.bf16.mxu1 %v4791_v36  ;;  %4301 = vmatprep.mubr.bf16.mxu0 %v4791_v36 }
  0x82   : > { %4222 = vmatmul.mubr.bf16.gmra.mrb[44].mxu1 %v4796_v42  ;;  %4302 = vmatmul.mubr.bf16.gmra.mrb[44].mxu0 %v4796_v42 }
  0x83   : > { %4225 = vmatprep.mubr.bf16.mxu1 %v4801_v44  ;;  %4305 = vmatprep.mubr.bf16.mxu0 %v4801_v44 }
  0x8a   : > { %4226 = vmatmul.mubr.bf16.gmra.mrb[48].mxu1 %v4904_v55  ;;  %4306 = vmatmul.mubr.bf16.gmra.mrb[48].mxu0 %v4904_v55 }
  0x8b   : > { %4229 = vmatprep.mubr.bf16.mxu1 %v718_v17  ;;  %4309 = vmatprep.mubr.bf16.mxu0 %v718_v17 }
  0x92   : > { %4230 = vmatmul.mubr.bf16.gmra.mrb[52].mxu1 %v719_v52  ;;  %4310 = vmatmul.mubr.bf16.gmra.mrb[52].mxu0 %v719_v52 }
  0x93   : > { %4233 = vmatprep.mubr.bf16.mxu1 %v720_v54  ;;  %4313 = vmatprep.mubr.bf16.mxu0 %v720_v54 }
  0x9a   : > { %4234 = vmatmul.mubr.bf16.gmra.mrb[56].mxu1 %v4843_v8  ;;  %4314 = vmatmul.mubr.bf16.gmra.mrb[56].mxu0 %v4843_v8 }
  0x9b   : > { %4237 = vmatprep.mubr.bf16.mxu1 %v4867_v45  ;;  %4317 = vmatprep.mubr.bf16.mxu0 %v4867_v45 }
  0xa2   : > { %4238 = vmatmul.mubr.bf16.gmra.mrb[60].mxu1 %v4891_v2  ;;  %4318 = vmatmul.mubr.bf16.gmra.mrb[60].mxu0 %v4891_v2 }
  0xa3   : > { %4241 = vmatprep.mubr.bf16.mxu1 %v4613_v20  ;;  %4321 = vmatprep.mubr.bf16.mxu0 %v4613_v20 }
  0xaa   : > { %4242 = vmatmul.mubr.bf16.gmra.mrb[64].mxu1 %v4684_v15  ;;  %4322 = vmatmul.mubr.bf16.gmra.mrb[64].mxu0 %v4684_v15 }
  0xab   : > { %4245 = vmatprep.mubr.bf16.mxu1 %v4699_v26  ;;  %4325 = vmatprep.mubr.bf16.mxu0 %v4699_v26 }
  0xb2   : > { %4246 = vmatmul.mubr.bf16.gmra.mrb[68].mxu1 %v4706_v31  ;;  %4326 = vmatmul.mubr.bf16.gmra.mrb[68].mxu0 %v4706_v31 }
  0xb3   : > { %4249 = vmatprep.mubr.bf16.mxu1 %v4718_v37  ;;  %4329 = vmatprep.mubr.bf16.mxu0 %v4718_v37 }
  0xba   : > { %4250 = vmatmul.mubr.bf16.gmra.mrb[72].mxu1 %v4789_v35  ;;  %4330 = vmatmul.mubr.bf16.gmra.mrb[72].mxu0 %v4789_v35 }
  0xbb   : > { %4253 = vmatprep.mubr.bf16.mxu1 %v4794_v39  ;;  %4333 = vmatprep.mubr.bf16.mxu0 %v4794_v39 }
  0xc2   : > { %4254 = vmatmul.mubr.bf16.gmra.mrb[76].mxu1 %v4798_v43  ;;  %4334 = vmatmul.mubr.bf16.gmra.mrb[76].mxu0 %v4798_v43 }
  0xc3   : > { %4257 = vmatprep.mubr.bf16.mxu1 %v4810_v48  ;;  %4337 = vmatprep.mubr.bf16.mxu0 %v4810_v48 }
  0xca   : > { %4258 = vmatmul.mubr.bf16.gmra.mrb[80].mxu1 %v4909_v16  ;;  %4338 = vmatmul.mubr.bf16.gmra.mrb[80].mxu0 %v4909_v16 }
  0xcb   : > { %4261 = vmatprep.mubr.bf16.mxu1 %v4916_v49  ;;  %4341 = vmatprep.mubr.bf16.mxu0 %v4916_v49 }
  0xd2   : > { %4262 = vmatmul.mubr.bf16.gmra.mrb[84].mxu1 %v4932_v53  ;;  %4342 = vmatmul.mubr.bf16.gmra.mrb[84].mxu0 %v4932_v53 }
  0xd3   : > { %4265 = vmatprep.mubr.bf16.mxu1 %v4934_v57  ;;  %4345 = vmatprep.mubr.bf16.mxu0 %v4934_v57 }
  0xda   : > { %4266 = vmatmul.mubr.bf16.gmra.mrb[88].mxu1 %v4862_v28  ;;  %4346 = vmatmul.mubr.bf16.gmra.mrb[88].mxu0 %v4862_v28 }
  0xdb   : > { %4269 = vmatprep.mubr.bf16.mxu1 %v4876_v58  ;;  %4349 = vmatprep.mubr.bf16.mxu0 %v4876_v58 }
  0xe2   : > { %4270 = vmatmul.mubr.bf16.gmra.mrb[92].mxu1 %v4900_v11  ;;  %4350 = vmatmul.mubr.bf16.gmra.mrb[92].mxu0 %v4900_v11 }
  0xfd   : > { %v4131_v5 = vpop.f32.mrb[0].mxu0  ;;  %v4163_v20 = vpop.f32.mrb[0].mxu1 }
  0xfe   : > { %v845_v14 = vpop.f32.mrb[1].mxu0  ;;  %v973_v15 = vpop.f32.mrb[1].mxu1  ;;  %v854_v30 = vadd.f32 %v4131_v5, %v5005_v19  ;;  %v982_v31 = vadd.f32 %v4163_v20, %v5005_v19 }
  0xff   : > { %v4132_v25 = vpop.f32.mrb[2].mxu0  ;;  %v4164_v26 = vpop.f32.mrb[2].mxu1  ;;  %v846_v36 = vadd.f32 %v5005_v19, %v845_v14  ;;  %v974_v39 = vadd.f32 %v5005_v19, %v973_v15 }
 0x100   : > { %v857_v32 = vadd.f32 %v4132_v25, %v5005_v19  ;;  %v985_v37 = vadd.f32 %v4164_v26, %v5005_v19  ;;  %v848_v34 = vpop.f32.mrb[3].mxu0  ;;  %v976_v35 = vpop.f32.mrb[3].mxu1 }
 0x101   : > { %v849_v42 = vadd.f32 %v5005_v19, %v848_v34  ;;  %v977_v43 = vadd.f32 %v5005_v19, %v976_v35 }
 0x102   : > { %v3428_v44 = vpack.c.bf16 %v857_v32, %v854_v30  ;;  %v3508_v48 = vpack.c.bf16 %v985_v37, %v982_v31 }
 0x103   : > { %v3423_v8 = vpack.c.bf16 %v849_v42, %v846_v36  ;;  %v3503_v28 = vpack.c.bf16 %v977_v43, %v974_v39 }
 0x104   : > { %3900 = vst [vmem:[%s5020_s14 + $0x8] sm:$0xff] %v3428_v44   ;;  %3916 = vst [vmem:[%s5020_s14 + $0x88] sm:$0xff] %v3508_v48  }
 0x105   : > { %3424 = vst [vmem:[%s5020_s14] sm:$0xff] %v3423_v8   ;;  %3915 = vst [vmem:[%s5020_s14 + $0x80] sm:$0xff] %v3503_v28   ;;  %v4135_v45 = vpop.f32.mrb[4].mxu0  ;;  %v4167_v58 = vpop.f32.mrb[4].mxu1 }
 0x106   : > { %v861_v62 = vpop.f32.mrb[5].mxu0  ;;  %v989_v41 = vpop.f32.mrb[5].mxu1  ;;  %v870_v61 = vadd.f32 %v4135_v45, %v5005_v19  ;;  %v998_v63 = vadd.f32 %v4167_v58, %v5005_v19 }
 0x107   : > { %v4136_v60 = vpop.f32.mrb[6].mxu0  ;;  %v4168_v50 = vpop.f32.mrb[6].mxu1  ;;  %v862_v7 = vadd.f32 %v5005_v19, %v861_v62  ;;  %v990_v9 = vadd.f32 %v5005_v19, %v989_v41 }
 0x108   : > { %v873_v0 = vadd.f32 %v4136_v60, %v5005_v19  ;;  %v1001_v2 = vadd.f32 %v4168_v50, %v5005_v19  ;;  %v864_v3 = vpop.f32.mrb[7].mxu0  ;;  %v992_v6 = vpop.f32.mrb[7].mxu1 }
 0x109   : > { %v865_v10 = vadd.f32 %v5005_v19, %v864_v3  ;;  %v993_v11 = vadd.f32 %v5005_v19, %v992_v6 }
 0x10a   : > { %v3438_v55 = vpack.c.bf16 %v873_v0, %v870_v61  ;;  %v3518_v56 = vpack.c.bf16 %v1001_v2, %v998_v63 }
 0x10b   : > { %v3433_v12 = vpack.c.bf16 %v865_v10, %v862_v7  ;;  %v3513_v13 = vpack.c.bf16 %v993_v11, %v990_v9 }
 0x10c   : > { %3902 = vst [vmem:[%s5020_s14 + $0x18] sm:$0xff] %v3438_v55   ;;  %3918 = vst [vmem:[%s5020_s14 + $0x98] sm:$0xff] %v3518_v56  }
 0x10d   : > { %3901 = vst [vmem:[%s5020_s14 + $0x10] sm:$0xff] %v3433_v12   ;;  %3917 = vst [vmem:[%s5020_s14 + $0x90] sm:$0xff] %v3513_v13   ;;  %v4139_v16 = vpop.f32.mrb[8].mxu0  ;;  %v4171_v59 = vpop.f32.mrb[8].mxu1 }
 0x10e   : > { %v877_v1 = vpop.f32.mrb[9].mxu0  ;;  %v1005_v17 = vpop.f32.mrb[9].mxu1  ;;  %v886_v40 = vadd.f32 %v4139_v16, %v5005_v19  ;;  %v1014_v49 = vadd.f32 %v4171_v59, %v5005_v19 }
 0x10f   : > { %v4140_v18 = vpop.f32.mrb[10].mxu0  ;;  %v4172_v23 = vpop.f32.mrb[10].mxu1  ;;  %v878_v29 = vadd.f32 %v5005_v19, %v877_v1  ;;  %v1006_v38 = vadd.f32 %v5005_v19, %v1005_v17 }
 0x110   : > { %v889_v21 = vadd.f32 %v4140_v18, %v5005_v19  ;;  %v1017_v22 = vadd.f32 %v4172_v23, %v5005_v19  ;;  %v880_v24 = vpop.f32.mrb[11].mxu0  ;;  %v1008_v27 = vpop.f32.mrb[11].mxu1 }
 0x111   : > { %v881_v33 = vadd.f32 %v5005_v19, %v880_v24  ;;  %v1009_v46 = vadd.f32 %v5005_v19, %v1008_v27 }
 0x112   : > { %v3448_v4 = vpack.c.bf16 %v889_v21, %v886_v40  ;;  %v3528_v47 = vpack.c.bf16 %v1017_v22, %v1014_v49 }
 0x113   : > { %v3443_v51 = vpack.c.bf16 %v881_v33, %v878_v29  ;;  %v3523_v52 = vpack.c.bf16 %v1009_v46, %v1006_v38 }
 0x114   : > { %3904 = vst [vmem:[%s5020_s14 + $0x28] sm:$0xff] %v3448_v4   ;;  %3920 = vst [vmem:[%s5020_s14 + $0xa8] sm:$0xff] %v3528_v47  }
 0x115   : > { %3903 = vst [vmem:[%s5020_s14 + $0x20] sm:$0xff] %v3443_v51   ;;  %3919 = vst [vmem:[%s5020_s14 + $0xa0] sm:$0xff] %v3523_v52   ;;  %v4143_v53 = vpop.f32.mrb[12].mxu0  ;;  %v4175_v54 = vpop.f32.mrb[12].mxu1 }
 0x116   : > { %v893_v57 = vpop.f32.mrb[13].mxu0  ;;  %v1021_v5 = vpop.f32.mrb[13].mxu1  ;;  %v902_v15 = vadd.f32 %v4143_v53, %v5005_v19  ;;  %v1030_v25 = vadd.f32 %v4175_v54, %v5005_v19 }
 0x117   : > { %v4144_v20 = vpop.f32.mrb[14].mxu0  ;;  %v4176_v14 = vpop.f32.mrb[14].mxu1  ;;  %v894_v37 = vadd.f32 %v5005_v19, %v893_v57  ;;  %v1022_v34 = vadd.f32 %v5005_v19, %v1021_v5 }
 0x118   : > { %v905_v26 = vadd.f32 %v4144_v20, %v5005_v19  ;;  %v1033_v30 = vadd.f32 %v4176_v14, %v5005_v19  ;;  %v896_v31 = vpop.f32.mrb[15].mxu0  ;;  %v1024_v32 = vpop.f32.mrb[15].mxu1 }
 0x119   : > { %v897_v35 = vadd.f32 %v5005_v19, %v896_v31  ;;  %v1025_v36 = vadd.f32 %v5005_v19, %v1024_v32 }
 0x11a   : > { %v3458_v39 = vpack.c.bf16 %v905_v26, %v902_v15  ;;  %v3538_v42 = vpack.c.bf16 %v1033_v30, %v1030_v25 }
 0x11b   : > { %v3453_v43 = vpack.c.bf16 %v897_v35, %v894_v37  ;;  %v3533_v44 = vpack.c.bf16 %v1025_v36, %v1022_v34 }
 0x11c   : > { %3906 = vst [vmem:[%s5020_s14 + $0x38] sm:$0xff] %v3458_v39   ;;  %3922 = vst [vmem:[%s5020_s14 + $0xb8] sm:$0xff] %v3538_v42  }
 0x11d   : > { %3905 = vst [vmem:[%s5020_s14 + $0x30] sm:$0xff] %v3453_v43   ;;  %3921 = vst [vmem:[%s5020_s14 + $0xb0] sm:$0xff] %v3533_v44   ;;  %v4147_v48 = vpop.f32.mrb[16].mxu0  ;;  %v4179_v8 = vpop.f32.mrb[16].mxu1 }
 0x11e   : > { %v909_v28 = vpop.f32.mrb[17].mxu0  ;;  %v1037_v45 = vpop.f32.mrb[17].mxu1  ;;  %v918_v41 = vadd.f32 %v4147_v48, %v5005_v19  ;;  %v1046_v60 = vadd.f32 %v4179_v8, %v5005_v19 }
 0x11f   : > { %v4148_v58 = vpop.f32.mrb[18].mxu0  ;;  %v4180_v62 = vpop.f32.mrb[18].mxu1  ;;  %v910_v2 = vadd.f32 %v5005_v19, %v909_v28  ;;  %v1038_v3 = vadd.f32 %v5005_v19, %v1037_v45 }
 0x120   : > { %v921_v50 = vadd.f32 %v4148_v58, %v5005_v19  ;;  %v1049_v61 = vadd.f32 %v4180_v62, %v5005_v19  ;;  %v912_v63 = vpop.f32.mrb[19].mxu0  ;;  %v1040_v0 = vpop.f32.mrb[19].mxu1 }
 0x121   : > { %v913_v6 = vadd.f32 %v5005_v19, %v912_v63  ;;  %v1041_v7 = vadd.f32 %v5005_v19, %v1040_v0 }
 0x122   : > { %v3468_v9 = vpack.c.bf16 %v921_v50, %v918_v41  ;;  %v3548_v10 = vpack.c.bf16 %v1049_v61, %v1046_v60 }
 0x123   : > { %v3463_v11 = vpack.c.bf16 %v913_v6, %v910_v2  ;;  %v3543_v55 = vpack.c.bf16 %v1041_v7, %v1038_v3 }
 0x124   : > { %3908 = vst [vmem:[%s5020_s14 + $0x48] sm:$0xff] %v3468_v9   ;;  %3924 = vst [vmem:[%s5020_s14 + $0xc8] sm:$0xff] %v3548_v10  }
 0x125   : > { %3907 = vst [vmem:[%s5020_s14 + $0x40] sm:$0xff] %v3463_v11   ;;  %3923 = vst [vmem:[%s5020_s14 + $0xc0] sm:$0xff] %v3543_v55   ;;  %v4151_v56 = vpop.f32.mrb[20].mxu0  ;;  %v4183_v12 = vpop.f32.mrb[20].mxu1  ;;  %v5115_v11 = vld [vmem:[%s5347_s6] ss:$0 sm:$0xff] }
 0x126   : > { %v925_v13 = vpop.f32.mrb[21].mxu0  ;;  %v1053_v16 = vpop.f32.mrb[21].mxu1  ;;  %v934_v17 = vadd.f32 %v4151_v56, %v5005_v19  ;;  %v1062_v18 = vadd.f32 %v4183_v12, %v5005_v19 }
 0x127   : > { %v4152_v59 = vpop.f32.mrb[22].mxu0  ;;  %v4184_v1 = vpop.f32.mrb[22].mxu1  ;;  %v926_v22 = vadd.f32 %v5005_v19, %v925_v13  ;;  %v1054_v24 = vadd.f32 %v5005_v19, %v1053_v16 }
 0x128   : > { %v937_v23 = vadd.f32 %v4152_v59, %v5005_v19  ;;  %v1065_v40 = vadd.f32 %v4184_v1, %v5005_v19  ;;  %v928_v49 = vpop.f32.mrb[23].mxu0  ;;  %v1056_v21 = vpop.f32.mrb[23].mxu1 }
 0x129   : > { %v929_v27 = vadd.f32 %v5005_v19, %v928_v49  ;;  %v1057_v29 = vadd.f32 %v5005_v19, %v1056_v21 }
 0x12a   : > { %v3478_v38 = vpack.c.bf16 %v937_v23, %v934_v17  ;;  %v3558_v33 = vpack.c.bf16 %v1065_v40, %v1062_v18 }
 0x12b   : > { %v3473_v46 = vpack.c.bf16 %v929_v27, %v926_v22  ;;  %v3553_v4 = vpack.c.bf16 %v1057_v29, %v1054_v24 }
 0x12c   : > { %3910 = vst [vmem:[%s5020_s14 + $0x58] sm:$0xff] %v3478_v38   ;;  %3926 = vst [vmem:[%s5020_s14 + $0xd8] sm:$0xff] %v3558_v33  }
 0x12d   : > { %3909 = vst [vmem:[%s5020_s14 + $0x50] sm:$0xff] %v3473_v46   ;;  %3925 = vst [vmem:[%s5020_s14 + $0xd0] sm:$0xff] %v3553_v4   ;;  %v4155_v47 = vpop.f32.mrb[24].mxu0  ;;  %v4187_v51 = vpop.f32.mrb[24].mxu1 }
 0x12e   : > { %v941_v52 = vpop.f32.mrb[25].mxu0  ;;  %v1069_v53 = vpop.f32.mrb[25].mxu1  ;;  %v950_v5 = vadd.f32 %v4155_v47, %v5005_v19  ;;  %v1078_v20 = vadd.f32 %v4187_v51, %v5005_v19 }
 0x12f   : > { %v4156_v54 = vpop.f32.mrb[26].mxu0  ;;  %v4188_v57 = vpop.f32.mrb[26].mxu1  ;;  %v942_v30 = vadd.f32 %v5005_v19, %v941_v52  ;;  %v1070_v31 = vadd.f32 %v5005_v19, %v1069_v53 }
 0x130   : > { %v953_v14 = vadd.f32 %v4156_v54, %v5005_v19  ;;  %v1081_v15 = vadd.f32 %v4188_v57, %v5005_v19  ;;  %v944_v25 = vpop.f32.mrb[27].mxu0  ;;  %v1072_v26 = vpop.f32.mrb[27].mxu1 }
 0x131   : > { %v945_v32 = vadd.f32 %v5005_v19, %v944_v25  ;;  %v1073_v37 = vadd.f32 %v5005_v19, %v1072_v26 }
 0x132   : > { %v3488_v34 = vpack.c.bf16 %v953_v14, %v950_v5  ;;  %v3568_v35 = vpack.c.bf16 %v1081_v15, %v1078_v20 }
 0x133   : > { %v3483_v36 = vpack.c.bf16 %v945_v32, %v942_v30  ;;  %v3563_v39 = vpack.c.bf16 %v1073_v37, %v1070_v31 }
 0x134   : > { %3912 = vst [vmem:[%s5020_s14 + $0x68] sm:$0xff] %v3488_v34   ;;  %3928 = vst [vmem:[%s5020_s14 + $0xe8] sm:$0xff] %v3568_v35  }
 0x135   : > { %3911 = vst [vmem:[%s5020_s14 + $0x60] sm:$0xff] %v3483_v36   ;;  %3927 = vst [vmem:[%s5020_s14 + $0xe0] sm:$0xff] %v3563_v39   ;;  %v4159_v42 = vpop.f32.mrb[28].mxu0  ;;  %v4191_v43 = vpop.f32.mrb[28].mxu1 }
 0x136   : > { %v957_v44 = vpop.f32.mrb[29].mxu0  ;;  %v1085_v48 = vpop.f32.mrb[29].mxu1  ;;  %v966_v45 = vadd.f32 %v4159_v42, %v5005_v19  ;;  %v1094_v58 = vadd.f32 %v4191_v43, %v5005_v19 }
 0x137   : > { %v4160_v8 = vpop.f32.mrb[30].mxu0  ;;  %v4192_v28 = vpop.f32.mrb[30].mxu1  ;;  %v958_v61 = vadd.f32 %v5005_v19, %v957_v44  ;;  %v1086_v63 = vadd.f32 %v5005_v19, %v1085_v48 }
 0x138   : > { %v969_v62 = vadd.f32 %v4160_v8, %v5005_v19  ;;  %v1097_v41 = vadd.f32 %v4192_v28, %v5005_v19  ;;  %v960_v60 = vpop.f32.mrb[31].mxu0  ;;  %v1088_v50 = vpop.f32.mrb[31].mxu1 }
 0x139   : > { %v961_v0 = vadd.f32 %v5005_v19, %v960_v60  ;;  %v1089_v2 = vadd.f32 %v5005_v19, %v1088_v50  ;;  %v5120_v19 = vld [vmem:[%s5349_s8] ss:$0 sm:$0xff] }
 0x13a   : > { %v3498_v3 = vpack.c.bf16 %v969_v62, %v966_v45  ;;  %v3578_v6 = vpack.c.bf16 %v1097_v41, %v1094_v58 }
 0x13b   : > { %v3493_v7 = vpack.c.bf16 %v961_v0, %v958_v61  ;;  %v3573_v9 = vpack.c.bf16 %v1089_v2, %v1086_v63 }
 0x13c   : > { %3914 = vst [vmem:[%s5020_s14 + $0x78] sm:$0xff] %v3498_v3   ;;  %3930 = vst [vmem:[%s5020_s14 + $0xf8] sm:$0xff] %v3578_v6  }
 0x13d   : > { %3913 = vst [vmem:[%s5020_s14 + $0x70] sm:$0xff] %v3493_v7   ;;  %3929 = vst [vmem:[%s5020_s14 + $0xf0] sm:$0xff] %v3573_v9   ;;  %v4211_v10 = vpop.f32.mrb[32].mxu1  ;;  %v4291_v55 = vpop.f32.mrb[32].mxu0 }
 0x13e   : > { %v1205_v56 = vpop.f32.mrb[33].mxu1  ;;  %v1565_v12 = vpop.f32.mrb[33].mxu0  ;;  %v1214_v59 = vadd.f32 %v4211_v10, %v5115_v11  ;;  %v1574_v1 = vadd.f32 %v4291_v55, %v5120_v19 }
 0x13f   : > { %v4212_v13 = vpop.f32.mrb[34].mxu1  ;;  %v4292_v16 = vpop.f32.mrb[34].mxu0  ;;  %v1206_v49 = vadd.f32 %v5115_v11, %v1205_v56  ;;  %v1566_v21 = vadd.f32 %v5120_v19, %v1565_v12 }
 0x140   : > { %v1217_v17 = vadd.f32 %v4212_v13, %v5115_v11  ;;  %v1577_v18 = vadd.f32 %v4292_v16, %v5120_v19  ;;  %v1208_v23 = vpop.f32.mrb[35].mxu1  ;;  %v1568_v40 = vpop.f32.mrb[35].mxu0 }
 0x141   : > { %v1209_v22 = vadd.f32 %v5115_v11, %v1208_v23  ;;  %v1569_v24 = vadd.f32 %v5120_v19, %v1568_v40 }
 0x142   : > { %v3588_v27 = vpack.c.bf16 %v1217_v17, %v1214_v59  ;;  %v3748_v29 = vpack.c.bf16 %v1577_v18, %v1574_v1 }
 0x143   : > { %v3583_v38 = vpack.c.bf16 %v1209_v22, %v1206_v49  ;;  %v3743_v33 = vpack.c.bf16 %v1569_v24, %v1566_v21 }
 0x144   : > { %3931 = vst [vmem:[%s5132_s29 + $0x8] sm:$0xff] %v3588_v27   ;;  %3962 = vst [vmem:[%s5138_s13 + $0x8] sm:$0xff] %v3748_v29  }
 0x145   : > { %3584 = vst [vmem:[%s5132_s29] sm:$0xff] %v3583_v38   ;;  %3744 = vst [vmem:[%s5138_s13] sm:$0xff] %v3743_v33   ;;  %v4215_v46 = vpop.f32.mrb[36].mxu1  ;;  %v4295_v4 = vpop.f32.mrb[36].mxu0 }
 0x146   : > { %v1221_v47 = vpop.f32.mrb[37].mxu1  ;;  %v1581_v51 = vpop.f32.mrb[37].mxu0  ;;  %v1230_v54 = vadd.f32 %v4215_v46, %v5115_v11  ;;  %v1590_v57 = vadd.f32 %v4295_v4, %v5120_v19 }
 0x147   : > { %v4216_v52 = vpop.f32.mrb[38].mxu1  ;;  %v4296_v53 = vpop.f32.mrb[38].mxu0  ;;  %v1222_v25 = vadd.f32 %v5115_v11, %v1221_v47  ;;  %v1582_v26 = vadd.f32 %v5120_v19, %v1581_v51 }
 0x148   : > { %v1233_v5 = vadd.f32 %v4216_v52, %v5115_v11  ;;  %v1593_v20 = vadd.f32 %v4296_v53, %v5120_v19  ;;  %v1224_v14 = vpop.f32.mrb[39].mxu1  ;;  %v1584_v15 = vpop.f32.mrb[39].mxu0 }
 0x149   : > { %v1225_v30 = vadd.f32 %v5115_v11, %v1224_v14  ;;  %v1585_v31 = vadd.f32 %v5120_v19, %v1584_v15 }
 0x14a   : > { %v3598_v32 = vpack.c.bf16 %v1233_v5, %v1230_v54  ;;  %v3758_v37 = vpack.c.bf16 %v1593_v20, %v1590_v57 }
 0x14b   : > { %v3593_v34 = vpack.c.bf16 %v1225_v30, %v1222_v25  ;;  %v3753_v35 = vpack.c.bf16 %v1585_v31, %v1582_v26 }
 0x14c   : > { %3933 = vst [vmem:[%s5132_s29 + $0x18] sm:$0xff] %v3598_v32   ;;  %3964 = vst [vmem:[%s5138_s13 + $0x18] sm:$0xff] %v3758_v37  }
 0x14d   : > { %3932 = vst [vmem:[%s5132_s29 + $0x10] sm:$0xff] %v3593_v34   ;;  %3963 = vst [vmem:[%s5138_s13 + $0x10] sm:$0xff] %v3753_v35   ;;  %v4219_v36 = vpop.f32.mrb[40].mxu1  ;;  %v4299_v39 = vpop.f32.mrb[40].mxu0 }
 0x14e   : > { %v1237_v42 = vpop.f32.mrb[41].mxu1  ;;  %v1597_v43 = vpop.f32.mrb[41].mxu0  ;;  %v1246_v8 = vadd.f32 %v4219_v36, %v5115_v11  ;;  %v1606_v28 = vadd.f32 %v4299_v39, %v5120_v19 }
 0x14f   : > { %v4220_v44 = vpop.f32.mrb[42].mxu1  ;;  %v4300_v48 = vpop.f32.mrb[42].mxu0  ;;  %v1238_v60 = vadd.f32 %v5115_v11, %v1237_v42  ;;  %v1598_v50 = vadd.f32 %v5120_v19, %v1597_v43 }
 0x150   : > { %v1249_v45 = vadd.f32 %v4220_v44, %v5115_v11  ;;  %v1609_v58 = vadd.f32 %v4300_v48, %v5120_v19  ;;  %v1240_v62 = vpop.f32.mrb[43].mxu1  ;;  %v1600_v41 = vpop.f32.mrb[43].mxu0 }
 0x151   : > { %v1241_v61 = vadd.f32 %v5115_v11, %v1240_v62  ;;  %v1601_v63 = vadd.f32 %v5120_v19, %v1600_v41 }
 0x152   : > { %v3608_v0 = vpack.c.bf16 %v1249_v45, %v1246_v8  ;;  %v3768_v2 = vpack.c.bf16 %v1609_v58, %v1606_v28 }
 0x153   : > { %v3603_v3 = vpack.c.bf16 %v1241_v61, %v1238_v60  ;;  %v3763_v6 = vpack.c.bf16 %v1601_v63, %v1598_v50 }
 0x154   : > { %3935 = vst [vmem:[%s5132_s29 + $0x28] sm:$0xff] %v3608_v0   ;;  %3966 = vst [vmem:[%s5138_s13 + $0x28] sm:$0xff] %v3768_v2  }
 0x155   : > { %3934 = vst [vmem:[%s5132_s29 + $0x20] sm:$0xff] %v3603_v3   ;;  %3965 = vst [vmem:[%s5138_s13 + $0x20] sm:$0xff] %v3763_v6   ;;  %v4223_v7 = vpop.f32.mrb[44].mxu1  ;;  %v4303_v9 = vpop.f32.mrb[44].mxu0 }
 0x156   : > { %v1253_v10 = vpop.f32.mrb[45].mxu1  ;;  %v1613_v55 = vpop.f32.mrb[45].mxu0  ;;  %v1262_v13 = vadd.f32 %v4223_v7, %v5115_v11  ;;  %v1622_v16 = vadd.f32 %v4303_v9, %v5120_v19 }
 0x157   : > { %v4224_v56 = vpop.f32.mrb[46].mxu1  ;;  %v4304_v12 = vpop.f32.mrb[46].mxu0  ;;  %v1254_v23 = vadd.f32 %v5115_v11, %v1253_v10  ;;  %v1614_v40 = vadd.f32 %v5120_v19, %v1613_v55 }
 0x158   : > { %v1265_v59 = vadd.f32 %v4224_v56, %v5115_v11  ;;  %v1625_v1 = vadd.f32 %v4304_v12, %v5120_v19  ;;  %v1256_v17 = vpop.f32.mrb[47].mxu1  ;;  %v1616_v18 = vpop.f32.mrb[47].mxu0 }
 0x159   : > { %v1257_v49 = vadd.f32 %v5115_v11, %v1256_v17  ;;  %v1617_v21 = vadd.f32 %v5120_v19, %v1616_v18 }
 0x15a   : > { %v3618_v22 = vpack.c.bf16 %v1265_v59, %v1262_v13  ;;  %v3778_v24 = vpack.c.bf16 %v1625_v1, %v1622_v16 }
 0x15b   : > { %v3613_v27 = vpack.c.bf16 %v1257_v49, %v1254_v23  ;;  %v3773_v29 = vpack.c.bf16 %v1617_v21, %v1614_v40 }
 0x15c   : > { %3937 = vst [vmem:[%s5132_s29 + $0x38] sm:$0xff] %v3618_v22   ;;  %3968 = vst [vmem:[%s5138_s13 + $0x38] sm:$0xff] %v3778_v24  }
 0x15d   : > { %3936 = vst [vmem:[%s5132_s29 + $0x30] sm:$0xff] %v3613_v27   ;;  %3967 = vst [vmem:[%s5138_s13 + $0x30] sm:$0xff] %v3773_v29   ;;  %v4227_v38 = vpop.f32.mrb[48].mxu1  ;;  %v4307_v33 = vpop.f32.mrb[48].mxu0 }
 0x15e   : > { %v1269_v46 = vpop.f32.mrb[49].mxu1  ;;  %v1629_v4 = vpop.f32.mrb[49].mxu0  ;;  %v1278_v52 = vadd.f32 %v4227_v38, %v5115_v11  ;;  %v1638_v53 = vadd.f32 %v4307_v33, %v5120_v19 }
 0x15f   : > { %v4228_v47 = vpop.f32.mrb[50].mxu1  ;;  %v4308_v51 = vpop.f32.mrb[50].mxu0  ;;  %v1270_v14 = vadd.f32 %v5115_v11, %v1269_v46  ;;  %v1630_v15 = vadd.f32 %v5120_v19, %v1629_v4 }
 0x160   : > { %v1281_v54 = vadd.f32 %v4228_v47, %v5115_v11  ;;  %v1641_v57 = vadd.f32 %v4308_v51, %v5120_v19  ;;  %v1272_v5 = vpop.f32.mrb[51].mxu1  ;;  %v1632_v20 = vpop.f32.mrb[51].mxu0 }
 0x161   : > { %v1273_v25 = vadd.f32 %v5115_v11, %v1272_v5  ;;  %v1633_v26 = vadd.f32 %v5120_v19, %v1632_v20 }
 0x162   : > { %v3628_v30 = vpack.c.bf16 %v1281_v54, %v1278_v52  ;;  %v3788_v31 = vpack.c.bf16 %v1641_v57, %v1638_v53 }
 0x163   : > { %v3623_v32 = vpack.c.bf16 %v1273_v25, %v1270_v14  ;;  %v3783_v37 = vpack.c.bf16 %v1633_v26, %v1630_v15 }
 0x164   : > { %3939 = vst [vmem:[%s5132_s29 + $0x48] sm:$0xff] %v3628_v30   ;;  %3970 = vst [vmem:[%s5138_s13 + $0x48] sm:$0xff] %v3788_v31  }
 0x165   : > { %3938 = vst [vmem:[%s5132_s29 + $0x40] sm:$0xff] %v3623_v32   ;;  %3969 = vst [vmem:[%s5138_s13 + $0x40] sm:$0xff] %v3783_v37   ;;  %v4231_v34 = vpop.f32.mrb[52].mxu1  ;;  %v4311_v35 = vpop.f32.mrb[52].mxu0 }
 0x166   : > { %v1285_v36 = vpop.f32.mrb[53].mxu1  ;;  %v1645_v39 = vpop.f32.mrb[53].mxu0  ;;  %v1294_v44 = vadd.f32 %v4231_v34, %v5115_v11  ;;  %v1654_v48 = vadd.f32 %v4311_v35, %v5120_v19 }
 0x167   : > { %v4232_v42 = vpop.f32.mrb[54].mxu1  ;;  %v4312_v43 = vpop.f32.mrb[54].mxu0  ;;  %v1286_v62 = vadd.f32 %v5115_v11, %v1285_v36  ;;  %v1646_v41 = vadd.f32 %v5120_v19, %v1645_v39 }
 0x168   : > { %v1297_v8 = vadd.f32 %v4232_v42, %v5115_v11  ;;  %v1657_v28 = vadd.f32 %v4312_v43, %v5120_v19  ;;  %v1288_v45 = vpop.f32.mrb[55].mxu1  ;;  %v1648_v58 = vpop.f32.mrb[55].mxu0 }
 0x169   : > { %v1289_v60 = vadd.f32 %v5115_v11, %v1288_v45  ;;  %v1649_v50 = vadd.f32 %v5120_v19, %v1648_v58 }
 0x16a   : > { %v3638_v61 = vpack.c.bf16 %v1297_v8, %v1294_v44  ;;  %v3798_v63 = vpack.c.bf16 %v1657_v28, %v1654_v48 }
 0x16b   : > { %v3633_v0 = vpack.c.bf16 %v1289_v60, %v1286_v62  ;;  %v3793_v2 = vpack.c.bf16 %v1649_v50, %v1646_v41 }
 0x16c   : > { %3941 = vst [vmem:[%s5132_s29 + $0x58] sm:$0xff] %v3638_v61   ;;  %3972 = vst [vmem:[%s5138_s13 + $0x58] sm:$0xff] %v3798_v63  }
 0x16d   : > { %3940 = vst [vmem:[%s5132_s29 + $0x50] sm:$0xff] %v3633_v0   ;;  %3971 = vst [vmem:[%s5138_s13 + $0x50] sm:$0xff] %v3793_v2   ;;  %v4235_v3 = vpop.f32.mrb[56].mxu1  ;;  %v4315_v6 = vpop.f32.mrb[56].mxu0 }
 0x16e   : > { %v1301_v7 = vpop.f32.mrb[57].mxu1  ;;  %v1661_v9 = vpop.f32.mrb[57].mxu0  ;;  %v1310_v56 = vadd.f32 %v4235_v3, %v5115_v11  ;;  %v1670_v12 = vadd.f32 %v4315_v6, %v5120_v19 }
 0x16f   : > { %v4236_v10 = vpop.f32.mrb[58].mxu1  ;;  %v4316_v55 = vpop.f32.mrb[58].mxu0  ;;  %v1302_v17 = vadd.f32 %v5115_v11, %v1301_v7  ;;  %v1662_v18 = vadd.f32 %v5120_v19, %v1661_v9 }
 0x170   : > { %v1313_v13 = vadd.f32 %v4236_v10, %v5115_v11  ;;  %v1673_v16 = vadd.f32 %v4316_v55, %v5120_v19  ;;  %v1304_v59 = vpop.f32.mrb[59].mxu1  ;;  %v1664_v1 = vpop.f32.mrb[59].mxu0 }
 0x171   : > { %v1305_v23 = vadd.f32 %v5115_v11, %v1304_v59  ;;  %v1665_v40 = vadd.f32 %v5120_v19, %v1664_v1 }
 0x172   : > { %v3648_v49 = vpack.c.bf16 %v1313_v13, %v1310_v56  ;;  %v3808_v21 = vpack.c.bf16 %v1673_v16, %v1670_v12 }
 0x173   : > { %v3643_v22 = vpack.c.bf16 %v1305_v23, %v1302_v17  ;;  %v3803_v24 = vpack.c.bf16 %v1665_v40, %v1662_v18 }
 0x174   : > { %3943 = vst [vmem:[%s5132_s29 + $0x68] sm:$0xff] %v3648_v49   ;;  %3974 = vst [vmem:[%s5138_s13 + $0x68] sm:$0xff] %v3808_v21  }
 0x175   : > { %3942 = vst [vmem:[%s5132_s29 + $0x60] sm:$0xff] %v3643_v22   ;;  %3973 = vst [vmem:[%s5138_s13 + $0x60] sm:$0xff] %v3803_v24   ;;  %v4239_v27 = vpop.f32.mrb[60].mxu1  ;;  %v4319_v29 = vpop.f32.mrb[60].mxu0 }
 0x176   : > { %v1317_v38 = vpop.f32.mrb[61].mxu1  ;;  %v1677_v33 = vpop.f32.mrb[61].mxu0  ;;  %v1326_v47 = vadd.f32 %v4239_v27, %v5115_v11  ;;  %v1686_v51 = vadd.f32 %v4319_v29, %v5120_v19 }
 0x177   : > { %v4240_v46 = vpop.f32.mrb[62].mxu1  ;;  %v4320_v4 = vpop.f32.mrb[62].mxu0  ;;  %v1318_v5 = vadd.f32 %v5115_v11, %v1317_v38  ;;  %v1678_v20 = vadd.f32 %v5120_v19, %v1677_v33 }
 0x178   : > { %v1329_v52 = vadd.f32 %v4240_v46, %v5115_v11  ;;  %v1689_v53 = vadd.f32 %v4320_v4, %v5120_v19  ;;  %v1320_v54 = vpop.f32.mrb[63].mxu1  ;;  %v1680_v57 = vpop.f32.mrb[63].mxu0 }
 0x179   : > { %v1321_v14 = vadd.f32 %v5115_v11, %v1320_v54  ;;  %v1681_v15 = vadd.f32 %v5120_v19, %v1680_v57 }
 0x17a   : > { %v3658_v25 = vpack.c.bf16 %v1329_v52, %v1326_v47  ;;  %v3818_v26 = vpack.c.bf16 %v1689_v53, %v1686_v51 }
 0x17b   : > { %v3653_v30 = vpack.c.bf16 %v1321_v14, %v1318_v5  ;;  %v3813_v31 = vpack.c.bf16 %v1681_v15, %v1678_v20 }
 0x17c   : > { %3945 = vst [vmem:[%s5132_s29 + $0x78] sm:$0xff] %v3658_v25   ;;  %3976 = vst [vmem:[%s5138_s13 + $0x78] sm:$0xff] %v3818_v26  }
 0x17d   : > { %3944 = vst [vmem:[%s5132_s29 + $0x70] sm:$0xff] %v3653_v30   ;;  %3975 = vst [vmem:[%s5138_s13 + $0x70] sm:$0xff] %v3813_v31   ;;  %v4243_v32 = vpop.f32.mrb[64].mxu1  ;;  %v4323_v37 = vpop.f32.mrb[64].mxu0 }
 0x17e   : > { %v1333_v34 = vpop.f32.mrb[65].mxu1  ;;  %v1693_v35 = vpop.f32.mrb[65].mxu0  ;;  %v1342_v42 = vadd.f32 %v4243_v32, %v5115_v11  ;;  %v1702_v43 = vadd.f32 %v4323_v37, %v5120_v19 }
 0x17f   : > { %v4244_v36 = vpop.f32.mrb[66].mxu1  ;;  %v4324_v39 = vpop.f32.mrb[66].mxu0  ;;  %v1334_v45 = vadd.f32 %v5115_v11, %v1333_v34  ;;  %v1694_v58 = vadd.f32 %v5120_v19, %v1693_v35 }
 0x180   : > { %v1345_v44 = vadd.f32 %v4244_v36, %v5115_v11  ;;  %v1705_v48 = vadd.f32 %v4324_v39, %v5120_v19  ;;  %v1336_v8 = vpop.f32.mrb[67].mxu1  ;;  %v1696_v28 = vpop.f32.mrb[67].mxu0 }
 0x181   : > { %v1337_v62 = vadd.f32 %v5115_v11, %v1336_v8  ;;  %v1697_v41 = vadd.f32 %v5120_v19, %v1696_v28 }
 0x182   : > { %v3668_v60 = vpack.c.bf16 %v1345_v44, %v1342_v42  ;;  %v3828_v50 = vpack.c.bf16 %v1705_v48, %v1702_v43 }
 0x183   : > { %v3663_v61 = vpack.c.bf16 %v1337_v62, %v1334_v45  ;;  %v3823_v63 = vpack.c.bf16 %v1697_v41, %v1694_v58 }
 0x184   : > { %3947 = vst [vmem:[%s5132_s29 + $0x88] sm:$0xff] %v3668_v60   ;;  %3978 = vst [vmem:[%s5138_s13 + $0x88] sm:$0xff] %v3828_v50  }
 0x185   : > { %3946 = vst [vmem:[%s5132_s29 + $0x80] sm:$0xff] %v3663_v61   ;;  %3977 = vst [vmem:[%s5138_s13 + $0x80] sm:$0xff] %v3823_v63   ;;  %v4247_v0 = vpop.f32.mrb[68].mxu1  ;;  %v4327_v2 = vpop.f32.mrb[68].mxu0 }
 0x186   : > { %v1349_v3 = vpop.f32.mrb[69].mxu1  ;;  %v1709_v6 = vpop.f32.mrb[69].mxu0  ;;  %v1358_v10 = vadd.f32 %v4247_v0, %v5115_v11  ;;  %v1718_v55 = vadd.f32 %v4327_v2, %v5120_v19 }
 0x187   : > { %v4248_v7 = vpop.f32.mrb[70].mxu1  ;;  %v4328_v9 = vpop.f32.mrb[70].mxu0  ;;  %v1350_v59 = vadd.f32 %v5115_v11, %v1349_v3  ;;  %v1710_v1 = vadd.f32 %v5120_v19, %v1709_v6 }
 0x188   : > { %v1361_v56 = vadd.f32 %v4248_v7, %v5115_v11  ;;  %v1721_v12 = vadd.f32 %v4328_v9, %v5120_v19  ;;  %v1352_v13 = vpop.f32.mrb[71].mxu1  ;;  %v1712_v16 = vpop.f32.mrb[71].mxu0 }
 0x189   : > { %v1353_v17 = vadd.f32 %v5115_v11, %v1352_v13  ;;  %v1713_v18 = vadd.f32 %v5120_v19, %v1712_v16 }
 0x18a   : > { %v3678_v23 = vpack.c.bf16 %v1361_v56, %v1358_v10  ;;  %v3838_v40 = vpack.c.bf16 %v1721_v12, %v1718_v55 }
 0x18b   : > { %v3673_v49 = vpack.c.bf16 %v1353_v17, %v1350_v59  ;;  %v3833_v21 = vpack.c.bf16 %v1713_v18, %v1710_v1 }
 0x18c   : > { %3949 = vst [vmem:[%s5132_s29 + $0x98] sm:$0xff] %v3678_v23   ;;  %3980 = vst [vmem:[%s5138_s13 + $0x98] sm:$0xff] %v3838_v40  }
 0x18d   : > { %3948 = vst [vmem:[%s5132_s29 + $0x90] sm:$0xff] %v3673_v49   ;;  %3979 = vst [vmem:[%s5138_s13 + $0x90] sm:$0xff] %v3833_v21   ;;  %v4251_v22 = vpop.f32.mrb[72].mxu1  ;;  %v4331_v24 = vpop.f32.mrb[72].mxu0 }
 0x18e   : > { %v1365_v27 = vpop.f32.mrb[73].mxu1  ;;  %v1725_v29 = vpop.f32.mrb[73].mxu0  ;;  %v1374_v46 = vadd.f32 %v4251_v22, %v5115_v11  ;;  %v1734_v4 = vadd.f32 %v4331_v24, %v5120_v19 }
 0x18f   : > { %v4252_v38 = vpop.f32.mrb[74].mxu1  ;;  %v4332_v33 = vpop.f32.mrb[74].mxu0  ;;  %v1366_v54 = vadd.f32 %v5115_v11, %v1365_v27  ;;  %v1726_v57 = vadd.f32 %v5120_v19, %v1725_v29 }
 0x190   : > { %v1377_v47 = vadd.f32 %v4252_v38, %v5115_v11  ;;  %v1737_v51 = vadd.f32 %v4332_v33, %v5120_v19  ;;  %v1368_v52 = vpop.f32.mrb[75].mxu1  ;;  %v1728_v53 = vpop.f32.mrb[75].mxu0 }
 0x191   : > { %v1369_v5 = vadd.f32 %v5115_v11, %v1368_v52  ;;  %v1729_v20 = vadd.f32 %v5120_v19, %v1728_v53 }
 0x192   : > { %v3688_v14 = vpack.c.bf16 %v1377_v47, %v1374_v46  ;;  %v3848_v15 = vpack.c.bf16 %v1737_v51, %v1734_v4 }
 0x193   : > { %v3683_v25 = vpack.c.bf16 %v1369_v5, %v1366_v54  ;;  %v3843_v26 = vpack.c.bf16 %v1729_v20, %v1726_v57 }
 0x194   : > { %3951 = vst [vmem:[%s5132_s29 + $0xa8] sm:$0xff] %v3688_v14   ;;  %3982 = vst [vmem:[%s5138_s13 + $0xa8] sm:$0xff] %v3848_v15  }
 0x195   : > { %3950 = vst [vmem:[%s5132_s29 + $0xa0] sm:$0xff] %v3683_v25   ;;  %3981 = vst [vmem:[%s5138_s13 + $0xa0] sm:$0xff] %v3843_v26   ;;  %v4255_v30 = vpop.f32.mrb[76].mxu1  ;;  %v4335_v31 = vpop.f32.mrb[76].mxu0 }
 0x196   : > { %v1381_v32 = vpop.f32.mrb[77].mxu1  ;;  %v1741_v37 = vpop.f32.mrb[77].mxu0  ;;  %v1390_v36 = vadd.f32 %v4255_v30, %v5115_v11  ;;  %v1750_v39 = vadd.f32 %v4335_v31, %v5120_v19 }
 0x197   : > { %v4256_v34 = vpop.f32.mrb[78].mxu1  ;;  %v4336_v35 = vpop.f32.mrb[78].mxu0  ;;  %v1382_v8 = vadd.f32 %v5115_v11, %v1381_v32  ;;  %v1742_v28 = vadd.f32 %v5120_v19, %v1741_v37 }
 0x198   : > { %v1393_v42 = vadd.f32 %v4256_v34, %v5115_v11  ;;  %v1753_v43 = vadd.f32 %v4336_v35, %v5120_v19  ;;  %v1384_v44 = vpop.f32.mrb[79].mxu1  ;;  %v1744_v48 = vpop.f32.mrb[79].mxu0 }
 0x199   : > { %v1385_v45 = vadd.f32 %v5115_v11, %v1384_v44  ;;  %v1745_v58 = vadd.f32 %v5120_v19, %v1744_v48 }
 0x19a   : > { %v3698_v62 = vpack.c.bf16 %v1393_v42, %v1390_v36  ;;  %v3858_v41 = vpack.c.bf16 %v1753_v43, %v1750_v39 }
 0x19b   : > { %v3693_v60 = vpack.c.bf16 %v1385_v45, %v1382_v8  ;;  %v3853_v50 = vpack.c.bf16 %v1745_v58, %v1742_v28 }
 0x19c   : > { %3953 = vst [vmem:[%s5132_s29 + $0xb8] sm:$0xff] %v3698_v62   ;;  %3984 = vst [vmem:[%s5138_s13 + $0xb8] sm:$0xff] %v3858_v41  }
 0x19d   : > { %3952 = vst [vmem:[%s5132_s29 + $0xb0] sm:$0xff] %v3693_v60   ;;  %3983 = vst [vmem:[%s5138_s13 + $0xb0] sm:$0xff] %v3853_v50   ;;  %v4259_v61 = vpop.f32.mrb[80].mxu1  ;;  %v4339_v63 = vpop.f32.mrb[80].mxu0 }
 0x19e   : > { %v1397_v0 = vpop.f32.mrb[81].mxu1  ;;  %v1757_v2 = vpop.f32.mrb[81].mxu0  ;;  %v1406_v7 = vadd.f32 %v4259_v61, %v5115_v11  ;;  %v1766_v9 = vadd.f32 %v4339_v63, %v5120_v19 }
 0x19f   : > { %v4260_v3 = vpop.f32.mrb[82].mxu1  ;;  %v4340_v6 = vpop.f32.mrb[82].mxu0  ;;  %v1398_v13 = vadd.f32 %v5115_v11, %v1397_v0  ;;  %v1758_v16 = vadd.f32 %v5120_v19, %v1757_v2 }
 0x1a0   : > { %v1409_v10 = vadd.f32 %v4260_v3, %v5115_v11  ;;  %v1769_v55 = vadd.f32 %v4340_v6, %v5120_v19  ;;  %v1400_v56 = vpop.f32.mrb[83].mxu1  ;;  %v1760_v12 = vpop.f32.mrb[83].mxu0 }
 0x1a1   : > { %v1401_v59 = vadd.f32 %v5115_v11, %v1400_v56  ;;  %v1761_v1 = vadd.f32 %v5120_v19, %v1760_v12 }
 0x1a2   : > { %v3708_v17 = vpack.c.bf16 %v1409_v10, %v1406_v7  ;;  %v3868_v18 = vpack.c.bf16 %v1769_v55, %v1766_v9 }
 0x1a3   : > { %v3703_v23 = vpack.c.bf16 %v1401_v59, %v1398_v13  ;;  %v3863_v40 = vpack.c.bf16 %v1761_v1, %v1758_v16 }
 0x1a4   : > { %3955 = vst [vmem:[%s5132_s29 + $0xc8] sm:$0xff] %v3708_v17   ;;  %3986 = vst [vmem:[%s5138_s13 + $0xc8] sm:$0xff] %v3868_v18  }
 0x1a5   : > { %3954 = vst [vmem:[%s5132_s29 + $0xc0] sm:$0xff] %v3703_v23   ;;  %3985 = vst [vmem:[%s5138_s13 + $0xc0] sm:$0xff] %v3863_v40   ;;  %v4263_v49 = vpop.f32.mrb[84].mxu1  ;;  %v4343_v21 = vpop.f32.mrb[84].mxu0 }
 0x1a6   : > { %v1413_v22 = vpop.f32.mrb[85].mxu1  ;;  %v1773_v24 = vpop.f32.mrb[85].mxu0  ;;  %v1422_v38 = vadd.f32 %v4263_v49, %v5115_v11  ;;  %v1782_v33 = vadd.f32 %v4343_v21, %v5120_v19 }
 0x1a7   : > { %v4264_v27 = vpop.f32.mrb[86].mxu1  ;;  %v4344_v29 = vpop.f32.mrb[86].mxu0  ;;  %v1414_v52 = vadd.f32 %v5115_v11, %v1413_v22  ;;  %v1774_v53 = vadd.f32 %v5120_v19, %v1773_v24 }
 0x1a8   : > { %v1425_v46 = vadd.f32 %v4264_v27, %v5115_v11  ;;  %v1785_v4 = vadd.f32 %v4344_v29, %v5120_v19  ;;  %v1416_v47 = vpop.f32.mrb[87].mxu1  ;;  %v1776_v51 = vpop.f32.mrb[87].mxu0 }
 0x1a9   : > { %v1417_v54 = vadd.f32 %v5115_v11, %v1416_v47  ;;  %v1777_v57 = vadd.f32 %v5120_v19, %v1776_v51 }
 0x1aa   : > { %v3718_v5 = vpack.c.bf16 %v1425_v46, %v1422_v38  ;;  %v3878_v20 = vpack.c.bf16 %v1785_v4, %v1782_v33 }
 0x1ab   : > { %v3713_v14 = vpack.c.bf16 %v1417_v54, %v1414_v52  ;;  %v3873_v15 = vpack.c.bf16 %v1777_v57, %v1774_v53 }
 0x1ac   : > { %3957 = vst [vmem:[%s5132_s29 + $0xd8] sm:$0xff] %v3718_v5   ;;  %3988 = vst [vmem:[%s5138_s13 + $0xd8] sm:$0xff] %v3878_v20  }
 0x1ad   : > { %3956 = vst [vmem:[%s5132_s29 + $0xd0] sm:$0xff] %v3713_v14   ;;  %3987 = vst [vmem:[%s5138_s13 + $0xd0] sm:$0xff] %v3873_v15   ;;  %v4267_v25 = vpop.f32.mrb[88].mxu1  ;;  %v4347_v26 = vpop.f32.mrb[88].mxu0 }
 0x1ae   : > { %v1429_v30 = vpop.f32.mrb[89].mxu1  ;;  %v1789_v31 = vpop.f32.mrb[89].mxu0  ;;  %v1438_v34 = vadd.f32 %v4267_v25, %v5115_v11  ;;  %v1798_v35 = vadd.f32 %v4347_v26, %v5120_v19 }
 0x1af   : > { %v4268_v32 = vpop.f32.mrb[90].mxu1  ;;  %v4348_v37 = vpop.f32.mrb[90].mxu0  ;;  %v1430_v44 = vadd.f32 %v5115_v11, %v1429_v30  ;;  %v1790_v48 = vadd.f32 %v5120_v19, %v1789_v31 }
 0x1b0   : > { %v1441_v36 = vadd.f32 %v4268_v32, %v5115_v11  ;;  %v1801_v39 = vadd.f32 %v4348_v37, %v5120_v19  ;;  %v1432_v42 = vpop.f32.mrb[91].mxu1  ;;  %v1792_v43 = vpop.f32.mrb[91].mxu0 }
 0x1b1   : > { %v1433_v8 = vadd.f32 %v5115_v11, %v1432_v42  ;;  %v1793_v28 = vadd.f32 %v5120_v19, %v1792_v43 }
 0x1b2   : > { %v3728_v45 = vpack.c.bf16 %v1441_v36, %v1438_v34  ;;  %v3888_v58 = vpack.c.bf16 %v1801_v39, %v1798_v35 }
 0x1b3   : > { %v3723_v62 = vpack.c.bf16 %v1433_v8, %v1430_v44  ;;  %v3883_v41 = vpack.c.bf16 %v1793_v28, %v1790_v48 }
 0x1b4   : > { %3959 = vst [vmem:[%s5132_s29 + $0xe8] sm:$0xff] %v3728_v45   ;;  %3990 = vst [vmem:[%s5138_s13 + $0xe8] sm:$0xff] %v3888_v58  }
 0x1b5   : > { %3958 = vst [vmem:[%s5132_s29 + $0xe0] sm:$0xff] %v3723_v62   ;;  %3989 = vst [vmem:[%s5138_s13 + $0xe0] sm:$0xff] %v3883_v41   ;;  %v4271_v60 = vpop.f32.mrb[92].mxu1  ;;  %v4351_v50 = vpop.f32.mrb[92].mxu0 }
 0x1b6   : > { %v1445_v61 = vpop.f32.mrb[93].mxu1  ;;  %v1805_v63 = vpop.f32.mrb[93].mxu0  ;;  %v1454_v3 = vadd.f32 %v4271_v60, %v5115_v11  ;;  %v1814_v6 = vadd.f32 %v4351_v50, %v5120_v19 }
 0x1b7   : > { %v4272_v0 = vpop.f32.mrb[94].mxu1  ;;  %v4352_v2 = vpop.f32.mrb[94].mxu0  ;;  %v1446_v56 = vadd.f32 %v5115_v11, %v1445_v61  ;;  %v1806_v12 = vadd.f32 %v5120_v19, %v1805_v63 }
 0x1b8   : > { %v1457_v7 = vadd.f32 %v4272_v0, %v5115_v11  ;;  %v1817_v9 = vadd.f32 %v4352_v2, %v5120_v19  ;;  %v1448_v10 = vpop.f32.mrb[95].mxu1  ;;  %v1808_v55 = vpop.f32.mrb[95].mxu0 }
 0x1b9   : > { %v1449_v13 = vadd.f32 %v5115_v11, %v1448_v10  ;;  %v1809_v16 = vadd.f32 %v5120_v19, %v1808_v55 }
 0x1ba   : > { %v3738_v59 = vpack.c.bf16 %v1457_v7, %v1454_v3  ;;  %v3898_v1 = vpack.c.bf16 %v1817_v9, %v1814_v6 }
 0x1bb   : > { %v3733_v17 = vpack.c.bf16 %v1449_v13, %v1446_v56  ;;  %v3893_v18 = vpack.c.bf16 %v1809_v16, %v1806_v12 }
 0x1bc   : > { %3961 = vst [vmem:[%s5132_s29 + $0xf8] sm:$0xff] %v3738_v59   ;;  %3992 = vst [vmem:[%s5138_s13 + $0xf8] sm:$0xff] %v3898_v1  }
 0x1bd   : > { %3960 = vst [vmem:[%s5132_s29 + $0xf0] sm:$0xff] %v3733_v17   ;;  %3991 = vst [vmem:[%s5138_s13 + $0xf0] sm:$0xff] %v3893_v18  }
 0x1be PF: > { %s22_s21 = sadd.s32 1, %s4471_s21   ;;  %s5354_s23 = sld [smem:[#allocation2_spill]] }
 0x1bf   : > { %p19_p7 = scmp.ge.s32.totalorder %s22_s21, 6   ;;  %s5355_s17 = smov %s4463_s19 }
 0x1c0   : > { %s5356_s18 = smov %s4467_s20  ;;  %s5357_s19 = smov %s5360_s22 }
 0x1c1   :  { %21 = sbr.rel (!%p19_p7) target bundleno = 3 (0x3), region = 116 }
 0x1c4   : > { %s5358_s20 = smov %s5354_s23 }

// kernel: attn_block_4d.5
= control target key start
LH: loop header
LB: loop body
LE: loop exit
PB: predicated region body
PF: predicated region fallthrough
CT: control target
= control target key end

     0   :  { %s4207_s27 = smov 0   ;;  %s4209_s28 = smov 0   ;;  %s5763_s0 = inlined_call_operand.vmem [shape: f32[2,1024,128], index: 0, kind: input, shape index: {}, may-alias: {0,8}]   ;;  %s5764_s1 = inlined_call_operand.vmem [shape: f32[2,1,128], index: 1, kind: input, shape index: {}]   ;;  %s5765_s2 = inlined_call_operand.vmem [shape: f32[2,1,128], index: 2, kind: input, shape index: {}]   ;;  %s5766_s3 = inlined_call_operand.vmem [shape: bf16[2,1024,128], index: 3, kind: input, shape index: {}]   ;;  %s5767_s4 = inlined_call_operand.vmem [shape: bf16[2,1024,128], index: 4, kind: input, shape index: {}]   ;;  %s5768_s5 = inlined_call_operand.vmem [shape: bf16[2,1024,128], index: 5, kind: input, shape index: {}]   ;;  %s5769_s6 = inlined_call_operand.vmem [shape: bf16[128,128], index: 6, kind: input, shape index: {}]   ;;  %s5770_s7 = inlined_call_operand.vmem [shape: f32[1,128], index: 7, kind: input, shape index: {}]   ;;  %s5771_s8 = inlined_call_operand.vmem [shape: f32[2,1024,128], index: 8, kind: output, shape index: {}, may-alias: {0,8}]  }
   0x1   :  { %s4211_s29 = smov 0   ;;  %s4213_s30 = smov 0  }
   0x2   :  { %s4215_s9 = smov 0   ;;  %s4217_s10 = smov 0  }
   0x3   :  { %s4219_s11 = smov 0  }
   0x4 LB: > { %5863 = sst [smem:[#allocation5_spill]] %s4148_s9  ;;  %s30_s12 = sadd.s32 1, %s4144_s30  ;;  %s4156_s11 = sphi %s4219_s11, %s18_s11   ;;  %s4152_s10 = sphi %s4217_s10, %s6086_s10   ;;  %s4148_s9 = sphi %s4215_s9, %s6085_s9   ;;  %s4144_s30 = sphi %s4213_s30, %s6088_s30   ;;  %s4140_s29 = sphi %s4211_s29, %s6083_s29   ;;  %s4136_s28 = sphi %s4209_s28, %s6082_s28   ;;  %s4132_s27 = sphi %s4207_s27, %s6087_s27  }
   0x5   : > { %5864 = sst [smem:[#allocation6_spill]] %s4152_s10  ;;  %p31_p0 = scmp.ge.s32.totalorder %s30_s12, 4 }
   0x6   : > { %s33_s13 = sadd.s32 1, %s4148_s9  ;;  %p3399_p1 = scmp.ge.s32.totalorder %s4156_s11, 1 }
   0x7   : > { %p357_p2 = scmp.lt.s32.totalorder %s4156_s11, 33  ;;  %s6090_s12 = smov (%p31_p0, %s30_s12), 0 }
   0x8   : > { %5865 = sst [smem:[#allocation7_spill]] %s6090_s12  ;;  %s6092_s13 = smov (!%p31_p0, %s33_s13), %s4148_s9 }
   0x9   : > { %p358_p3 = pnand %p3399_p1, %p357_p2  ;;  %p35_p4 = scmp.ge.s32.totalorder %s6092_s13, 4 }
   0xa   : > { %s37_s14 = sadd.s32 1, %s4152_s10 }
   0xb   : > { %s6094_s13 = smov (%p35_p4, %s6092_s13), 0  ;;  %s6096_s14 = smov (!%p35_p4, %s37_s14), %s4152_s10 }
   0xc   : > { %5866 = sst [smem:[#allocation8_spill]] %s6094_s13  ;;  %p39_p5 = scmp.ge.s32.totalorder %s6096_s14, 2 }
   0xd   : > { %361 = sbr.rel (%p358_p3) target bundleno = 1464 (0x5b8), region = 52 }
   0xe   : > { %s6098_s14 = smov (%p39_p5, %s6096_s14), 0 }
   0xf   : > { %5867 = sst [smem:[#allocation9_spill]] %s6098_s14 }
  0x14   : > { %s3400_s15 = sshll.u32 %s4136_s28, 5  ;;  %p433_p6 = scmp.lt.s32.totalorder %s4140_s29, 1 }
  0x15   : > { %p435_p7 = scmp.lt.s32.totalorder %s3400_s15, 127  ;;  %s3406_s16 = sshll.u32 %s4132_s27, 5 }
  0x16   : > { %s6100_s29 = smov (!%p433_p6, %s4140_s29), 1  ;;  %p461_p8 = scmp.lt.s32.totalorder %s3406_s16, 127 }
  0x17   : > { %s6102_s15 = smov (!%p435_p7, %s3400_s15), 127  ;;  %s3401_s17 = sshll.u32 %s6100_s29, 7 }
  0x18   : > { %s438_s21 = sadd.s32 %s3401_s17, %s6102_s15  ;;  %s6104_s16 = smov (!%p461_p8, %s3406_s16), 127 }
  0x19   : > { %s3402_s25 = sshll.u32 %s438_s21, 3  ;;  %s3405_s26 = sshll.u32 %s438_s21, 2 }
  0x1a   : > { %s4266_s13 = scalar_lea.vmem %s5763_s0, %s3402_s25  ;;  %s4271_s9 = scalar_lea.vmem %s5766_s3, %s3405_s26 }
  0x1b   : > { %s4276_s15 = scalar_lea.vmem %s5771_s8, %s3402_s25  ;;  %s464_s22 = sadd.s32 %s3401_s17, %s6104_s16 }
  0x1c   : > { %s3408_s23 = sshll.u32 %s464_s22, 2  ;;  %p3415_p9 = scmp.ne.s32.totalorder %s4132_s27, 0 }
  0x1d   : > { %s4281_s14 = scalar_lea.vmem %s5767_s4, %s3408_s23  ;;  %s4286_s10 = scalar_lea.vmem %s5768_s5, %s3408_s23  ;;  %vm493_vm0 = vcmask (!%p3415_p9), 7168   ;;  %v4158_v0 = vmov (!%p3415_p9), -inf   ;;  %v4159_v1 = vmov (!%p3415_p9), 0.0  }
  0x1e   : > { %492 = sbr.rel (%p3415_p9) target bundleno = 78 (0x4e), region = 56  ;;  %494 = vst.msk [vmem:[#allocation2] sm:$0xff] (!%p3415_p9), %vm493_vm0, %v4158_v0  ;;  %495 = vst.msk [vmem:[#allocation2 + $0x8] sm:$0xff] (!%p3415_p9), %vm493_vm0, %v4158_v0 }
  0x1f   : > { %496 = vst.msk [vmem:[#allocation2 + $0x10] sm:$0xff] (!%p3415_p9), %vm493_vm0, %v4158_v0  ;;  %497 = vst.msk [vmem:[#allocation2 + $0x18] sm:$0xff] (!%p3415_p9), %vm493_vm0, %v4158_v0 }
  0x20   : > { %498 = vst.msk [vmem:[#allocation2 + $0x20] sm:$0xff] (!%p3415_p9), %vm493_vm0, %v4158_v0  ;;  %499 = vst.msk [vmem:[#allocation2 + $0x28] sm:$0xff] (!%p3415_p9), %vm493_vm0, %v4158_v0 }
  0x21   : > { %500 = vst.msk [vmem:[#allocation2 + $0x30] sm:$0xff] (!%p3415_p9), %vm493_vm0, %v4158_v0  ;;  %501 = vst.msk [vmem:[#allocation2 + $0x38] sm:$0xff] (!%p3415_p9), %vm493_vm0, %v4158_v0 }
  0x22   : > { %502 = vst.msk [vmem:[#allocation2 + $0x40] sm:$0xff] (!%p3415_p9), %vm493_vm0, %v4158_v0  ;;  %503 = vst.msk [vmem:[#allocation2 + $0x48] sm:$0xff] (!%p3415_p9), %vm493_vm0, %v4158_v0 }
  0x23   : > { %504 = vst.msk [vmem:[#allocation2 + $0x50] sm:$0xff] (!%p3415_p9), %vm493_vm0, %v4158_v0  ;;  %505 = vst.msk [vmem:[#allocation2 + $0x58] sm:$0xff] (!%p3415_p9), %vm493_vm0, %v4158_v0 }
  0x24   : > { %506 = vst.msk [vmem:[#allocation2 + $0x60] sm:$0xff] (!%p3415_p9), %vm493_vm0, %v4158_v0  ;;  %507 = vst.msk [vmem:[#allocation2 + $0x68] sm:$0xff] (!%p3415_p9), %vm493_vm0, %v4158_v0 }
  0x25   : > { %508 = vst.msk [vmem:[#allocation2 + $0x70] sm:$0xff] %vm493_vm0, %v4158_v0  ;;  %509 = vst.msk [vmem:[#allocation2 + $0x78] sm:$0xff] %vm493_vm0, %v4158_v0 }
  0x26   : > { %510 = vst.msk [vmem:[#allocation2 + $0x80] sm:$0xff] %vm493_vm0, %v4158_v0  ;;  %511 = vst.msk [vmem:[#allocation2 + $0x88] sm:$0xff] %vm493_vm0, %v4158_v0 }
  0x27   : > { %512 = vst.msk [vmem:[#allocation2 + $0x90] sm:$0xff] %vm493_vm0, %v4158_v0  ;;  %513 = vst.msk [vmem:[#allocation2 + $0x98] sm:$0xff] %vm493_vm0, %v4158_v0 }
  0x28   : > { %514 = vst.msk [vmem:[#allocation2 + $0xa0] sm:$0xff] %vm493_vm0, %v4158_v0  ;;  %515 = vst.msk [vmem:[#allocation2 + $0xa8] sm:$0xff] %vm493_vm0, %v4158_v0 }
  0x29   : > { %516 = vst.msk [vmem:[#allocation2 + $0xb0] sm:$0xff] %vm493_vm0, %v4158_v0  ;;  %517 = vst.msk [vmem:[#allocation2 + $0xb8] sm:$0xff] %vm493_vm0, %v4158_v0 }
  0x2a   : > { %518 = vst.msk [vmem:[#allocation2 + $0xc0] sm:$0xff] %vm493_vm0, %v4158_v0  ;;  %519 = vst.msk [vmem:[#allocation2 + $0xc8] sm:$0xff] %vm493_vm0, %v4158_v0 }
  0x2b   : > { %520 = vst.msk [vmem:[#allocation2 + $0xd0] sm:$0xff] %vm493_vm0, %v4158_v0  ;;  %521 = vst.msk [vmem:[#allocation2 + $0xd8] sm:$0xff] %vm493_vm0, %v4158_v0 }
  0x2c   : > { %522 = vst.msk [vmem:[#allocation2 + $0xe0] sm:$0xff] %vm493_vm0, %v4158_v0  ;;  %523 = vst.msk [vmem:[#allocation2 + $0xe8] sm:$0xff] %vm493_vm0, %v4158_v0 }
  0x2d   : > { %524 = vst.msk [vmem:[#allocation2 + $0xf0] sm:$0xff] %vm493_vm0, %v4158_v0  ;;  %525 = vst.msk [vmem:[#allocation2 + $0xf8] sm:$0xff] %vm493_vm0, %v4158_v0 }
  0x2e   : > { %526 = vst.msk [vmem:[#allocation3] sm:$0xff] %vm493_vm0, %v4159_v1  ;;  %527 = vst.msk [vmem:[#allocation3 + $0x8] sm:$0xff] %vm493_vm0, %v4159_v1 }
  0x2f   : > { %528 = vst.msk [vmem:[#allocation3 + $0x10] sm:$0xff] %vm493_vm0, %v4159_v1  ;;  %529 = vst.msk [vmem:[#allocation3 + $0x18] sm:$0xff] %vm493_vm0, %v4159_v1 }
  0x30   : > { %530 = vst.msk [vmem:[#allocation3 + $0x20] sm:$0xff] %vm493_vm0, %v4159_v1  ;;  %531 = vst.msk [vmem:[#allocation3 + $0x28] sm:$0xff] %vm493_vm0, %v4159_v1 }
  0x31   : > { %532 = vst.msk [vmem:[#allocation3 + $0x30] sm:$0xff] %vm493_vm0, %v4159_v1  ;;  %533 = vst.msk [vmem:[#allocation3 + $0x38] sm:$0xff] %vm493_vm0, %v4159_v1 }
  0x32   : > { %534 = vst.msk [vmem:[#allocation3 + $0x40] sm:$0xff] %vm493_vm0, %v4159_v1  ;;  %535 = vst.msk [vmem:[#allocation3 + $0x48] sm:$0xff] %vm493_vm0, %v4159_v1 }
  0x33   : > { %536 = vst.msk [vmem:[#allocation3 + $0x50] sm:$0xff] %vm493_vm0, %v4159_v1  ;;  %537 = vst.msk [vmem:[#allocation3 + $0x58] sm:$0xff] %vm493_vm0, %v4159_v1 }
  0x34   : > { %538 = vst.msk [vmem:[#allocation3 + $0x60] sm:$0xff] %vm493_vm0, %v4159_v1  ;;  %539 = vst.msk [vmem:[#allocation3 + $0x68] sm:$0xff] %vm493_vm0, %v4159_v1 }
  0x35   : > { %540 = vst.msk [vmem:[#allocation3 + $0x70] sm:$0xff] %vm493_vm0, %v4159_v1  ;;  %541 = vst.msk [vmem:[#allocation3 + $0x78] sm:$0xff] %vm493_vm0, %v4159_v1 }
  0x36   : > { %542 = vst.msk [vmem:[#allocation3 + $0x80] sm:$0xff] %vm493_vm0, %v4159_v1  ;;  %543 = vst.msk [vmem:[#allocation3 + $0x88] sm:$0xff] %vm493_vm0, %v4159_v1 }
  0x37   : > { %544 = vst.msk [vmem:[#allocation3 + $0x90] sm:$0xff] %vm493_vm0, %v4159_v1  ;;  %545 = vst.msk [vmem:[#allocation3 + $0x98] sm:$0xff] %vm493_vm0, %v4159_v1 }
  0x38   : > { %546 = vst.msk [vmem:[#allocation3 + $0xa0] sm:$0xff] %vm493_vm0, %v4159_v1  ;;  %547 = vst.msk [vmem:[#allocation3 + $0xa8] sm:$0xff] %vm493_vm0, %v4159_v1 }
  0x39   : > { %548 = vst.msk [vmem:[#allocation3 + $0xb0] sm:$0xff] %vm493_vm0, %v4159_v1  ;;  %549 = vst.msk [vmem:[#allocation3 + $0xb8] sm:$0xff] %vm493_vm0, %v4159_v1 }
  0x3a   : > { %550 = vst.msk [vmem:[#allocation3 + $0xc0] sm:$0xff] %vm493_vm0, %v4159_v1  ;;  %551 = vst.msk [vmem:[#allocation3 + $0xc8] sm:$0xff] %vm493_vm0, %v4159_v1 }
  0x3b   : > { %552 = vst.msk [vmem:[#allocation3 + $0xd0] sm:$0xff] %vm493_vm0, %v4159_v1  ;;  %553 = vst.msk [vmem:[#allocation3 + $0xd8] sm:$0xff] %vm493_vm0, %v4159_v1 }
  0x3c   : > { %554 = vst.msk [vmem:[#allocation3 + $0xe0] sm:$0xff] %vm493_vm0, %v4159_v1  ;;  %555 = vst.msk [vmem:[#allocation3 + $0xe8] sm:$0xff] %vm493_vm0, %v4159_v1 }
  0x3d   : > { %556 = vst.msk [vmem:[#allocation3 + $0xf0] sm:$0xff] %vm493_vm0, %v4159_v1  ;;  %557 = vst.msk [vmem:[#allocation3 + $0xf8] sm:$0xff] %vm493_vm0, %v4159_v1 }
  0x3e   : > { %558 = vst [vmem:[#allocation4] sm:$0xff] %v4159_v1  ;;  %559 = vst [vmem:[#allocation4 + $0x8] sm:$0xff] %v4159_v1 }
  0x3f   : > { %560 = vst [vmem:[#allocation4 + $0x10] sm:$0xff] %v4159_v1  ;;  %561 = vst [vmem:[#allocation4 + $0x18] sm:$0xff] %v4159_v1 }
  0x40   : > { %562 = vst [vmem:[#allocation4 + $0x20] sm:$0xff] %v4159_v1  ;;  %563 = vst [vmem:[#allocation4 + $0x28] sm:$0xff] %v4159_v1 }
  0x41   : > { %564 = vst [vmem:[#allocation4 + $0x30] sm:$0xff] %v4159_v1  ;;  %565 = vst [vmem:[#allocation4 + $0x38] sm:$0xff] %v4159_v1 }
  0x42   : > { %566 = vst [vmem:[#allocation4 + $0x40] sm:$0xff] %v4159_v1  ;;  %567 = vst [vmem:[#allocation4 + $0x48] sm:$0xff] %v4159_v1 }
  0x43   : > { %568 = vst [vmem:[#allocation4 + $0x50] sm:$0xff] %v4159_v1  ;;  %569 = vst [vmem:[#allocation4 + $0x58] sm:$0xff] %v4159_v1 }
  0x44   : > { %570 = vst [vmem:[#allocation4 + $0x60] sm:$0xff] %v4159_v1  ;;  %571 = vst [vmem:[#allocation4 + $0x68] sm:$0xff] %v4159_v1 }
  0x45   : > { %572 = vst [vmem:[#allocation4 + $0x70] sm:$0xff] %v4159_v1  ;;  %573 = vst [vmem:[#allocation4 + $0x78] sm:$0xff] %v4159_v1 }
  0x46   : > { %574 = vst [vmem:[#allocation4 + $0x80] sm:$0xff] %v4159_v1  ;;  %575 = vst [vmem:[#allocation4 + $0x88] sm:$0xff] %v4159_v1 }
  0x47   : > { %576 = vst [vmem:[#allocation4 + $0x90] sm:$0xff] %v4159_v1  ;;  %577 = vst [vmem:[#allocation4 + $0x98] sm:$0xff] %v4159_v1 }
  0x48   : > { %578 = vst [vmem:[#allocation4 + $0xa0] sm:$0xff] %v4159_v1  ;;  %579 = vst [vmem:[#allocation4 + $0xa8] sm:$0xff] %v4159_v1 }
  0x49   : > { %580 = vst [vmem:[#allocation4 + $0xb0] sm:$0xff] %v4159_v1  ;;  %581 = vst [vmem:[#allocation4 + $0xb8] sm:$0xff] %v4159_v1 }
  0x4a   : > { %582 = vst [vmem:[#allocation4 + $0xc0] sm:$0xff] %v4159_v1  ;;  %583 = vst [vmem:[#allocation4 + $0xc8] sm:$0xff] %v4159_v1 }
  0x4b   : > { %584 = vst [vmem:[#allocation4 + $0xd0] sm:$0xff] %v4159_v1  ;;  %585 = vst [vmem:[#allocation4 + $0xd8] sm:$0xff] %v4159_v1 }
  0x4c   : > { %586 = vst [vmem:[#allocation4 + $0xe0] sm:$0xff] %v4159_v1  ;;  %587 = vst [vmem:[#allocation4 + $0xe8] sm:$0xff] %v4159_v1 }
  0x4d   : > { %588 = vst [vmem:[#allocation4 + $0xf0] sm:$0xff] %v4159_v1  ;;  %589 = vst [vmem:[#allocation4 + $0xf8] sm:$0xff] %v4159_v1 }
  0x4e PF: > { %v3788_v2 = vld [vmem:[%s4281_s14 + $0x40] sm:$0xff]   ;;  %v3790_v4 = vld [vmem:[%s4281_s14 + $0x48] sm:$0xff]   ;;  %v3792_v6 = vld [vmem:[%s4281_s14 + $0x50] sm:$0xff]   ;;  %v4160_v51 = vmov 0   ;;  %vm1839_vm1 = vcmask 7168   ;;  %p3464_p10 = scmp.ne.s32.totalorder %s4132_s27, 3 }
  0x4f   : > { %v3789_v3 = vld [vmem:[%s4281_s14] sm:$0xff]   ;;  %3478 = vmatprep.subr.bf16.mxu0 %v3788_v2  ;;  %v3791_v5 = vld [vmem:[%s4281_s14 + $0x8] sm:$0xff]   ;;  %v3793_v7 = vld [vmem:[%s4281_s14 + $0x10] sm:$0xff]   ;;  %3786 = vset.pattern.permute.xlu0 %v4160_v51  ;;  %s6081_s17 = scalar_lea.vmem (!%p3464_p10), %s5765_s2, %s6100_s29 }
  0x50   : > { %3479 = vmatpush3.bf16.xpose.msra.mxu0 %v3789_v3  ;;  %v3794_v8 = vld [vmem:[%s4281_s14 + $0x58] sm:$0xff]   ;;  %v3804_v9 = vld [vmem:[%s4271_s9] sm:$0xff]   ;;  %v3798_v13 = vld [vmem:[%s4281_s14 + $0x68] sm:$0xff]   ;;  %3787 = vset.pattern.permute.xlu1 %v4160_v51 }
  0x51   : > { %3480 = vmatprep.subr.bf16.mxu0 %v3790_v4  ;;  %3494 = vmatprep.mubr.bf16.mxu0 %v3804_v9  ;;  %v3795_v10 = vld [vmem:[%s4281_s14 + $0x18] sm:$0xff]   ;;  %v3796_v11 = vld [vmem:[%s4281_s14 + $0x60] sm:$0xff]   ;;  %v3799_v14 = vld [vmem:[%s4281_s14 + $0x28] sm:$0xff]  }
  0x52   : > { %v3797_v12 = vld [vmem:[%s4281_s14 + $0x20] sm:$0xff]   ;;  %v3800_v15 = vld [vmem:[%s4281_s14 + $0x70] sm:$0xff]   ;;  %v3802_v17 = vld [vmem:[%s4281_s14 + $0x78] sm:$0xff]  }
  0x53   : > { %v3801_v16 = vld [vmem:[%s4281_s14 + $0x30] sm:$0xff]   ;;  %v3803_v18 = vld [vmem:[%s4281_s14 + $0x38] sm:$0xff]   ;;  %v3805_v19 = vld [vmem:[%s4271_s9 + $0x8] sm:$0xff]  }
  0x54   : > { %v3806_v20 = vld [vmem:[%s4271_s9 + $0x10] sm:$0xff]   ;;  %v3807_v21 = vld [vmem:[%s4271_s9 + $0x18] sm:$0xff]   ;;  %v3808_v22 = vld [vmem:[%s4271_s9 + $0x20] sm:$0xff]  }
  0x55   : > { %v3809_v23 = vld [vmem:[%s4271_s9 + $0x28] sm:$0xff]   ;;  %v3810_v24 = vld [vmem:[%s4271_s9 + $0x30] sm:$0xff]   ;;  %v3811_v25 = vld [vmem:[%s4271_s9 + $0x38] sm:$0xff]  }
  0x56   : > { %v3812_v26 = vld [vmem:[%s4271_s9 + $0x40] sm:$0xff]   ;;  %v3813_v27 = vld [vmem:[%s4271_s9 + $0x48] sm:$0xff]   ;;  %v3814_v28 = vld [vmem:[%s4271_s9 + $0x50] sm:$0xff]  }
  0x57   : > { %v3815_v29 = vld [vmem:[%s4271_s9 + $0x58] sm:$0xff]   ;;  %v3816_v30 = vld [vmem:[%s4271_s9 + $0x60] sm:$0xff]   ;;  %v3817_v31 = vld [vmem:[%s4271_s9 + $0x68] sm:$0xff]  }
  0x58   : > { %3481 = vmatpush3.bf16.xpose.msra.mxu0 %v3791_v5  ;;  %v3818_v32 = vld [vmem:[%s4271_s9 + $0x70] sm:$0xff]   ;;  %v3819_v33 = vld [vmem:[%s4271_s9 + $0x78] sm:$0xff]   ;;  %s6080_s9 = scalar_lea.vmem (!%p3464_p10), %s5764_s1, %s6100_s29 }
  0x59   : > { %3482 = vmatprep.subr.bf16.mxu0 %v3792_v6 }
  0x60   : > { %3483 = vmatpush3.bf16.xpose.msra.mxu0 %v3793_v7 }
  0x61   : > { %3484 = vmatprep.subr.bf16.mxu0 %v3794_v8 }
  0x68   : > { %3485 = vmatpush3.bf16.xpose.msra.mxu0 %v3795_v10 }
  0x69   : > { %3486 = vmatprep.subr.bf16.mxu0 %v3796_v11 }
  0x70   : > { %3487 = vmatpush3.bf16.xpose.msra.mxu0 %v3797_v12 }
  0x71   : > { %3488 = vmatprep.subr.bf16.mxu0 %v3798_v13 }
  0x78   : > { %3489 = vmatpush3.bf16.xpose.msra.mxu0 %v3799_v14 }
  0x79   : > { %3490 = vmatprep.subr.bf16.mxu0 %v3800_v15 }
  0x80   : > { %3491 = vmatpush3.bf16.xpose.msra.mxu0 %v3801_v16 }
  0x81   : > { %3492 = vmatprep.subr.bf16.mxu0 %v3802_v17 }
  0x88   : > { %3493 = vmatpush3.bf16.xpose.msra.mxu0 %v3803_v18 }
  0x8f   : > { %3495 = vmatmul.mubr.bf16.vlgmr.msra.gmra.mrb[0].mxu0 %v3804_v9 }
  0x90   : > { %3496 = vmatprep.mubr.bf16.mxu0 %v3805_v19 }
  0x97   : > { %3497 = vmatmul.mubr.bf16.gmra.mrb[4].mxu0 %v3805_v19 }
  0x98   : > { %3498 = vmatprep.mubr.bf16.mxu0 %v3806_v20 }
  0x9f   : > { %3499 = vmatmul.mubr.bf16.gmra.mrb[8].mxu0 %v3806_v20 }
  0xa0   : > { %3500 = vmatprep.mubr.bf16.mxu0 %v3807_v21 }
  0xa7   : > { %3501 = vmatmul.mubr.bf16.gmra.mrb[12].mxu0 %v3807_v21 }
  0xa8   : > { %3502 = vmatprep.mubr.bf16.mxu0 %v3808_v22 }
  0xaf   : > { %3503 = vmatmul.mubr.bf16.gmra.mrb[16].mxu0 %v3808_v22 }
  0xb0   : > { %3504 = vmatprep.mubr.bf16.mxu0 %v3809_v23 }
  0xb7   : > { %3505 = vmatmul.mubr.bf16.gmra.mrb[20].mxu0 %v3809_v23 }
  0xb8   : > { %3506 = vmatprep.mubr.bf16.mxu0 %v3810_v24 }
  0xbf   : > { %3507 = vmatmul.mubr.bf16.gmra.mrb[24].mxu0 %v3810_v24 }
  0xc0   : > { %3508 = vmatprep.mubr.bf16.mxu0 %v3811_v25 }
  0xc7   : > { %3509 = vmatmul.mubr.bf16.gmra.mrb[28].mxu0 %v3811_v25 }
  0xc8   : > { %3510 = vmatprep.mubr.bf16.mxu0 %v3812_v26 }
  0xcf   : > { %3511 = vmatmul.mubr.bf16.gmra.mrb[32].mxu0 %v3812_v26 }
  0xd0   : > { %3512 = vmatprep.mubr.bf16.mxu0 %v3813_v27 }
  0xd7   : > { %3513 = vmatmul.mubr.bf16.gmra.mrb[36].mxu0 %v3813_v27 }
  0xd8   : > { %3514 = vmatprep.mubr.bf16.mxu0 %v3814_v28 }
  0xdf   : > { %3515 = vmatmul.mubr.bf16.gmra.mrb[40].mxu0 %v3814_v28 }
  0xe0   : > { %3516 = vmatprep.mubr.bf16.mxu0 %v3815_v29 }
  0xe7   : > { %3517 = vmatmul.mubr.bf16.gmra.mrb[44].mxu0 %v3815_v29 }
  0xe8   : > { %3518 = vmatprep.mubr.bf16.mxu0 %v3816_v30 }
  0xef   : > { %3519 = vmatmul.mubr.bf16.gmra.mrb[48].mxu0 %v3816_v30 }
  0xf0   : > { %3520 = vmatprep.mubr.bf16.mxu0 %v3817_v31 }
  0xf7   : > { %3521 = vmatmul.mubr.bf16.gmra.mrb[52].mxu0 %v3817_v31 }
  0xf8   : > { %3522 = vmatprep.mubr.bf16.mxu0 %v3818_v32 }
  0xff   : > { %3523 = vmatmul.mubr.bf16.gmra.mrb[56].mxu0 %v3818_v32 }
 0x100   : > { %3524 = vmatprep.mubr.bf16.mxu0 %v3819_v33 }
 0x107   : > { %3525 = vmatmul.mubr.bf16.gmra.mrb[60].mxu0 %v3819_v33 }
 0x162   : > { %v4449_v34 = vpop.f32.mrb[0].mxu0 }
 0x163   : > { %v4451_v35 = vpop.f32.mrb[1].mxu0 }
 0x164   : > { %v4453_v36 = vpop.f32.mrb[2].mxu0  ;;  %v1071_v37 = vmax.f32 %v4449_v34, %v4451_v35 }
 0x165   : > { %v4457_v38 = vpop.f32.mrb[3].mxu0 }
 0x166   : > { %1072 = vmax.xlane.f32.xlu0 %v1071_v37  ;;  %v1074_v39 = vmax.f32 %v4453_v36, %v4457_v38 }
 0x16a   : > { %1075 = vmax.xlane.f32.xlu0 %v1074_v39  ;;  %v4461_v40 = vpop.f32.mrb[4].mxu0 }
 0x16b   : > { %v4463_v41 = vpop.f32.mrb[5].mxu0 }
 0x16c   : > { %v4465_v42 = vpop.f32.mrb[6].mxu0  ;;  %v1077_v43 = vmax.f32 %v4461_v40, %v4463_v41 }
 0x16d   : > { %v4469_v44 = vpop.f32.mrb[7].mxu0 }
 0x16e   : > { %1078 = vmax.xlane.f32.xlu1 %v1077_v43  ;;  %v1080_v45 = vmax.f32 %v4465_v42, %v4469_v44 }
 0x172   : > { %1081 = vmax.xlane.f32.xlu1 %v1080_v45  ;;  %v4473_v46 = vpop.f32.mrb[8].mxu0 }
 0x173   : > { %v4475_v47 = vpop.f32.mrb[9].mxu0 }
 0x174   : > { %v4477_v48 = vpop.f32.mrb[10].mxu0  ;;  %v1083_v49 = vmax.f32 %v4473_v46, %v4475_v47 }
 0x175   : > { %v4481_v50 = vpop.f32.mrb[11].mxu0 }
 0x176   : > { %1084 = vmax.xlane.f32.xlu0 %v1083_v49  ;;  %v1086_v52 = vmax.f32 %v4477_v48, %v4481_v50 }
 0x178   : > { %1087 = vmax.xlane.f32.xlu1 %v1086_v52 }
 0x17a   : > { %v4485_v53 = vpop.f32.mrb[12].mxu0 }
 0x17b   : > { %v4487_v54 = vpop.f32.mrb[13].mxu0 }
 0x17c   : > { %v4489_v55 = vpop.f32.mrb[14].mxu0  ;;  %v1089_v56 = vmax.f32 %v4485_v53, %v4487_v54 }
 0x17d   : > { %v4493_v57 = vpop.f32.mrb[15].mxu0 }
 0x17e   : > { %1090 = vmax.xlane.f32.xlu0 %v1089_v56  ;;  %v1092_v58 = vmax.f32 %v4489_v55, %v4493_v57 }
 0x180   : > { %1093 = vmax.xlane.f32.xlu1 %v1092_v58 }
 0x182   : > { %v4497_v59 = vpop.f32.mrb[16].mxu0 }
 0x183   : > { %v4499_v60 = vpop.f32.mrb[17].mxu0 }
 0x184   : > { %v4501_v61 = vpop.f32.mrb[18].mxu0  ;;  %v1095_v62 = vmax.f32 %v4497_v59, %v4499_v60 }
 0x185   : > { %v4505_v63 = vpop.f32.mrb[19].mxu0 }
 0x186   : > { %1096 = vmax.xlane.f32.xlu0 %v1095_v62  ;;  %v1098_v0 = vmax.f32 %v4501_v61, %v4505_v63 }
 0x188   : > { %1099 = vmax.xlane.f32.xlu1 %v1098_v0 }
 0x18a   : > { %v4509_v1 = vpop.f32.mrb[20].mxu0 }
 0x18b   : > { %v4511_v2 = vpop.f32.mrb[21].mxu0 }
 0x18c   : > { %v4513_v3 = vpop.f32.mrb[22].mxu0  ;;  %v1101_v4 = vmax.f32 %v4509_v1, %v4511_v2 }
 0x18d   : > { %v4517_v5 = vpop.f32.mrb[23].mxu0 }
 0x18e   : > { %1102 = vmax.xlane.f32.xlu0 %v1101_v4  ;;  %v1104_v6 = vmax.f32 %v4513_v3, %v4517_v5 }
 0x190   : > { %1105 = vmax.xlane.f32.xlu1 %v1104_v6 }
 0x192   : > { %v4521_v7 = vpop.f32.mrb[24].mxu0 }
 0x193   : > { %5868 = vst [vmem:[#allocation10_spill] sm:$0xff] %v4521_v7  ;;  %v4523_v8 = vpop.f32.mrb[25].mxu0 }
 0x194   : > { %5869 = vst [vmem:[#allocation11_spill] sm:$0xff] %v4523_v8  ;;  %v4525_v9 = vpop.f32.mrb[26].mxu0  ;;  %v1107_v10 = vmax.f32 %v4521_v7, %v4523_v8 }
 0x195   : > { %5870 = vst [vmem:[#allocation12_spill] sm:$0xff] %v4525_v9  ;;  %v4529_v11 = vpop.f32.mrb[27].mxu0 }
 0x196   : > { %5871 = vst [vmem:[#allocation13_spill] sm:$0xff] %v4529_v11  ;;  %1108 = vmax.xlane.f32.xlu0 %v1107_v10  ;;  %v1110_v12 = vmax.f32 %v4525_v9, %v4529_v11  ;;  %v4795_v11 = vld [vmem:[#allocation2 + $0x70] sm:$0xff]  ;;  %v4797_v9 = vld [vmem:[#allocation2 + $0x78] sm:$0xff] }
 0x197   : > { %5914 = vst [vmem:[#allocation56_spill] sm:$0xff] %v4795_v11  ;;  %5915 = vst [vmem:[#allocation57_spill] sm:$0xff] %v4797_v9 }
 0x198   : > { %1111 = vmax.xlane.f32.xlu1 %v1110_v12 }
 0x19a   : > { %v4533_v13 = vpop.f32.mrb[28].mxu0 }
 0x19b   : > { %5872 = vst [vmem:[#allocation14_spill] sm:$0xff] %v4533_v13  ;;  %v4535_v14 = vpop.f32.mrb[29].mxu0 }
 0x19c   : > { %5873 = vst [vmem:[#allocation15_spill] sm:$0xff] %v4535_v14  ;;  %v4537_v15 = vpop.f32.mrb[30].mxu0  ;;  %v1113_v16 = vmax.f32 %v4533_v13, %v4535_v14 }
 0x19d   : > { %5874 = vst [vmem:[#allocation16_spill] sm:$0xff] %v4537_v15  ;;  %v4541_v17 = vpop.f32.mrb[31].mxu0 }
 0x19e   : > { %5875 = vst [vmem:[#allocation17_spill] sm:$0xff] %v4541_v17  ;;  %1114 = vmax.xlane.f32.xlu0 %v1113_v16  ;;  %v1116_v18 = vmax.f32 %v4537_v15, %v4541_v17  ;;  %v4779_v17 = vld [vmem:[#allocation2 + $0x68] sm:$0xff] }
 0x19f   : > { %5913 = vst [vmem:[#allocation55_spill] sm:$0xff] %v4779_v17 }
 0x1a0   : > { %1117 = vmax.xlane.f32.xlu1 %v1116_v18 }
 0x1a2   : > { %v4545_v19 = vpop.f32.mrb[32].mxu0 }
 0x1a3   : > { %5876 = vst [vmem:[#allocation18_spill] sm:$0xff] %v4545_v19  ;;  %v4547_v20 = vpop.f32.mrb[33].mxu0 }
 0x1a4   : > { %5877 = vst [vmem:[#allocation19_spill] sm:$0xff] %v4547_v20  ;;  %v4549_v21 = vpop.f32.mrb[34].mxu0  ;;  %v1119_v22 = vmax.f32 %v4545_v19, %v4547_v20 }
 0x1a5   : > { %5878 = vst [vmem:[#allocation20_spill] sm:$0xff] %v4549_v21  ;;  %v4553_v23 = vpop.f32.mrb[35].mxu0 }
 0x1a6   : > { %5879 = vst [vmem:[#allocation21_spill] sm:$0xff] %v4553_v23  ;;  %1120 = vmax.xlane.f32.xlu0 %v1119_v22  ;;  %v1122_v24 = vmax.f32 %v4549_v21, %v4553_v23  ;;  %v4759_v23 = vld [vmem:[#allocation2 + $0x58] sm:$0xff] }
 0x1a7   : > { %5909 = vst [vmem:[#allocation51_spill] sm:$0xff] %v4759_v23 }
 0x1a8   : > { %1123 = vmax.xlane.f32.xlu1 %v1122_v24 }
 0x1aa   : > { %v4557_v25 = vpop.f32.mrb[36].mxu0 }
 0x1ab   : > { %5880 = vst [vmem:[#allocation22_spill] sm:$0xff] %v4557_v25  ;;  %v4559_v26 = vpop.f32.mrb[37].mxu0 }
 0x1ac   : > { %5881 = vst [vmem:[#allocation23_spill] sm:$0xff] %v4559_v26  ;;  %v4561_v27 = vpop.f32.mrb[38].mxu0  ;;  %v1125_v28 = vmax.f32 %v4557_v25, %v4559_v26  ;;  %v4716_v26 = vld [vmem:[#allocation2 + $0x30] sm:$0xff] }
 0x1ad   : > { %5882 = vst [vmem:[#allocation24_spill] sm:$0xff] %v4561_v27  ;;  %v4565_v29 = vpop.f32.mrb[39].mxu0 }
 0x1ae   : > { %5883 = vst [vmem:[#allocation25_spill] sm:$0xff] %v4565_v29  ;;  %1126 = vmax.xlane.f32.xlu0 %v1125_v28  ;;  %v1128_v30 = vmax.f32 %v4561_v27, %v4565_v29  ;;  %v4688_v29 = vld [vmem:[#allocation2 + $0x20] sm:$0xff] }
 0x1b0   : > { %1129 = vmax.xlane.f32.xlu1 %v1128_v30 }
 0x1b2   : > { %v4569_v31 = vpop.f32.mrb[40].mxu0 }
 0x1b3   : > { %5884 = vst [vmem:[#allocation26_spill] sm:$0xff] %v4569_v31  ;;  %v4571_v32 = vpop.f32.mrb[41].mxu0 }
 0x1b4   : > { %5885 = vst [vmem:[#allocation27_spill] sm:$0xff] %v4571_v32  ;;  %v4573_v33 = vpop.f32.mrb[42].mxu0  ;;  %v1131_v37 = vmax.f32 %v4569_v31, %v4571_v32  ;;  %v3828_v32 = vld [vmem:[%s4286_s10 + $0x60] sm:$0xff]  }
 0x1b5   : > { %5886 = vst [vmem:[#allocation28_spill] sm:$0xff] %v4573_v33  ;;  %v4577_v39 = vpop.f32.mrb[43].mxu0  ;;  %v3829_v31 = vld [vmem:[%s4286_s10 + $0x20] sm:$0xff]  }
 0x1b6   : > { %5887 = vst [vmem:[#allocation29_spill] sm:$0xff] %v4577_v39  ;;  %1132 = vmax.xlane.f32.xlu1 %v1131_v37  ;;  %v1134_v43 = vmax.f32 %v4573_v33, %v4577_v39 }
 0x1b8   : > { %1135 = vmax.xlane.f32.xlu0 %v1134_v43 }
 0x1ba   : > { %v4581_v45 = vpop.f32.mrb[44].mxu0 }
 0x1bb   : > { %5888 = vst [vmem:[#allocation30_spill] sm:$0xff] %v4581_v45  ;;  %v4583_v49 = vpop.f32.mrb[45].mxu0 }
 0x1bc   : > { %5889 = vst [vmem:[#allocation31_spill] sm:$0xff] %v4583_v49  ;;  %v4585_v51 = vpop.f32.mrb[46].mxu0  ;;  %v1137_v52 = vmax.f32 %v4581_v45, %v4583_v49  ;;  %v4645_v49 = vld [vmem:[#allocation2] sm:$0xff]  ;;  %v3824_v45 = vld [vmem:[%s4286_s10 + $0x50] sm:$0xff]  }
 0x1bd   : > { %5890 = vst [vmem:[#allocation32_spill] sm:$0xff] %v4585_v51  ;;  %v4589_v56 = vpop.f32.mrb[47].mxu0 }
 0x1be   : > { %5891 = vst [vmem:[#allocation33_spill] sm:$0xff] %v4589_v56  ;;  %1138 = vmax.xlane.f32.xlu1 %v1137_v52  ;;  %v1140_v58 = vmax.f32 %v4585_v51, %v4589_v56 }
 0x1c0   : > { %1141 = vmax.xlane.f32.xlu0 %v1140_v58 }
 0x1c2   : > { %v4593_v62 = vpop.f32.mrb[48].mxu0 }
 0x1c3   : > { %5892 = vst [vmem:[#allocation34_spill] sm:$0xff] %v4593_v62  ;;  %v4595_v0 = vpop.f32.mrb[49].mxu0 }
 0x1c4   : > { %5893 = vst [vmem:[#allocation35_spill] sm:$0xff] %v4595_v0  ;;  %v4597_v4 = vpop.f32.mrb[50].mxu0  ;;  %v1143_v6 = vmax.f32 %v4593_v62, %v4595_v0  ;;  %v3820_v0 = vld [vmem:[%s4286_s10 + $0x40] sm:$0xff]  }
 0x1c5   : > { %5894 = vst [vmem:[#allocation36_spill] sm:$0xff] %v4597_v4  ;;  %v4601_v10 = vpop.f32.mrb[51].mxu0  ;;  %v3821_v62 = vld [vmem:[%s4286_s10] sm:$0xff]   ;;  %3526 = vmatprep.subr.bf16.mxu1 %v3820_v0 }
 0x1c6   : > { %5895 = vst [vmem:[#allocation37_spill] sm:$0xff] %v4601_v10  ;;  %1144 = vmax.xlane.f32.xlu0 %v1143_v6  ;;  %v1146_v12 = vmax.f32 %v4597_v4, %v4601_v10  ;;  %3527 = vmatpush3.bf16.msra.mxu1 %v3821_v62  ;;  %v3833_v10 = vld [vmem:[%s4286_s10 + $0x30] sm:$0xff]  }
 0x1c8   : > { %1147 = vmax.xlane.f32.xlu1 %v1146_v12 }
 0x1ca   : > { %v4605_v16 = vpop.f32.mrb[52].mxu0 }
 0x1cb   : > { %5896 = vst [vmem:[#allocation38_spill] sm:$0xff] %v4605_v16  ;;  %v4607_v18 = vpop.f32.mrb[53].mxu0 }
 0x1cc   : > { %5897 = vst [vmem:[#allocation39_spill] sm:$0xff] %v4607_v18  ;;  %v4609_v22 = vpop.f32.mrb[54].mxu0  ;;  %v1149_v24 = vmax.f32 %v4605_v16, %v4607_v18 }
 0x1cd   : > { %5898 = vst [vmem:[#allocation40_spill] sm:$0xff] %v4609_v22  ;;  %v4613_v28 = vpop.f32.mrb[55].mxu0 }
 0x1ce   : > { %5899 = vst [vmem:[#allocation41_spill] sm:$0xff] %v4613_v28  ;;  %1150 = vmax.xlane.f32.xlu1 %v1149_v24  ;;  %v1152_v30 = vmax.f32 %v4609_v22, %v4613_v28  ;;  %v4676_v28 = vld [vmem:[#allocation2 + $0x18] sm:$0xff]  ;;  %v3831_v22 = vld [vmem:[%s4286_s10 + $0x28] sm:$0xff]  }
 0x1d0   : > { %1153 = vmax.xlane.f32.xlu0 %v1152_v30 }
 0x1d2   : > { %v4617_v37 = vpop.f32.mrb[56].mxu0 }
 0x1d3   : > { %5900 = vst [vmem:[#allocation42_spill] sm:$0xff] %v4617_v37  ;;  %v4619_v43 = vpop.f32.mrb[57].mxu0 }
 0x1d4   : > { %5901 = vst [vmem:[#allocation43_spill] sm:$0xff] %v4619_v43  ;;  %v4621_v52 = vpop.f32.mrb[58].mxu0  ;;  %v1155_v58 = vmax.f32 %v4617_v37, %v4619_v43  ;;  %v4652_v37 = vld [vmem:[#allocation2 + $0x8] sm:$0xff] }
 0x1d5   : > { %5902 = vst [vmem:[#allocation44_spill] sm:$0xff] %v4621_v52  ;;  %v4625_v6 = vpop.f32.mrb[59].mxu0 }
 0x1d6   : > { %5903 = vst [vmem:[#allocation45_spill] sm:$0xff] %v4625_v6  ;;  %v1158_v12 = vmax.f32 %v4621_v52, %v4625_v6  ;;  %1156 = vmax.xlane.f32.xlu0 %v1155_v58  ;;  %v3822_v58 = vld [vmem:[%s4286_s10 + $0x48] sm:$0xff]   ;;  %v3825_v6 = vld [vmem:[%s4286_s10 + $0x10] sm:$0xff]  }
 0x1d7   : > { %3528 = vmatprep.subr.bf16.mxu1 %v3822_v58  ;;  %v3826_v58 = vld [vmem:[%s4286_s10 + $0x58] sm:$0xff]  }
 0x1d8   : > { %1159 = vmax.xlane.f32.xlu1 %v1158_v12  ;;  %v3823_v12 = vld [vmem:[%s4286_s10 + $0x8] sm:$0xff]  }
 0x1d9   : > { %3529 = vmatpush3.bf16.msra.mxu1 %v3823_v12 }
 0x1da   : > { %v4629_v24 = vpop.f32.mrb[60].mxu0  ;;  %3530 = vmatprep.subr.bf16.mxu1 %v3824_v45  ;;  %v4664_v45 = vld [vmem:[#allocation2 + $0x10] sm:$0xff] }
 0x1db   : > { %5904 = vst [vmem:[#allocation46_spill] sm:$0xff] %v4629_v24  ;;  %v4631_v30 = vpop.f32.mrb[61].mxu0 }
 0x1dc   : > { %5905 = vst [vmem:[#allocation47_spill] sm:$0xff] %v4631_v30  ;;  %v4633_v18 = vpop.f32.mrb[62].mxu0 }
 0x1dd   : > { %5906 = vst [vmem:[#allocation48_spill] sm:$0xff] %v4633_v18  ;;  %v4637_v43 = vpop.f32.mrb[63].mxu0  ;;  %3531 = vmatpush3.bf16.msra.mxu1 %v3825_v6  ;;  %v3830_v6 = vld [vmem:[%s4286_s10 + $0x68] sm:$0xff]  }
 0x1de   : > { %5907 = vst [vmem:[#allocation49_spill] sm:$0xff] %v4637_v43  ;;  %3532 = vmatprep.subr.bf16.mxu1 %v3826_v58  ;;  %v4695_v58 = vld [vmem:[#allocation2 + $0x28] sm:$0xff] }
 0x1f3   : > { %v1073_v16 = vpop.xlane.xlu0 %1072 }
 0x1f4   : > { %v4650_v52 = vmax.f32 %v4645_v49, %v1073_v16  ;;  %v3827_v16 = vld [vmem:[%s4286_s10 + $0x18] sm:$0xff]  }
 0x1f5   : > { %3533 = vmatpush3.bf16.msra.mxu1 %v3827_v16 }
 0x1f6   : > { %2481 = vst.msk [vmem:[#allocation2] sm:$0xff] %vm1839_vm1, %v4650_v52  ;;  %1297 = vperm.xlu0 %3786, %v4650_v52   ;;  %3534 = vmatprep.subr.bf16.mxu1 %v3828_v32 }
 0x1f7   : > { %v1076_v0 = vpop.xlane.xlu0 %1075 }
 0x1f8   : > { %v4661_v12 = vmax.f32 %v4652_v37, %v1076_v0 }
 0x1f9   : > { %3535 = vmatpush3.bf16.msra.mxu1 %v3829_v31 }
 0x1fa   : > { %2482 = vst.msk [vmem:[#allocation2 + $0x8] sm:$0xff] %vm1839_vm1, %v4661_v12  ;;  %1302 = vperm.xlu1 %3787, %v4661_v12   ;;  %3536 = vmatprep.subr.bf16.mxu1 %v3830_v6 }
 0x1fb   : > { %v1079_v62 = vpop.xlane.xlu1 %1078 }
 0x1fc   : > { %v4673_v0 = vmax.f32 %v4664_v45, %v1079_v62 }
 0x1fd   : > { %3537 = vmatpush3.bf16.msra.mxu1 %v3831_v22  ;;  %v3834_v22 = vld [vmem:[%s4286_s10 + $0x78] sm:$0xff]  }
 0x1fe   : > { %2483 = vst.msk [vmem:[#allocation2 + $0x10] sm:$0xff] %vm1839_vm1, %v4673_v0  ;;  %1307 = vperm.xlu1 %3787, %v4673_v0  }
 0x1ff   : > { %v1082_v16 = vpop.xlane.xlu1 %1081 }
 0x200   : > { %v4685_v62 = vmax.f32 %v4676_v28, %v1082_v16  ;;  %v3832_v16 = vld [vmem:[%s4286_s10 + $0x70] sm:$0xff]  }
 0x201   : > { %3538 = vmatprep.subr.bf16.mxu1 %v3832_v16  ;;  %v3835_v16 = vld [vmem:[%s4286_s10 + $0x38] sm:$0xff]  }
 0x202   : > { %2484 = vst.msk [vmem:[#allocation2 + $0x18] sm:$0xff] %vm1839_vm1, %v4685_v62  ;;  %1312 = vperm.xlu1 %3787, %v4685_v62   ;;  %3539 = vmatpush3.bf16.msra.mxu1 %v3833_v10 }
 0x203   : > { %v1085_v31 = vpop.xlane.xlu0 %1084  ;;  %3540 = vmatprep.subr.bf16.mxu1 %v3834_v22 }
 0x204   : > { %v4699_v27 = vmax.f32 %v4688_v29, %v1085_v31  ;;  %v4739_v31 = vld [vmem:[#allocation2 + $0x48] sm:$0xff] }
 0x205   : > { %v1088_v6 = vpop.xlane.xlu1 %1087 }
 0x206   : > { %2485 = vst.msk [vmem:[#allocation2 + $0x20] sm:$0xff] %vm1839_vm1, %v4699_v27  ;;  %v4707_v4 = vmax.f32 %v4695_v58, %v1088_v6  ;;  %1317 = vperm.xlu0 %3786, %v4699_v27   ;;  %3541 = vmatpush3.bf16.msra.mxu1 %v3835_v16  ;;  %v4719_v6 = vld [vmem:[#allocation2 + $0x38] sm:$0xff] }
 0x208   : > { %2486 = vst.msk [vmem:[#allocation2 + $0x28] sm:$0xff] %vm1839_vm1, %v4707_v4 }
 0x20a   : > { %1322 = vperm.xlu0 %3786, %v4707_v4  }
 0x20b   : > { %v1091_v32 = vpop.xlane.xlu0 %1090 }
 0x20c   : > { %v4722_v25 = vmax.f32 %v4716_v26, %v1091_v32  ;;  %v4736_v32 = vld [vmem:[#allocation2 + $0x40] sm:$0xff] }
 0x20d   : > { %v1094_v10 = vpop.xlane.xlu1 %1093 }
 0x20e   : > { %2487 = vst.msk [vmem:[#allocation2 + $0x30] sm:$0xff] %vm1839_vm1, %v4722_v25  ;;  %v4729_v56 = vmax.f32 %v4719_v6, %v1094_v10  ;;  %1327 = vperm.xlu1 %3787, %v4722_v25  }
 0x210   : > { %2488 = vst.msk [vmem:[#allocation2 + $0x38] sm:$0xff] %vm1839_vm1, %v4729_v56 }
 0x212   : > { %1332 = vperm.xlu1 %3787, %v4729_v56  }
 0x213   : > { %v1097_v16 = vpop.xlane.xlu0 %1096 }
 0x214   : > { %v4742_v51 = vmax.f32 %v4736_v32, %v1097_v16  ;;  %v4756_v16 = vld [vmem:[#allocation2 + $0x50] sm:$0xff] }
 0x215   : > { %v1100_v10 = vpop.xlane.xlu1 %1099  ;;  %5908 = vst [vmem:[#allocation50_spill] sm:$0xff] %v4756_v16 }
 0x216   : > { %2489 = vst.msk [vmem:[#allocation2 + $0x40] sm:$0xff] %vm1839_vm1, %v4742_v51  ;;  %v4749_v22 = vmax.f32 %v4739_v31, %v1100_v10  ;;  %1337 = vperm.xlu0 %3786, %v4742_v51  }
 0x218   : > { %2490 = vst.msk [vmem:[#allocation2 + $0x48] sm:$0xff] %vm1839_vm1, %v4749_v22 }
 0x21a   : > { %1342 = vperm.xlu0 %3786, %v4749_v22  }
 0x21b   : > { %v1103_v39 = vpop.xlane.xlu0 %1102 }
 0x21c   : > { %v4762_v33 = vmax.f32 %v4756_v16, %v1103_v39  ;;  %v4776_v39 = vld [vmem:[#allocation2 + $0x60] sm:$0xff] }
 0x21d   : > { %v1106_v10 = vpop.xlane.xlu1 %1105  ;;  %5912 = vst [vmem:[#allocation54_spill] sm:$0xff] %v4776_v39 }
 0x21e   : > { %5910 = vst [vmem:[#allocation52_spill] sm:$0xff] %v4762_v33  ;;  %2491 = vst.msk [vmem:[#allocation2 + $0x50] sm:$0xff] %vm1839_vm1, %v4762_v33  ;;  %v4769_v21 = vmax.f32 %v4759_v23, %v1106_v10  ;;  %1347 = vperm.xlu1 %3787, %v4762_v33  }
 0x220   : > { %5911 = vst [vmem:[#allocation53_spill] sm:$0xff] %v4769_v21  ;;  %2492 = vst.msk [vmem:[#allocation2 + $0x58] sm:$0xff] %vm1839_vm1, %v4769_v21 }
 0x222   : > { %1352 = vperm.xlu1 %3787, %v4769_v21  }
 0x223   : > { %v1109_v20 = vpop.xlane.xlu0 %1108 }
 0x224   : > { %v4782_v19 = vmax.f32 %v4776_v39, %v1109_v20  ;;  %v4815_v39 = vld [vmem:[#allocation2 + $0x88] sm:$0xff] }
 0x225   : > { %v1112_v10 = vpop.xlane.xlu1 %1111  ;;  %5918 = vst [vmem:[#allocation60_spill] sm:$0xff] %v4815_v39 }
 0x226   : > { %2493 = vst.msk [vmem:[#allocation2 + $0x60] sm:$0xff] %vm1839_vm1, %v4782_v19  ;;  %v4789_v15 = vmax.f32 %v4779_v17, %v1112_v10  ;;  %v4813_v17 = vld [vmem:[#allocation2 + $0x80] sm:$0xff] }
 0x227   : > { %5917 = vst [vmem:[#allocation59_spill] sm:$0xff] %v4813_v17 }
 0x228   : > { %2494 = vst.msk [vmem:[#allocation2 + $0x68] sm:$0xff] %vm1839_vm1, %v4789_v15 }
 0x22b   : > { %v1115_v20 = vpop.xlane.xlu0 %1114 }
 0x22c   : > { %v4800_v8 = vmax.f32 %v4795_v11, %v1115_v20  ;;  %v4836_v11 = vld [vmem:[#allocation2 + $0x98] sm:$0xff] }
 0x22d   : > { %v1118_v14 = vpop.xlane.xlu1 %1117  ;;  %5922 = vst [vmem:[#allocation63_spill] sm:$0xff] %v4836_v11 }
 0x22e   : > { %5916 = vst [vmem:[#allocation58_spill] sm:$0xff] %v4800_v8  ;;  %2495 = vst.msk [vmem:[#allocation2 + $0x70] sm:$0xff] %vm1839_vm1, %v4800_v8  ;;  %v4807_v10 = vmax.f32 %v4797_v9, %v1118_v14  ;;  %v4834_v9 = vld [vmem:[#allocation2 + $0x90] sm:$0xff] }
 0x22f   : > { %5921 = vst [vmem:[#allocation62_spill] sm:$0xff] %v4834_v9 }
 0x230   : > { %2496 = vst.msk [vmem:[#allocation2 + $0x78] sm:$0xff] %vm1839_vm1, %v4807_v10 }
 0x233   : > { %v1121_v20 = vpop.xlane.xlu0 %1120 }
 0x234   : > { %v4818_v21 = vmax.f32 %v4813_v17, %v1121_v20  ;;  %v5920_v20 = vmax.f32 %v4633_v18, %v4637_v43  ;;  %v4852_v43 = vld [vmem:[#allocation2 + $0xa0] sm:$0xff]  ;;  %v4854_v18 = vld [vmem:[#allocation2 + $0xa8] sm:$0xff] }
 0x235   : > { %v1124_v7 = vpop.xlane.xlu1 %1123  ;;  %5923 = vst [vmem:[#allocation64_spill] sm:$0xff] %v4852_v43  ;;  %5924 = vst [vmem:[#allocation65_spill] sm:$0xff] %v4854_v18 }
 0x236   : > { %5919 = vst [vmem:[#allocation61_spill] sm:$0xff] %v4818_v21  ;;  %2497 = vst.msk [vmem:[#allocation2 + $0x80] sm:$0xff] %vm1839_vm1, %v4818_v21  ;;  %v4825_v14 = vmax.f32 %v4815_v39, %v1124_v7 }
 0x238   : > { %2498 = vst.msk [vmem:[#allocation2 + $0x88] sm:$0xff] %vm1839_vm1, %v4825_v14 }
 0x239   : > { %1165 = vmax.xlane.f32.xlu0 %v5920_v20 }
 0x23b   : > { %v1127_v23 = vpop.xlane.xlu0 %1126 }
 0x23c   : > { %v4839_v17 = vmax.f32 %v4834_v9, %v1127_v23  ;;  %v5925_v9 = vmax.f32 %v4629_v24, %v4631_v30  ;;  %v4875_v30 = vld [vmem:[#allocation2 + $0xb8] sm:$0xff]  ;;  %v4895_v24 = vld [vmem:[#allocation2 + $0xc8] sm:$0xff] }
 0x23d   : > { %v1130_v7 = vpop.xlane.xlu1 %1129  ;;  %5928 = vst [vmem:[#allocation68_spill] sm:$0xff] %v4875_v30  ;;  %5932 = vst [vmem:[#allocation72_spill] sm:$0xff] %v4895_v24 }
 0x23e   : > { %2499 = vst.msk [vmem:[#allocation2 + $0x90] sm:$0xff] %vm1839_vm1, %v4839_v17  ;;  %v4846_v13 = vmax.f32 %v4836_v11, %v1130_v7 }
 0x240   : > { %2500 = vst.msk [vmem:[#allocation2 + $0x98] sm:$0xff] %vm1839_vm1, %v4846_v13 }
 0x243   : > { %v1133_v23 = vpop.xlane.xlu1 %1132 }
 0x244   : > { %v4857_v39 = vmax.f32 %v4852_v43, %v1133_v23  ;;  %v4873_v23 = vld [vmem:[#allocation2 + $0xb0] sm:$0xff] }
 0x245   : > { %v1136_v33 = vpop.xlane.xlu0 %1135  ;;  %5927 = vst [vmem:[#allocation67_spill] sm:$0xff] %v4873_v23 }
 0x246   : > { %1162 = vmax.xlane.f32.xlu1 %v5925_v9  ;;  %2501 = vst.msk [vmem:[#allocation2 + $0xa0] sm:$0xff] %vm1839_vm1, %v4857_v39  ;;  %v4867_v20 = vmax.f32 %v4854_v18, %v1136_v33 }
 0x248   : > { %5926 = vst [vmem:[#allocation66_spill] sm:$0xff] %v4867_v20  ;;  %2502 = vst.msk [vmem:[#allocation2 + $0xa8] sm:$0xff] %vm1839_vm1, %v4867_v20 }
 0x24b   : > { %v1139_v16 = vpop.xlane.xlu1 %1138 }
 0x24c   : > { %v4878_v9 = vmax.f32 %v4873_v23, %v1139_v16  ;;  %v4892_v16 = vld [vmem:[#allocation2 + $0xc0] sm:$0xff] }
 0x24d   : > { %v1142_v7 = vpop.xlane.xlu0 %1141  ;;  %5931 = vst [vmem:[#allocation71_spill] sm:$0xff] %v4892_v16 }
 0x24e   : > { %5929 = vst [vmem:[#allocation69_spill] sm:$0xff] %v4878_v9  ;;  %2503 = vst.msk [vmem:[#allocation2 + $0xb0] sm:$0xff] %vm1839_vm1, %v4878_v9  ;;  %v4885_v33 = vmax.f32 %v4875_v30, %v1142_v7 }
 0x24f   : > { %1357 = vperm.xlu0 %3786, %v4782_v19  }
 0x250   : > { %5930 = vst [vmem:[#allocation70_spill] sm:$0xff] %v4885_v33  ;;  %2504 = vst.msk [vmem:[#allocation2 + $0xb8] sm:$0xff] %vm1839_vm1, %v4885_v33 }
 0x253   : > { %1362 = vperm.xlu0 %3786, %v4789_v15   ;;  %v1145_v18 = vpop.xlane.xlu0 %1144 }
 0x254   : > { %v4898_v23 = vmax.f32 %v4892_v16, %v1145_v18  ;;  %v4913_v18 = vld [vmem:[#allocation2 + $0xd0] sm:$0xff]  ;;  %v4917_v16 = vld [vmem:[#allocation2 + $0xd8] sm:$0xff] }
 0x255   : > { %v1148_v7 = vpop.xlane.xlu1 %1147  ;;  %5935 = vst [vmem:[#allocation75_spill] sm:$0xff] %v4913_v18  ;;  %5936 = vst [vmem:[#allocation76_spill] sm:$0xff] %v4917_v16 }
 0x256   : > { %5933 = vst [vmem:[#allocation73_spill] sm:$0xff] %v4898_v23  ;;  %2505 = vst.msk [vmem:[#allocation2 + $0xc0] sm:$0xff] %vm1839_vm1, %v4898_v23  ;;  %v4905_v11 = vmax.f32 %v4895_v24, %v1148_v7 }
 0x257   : > { %1377 = vperm.xlu1 %3787, %v4818_v21   ;;  %1367 = vperm.xlu0 %3786, %v4800_v8   ;;  %v4939_v8 = vld [vmem:[#allocation2 + $0xe8] sm:$0xff] }
 0x258   : > { %5934 = vst [vmem:[#allocation74_spill] sm:$0xff] %v4905_v11  ;;  %2506 = vst.msk [vmem:[#allocation2 + $0xc8] sm:$0xff] %vm1839_vm1, %v4905_v11 }
 0x259   : > { %5939 = vst [vmem:[#allocation79_spill] sm:$0xff] %v4939_v8 }
 0x25b   : > { %1402 = vperm.xlu1 %3787, %v4867_v20   ;;  %1372 = vperm.xlu0 %3786, %v4807_v10   ;;  %v1151_v43 = vpop.xlane.xlu1 %1150 }
 0x25c   : > { %v4920_v7 = vmax.f32 %v4913_v18, %v1151_v43  ;;  %v4935_v43 = vld [vmem:[#allocation2 + $0xe0] sm:$0xff] }
 0x25d   : > { %v1154_v21 = vpop.xlane.xlu0 %1153  ;;  %5938 = vst [vmem:[#allocation78_spill] sm:$0xff] %v4935_v43 }
 0x25e   : > { %2507 = vst.msk [vmem:[#allocation2 + $0xd0] sm:$0xff] %vm1839_vm1, %v4920_v7  ;;  %v4927_v30 = vmax.f32 %v4917_v16, %v1154_v21 }
 0x25f   : > { %1412 = vperm.xlu1 %3787, %v4885_v33   ;;  %1382 = vperm.xlu0 %3786, %v4825_v14  }
 0x260   : > { %5937 = vst [vmem:[#allocation77_spill] sm:$0xff] %v4927_v30  ;;  %2508 = vst.msk [vmem:[#allocation2 + $0xd8] sm:$0xff] %vm1839_vm1, %v4927_v30 }
 0x263   : > { %1422 = vperm.xlu1 %3787, %v4905_v11   ;;  %1387 = vperm.xlu0 %3786, %v4839_v17   ;;  %v1157_v21 = vpop.xlane.xlu0 %1156 }
 0x264   : > { %v4942_v18 = vmax.f32 %v4935_v43, %v1157_v21 }
 0x265   : > { %v1160_v33 = vpop.xlane.xlu1 %1159 }
 0x266   : > { %v4945_v20 = vmax.f32 %v4939_v8, %v1160_v33  ;;  %2509 = vst.msk [vmem:[#allocation2 + $0xe0] sm:$0xff] %vm1839_vm1, %v4942_v18 }
 0x267   : > { %1432 = vperm.xlu1 %3787, %v4927_v30   ;;  %1392 = vperm.xlu0 %3786, %v4846_v13  }
 0x268   : > { %5940 = vst [vmem:[#allocation80_spill] sm:$0xff] %v4945_v20  ;;  %2510 = vst.msk [vmem:[#allocation2 + $0xe8] sm:$0xff] %vm1839_vm1, %v4945_v20 }
 0x26b   : > { %1442 = vperm.xlu1 %3787, %v4945_v20   ;;  %1397 = vperm.xlu0 %3786, %v4857_v39  }
 0x26f   : > { %1407 = vperm.xlu0 %3786, %v4878_v9  }
 0x273   : > { %1417 = vperm.xlu0 %3786, %v4898_v23  }
 0x275   : > { %v1298_v33 = vpop.permute.xlu0 %1297 }
 0x276   : > { %v1455_v21 = vsub.f32 %v4449_v34, %v1298_v33  ;;  %v1456_v24 = vsub.f32 %v4451_v35, %v1298_v33 }
 0x277   : > { %1427 = vperm.xlu0 %3786, %v4920_v7  }
 0x278   : > { %v1519_v43 = vmul.f32 1.442695, %v1455_v21  ;;  %v1521_v16 = vmul.f32 1.442695, %v1456_v24 }
 0x279   : > { %v1303_v8 = vpop.permute.xlu1 %1302 }
 0x27a   : > { %3836 = vpow2.f32 %v1519_v43  ;;  %v1457_v30 = vsub.f32 %v4453_v36, %v1303_v8  ;;  %v1458_v20 = vsub.f32 %v4457_v38, %v1303_v8 }
 0x27b   : > { %3838 = vpow2.f32 %v1521_v16  ;;  %1437 = vperm.xlu0 %3786, %v4942_v18  }
 0x27c   : > { %v1523_v11 = vmul.f32 1.442695, %v1457_v30  ;;  %v1525_v23 = vmul.f32 1.442695, %v1458_v20 }
 0x27d   : > { %v1308_v9 = vpop.permute.xlu1 %1307 }
 0x27e   : > { %3840 = vpow2.f32 %v1523_v11  ;;  %v1459_v34 = vsub.f32 %v4461_v40, %v1308_v9  ;;  %v1460_v35 = vsub.f32 %v4463_v41, %v1308_v9 }
 0x27f   : > { %3842 = vpow2.f32 %v1525_v23 }
 0x280   : > { %v1527_v33 = vmul.f32 1.442695, %v1459_v34  ;;  %v1529_v24 = vmul.f32 1.442695, %v1460_v35 }
 0x281   : > { %v1313_v21 = vpop.permute.xlu1 %1312 }
 0x282   : > { %3844 = vpow2.f32 %v1527_v33  ;;  %v1461_v36 = vsub.f32 %v4465_v42, %v1313_v21  ;;  %v1462_v38 = vsub.f32 %v4469_v44, %v1313_v21 }
 0x283   : > { %3846 = vpow2.f32 %v1529_v24 }
 0x284   : > { %v3837_v8 = vpop.eup %3836  ;;  %v1531_v16 = vmul.f32 1.442695, %v1461_v36  ;;  %v1533_v30 = vmul.f32 1.442695, %v1462_v38 }
 0x285   : > { %v3839_v20 = vpop.eup %3838  ;;  %v1318_v43 = vpop.permute.xlu0 %1317 }
 0x286   : > { %3848 = vpow2.f32 %v1531_v16  ;;  %v1463_v40 = vsub.f32 %v4473_v46, %v1318_v43  ;;  %v1464_v41 = vsub.f32 %v4475_v47, %v1318_v43  ;;  %v4973_v11 = vadd.f32 %v3839_v20, %v3837_v8 }
 0x287   : > { %3850 = vpow2.f32 %v1533_v30 }
 0x288   : > { %v3841_v23 = vpop.eup %3840  ;;  %v1535_v9 = vmul.f32 1.442695, %v1463_v40  ;;  %v1537_v34 = vmul.f32 1.442695, %v1464_v41 }
 0x289   : > { %v3843_v42 = vpop.eup %3842  ;;  %v1323_v35 = vpop.permute.xlu0 %1322  ;;  %v2096_v44 = vpack.c.bf16 %v3841_v23, %v3837_v8 }
 0x28a   : > { %3852 = vpow2.f32 %v1535_v9  ;;  %v1465_v33 = vsub.f32 %v4477_v48, %v1323_v35  ;;  %v1466_v24 = vsub.f32 %v4481_v50, %v1323_v35  ;;  %v2097_v21 = vpack.c.bf16 %v3843_v42, %v3839_v20 }
 0x28b   : > { %3854 = vpow2.f32 %v1537_v34  ;;  %v4977_v36 = vadd.f32 %v3843_v42, %v3841_v23 }
 0x28c   : > { %v3845_v46 = vpop.eup %3844  ;;  %v1539_v47 = vmul.f32 1.442695, %v1465_v33  ;;  %v1541_v38 = vmul.f32 1.442695, %v1466_v24  ;;  %2288 = vmatprep.mubr.bf16.mxu1 %v2097_v21 }
 0x28d   : > { %v3847_v16 = vpop.eup %3846  ;;  %2289 = vmatmul.mubr.bf16.vlgmr.msra.gmra.mrb[0].mxu1 %v2096_v44  ;;  %v1328_v30 = vpop.permute.xlu1 %1327 }
 0x28e   : > { %3856 = vpow2.f32 %v1539_v47  ;;  %v1467_v43 = vsub.f32 %v4485_v53, %v1328_v30  ;;  %v1468_v8 = vsub.f32 %v4487_v54, %v1328_v30  ;;  %v4981_v40 = vadd.f32 %v3847_v16, %v3845_v46 }
 0x28f   : > { %3858 = vpow2.f32 %v1541_v38 }
 0x290   : > { %v3849_v48 = vpop.eup %3848  ;;  %v1543_v50 = vmul.f32 1.442695, %v1467_v43  ;;  %v1545_v20 = vmul.f32 1.442695, %v1468_v8 }
 0x291   : > { %v3851_v41 = vpop.eup %3850  ;;  %v1333_v23 = vpop.permute.xlu1 %1332  ;;  %v2098_v9 = vpack.c.bf16 %v3849_v48, %v3845_v46 }
 0x292   : > { %3860 = vpow2.f32 %v1543_v50  ;;  %v1469_v34 = vsub.f32 %v4489_v55, %v1333_v23  ;;  %v1470_v42 = vsub.f32 %v4493_v57, %v1333_v23  ;;  %v2099_v35 = vpack.c.bf16 %v3851_v41, %v3847_v16 }
 0x293   : > { %3862 = vpow2.f32 %v1545_v20  ;;  %v4985_v44 = vadd.f32 %v3851_v41, %v3849_v48 }
 0x294   : > { %v3853_v53 = vpop.eup %3852  ;;  %v1547_v54 = vmul.f32 1.442695, %v1469_v34  ;;  %v1549_v33 = vmul.f32 1.442695, %v1470_v42  ;;  %2296 = vmatprep.mubr.bf16.mxu1 %v2099_v35 }
 0x295   : > { %v3855_v24 = vpop.eup %3854  ;;  %2297 = vmatmul.mubr.bf16.gmra.mrb[4].mxu1 %v2098_v9  ;;  %v1338_v21 = vpop.permute.xlu0 %1337 }
 0x296   : > { %3864 = vpow2.f32 %v1547_v54  ;;  %v1471_v47 = vsub.f32 %v4497_v59, %v1338_v21  ;;  %v1472_v46 = vsub.f32 %v4499_v60, %v1338_v21  ;;  %v4989_v38 = vadd.f32 %v3855_v24, %v3853_v53 }
 0x297   : > { %3866 = vpow2.f32 %v1549_v33 }
 0x298   : > { %v3857_v55 = vpop.eup %3856  ;;  %v1551_v57 = vmul.f32 1.442695, %v1471_v47  ;;  %v1553_v16 = vmul.f32 1.442695, %v1472_v46 }
 0x299   : > { %v3859_v30 = vpop.eup %3858  ;;  %v1343_v43 = vpop.permute.xlu0 %1342  ;;  %v2100_v8 = vpack.c.bf16 %v3857_v55, %v3853_v53 }
 0x29a   : > { %3868 = vpow2.f32 %v1551_v57  ;;  %v1473_v48 = vsub.f32 %v4501_v61, %v1343_v43  ;;  %v1474_v50 = vsub.f32 %v4505_v63, %v1343_v43  ;;  %v2101_v20 = vpack.c.bf16 %v3859_v30, %v3855_v24 }
 0x29b   : > { %3870 = vpow2.f32 %v1553_v16  ;;  %v4993_v41 = vadd.f32 %v3859_v30, %v3857_v55 }
 0x29c   : > { %v3861_v59 = vpop.eup %3860  ;;  %v1555_v60 = vmul.f32 1.442695, %v1473_v48  ;;  %v1557_v23 = vmul.f32 1.442695, %v1474_v50  ;;  %2304 = vmatprep.mubr.bf16.mxu1 %v2101_v20 }
 0x29d   : > { %v3863_v9 = vpop.eup %3862  ;;  %2305 = vmatmul.mubr.bf16.gmra.mrb[8].mxu1 %v2100_v8  ;;  %v1348_v34 = vpop.permute.xlu1 %1347 }
 0x29e   : > { %3872 = vpow2.f32 %v1555_v60  ;;  %v1475_v42 = vsub.f32 %v4509_v1, %v1348_v34  ;;  %v1476_v35 = vsub.f32 %v4511_v2, %v1348_v34  ;;  %v4997_v53 = vadd.f32 %v3863_v9, %v3861_v59 }
 0x29f   : > { %3874 = vpow2.f32 %v1557_v23 }
 0x2a0   : > { %v3865_v61 = vpop.eup %3864  ;;  %v1559_v63 = vmul.f32 1.442695, %v1475_v42  ;;  %v1561_v54 = vmul.f32 1.442695, %v1476_v35 }
 0x2a1   : > { %v3867_v33 = vpop.eup %3866  ;;  %v1353_v24 = vpop.permute.xlu1 %1352  ;;  %v2102_v21 = vpack.c.bf16 %v3865_v61, %v3861_v59 }
 0x2a2   : > { %3876 = vpow2.f32 %v1559_v63  ;;  %v1477_v47 = vsub.f32 %v4513_v3, %v1353_v24  ;;  %v1478_v46 = vsub.f32 %v4517_v5, %v1353_v24  ;;  %v2103_v55 = vpack.c.bf16 %v3867_v33, %v3863_v9 }
 0x2a3   : > { %3878 = vpow2.f32 %v1561_v54  ;;  %v5001_v57 = vadd.f32 %v3867_v33, %v3865_v61  ;;  %v5941_v61 = vsub.f32 %v4645_v49, %v4650_v52  ;;  %v5942_v54 = vsub.f32 %v4652_v37, %v4661_v12 }
 0x2a4   : > { %v3869_v1 = vpop.eup %3868  ;;  %v1563_v2 = vmul.f32 1.442695, %v1477_v47  ;;  %v1565_v16 = vmul.f32 1.442695, %v1478_v46  ;;  %2312 = vmatprep.mubr.bf16.mxu1 %v2103_v55  ;;  %v5943_v24 = vsub.f32 %v4664_v45, %v4673_v0  ;;  %v5944_v47 = vsub.f32 %v4676_v28, %v4685_v62 }
 0x2a5   : > { %v3871_v30 = vpop.eup %3870  ;;  %2313 = vmatmul.mubr.bf16.gmra.mrb[12].mxu1 %v2102_v21  ;;  %v1231_v63 = vmul.f32 1.442695, %v5941_v61  ;;  %v1233_v33 = vmul.f32 1.442695, %v5942_v54  ;;  %v5945_v55 = vsub.f32 %v4688_v29, %v4699_v27  ;;  %v5946_v49 = vsub.f32 %v4695_v58, %v4707_v4  ;;  %v5041_v58 = vld [vmem:[#allocation2 + $0xf8] sm:$0xff] }
 0x2a6   : > { %3880 = vpow2.f32 %v1563_v2  ;;  %v5003_v43 = vadd.f32 %v3871_v30, %v3869_v1  ;;  %v1235_v21 = vmul.f32 1.442695, %v5943_v24  ;;  %v1237_v46 = vmul.f32 1.442695, %v5944_v47  ;;  %v5968_v24 = vld [vmem:[#allocation61_spill] sm:$0xff] }
 0x2a7   : > { %3882 = vpow2.f32 %v1565_v16  ;;  %v1241_v52 = vmul.f32 1.442695, %v5946_v49  ;;  %v5947_v37 = vsub.f32 %v4716_v26, %v4722_v25  ;;  %v5948_v28 = vsub.f32 %v4719_v6, %v4729_v56  ;;  %v5951_v25 = vld [vmem:[#allocation50_spill] sm:$0xff]  ;;  %v5952_v26 = vld [vmem:[#allocation52_spill] sm:$0xff]  ;;  %v5954_v56 = vld [vmem:[#allocation51_spill] sm:$0xff] }
 0x2a8   : > { %v3873_v8 = vpop.eup %3872  ;;  %3884 = vpow2.f32 %v1231_v63  ;;  %v5949_v27 = vsub.f32 %v4736_v32, %v4742_v51  ;;  %v5950_v4 = vsub.f32 %v4739_v31, %v4749_v22  ;;  %v5953_v62 = vsub.f32 %v5951_v25, %v5952_v26  ;;  %v5955_v6 = vld [vmem:[#allocation53_spill] sm:$0xff]  ;;  %v5957_v51 = vld [vmem:[#allocation54_spill] sm:$0xff]  ;;  %v5959_v22 = vld [vmem:[#allocation55_spill] sm:$0xff] }
 0x2a9   : > { %v3875_v48 = vpop.eup %3874  ;;  %v2104_v50 = vpack.c.bf16 %v3873_v8, %v3869_v1  ;;  %v1239_v1 = vmul.f32 1.442695, %v5945_v55  ;;  %3886 = vpow2.f32 %v1233_v33  ;;  %v1243_v12 = vmul.f32 1.442695, %v5947_v37  ;;  %v5967_v33 = vld [vmem:[#allocation59_spill] sm:$0xff]  ;;  %v5971_v55 = vld [vmem:[#allocation60_spill] sm:$0xff] }
 0x2aa   : > { %v2105_v3 = vpack.c.bf16 %v3875_v48, %v3871_v30  ;;  %v5005_v20 = vadd.f32 %v3875_v48, %v3873_v8  ;;  %3888 = vpow2.f32 %v1235_v21  ;;  %v1245_v45 = vmul.f32 1.442695, %v5948_v28  ;;  %v5974_v37 = vld [vmem:[#allocation62_spill] sm:$0xff]  ;;  %v5981_v26 = vld [vmem:[#allocation11_spill] sm:$0xff] }
 0x2ab   : > { %3890 = vpow2.f32 %v1237_v46  ;;  %v1247_v29 = vmul.f32 1.442695, %v5949_v27  ;;  %v1249_v0 = vmul.f32 1.442695, %v5950_v4  ;;  %v1251_v2 = vmul.f32 1.442695, %v5953_v62 }
 0x2ac   : > { %v3877_v5 = vpop.eup %3876  ;;  %2320 = vmatprep.mubr.bf16.mxu1 %v2105_v3  ;;  %3892 = vpow2.f32 %v1239_v1  ;;  %v5956_v16 = vsub.f32 %v5954_v56, %v5955_v6  ;;  %v5958_v32 = vsub.f32 %v5957_v51, %v4782_v19  ;;  %v5969_v21 = vsub.f32 %v5967_v33, %v5968_v24  ;;  %v5995_v24 = vld [vmem:[#allocation67_spill] sm:$0xff] }
 0x2ad   : > { %v3879_v59 = vpop.eup %3878  ;;  %2321 = vmatmul.mubr.bf16.gmra.mrb[16].mxu1 %v2104_v50  ;;  %3894 = vpow2.f32 %v1241_v52  ;;  %v5960_v50 = vsub.f32 %v5959_v22, %v4789_v15  ;;  %v5964_v15 = vld [vmem:[#allocation57_spill] sm:$0xff]  ;;  %v5972_v1 = vsub.f32 %v5971_v55, %v4825_v14  ;;  %v5980_v14 = vld [vmem:[#allocation10_spill] sm:$0xff] }
 0x2ae   : > { %v5007_v60 = vadd.f32 %v3879_v59, %v3877_v5  ;;  %3896 = vpow2.f32 %v1243_v12  ;;  %v1253_v30 = vmul.f32 1.442695, %v5956_v16  ;;  %v1255_v48 = vmul.f32 1.442695, %v5958_v32  ;;  %v5987_v32 = vld [vmem:[#allocation65_spill] sm:$0xff] }
 0x2af   : > { %3898 = vpow2.f32 %v1245_v45  ;;  %v1257_v3 = vmul.f32 1.442695, %v5960_v50  ;;  %v5965_v61 = vsub.f32 %v5964_v15, %v4807_v10  ;;  %v1263_v47 = vmul.f32 1.442695, %v5969_v21  ;;  %v5977_v45 = vld [vmem:[#allocation63_spill] sm:$0xff]  ;;  %v5996_v21 = vld [vmem:[#allocation69_spill] sm:$0xff] }
 0x2b0   : > { %v3881_v23 = vpop.eup %3880  ;;  %3900 = vpow2.f32 %v1247_v29  ;;  %v1265_v49 = vmul.f32 1.442695, %v5972_v1  ;;  %v5975_v10 = vsub.f32 %v5974_v37, %v4839_v17  ;;  %v5978_v27 = vsub.f32 %v5977_v45, %v4846_v13  ;;  %v5983_v17 = vld [vmem:[#allocation64_spill] sm:$0xff] }
 0x2b1   : > { %v3883_v9 = vpop.eup %3882  ;;  %v2106_v34 = vpack.c.bf16 %v3881_v23, %v3877_v5  ;;  %3902 = vpow2.f32 %v1249_v0  ;;  %v1261_v63 = vmul.f32 1.442695, %v5965_v61  ;;  %v5984_v56 = vsub.f32 %v5983_v17, %v4857_v39  ;;  %v5991_v39 = vld [vmem:[#allocation12_spill] sm:$0xff] }
 0x2b2   : > { %v2107_v42 = vpack.c.bf16 %v3883_v9, %v3879_v59  ;;  %v5009_v35 = vadd.f32 %v3883_v9, %v3881_v23  ;;  %v5058_v5 = vpop.eup %3884  ;;  %3904 = vpow2.f32 %v1251_v2  ;;  %v5961_v59 = vld [vmem:[#allocation56_spill] sm:$0xff]  ;;  %v5962_v23 = vld [vmem:[#allocation58_spill] sm:$0xff]  ;;  %v1267_v12 = vmul.f32 1.442695, %v5975_v10 }
 0x2b3   : > { %v5963_v9 = vsub.f32 %v5961_v59, %v5962_v23  ;;  %v5068_v19 = vpop.eup %3886  ;;  %3906 = vpow2.f32 %v1253_v30  ;;  %v1269_v29 = vmul.f32 1.442695, %v5978_v27  ;;  %v1271_v6 = vmul.f32 1.442695, %v5984_v56  ;;  %v5999_v10 = vld [vmem:[#allocation68_spill] sm:$0xff] }
 0x2b4   : > { %2328 = vmatprep.mubr.bf16.mxu1 %v2107_v42  ;;  %v5073_v54 = vpop.eup %3888  ;;  %3908 = vpow2.f32 %v1255_v48  ;;  %v5988_v48 = vld [vmem:[#allocation66_spill] sm:$0xff] }
 0x2b5   : > { %2329 = vmatmul.mubr.bf16.gmra.mrb[20].mxu1 %v2106_v34  ;;  %v1259_v34 = vmul.f32 1.442695, %v5963_v9  ;;  %5966 = vst [vmem:[#allocation50_spill] sm:$0xff] %v5073_v54  ;;  %v5078_v46 = vpop.eup %3890  ;;  %3910 = vpow2.f32 %v1257_v3  ;;  %v5989_v22 = vsub.f32 %v5987_v32, %v5988_v48  ;;  %v5992_v9 = vld [vmem:[#allocation13_spill] sm:$0xff]  ;;  %v6007_v32 = vld [vmem:[#allocation19_spill] sm:$0xff] }
 0x2b6   : > { %5970 = vst [vmem:[#allocation52_spill] sm:$0xff] %v5078_v46  ;;  %v5083_v52 = vpop.eup %3892 }
 0x2b7   : > { %5973 = vst [vmem:[#allocation51_spill] sm:$0xff] %v5083_v52  ;;  %3912 = vpow2.f32 %v1259_v34  ;;  %v5089_v28 = vpop.eup %3894  ;;  %v1273_v50 = vmul.f32 1.442695, %v5989_v22 }
 0x2b8   : > { %5976 = vst [vmem:[#allocation53_spill] sm:$0xff] %v5089_v28  ;;  %3914 = vpow2.f32 %v1261_v63  ;;  %v5094_v0 = vpop.eup %3896 }
 0x2b9   : > { %5979 = vst [vmem:[#allocation54_spill] sm:$0xff] %v5094_v0  ;;  %3916 = vpow2.f32 %v1263_v47  ;;  %v5098_v2 = vpop.eup %3898  ;;  %v5997_v47 = vsub.f32 %v5995_v24, %v5996_v21  ;;  %v6010_v24 = vld [vmem:[#allocation16_spill] sm:$0xff] }
 0x2ba   : > { %5982 = vst [vmem:[#allocation55_spill] sm:$0xff] %v5098_v2  ;;  %3918 = vpow2.f32 %v1265_v49  ;;  %v5103_v16 = vpop.eup %3900 }
 0x2bb   : > { %5985 = vst [vmem:[#allocation56_spill] sm:$0xff] %v5103_v16  ;;  %3920 = vpow2.f32 %v1267_v12  ;;  %v5108_v51 = vpop.eup %3902  ;;  %v1275_v55 = vmul.f32 1.442695, %v5997_v47  ;;  %v6000_v12 = vld [vmem:[#allocation70_spill] sm:$0xff]  ;;  %v6011_v47 = vld [vmem:[#allocation17_spill] sm:$0xff] }
 0x2bc   : > { %5986 = vst [vmem:[#allocation58_spill] sm:$0xff] %v5108_v51  ;;  %3922 = vpow2.f32 %v1269_v29  ;;  %v5113_v59 = vpop.eup %3904  ;;  %v6001_v45 = vsub.f32 %v5999_v10, %v6000_v12  ;;  %v6013_v10 = vld [vmem:[#allocation28_spill] sm:$0xff] }
 0x2bd   : > { %5990 = vst [vmem:[#allocation57_spill] sm:$0xff] %v5113_v59  ;;  %v5117_v61 = vpop.eup %3906  ;;  %v6022_v29 = vld [vmem:[#allocation36_spill] sm:$0xff] }
 0x2be   : > { %5993 = vst [vmem:[#allocation59_spill] sm:$0xff] %v5117_v61  ;;  %v5122_v33 = vpop.eup %3908  ;;  %v1277_v27 = vmul.f32 1.442695, %v6001_v45  ;;  %v6014_v45 = vld [vmem:[#allocation29_spill] sm:$0xff] }
 0x2bf   : > { %5994 = vst [vmem:[#allocation61_spill] sm:$0xff] %v5122_v33  ;;  %v5128_v37 = vpop.eup %3910 }
 0x2c0   : > { %5998 = vst [vmem:[#allocation60_spill] sm:$0xff] %v5128_v37 }
 0x2c6   : > { %v1166_v8 = vpop.xlane.xlu0 %1165 }
 0x2c7   : > { %v5053_v31 = vmax.f32 %v5041_v58, %v1166_v8  ;;  %v5106_v8 = vld [vmem:[#allocation2 + $0xf0] sm:$0xff] }
 0x2c9   : > { %2512 = vst.msk [vmem:[#allocation2 + $0xf8] sm:$0xff] %vm1839_vm1, %v5053_v31  ;;  %1452 = vperm.xlu1 %3787, %v5053_v31  }
 0x2cd   : > { %1906 = vperm.xlu1 %3787, %v5058_v5  }
 0x2ce   : > { %v1358_v4 = vpop.permute.xlu0 %1357 }
 0x2cf   : > { %v1479_v25 = vsub.f32 %v5980_v14, %v1358_v4  ;;  %v1480_v62 = vsub.f32 %v5981_v26, %v1358_v4  ;;  %v5138_v14 = vpop.eup %3912 }
 0x2d0   : > { %6002 = vst [vmem:[#allocation62_spill] sm:$0xff] %v5138_v14 }
 0x2d1   : > { %v1567_v13 = vmul.f32 1.442695, %v1479_v25  ;;  %v1569_v30 = vmul.f32 1.442695, %v1480_v62  ;;  %1916 = vperm.xlu1 %3787, %v5073_v54   ;;  %v6003_v25 = vld [vmem:[#allocation14_spill] sm:$0xff]  ;;  %v6004_v62 = vld [vmem:[#allocation15_spill] sm:$0xff] }
 0x2d2   : > { %v1363_v3 = vpop.permute.xlu0 %1362 }
 0x2d3   : > { %3924 = vpow2.f32 %v1567_v13  ;;  %v1481_v23 = vsub.f32 %v5991_v39, %v1363_v3  ;;  %v1482_v34 = vsub.f32 %v5992_v9, %v1363_v3  ;;  %v1163_v15 = vpop.xlane.xlu1 %1162  ;;  %v6006_v13 = vld [vmem:[#allocation18_spill] sm:$0xff] }
 0x2d4   : > { %3926 = vpow2.f32 %v1569_v30  ;;  %v5120_v63 = vmax.f32 %v5106_v8, %v1163_v15 }
 0x2d5   : > { %3928 = vpow2.f32 %v1271_v6  ;;  %v1571_v1 = vmul.f32 1.442695, %v1481_v23  ;;  %v1573_v49 = vmul.f32 1.442695, %v1482_v34  ;;  %1921 = vperm.xlu1 %3787, %v5078_v46   ;;  %v5142_v6 = vpop.eup %3914 }
 0x2d6   : > { %3930 = vpow2.f32 %v1273_v50  ;;  %2511 = vst.msk [vmem:[#allocation2 + $0xf0] sm:$0xff] %vm1839_vm1, %v5120_v63  ;;  %1447 = vperm.xlu0 %3786, %v5120_v63   ;;  %v1368_v4 = vpop.permute.xlu0 %1367  ;;  %6005 = vst [vmem:[#allocation63_spill] sm:$0xff] %v5142_v6  ;;  %v5146_v22 = vpop.eup %3916 }
 0x2d7   : > { %3932 = vpow2.f32 %v1571_v1  ;;  %v1483_v26 = vsub.f32 %v6003_v25, %v1368_v4  ;;  %v1484_v17 = vsub.f32 %v6004_v62, %v1368_v4  ;;  %v1378_v56 = vpop.permute.xlu1 %1377  ;;  %6008 = vst [vmem:[#allocation10_spill] sm:$0xff] %v5146_v22  ;;  %v5149_v39 = vpop.eup %3918 }
 0x2d8   : > { %3934 = vpow2.f32 %v1573_v49  ;;  %v1487_v30 = vsub.f32 %v6006_v13, %v1378_v56  ;;  %v1488_v48 = vsub.f32 %v6007_v32, %v1378_v56  ;;  %6009 = vst [vmem:[#allocation11_spill] sm:$0xff] %v5149_v39  ;;  %v5152_v15 = vpop.eup %3920  ;;  %v6015_v32 = vld [vmem:[#allocation20_spill] sm:$0xff] }
 0x2d9   : > { %3936 = vpow2.f32 %v1275_v55  ;;  %v1575_v50 = vmul.f32 1.442695, %v1483_v26  ;;  %v1577_v3 = vmul.f32 1.442695, %v1484_v17  ;;  %1931 = vperm.xlu1 %3787, %v5089_v28   ;;  %v5156_v49 = vpop.eup %3922 }
 0x2da   : > { %3938 = vpow2.f32 %v1277_v27  ;;  %v1583_v23 = vmul.f32 1.442695, %v1487_v30  ;;  %v1585_v9 = vmul.f32 1.442695, %v1488_v48  ;;  %1911 = vperm.xlu0 %3786, %v5068_v19   ;;  %v1373_v34 = vpop.permute.xlu0 %1372  ;;  %6012 = vst [vmem:[#allocation64_spill] sm:$0xff] %v5156_v49 }
 0x2db   : > { %3940 = vpow2.f32 %v1575_v50  ;;  %v1485_v21 = vsub.f32 %v6010_v24, %v1373_v34  ;;  %v1486_v1 = vsub.f32 %v6011_v47, %v1373_v34  ;;  %v1403_v55 = vpop.permute.xlu1 %1402  ;;  %v6016_v50 = vld [vmem:[#allocation21_spill] sm:$0xff] }
 0x2dc   : > { %3942 = vpow2.f32 %v1577_v3  ;;  %v1497_v12 = vsub.f32 %v6013_v10, %v1403_v55  ;;  %v1498_v27 = vsub.f32 %v6014_v45, %v1403_v55  ;;  %v6019_v47 = vld [vmem:[#allocation33_spill] sm:$0xff] }
 0x2dd   : > { %v3925_v4 = vpop.eup %3924  ;;  %3944 = vpow2.f32 %v1583_v23  ;;  %v1579_v25 = vmul.f32 1.442695, %v1485_v21  ;;  %v1581_v26 = vmul.f32 1.442695, %v1486_v1  ;;  %1941 = vperm.xlu1 %3787, %v5098_v2   ;;  %v6018_v21 = vld [vmem:[#allocation32_spill] sm:$0xff] }
 0x2de   : > { %v3927_v62 = vpop.eup %3926  ;;  %3946 = vpow2.f32 %v1585_v9  ;;  %v1603_v17 = vmul.f32 1.442695, %v1497_v12  ;;  %v1605_v56 = vmul.f32 1.442695, %v1498_v27  ;;  %1926 = vperm.xlu0 %3786, %v5083_v52   ;;  %v1383_v13 = vpop.permute.xlu0 %1382 }
 0x2df   : > { %v5162_v30 = vpop.eup %3928  ;;  %3948 = vpow2.f32 %v1579_v25  ;;  %v1489_v48 = vsub.f32 %v6015_v32, %v1383_v13  ;;  %v1490_v3 = vsub.f32 %v6016_v50, %v1383_v13  ;;  %v1413_v34 = vpop.permute.xlu1 %1412  ;;  %v5166_v23 = vadd.f32 %v3927_v62, %v3925_v4 }
 0x2e0   : > { %v5168_v24 = vpop.eup %3930  ;;  %3950 = vpow2.f32 %v1581_v26  ;;  %v1501_v9 = vsub.f32 %v6018_v21, %v1413_v34  ;;  %v1502_v1 = vsub.f32 %v6019_v47, %v1413_v34  ;;  %v6020_v26 = vld [vmem:[#allocation22_spill] sm:$0xff]  ;;  %v6021_v34 = vld [vmem:[#allocation23_spill] sm:$0xff] }
 0x2e1   : > { %6017 = vst [vmem:[#allocation65_spill] sm:$0xff] %v5168_v24  ;;  %v3933_v55 = vpop.eup %3932  ;;  %3952 = vpow2.f32 %v1603_v17  ;;  %v1587_v10 = vmul.f32 1.442695, %v1489_v48  ;;  %v1589_v12 = vmul.f32 1.442695, %v1490_v3  ;;  %1951 = vperm.xlu1 %3787, %v5108_v51  }
 0x2e2   : > { %v3935_v45 = vpop.eup %3934  ;;  %3954 = vpow2.f32 %v1605_v56  ;;  %v1611_v27 = vmul.f32 1.442695, %v1501_v9  ;;  %v1613_v25 = vmul.f32 1.442695, %v1502_v1  ;;  %1936 = vperm.xlu0 %3786, %v5094_v0   ;;  %v1388_v13 = vpop.permute.xlu0 %1387  ;;  %v2108_v32 = vpack.c.bf16 %v3933_v55, %v3925_v4  ;;  %v6023_v9 = vld [vmem:[#allocation37_spill] sm:$0xff] }
 0x2e3   : > { %v5174_v50 = vpop.eup %3936  ;;  %3956 = vpow2.f32 %v1587_v10  ;;  %v1491_v21 = vsub.f32 %v6020_v26, %v1388_v13  ;;  %v1492_v47 = vsub.f32 %v6021_v34, %v1388_v13  ;;  %v1423_v17 = vpop.permute.xlu1 %1422  ;;  %v2109_v48 = vpack.c.bf16 %v3935_v45, %v3927_v62  ;;  %v6025_v26 = vld [vmem:[#allocation25_spill] sm:$0xff] }
 0x2e4   : > { %v5178_v3 = vpop.eup %3938  ;;  %3958 = vpow2.f32 %v1589_v12  ;;  %v1505_v56 = vsub.f32 %v6022_v29, %v1423_v17  ;;  %v1506_v1 = vsub.f32 %v6023_v9, %v1423_v17  ;;  %v5182_v42 = vadd.f32 %v3935_v45, %v3933_v55  ;;  %v6024_v55 = vld [vmem:[#allocation24_spill] sm:$0xff] }
 0x2e5   : > { %v3941_v51 = vpop.eup %3940  ;;  %3960 = vpow2.f32 %v1611_v27  ;;  %v1591_v4 = vmul.f32 1.442695, %v1491_v21  ;;  %v1593_v2 = vmul.f32 1.442695, %v1492_v47  ;;  %2336 = vmatprep.mubr.bf16.mxu1 %v2109_v48  ;;  %1961 = vperm.xlu1 %3787, %v5117_v61   ;;  %v6026_v17 = vld [vmem:[#allocation40_spill] sm:$0xff]  ;;  %v6027_v48 = vld [vmem:[#allocation41_spill] sm:$0xff] }
 0x2e6   : > { %v3943_v10 = vpop.eup %3942  ;;  %3962 = vpow2.f32 %v1613_v25  ;;  %v1619_v13 = vmul.f32 1.442695, %v1505_v56  ;;  %v1621_v62 = vmul.f32 1.442695, %v1506_v1  ;;  %2337 = vmatmul.mubr.bf16.gmra.mrb[24].mxu1 %v2108_v32  ;;  %1946 = vperm.xlu0 %3786, %v5103_v16   ;;  %v1393_v12 = vpop.permute.xlu0 %1392  ;;  %v6030_v16 = vld [vmem:[#allocation44_spill] sm:$0xff] }
 0x2e7   : > { %v5186_v29 = vpop.eup %3944  ;;  %3964 = vpow2.f32 %v1591_v4  ;;  %v1493_v45 = vsub.f32 %v6024_v55, %v1393_v12  ;;  %v1494_v27 = vsub.f32 %v6025_v26, %v1393_v12  ;;  %v1433_v21 = vpop.permute.xlu1 %1432  ;;  %v5190_v34 = vadd.f32 %v3943_v10, %v3941_v51 }
 0x2e8   : > { %v3947_v47 = vpop.eup %3946  ;;  %3966 = vpow2.f32 %v1593_v2  ;;  %v1509_v25 = vsub.f32 %v6026_v17, %v1433_v21  ;;  %v1510_v56 = vsub.f32 %v6027_v48, %v1433_v21  ;;  %v6028_v21 = vld [vmem:[#allocation26_spill] sm:$0xff] }
 0x2e9   : > { %v3949_v32 = vpop.eup %3948  ;;  %3968 = vpow2.f32 %v1619_v13  ;;  %v1595_v9 = vmul.f32 1.442695, %v1493_v45  ;;  %v1597_v1 = vmul.f32 1.442695, %v1494_v27  ;;  %1971 = vperm.xlu1 %3787, %v5128_v37   ;;  %v5196_v4 = vadd.f32 %v3947_v47, %v5186_v29  ;;  %v6029_v45 = vld [vmem:[#allocation27_spill] sm:$0xff] }
 0x2ea   : > { %v3951_v55 = vpop.eup %3950  ;;  %3970 = vpow2.f32 %v1621_v62  ;;  %v1627_v12 = vmul.f32 1.442695, %v1509_v25  ;;  %v1629_v26 = vmul.f32 1.442695, %v1510_v56  ;;  %1956 = vperm.xlu0 %3786, %v5113_v59   ;;  %v1398_v2 = vpop.permute.xlu0 %1397  ;;  %v2110_v61 = vpack.c.bf16 %v3949_v32, %v3941_v51  ;;  %v6031_v25 = vld [vmem:[#allocation45_spill] sm:$0xff] }
 0x2eb   : > { %v5199_v17 = vpop.eup %3952  ;;  %3972 = vpow2.f32 %v1595_v9  ;;  %v1495_v13 = vsub.f32 %v6028_v21, %v1398_v2  ;;  %v1496_v27 = vsub.f32 %v6029_v45, %v1398_v2  ;;  %v1443_v48 = vpop.permute.xlu1 %1442  ;;  %v2111_v37 = vpack.c.bf16 %v3951_v55, %v3943_v10  ;;  %v6033_v21 = vld [vmem:[#allocation31_spill] sm:$0xff] }
 0x2ec   : > { %v5203_v28 = vpop.eup %3954  ;;  %3974 = vpow2.f32 %v1597_v1  ;;  %v1513_v62 = vsub.f32 %v6030_v16, %v1443_v48  ;;  %v1514_v56 = vsub.f32 %v6031_v25, %v1443_v48  ;;  %v5207_v46 = vadd.f32 %v3951_v55, %v3949_v32  ;;  %v6034_v48 = vld [vmem:[#allocation71_spill] sm:$0xff] }
 0x2ed   : > { %v3957_v59 = vpop.eup %3956  ;;  %3976 = vpow2.f32 %v1627_v12  ;;  %v1599_v51 = vmul.f32 1.442695, %v1495_v13  ;;  %v1601_v0 = vmul.f32 1.442695, %v1496_v27  ;;  %2344 = vmatprep.mubr.bf16.mxu1 %v2111_v37  ;;  %1981 = vperm.xlu1 %3787, %v5142_v6   ;;  %v5212_v9 = vadd.f32 %v5203_v28, %v5199_v17  ;;  %v6032_v37 = vld [vmem:[#allocation30_spill] sm:$0xff] }
 0x2ee   : > { %v3959_v10 = vpop.eup %3958  ;;  %3978 = vpow2.f32 %v1629_v26  ;;  %v1635_v1 = vmul.f32 1.442695, %v1513_v62  ;;  %v1637_v2 = vmul.f32 1.442695, %v1514_v56  ;;  %2345 = vmatmul.mubr.bf16.gmra.mrb[28].mxu1 %v2110_v61  ;;  %1966 = vperm.xlu0 %3786, %v5122_v33   ;;  %v1408_v16 = vpop.permute.xlu0 %1407  ;;  %v2112_v32 = vpack.c.bf16 %v3957_v59, %v5186_v29  ;;  %v6035_v26 = vld [vmem:[#allocation73_spill] sm:$0xff] }
 0x2ef   : > { %v5216_v55 = vpop.eup %3960  ;;  %3980 = vpow2.f32 %v1599_v51  ;;  %v1499_v12 = vsub.f32 %v6032_v37, %v1408_v16  ;;  %v1500_v13 = vsub.f32 %v6033_v21, %v1408_v16  ;;  %v2113_v45 = vpack.c.bf16 %v3959_v10, %v3947_v47  ;;  %v6037_v16 = vld [vmem:[#allocation72_spill] sm:$0xff]  ;;  %v6038_v37 = vld [vmem:[#allocation74_spill] sm:$0xff] }
 0x2f0   : > { %v5220_v27 = vpop.eup %3962  ;;  %v6036_v62 = vsub.f32 %v6034_v48, %v6035_v26  ;;  %3982 = vpow2.f32 %v1601_v0  ;;  %v5225_v61 = vadd.f32 %v3959_v10, %v3957_v59  ;;  %v6039_v21 = vsub.f32 %v6037_v16, %v6038_v37  ;;  %v6040_v10 = vld [vmem:[#allocation34_spill] sm:$0xff] }
 0x2f1   : > { %v5227_v56 = vpop.eup %3964  ;;  %3984 = vpow2.f32 %v1635_v1  ;;  %v1607_v29 = vmul.f32 1.442695, %v1499_v12  ;;  %v1609_v6 = vmul.f32 1.442695, %v1500_v13  ;;  %2352 = vmatprep.mubr.bf16.mxu1 %v2113_v45  ;;  %1991 = vperm.xlu1 %3787, %v5149_v39   ;;  %v5232_v47 = vadd.f32 %v5220_v27, %v5216_v55  ;;  %v6041_v12 = vld [vmem:[#allocation35_spill] sm:$0xff] }
 0x2f2   : > { %v1279_v25 = vmul.f32 1.442695, %v6036_v62  ;;  %v3967_v51 = vpop.eup %3966  ;;  %v1281_v48 = vmul.f32 1.442695, %v6039_v21  ;;  %3986 = vpow2.f32 %v1637_v2  ;;  %1976 = vperm.xlu0 %3786, %v5138_v14   ;;  %v1418_v0 = vpop.permute.xlu0 %1417  ;;  %v6042_v21 = vld [vmem:[#allocation76_spill] sm:$0xff]  ;;  %v6046_v39 = vld [vmem:[#allocation39_spill] sm:$0xff] }
 0x2f3   : > { %v5238_v59 = vpop.eup %3968  ;;  %3988 = vpow2.f32 %v1607_v29  ;;  %v1503_v1 = vsub.f32 %v6040_v10, %v1418_v0  ;;  %v1504_v13 = vsub.f32 %v6041_v12, %v1418_v0  ;;  %v5243_v45 = vadd.f32 %v3967_v51, %v5227_v56  ;;  %v6043_v0 = vld [vmem:[#allocation77_spill] sm:$0xff] }
 0x2f4   : > { %v5245_v26 = vpop.eup %3970  ;;  %3990 = vpow2.f32 %v1609_v6  ;;  %v6044_v10 = vsub.f32 %v6042_v21, %v6043_v0 }
 0x2f5   : > { %v3973_v62 = vpop.eup %3972  ;;  %3992 = vpow2.f32 %v1279_v25  ;;  %v1615_v16 = vmul.f32 1.442695, %v1503_v1  ;;  %v1617_v2 = vmul.f32 1.442695, %v1504_v13  ;;  %2001 = vperm.xlu1 %3787, %v5156_v49   ;;  %v5250_v37 = vadd.f32 %v5245_v26, %v5238_v59  ;;  %v6045_v13 = vld [vmem:[#allocation38_spill] sm:$0xff] }
 0x2f6   : > { %v3975_v29 = vpop.eup %3974  ;;  %3994 = vpow2.f32 %v1281_v48  ;;  %v1285_v12 = vmul.f32 1.442695, %v6044_v10  ;;  %2353 = vmatmul.mubr.bf16.gmra.mrb[32].mxu1 %v2112_v32  ;;  %1986 = vperm.xlu0 %3786, %v5146_v22   ;;  %v1428_v6 = vpop.permute.xlu0 %1427  ;;  %v2114_v25 = vpack.c.bf16 %v3973_v62, %v5227_v56  ;;  %v6047_v32 = vld [vmem:[#allocation75_spill] sm:$0xff] }
 0x2f7   : > { %v5257_v1 = vpop.eup %3976  ;;  %3996 = vpow2.f32 %v1615_v16  ;;  %v1507_v49 = vsub.f32 %v6045_v13, %v1428_v6  ;;  %v1508_v14 = vsub.f32 %v6046_v39, %v1428_v6  ;;  %v2115_v33 = vpack.c.bf16 %v3975_v29, %v3967_v51  ;;  %v6049_v51 = vld [vmem:[#allocation79_spill] sm:$0xff] }
 0x2f8   : > { %v5261_v54 = vpop.eup %3978  ;;  %3998 = vpow2.f32 %v1617_v2  ;;  %v5263_v48 = vadd.f32 %v3975_v29, %v3973_v62  ;;  %v6048_v0 = vsub.f32 %v6047_v32, %v4920_v7  ;;  %v6050_v2 = vld [vmem:[#allocation80_spill] sm:$0xff]  ;;  %v6053_v13 = vld [vmem:[#allocation43_spill] sm:$0xff] }
 0x2f9   : > { %v3981_v21 = vpop.eup %3980  ;;  %v1623_v22 = vmul.f32 1.442695, %v1507_v49  ;;  %v1625_v56 = vmul.f32 1.442695, %v1508_v14  ;;  %2360 = vmatprep.mubr.bf16.mxu1 %v2115_v33  ;;  %2011 = vperm.xlu1 %3787, %v5168_v24   ;;  %v5271_v16 = vadd.f32 %v5261_v54, %v5257_v1  ;;  %4000 = vpow2.f32 %v1285_v12  ;;  %v6052_v33 = vld [vmem:[#allocation42_spill] sm:$0xff] }
 0x2fa   : > { %v1283_v10 = vmul.f32 1.442695, %v6048_v0  ;;  %v3983_v39 = vpop.eup %3982  ;;  %v6051_v62 = vsub.f32 %v6049_v51, %v6050_v2  ;;  %1996 = vperm.xlu0 %3786, %v5152_v15   ;;  %v1438_v6 = vpop.permute.xlu0 %1437  ;;  %v2116_v7 = vpack.c.bf16 %v5199_v17, %v3981_v21 }
 0x2fb   : > { %v3985_v49 = vpop.eup %3984  ;;  %4002 = vpow2.f32 %v1623_v22  ;;  %v1511_v14 = vsub.f32 %v6052_v33, %v1438_v6  ;;  %v1512_v32 = vsub.f32 %v6053_v13, %v1438_v6  ;;  %v2117_v0 = vpack.c.bf16 %v5203_v28, %v3983_v39 }
 0x2fc   : > { %v1289_v29 = vmul.f32 1.442695, %v6051_v62  ;;  %v3987_v24 = vpop.eup %3986  ;;  %4004 = vpow2.f32 %v1625_v56  ;;  %v5281_v12 = vadd.f32 %v3983_v39, %v3981_v21  ;;  %v6054_v56 = vld [vmem:[#allocation78_spill] sm:$0xff] }
 0x2fd   : > { %v3989_v52 = vpop.eup %3988  ;;  %4006 = vpow2.f32 %v1283_v10  ;;  %v1631_v51 = vmul.f32 1.442695, %v1511_v14  ;;  %v1633_v2 = vmul.f32 1.442695, %v1512_v32  ;;  %2021 = vperm.xlu1 %3787, %v5178_v3   ;;  %v5284_v62 = vadd.f32 %v3987_v24, %v3985_v49 }
 0x2fe   : > { %v3991_v17 = vpop.eup %3990  ;;  %4008 = vpow2.f32 %v1289_v29  ;;  %2361 = vmatmul.mubr.bf16.gmra.mrb[36].mxu1 %v2114_v25  ;;  %2006 = vperm.xlu0 %3786, %v5162_v30   ;;  %v2118_v22 = vpack.c.bf16 %v5216_v55, %v3989_v52  ;;  %v6055_v21 = vsub.f32 %v6054_v56, %v4942_v18 }
 0x2ff   : > { %v5288_v28 = vpop.eup %3992  ;;  %4010 = vpow2.f32 %v1631_v51  ;;  %2368 = vmatprep.mubr.bf16.mxu1 %v2117_v0  ;;  %v2119_v10 = vpack.c.bf16 %v5220_v27, %v3991_v17  ;;  %v5294_v6 = vadd.f32 %v3991_v17, %v3989_v52 }
 0x300   : > { %v1287_v39 = vmul.f32 1.442695, %v6055_v21  ;;  %v5296_v33 = vpop.eup %3994  ;;  %4012 = vpow2.f32 %v1633_v2 }
 0x301   : > { %v3997_v25 = vpop.eup %3996  ;;  %2031 = vperm.xlu1 %3787, %v5296_v33  }
 0x302   : > { %v3999_v29 = vpop.eup %3998  ;;  %2016 = vperm.xlu0 %3786, %v5174_v50   ;;  %v2120_v55 = vpack.c.bf16 %v5238_v59, %v3997_v25  ;;  %4014 = vpow2.f32 %v1287_v39 }
 0x303   : > { %v2121_v18 = vpack.c.bf16 %v5245_v26, %v3999_v29  ;;  %v5302_v14 = vadd.f32 %v3999_v29, %v3997_v25  ;;  %v5304_v13 = vpop.eup %4000 }
 0x305   : > { %v4003_v52 = vpop.eup %4002  ;;  %2041 = vperm.xlu1 %3787, %v5304_v13  }
 0x306   : > { %v4005_v27 = vpop.eup %4004  ;;  %2369 = vmatmul.mubr.bf16.gmra.mrb[40].mxu1 %v2116_v7  ;;  %2026 = vperm.xlu0 %3786, %v5288_v28   ;;  %v2122_v32 = vpack.c.bf16 %v5257_v1, %v4003_v52 }
 0x307   : > { %v5309_v0 = vpop.eup %4006  ;;  %2376 = vmatprep.mubr.bf16.mxu1 %v2119_v10  ;;  %v2123_v59 = vpack.c.bf16 %v5261_v54, %v4005_v27  ;;  %v1789_v51 = vadd.f32 %v4005_v27, %v4003_v52 }
 0x308   : > { %v5312_v26 = vpop.eup %4008 }
 0x309   : > { %v4011_v2 = vpop.eup %4010  ;;  %2051 = vperm.xlu1 %3787, %v5312_v26  }
 0x30a   : > { %v4013_v17 = vpop.eup %4012  ;;  %2036 = vperm.xlu0 %3786, %v5309_v0   ;;  %v2124_v56 = vpack.c.bf16 %v3985_v49, %v4011_v2 }
 0x30b   : > { %v2125_v7 = vpack.c.bf16 %v3987_v24, %v4013_v17  ;;  %v1795_v21 = vadd.f32 %v4013_v17, %v4011_v2  ;;  %v6060_v17 = vsub.f32 %v5041_v58, %v5053_v31 }
 0x30c   : > { %v5316_v39 = vpop.eup %4014 }
 0x30e   : > { %2377 = vmatmul.mubr.bf16.gmra.mrb[44].mxu1 %v2118_v22  ;;  %2046 = vperm.xlu0 %3786, %v5316_v39  }
 0x30f   : > { %2384 = vmatprep.mubr.bf16.mxu1 %v2121_v18 }
 0x316   : > { %2385 = vmatmul.mubr.bf16.gmra.mrb[48].mxu1 %v2120_v55 }
 0x317   : > { %2392 = vmatprep.mubr.bf16.mxu1 %v2123_v59 }
 0x31e   : > { %2393 = vmatmul.mubr.bf16.gmra.mrb[52].mxu1 %v2122_v32  ;;  %v1874_v32 = vld [vmem:[#allocation4 + $0x10] sm:$0xff] }
 0x31f   : > { %2400 = vmatprep.mubr.bf16.mxu1 %v2125_v7 }
 0x326   : > { %2401 = vmatmul.mubr.bf16.gmra.mrb[56].mxu1 %v2124_v56 }
 0x32d   : > { %1712 = vadd.xlane.f32.xlu0 %v4973_v11  ;;  %1715 = vadd.xlane.f32.xlu1 %v4977_v36  ;;  %v6056_v36 = vld [vmem:[#allocation48_spill] sm:$0xff] }
 0x331   : > { %1718 = vadd.xlane.f32.xlu0 %v4981_v40  ;;  %1724 = vadd.xlane.f32.xlu1 %v4989_v38 }
 0x335   : > { %1721 = vadd.xlane.f32.xlu0 %v4985_v44  ;;  %1730 = vadd.xlane.f32.xlu1 %v4997_v53  ;;  %v6057_v44 = vld [vmem:[#allocation49_spill] sm:$0xff] }
 0x339   : > { %1727 = vadd.xlane.f32.xlu0 %v4993_v41  ;;  %1736 = vadd.xlane.f32.xlu1 %v5003_v43  ;;  %v6058_v43 = vld [vmem:[#allocation46_spill] sm:$0xff] }
 0x33d   : > { %1733 = vadd.xlane.f32.xlu0 %v5001_v57  ;;  %1742 = vadd.xlane.f32.xlu1 %v5007_v60  ;;  %v6059_v60 = vld [vmem:[#allocation47_spill] sm:$0xff] }
 0x341   : > { %1739 = vadd.xlane.f32.xlu0 %v5005_v20  ;;  %1748 = vadd.xlane.f32.xlu1 %v5166_v23 }
 0x345   : > { %1745 = vadd.xlane.f32.xlu0 %v5009_v35  ;;  %1754 = vadd.xlane.f32.xlu1 %v5190_v34 }
 0x348   : > { %v1453_v11 = vpop.permute.xlu1 %1452 }
 0x349   : > { %v1517_v40 = vsub.f32 %v6056_v36, %v1453_v11  ;;  %v1518_v38 = vsub.f32 %v6057_v44, %v1453_v11  ;;  %1751 = vadd.xlane.f32.xlu0 %v5182_v42  ;;  %1760 = vadd.xlane.f32.xlu1 %v5196_v4  ;;  %v1872_v4 = vld [vmem:[#allocation4] sm:$0xff] }
 0x34b   : > { %v1643_v41 = vmul.f32 1.442695, %v1517_v40  ;;  %v1645_v53 = vmul.f32 1.442695, %v1518_v38 }
 0x34c   : > { %v1907_v34 = vpop.permute.xlu1 %1906 }
 0x34d   : > { %4016 = vpow2.f32 %v1643_v41  ;;  %1757 = vadd.xlane.f32.xlu0 %v5207_v46  ;;  %1766 = vadd.xlane.f32.xlu1 %v5243_v45  ;;  %v1873_v45 = vld [vmem:[#allocation4 + $0x8] sm:$0xff]  ;;  %v2064_v49 = vmul.f32 %v1907_v34, %v1872_v4 }
 0x34e   : > { %4018 = vpow2.f32 %v1645_v53  ;;  %v1876_v53 = vld [vmem:[#allocation4 + $0x20] sm:$0xff] }
 0x351   : > { %1763 = vadd.xlane.f32.xlu0 %v5225_v61  ;;  %1772 = vadd.xlane.f32.xlu1 %v5281_v12  ;;  %v1917_v12 = vpop.permute.xlu1 %1916 }
 0x352   : > { %v2066_v56 = vmul.f32 %v1917_v12, %v1874_v32 }
 0x355   : > { %1769 = vadd.xlane.f32.xlu0 %v5263_v48  ;;  %1778 = vadd.xlane.f32.xlu1 %v5294_v6  ;;  %v1448_v57 = vpop.permute.xlu0 %1447 }
 0x356   : > { %v1515_v20 = vsub.f32 %v6058_v43, %v1448_v57  ;;  %v1516_v35 = vsub.f32 %v6059_v60, %v1448_v57  ;;  %v1877_v43 = vld [vmem:[#allocation4 + $0x28] sm:$0xff] }
 0x357   : > { %v4017_v42 = vpop.eup %4016 }
 0x358   : > { %v4019_v54 = vpop.eup %4018  ;;  %v1639_v23 = vmul.f32 1.442695, %v1515_v20  ;;  %v1641_v46 = vmul.f32 1.442695, %v1516_v35 }
 0x359   : > { %1775 = vadd.xlane.f32.xlu0 %v5212_v9  ;;  %1784 = vadd.xlane.f32.xlu1 %v5302_v14  ;;  %v1804_v24 = vadd.f32 %v4019_v54, %v4017_v42  ;;  %v1912_v1 = vpop.permute.xlu0 %1911 }
 0x35a   : > { %4020 = vpow2.f32 %v1639_v23  ;;  %v2065_v25 = vmul.f32 %v1912_v1, %v1873_v45  ;;  %v1878_v45 = vld [vmem:[#allocation4 + $0x30] sm:$0xff] }
 0x35b   : > { %4022 = vpow2.f32 %v1641_v46 }
 0x35d   : > { %1781 = vadd.xlane.f32.xlu0 %v5232_v47  ;;  %1790 = vadd.xlane.f32.xlu1 %v1789_v51  ;;  %v1875_v51 = vld [vmem:[#allocation4 + $0x18] sm:$0xff]  ;;  %v1927_v57 = vpop.permute.xlu0 %1926 }
 0x35e   : > { %v2068_v58 = vmul.f32 %v1927_v57, %v1876_v53 }
 0x360   : > { %v3542_v61 = vpop.f32.mrb[0].mxu1 }
 0x361   : > { %v3543_v48 = vpop.f32.mrb[1].mxu1  ;;  %1787 = vadd.xlane.f32.xlu0 %v5250_v37  ;;  %1796 = vadd.xlane.f32.xlu1 %v1795_v21  ;;  %v1922_v37 = vpop.permute.xlu1 %1921 }
 0x362   : > { %v3544_v9 = vadd.f32 %v3543_v48, %v3542_v61  ;;  %v3545_v22 = vpop.f32.mrb[2].mxu1  ;;  %v2067_v36 = vmul.f32 %v1922_v37, %v1875_v51  ;;  %v1937_v4 = vpop.permute.xlu0 %1936 }
 0x363   : > { %v3546_v10 = vpop.f32.mrb[3].mxu1 }
 0x364   : > { %v4021_v6 = vpop.eup %4020  ;;  %v2417_v29 = vadd.f32 %v3544_v9, %v2064_v49  ;;  %v3547_v55 = vadd.f32 %v3546_v10, %v3545_v22  ;;  %v1879_v49 = vld [vmem:[#allocation4 + $0x38] sm:$0xff] }
 0x365   : > { %v4023_v18 = vpop.eup %4022  ;;  %1793 = vadd.xlane.f32.xlu0 %v5271_v16  ;;  %v2126_v47 = vpack.c.bf16 %v4017_v42, %v4021_v6  ;;  %v1293_v16 = vmul.f32 1.442695, %v6060_v17  ;;  %v1932_v38 = vpop.permute.xlu1 %1931  ;;  %v6061_v42 = vsub.f32 %v5106_v8, %v5120_v63  ;;  %v2070_v8 = vmul.f32 %v1937_v4, %v1878_v45 }
 0x366   : > { %2449 = vst [vmem:[#allocation4] sm:$0xff] %v2417_v29  ;;  %v2418_v14 = vadd.f32 %v3547_v55, %v2065_v25  ;;  %v2127_v52 = vpack.c.bf16 %v4019_v54, %v4023_v18  ;;  %v1801_v27 = vadd.f32 %v4023_v18, %v4021_v6  ;;  %v2069_v23 = vmul.f32 %v1932_v38, %v1877_v43  ;;  %v1947_v10 = vpop.permute.xlu0 %1946 }
 0x367   : > { %4024 = vpow2.f32 %v1293_v16  ;;  %v1291_v54 = vmul.f32 1.442695, %v6061_v42 }
 0x368   : > { %2450 = vst [vmem:[#allocation4 + $0x8] sm:$0xff] %v2418_v14  ;;  %v3548_v59 = vpop.f32.mrb[4].mxu1  ;;  %2408 = vmatprep.mubr.bf16.mxu1 %v2127_v52  ;;  %1802 = vadd.xlane.f32.xlu1 %v1801_v27  ;;  %v1881_v27 = vld [vmem:[#allocation4 + $0x48] sm:$0xff] }
 0x369   : > { %v3549_v2 = vpop.f32.mrb[5].mxu1  ;;  %2409 = vmatmul.mubr.bf16.gmra.mrb[60].mxu1 %v2126_v47  ;;  %1799 = vadd.xlane.f32.xlu0 %v5284_v62  ;;  %v1942_v46 = vpop.permute.xlu1 %1941  ;;  %4026 = vpow2.f32 %v1291_v54  ;;  %v1880_v47 = vld [vmem:[#allocation4 + $0x40] sm:$0xff] }
 0x36a   : > { %v3550_v7 = vadd.f32 %v3549_v2, %v3548_v59  ;;  %v3551_v21 = vpop.f32.mrb[6].mxu1  ;;  %v2071_v25 = vmul.f32 %v1942_v46, %v1879_v49  ;;  %v1957_v32 = vpop.permute.xlu0 %1956  ;;  %v2072_v51 = vmul.f32 %v1947_v10, %v1880_v47 }
 0x36b   : > { %v3552_v11 = vpop.f32.mrb[7].mxu1 }
 0x36c   : > { %v2419_v40 = vadd.f32 %v3550_v7, %v2066_v56  ;;  %v3553_v44 = vadd.f32 %v3552_v11, %v3551_v21 }
 0x36d   : > { %1805 = vadd.xlane.f32.xlu0 %v1804_v24  ;;  %v1952_v9 = vpop.permute.xlu1 %1951 }
 0x36e   : > { %2451 = vst [vmem:[#allocation4 + $0x10] sm:$0xff] %v2419_v40  ;;  %v2420_v41 = vadd.f32 %v3553_v44, %v2067_v36  ;;  %v2073_v56 = vmul.f32 %v1952_v9, %v1881_v27  ;;  %v1882_v40 = vld [vmem:[#allocation4 + $0x50] sm:$0xff]  ;;  %v1967_v44 = vpop.permute.xlu0 %1966  ;;  %v1651_v27 = vld [vmem:[#allocation3 + $0x20] sm:$0xff] }
 0x36f   : > { %v2074_v57 = vmul.f32 %v1957_v32, %v1882_v40 }
 0x370   : > { %2452 = vst [vmem:[#allocation4 + $0x18] sm:$0xff] %v2420_v41  ;;  %v3554_v62 = vpop.f32.mrb[8].mxu1  ;;  %v1883_v41 = vld [vmem:[#allocation4 + $0x58] sm:$0xff] }
 0x371   : > { %v3555_v20 = vpop.f32.mrb[9].mxu1  ;;  %v5357_v1 = vpop.eup %4024 }
 0x372   : > { %v3556_v31 = vadd.f32 %v3555_v20, %v3554_v62  ;;  %v3557_v60 = vpop.f32.mrb[10].mxu1  ;;  %v1962_v14 = vpop.permute.xlu1 %1961 }
 0x373   : > { %v3558_v35 = vpop.f32.mrb[11].mxu1  ;;  %v5360_v59 = vpop.eup %4026 }
 0x374   : > { %v2421_v24 = vadd.f32 %v3556_v31, %v2068_v58  ;;  %v3559_v34 = vadd.f32 %v3558_v35, %v3557_v60  ;;  %v2075_v58 = vmul.f32 %v1962_v14, %v1883_v41  ;;  %v1977_v42 = vpop.permute.xlu0 %1976 }
 0x376   : > { %2453 = vst [vmem:[#allocation4 + $0x20] sm:$0xff] %v2421_v24  ;;  %v2422_v61 = vadd.f32 %v3559_v34, %v2069_v23  ;;  %v1972_v11 = vpop.permute.xlu1 %1971 }
 0x378   : > { %2454 = vst [vmem:[#allocation4 + $0x28] sm:$0xff] %v2422_v61  ;;  %v3560_v48 = vpop.f32.mrb[12].mxu1  ;;  %v5367_v46 = vpop.permute.xlu0 %1986 }
 0x379   : > { %v3561_v12 = vpop.f32.mrb[13].mxu1  ;;  %2061 = vperm.xlu1 %3787, %v5357_v1  }
 0x37a   : > { %v3562_v63 = vadd.f32 %v3561_v12, %v3560_v48  ;;  %v3563_v22 = vpop.f32.mrb[14].mxu1  ;;  %v5363_v31 = vpop.permute.xlu1 %1981 }
 0x37b   : > { %v3564_v6 = vpop.f32.mrb[15].mxu1 }
 0x37c   : > { %v2423_v29 = vadd.f32 %v3562_v63, %v2070_v8  ;;  %v3565_v55 = vadd.f32 %v3564_v6, %v3563_v22  ;;  %v5371_v34 = vpop.permute.xlu0 %1996  ;;  %v1648_v22 = vld [vmem:[#allocation3 + $0x8] sm:$0xff]  ;;  %v1647_v6 = vld [vmem:[#allocation3] sm:$0xff] }
 0x37e   : > { %2455 = vst [vmem:[#allocation4 + $0x30] sm:$0xff] %v2423_v29  ;;  %v2424_v18 = vadd.f32 %v3565_v55, %v2071_v25  ;;  %v5365_v23 = vpop.permute.xlu1 %1991  ;;  %v1884_v25 = vld [vmem:[#allocation4 + $0x60] sm:$0xff]  ;;  %v1680_v55 = vmul.f32 %v5068_v19, %v1648_v22  ;;  %v6062_v19 = vld [vmem:[#allocation51_spill] sm:$0xff]  ;;  %v1887_v22 = vld [vmem:[#allocation4 + $0x78] sm:$0xff] }
 0x37f   : > { %v2076_v32 = vmul.f32 %v1967_v44, %v1884_v25  ;;  %v1653_v44 = vld [vmem:[#allocation3 + $0x30] sm:$0xff] }
 0x380   : > { %2456 = vst [vmem:[#allocation4 + $0x38] sm:$0xff] %v2424_v18  ;;  %v3566_v52 = vpop.f32.mrb[16].mxu1  ;;  %v5375_v61 = vpop.permute.xlu0 %2006  ;;  %v1885_v18 = vld [vmem:[#allocation4 + $0x68] sm:$0xff] }
 0x381   : > { %v3567_v37 = vpop.f32.mrb[17].mxu1 }
 0x382   : > { %v3568_v2 = vadd.f32 %v3567_v37, %v3566_v52  ;;  %v3569_v17 = vpop.f32.mrb[18].mxu1  ;;  %v5369_v24 = vpop.permute.xlu1 %2001  ;;  %v1679_v52 = vmul.f32 %v5058_v5, %v1647_v6  ;;  %v6063_v5 = vld [vmem:[#allocation50_spill] sm:$0xff] }
 0x383   : > { %v3570_v16 = vpop.f32.mrb[19].mxu1  ;;  %2056 = vperm.xlu0 %3786, %v5360_v59  }
 0x384   : > { %v2425_v7 = vadd.f32 %v3568_v2, %v2072_v51  ;;  %v3571_v21 = vadd.f32 %v3570_v16, %v3569_v17  ;;  %v5379_v48 = vpop.permute.xlu0 %2016  ;;  %v1649_v16 = vld [vmem:[#allocation3 + $0x10] sm:$0xff] }
 0x386   : > { %2457 = vst [vmem:[#allocation4 + $0x40] sm:$0xff] %v2425_v7  ;;  %v2426_v36 = vadd.f32 %v3571_v21, %v2073_v56  ;;  %v5373_v4 = vpop.permute.xlu1 %2011  ;;  %v2077_v21 = vmul.f32 %v1972_v11, %v1885_v18  ;;  %v1655_v18 = vld [vmem:[#allocation3 + $0x40] sm:$0xff] }
 0x388   : > { %2458 = vst [vmem:[#allocation4 + $0x48] sm:$0xff] %v2426_v36  ;;  %v3572_v38 = vpop.f32.mrb[20].mxu1  ;;  %v5383_v12 = vpop.permute.xlu0 %2026 }
 0x389   : > { %v3573_v53 = vpop.f32.mrb[21].mxu1 }
 0x38a   : > { %v3574_v62 = vadd.f32 %v3573_v53, %v3572_v38  ;;  %v3575_v43 = vpop.f32.mrb[22].mxu1  ;;  %v5377_v45 = vpop.permute.xlu1 %2021  ;;  %v1683_v38 = vmul.f32 %v6062_v19, %v1651_v27  ;;  %v1681_v53 = vmul.f32 %v6063_v5, %v1649_v16  ;;  %v1657_v19 = vld [vmem:[#allocation3 + $0x50] sm:$0xff] }
 0x38b   : > { %v3576_v20 = vpop.f32.mrb[23].mxu1 }
 0x38c   : > { %v2427_v60 = vadd.f32 %v3574_v62, %v2074_v57  ;;  %v3577_v35 = vadd.f32 %v3576_v20, %v3575_v43  ;;  %v5387_v8 = vpop.permute.xlu0 %2036  ;;  %v1650_v20 = vld [vmem:[#allocation3 + $0x18] sm:$0xff] }
 0x38e   : > { %2459 = vst [vmem:[#allocation4 + $0x50] sm:$0xff] %v2427_v60  ;;  %v2428_v54 = vadd.f32 %v3577_v35, %v2075_v58  ;;  %v5381_v49 = vpop.permute.xlu1 %2031  ;;  %v1886_v58 = vld [vmem:[#allocation4 + $0x70] sm:$0xff]  ;;  %v6064_v35 = vld [vmem:[#allocation54_spill] sm:$0xff] }
 0x390   : > { %2460 = vst [vmem:[#allocation4 + $0x58] sm:$0xff] %v2428_v54  ;;  %v5391_v10 = vpop.permute.xlu0 %2046  ;;  %v1685_v54 = vmul.f32 %v6064_v35, %v1653_v44  ;;  %v1888_v44 = vld [vmem:[#allocation4 + $0x80] sm:$0xff] }
 0x392   : > { %v5385_v9 = vpop.permute.xlu1 %2041 }
 0x396   : > { %v5389_v63 = vpop.permute.xlu1 %2051 }
 0x3b9   : > { %v3578_v29 = vpop.f32.mrb[24].mxu1 }
 0x3ba   : > { %v3579_v47 = vpop.f32.mrb[25].mxu1  ;;  %v1716_v14 = vpop.xlane.xlu1 %1715 }
 0x3bb   : > { %v3580_v37 = vadd.f32 %v3579_v47, %v3578_v29  ;;  %v1808_v51 = vadd.f32 %v1716_v14, %v1680_v55  ;;  %v3581_v2 = vpop.f32.mrb[26].mxu1  ;;  %v1713_v17 = vpop.xlane.xlu0 %1712  ;;  %v6065_v29 = vld [vmem:[#allocation52_spill] sm:$0xff]  ;;  %v2078_v47 = vmul.f32 %v1977_v42, %v1886_v58 }
 0x3bc   : > { %v1807_v56 = vadd.f32 %v1713_v17, %v1679_v52  ;;  %v3582_v7 = vpop.f32.mrb[27].mxu1  ;;  %v1682_v55 = vmul.f32 %v6065_v29, %v1650_v20  ;;  %v2079_v17 = vmul.f32 %v5363_v31, %v1887_v22  ;;  %v1889_v20 = vld [vmem:[#allocation4 + $0x88] sm:$0xff]  ;;  %v2080_v22 = vmul.f32 %v5367_v46, %v1888_v44 }
 0x3bd   : > { %v2429_v36 = vadd.f32 %v3580_v37, %v2076_v32  ;;  %1841 = vst.msk [vmem:[#allocation3 + $0x8] sm:$0xff] %vm1839_vm1, %v1808_v51  ;;  %v3583_v40 = vadd.f32 %v3582_v7, %v3581_v2  ;;  %v1652_v37 = vld [vmem:[#allocation3 + $0x28] sm:$0xff]  ;;  %v6066_v7 = vld [vmem:[#allocation56_spill] sm:$0xff] }
 0x3be   : > { %1840 = vst.msk [vmem:[#allocation3] sm:$0xff] %vm1839_vm1, %v1807_v56  ;;  %v1725_v41 = vpop.xlane.xlu1 %1724  ;;  %v6073_v44 = vld [vmem:[#allocation59_spill] sm:$0xff] }
 0x3bf   : > { %2461 = vst [vmem:[#allocation4 + $0x60] sm:$0xff] %v2429_v36  ;;  %v2430_v57 = vadd.f32 %v3583_v40, %v2077_v21  ;;  %v1811_v62 = vadd.f32 %v1725_v41, %v1683_v38  ;;  %v1719_v43 = vpop.xlane.xlu0 %1718  ;;  %v1687_v21 = vmul.f32 %v6066_v7, %v1655_v18  ;;  %v6067_v40 = vld [vmem:[#allocation53_spill] sm:$0xff]  ;;  %v1656_v18 = vld [vmem:[#allocation3 + $0x48] sm:$0xff] }
 0x3c0   : > { %v1809_v60 = vadd.f32 %v1719_v43, %v1681_v53  ;;  %v1684_v42 = vmul.f32 %v6067_v40, %v1652_v37  ;;  %v1654_v53 = vld [vmem:[#allocation3 + $0x38] sm:$0xff]  ;;  %v1890_v40 = vld [vmem:[#allocation4 + $0x90] sm:$0xff] }
 0x3c1   : > { %2462 = vst [vmem:[#allocation4 + $0x68] sm:$0xff] %v2430_v57  ;;  %1844 = vst.msk [vmem:[#allocation3 + $0x20] sm:$0xff] %vm1839_vm1, %v1811_v62  ;;  %v3584_v11 = vpop.f32.mrb[28].mxu1  ;;  %v6068_v62 = vld [vmem:[#allocation57_spill] sm:$0xff] }
 0x3c2   : > { %1842 = vst.msk [vmem:[#allocation3 + $0x10] sm:$0xff] %vm1839_vm1, %v1809_v60  ;;  %v3585_v6 = vpop.f32.mrb[29].mxu1  ;;  %v1731_v25 = vpop.xlane.xlu1 %1730  ;;  %v1689_v43 = vmul.f32 %v6068_v62, %v1657_v19  ;;  %v6070_v37 = vld [vmem:[#allocation61_spill] sm:$0xff]  ;;  %v6072_v19 = vld [vmem:[#allocation62_spill] sm:$0xff]  ;;  %v2082_v62 = vmul.f32 %v5371_v34, %v1890_v40 }
 0x3c3   : > { %v3586_v14 = vadd.f32 %v3585_v6, %v3584_v11  ;;  %v1813_v52 = vadd.f32 %v1731_v25, %v1685_v54  ;;  %v3587_v27 = vpop.f32.mrb[30].mxu1  ;;  %v1722_v32 = vpop.xlane.xlu0 %1721  ;;  %v6069_v11 = vld [vmem:[#allocation55_spill] sm:$0xff]  ;;  %v1659_v54 = vld [vmem:[#allocation3 + $0x60] sm:$0xff] }
 0x3c4   : > { %v1810_v51 = vadd.f32 %v1722_v32, %v1682_v55  ;;  %v3588_v2 = vpop.f32.mrb[31].mxu1  ;;  %v1686_v35 = vmul.f32 %v6069_v11, %v1654_v53  ;;  %v1660_v11 = vld [vmem:[#allocation3 + $0x68] sm:$0xff] }
 0x3c5   : > { %v2431_v16 = vadd.f32 %v3586_v14, %v2078_v47  ;;  %1846 = vst.msk [vmem:[#allocation3 + $0x30] sm:$0xff] %vm1839_vm1, %v1813_v52  ;;  %v3589_v56 = vadd.f32 %v3588_v2, %v3587_v27  ;;  %v2081_v52 = vmul.f32 %v5365_v23, %v1889_v20 }
 0x3c6   : > { %1843 = vst.msk [vmem:[#allocation3 + $0x18] sm:$0xff] %vm1839_vm1, %v1810_v51  ;;  %v1737_v36 = vpop.xlane.xlu1 %1736  ;;  %v1691_v51 = vmul.f32 %v6070_v37, %v1659_v54  ;;  %v1662_v37 = vld [vmem:[#allocation3 + $0x78] sm:$0xff] }
 0x3c7   : > { %2463 = vst [vmem:[#allocation4 + $0x70] sm:$0xff] %v2431_v16  ;;  %v2432_v38 = vadd.f32 %v3589_v56, %v2079_v17  ;;  %v1815_v41 = vadd.f32 %v1737_v36, %v1687_v21  ;;  %v1728_v5 = vpop.xlane.xlu0 %1727  ;;  %v6071_v17 = vld [vmem:[#allocation58_spill] sm:$0xff]  ;;  %v1661_v16 = vld [vmem:[#allocation3 + $0x70] sm:$0xff]  ;;  %v1658_v36 = vld [vmem:[#allocation3 + $0x58] sm:$0xff] }
 0x3c8   : > { %v1812_v57 = vadd.f32 %v1728_v5, %v1684_v42  ;;  %v1688_v46 = vmul.f32 %v6071_v17, %v1656_v18 }
 0x3c9   : > { %2464 = vst [vmem:[#allocation4 + $0x78] sm:$0xff] %v2432_v38  ;;  %1848 = vst.msk [vmem:[#allocation3 + $0x40] sm:$0xff] %vm1839_vm1, %v1815_v41  ;;  %v3590_v31 = vpop.f32.mrb[32].mxu1  ;;  %v1693_v38 = vmul.f32 %v6072_v19, %v1661_v16  ;;  %v1891_v41 = vld [vmem:[#allocation4 + $0x98] sm:$0xff] }
 0x3ca   : > { %1845 = vst.msk [vmem:[#allocation3 + $0x28] sm:$0xff] %vm1839_vm1, %v1812_v57  ;;  %v3591_v58 = vpop.f32.mrb[33].mxu1  ;;  %v1743_v60 = vpop.xlane.xlu1 %1742  ;;  %v1690_v57 = vmul.f32 %v6073_v44, %v1658_v36  ;;  %v1667_v36 = vld [vmem:[#allocation3 + $0xa0] sm:$0xff] }
 0x3cb   : > { %v3592_v6 = vadd.f32 %v3591_v58, %v3590_v31  ;;  %v1817_v25 = vadd.f32 %v1743_v60, %v1689_v43  ;;  %v3593_v29 = vpop.f32.mrb[34].mxu1  ;;  %v1734_v55 = vpop.xlane.xlu0 %1733  ;;  %v1663_v31 = vld [vmem:[#allocation3 + $0x80] sm:$0xff] }
 0x3cc   : > { %v1814_v47 = vadd.f32 %v1734_v55, %v1686_v35  ;;  %v3594_v14 = vpop.f32.mrb[35].mxu1 }
 0x3cd   : > { %v2433_v27 = vadd.f32 %v3592_v6, %v2080_v22  ;;  %1850 = vst.msk [vmem:[#allocation3 + $0x50] sm:$0xff] %vm1839_vm1, %v1817_v25  ;;  %v3595_v32 = vadd.f32 %v3594_v14, %v3593_v29  ;;  %v2083_v22 = vmul.f32 %v5369_v24, %v1891_v41  ;;  %v6074_v29 = vld [vmem:[#allocation10_spill] sm:$0xff]  ;;  %v1665_v14 = vld [vmem:[#allocation3 + $0x90] sm:$0xff]  ;;  %v1664_v41 = vld [vmem:[#allocation3 + $0x88] sm:$0xff] }
 0x3ce   : > { %1847 = vst.msk [vmem:[#allocation3 + $0x38] sm:$0xff] %vm1839_vm1, %v1814_v47  ;;  %v1749_v2 = vpop.xlane.xlu1 %1748  ;;  %v1695_v55 = vmul.f32 %v6074_v29, %v1663_v31  ;;  %v6075_v47 = vld [vmem:[#allocation60_spill] sm:$0xff]  ;;  %v1697_v17 = vmul.f32 %v5152_v15, %v1665_v14  ;;  %v1699_v31 = vmul.f32 %v5162_v30, %v1667_v36  ;;  %v1895_v30 = vld [vmem:[#allocation4 + $0xb8] sm:$0xff] }
 0x3cf   : > { %2465 = vst [vmem:[#allocation4 + $0x80] sm:$0xff] %v2433_v27  ;;  %v2434_v56 = vadd.f32 %v3595_v32, %v2081_v52  ;;  %v1819_v7 = vadd.f32 %v1749_v2, %v1691_v51  ;;  %v1740_v21 = vpop.xlane.xlu0 %1739  ;;  %v1692_v34 = vmul.f32 %v6075_v47, %v1660_v11  ;;  %v1892_v51 = vld [vmem:[#allocation4 + $0xa0] sm:$0xff] }
 0x3d0   : > { %v1816_v42 = vadd.f32 %v1740_v21, %v1688_v46  ;;  %v1893_v46 = vld [vmem:[#allocation4 + $0xa8] sm:$0xff]  ;;  %v2084_v40 = vmul.f32 %v5375_v61, %v1892_v51  ;;  %v1671_v47 = vld [vmem:[#allocation3 + $0xc0] sm:$0xff] }
 0x3d1   : > { %2466 = vst [vmem:[#allocation4 + $0x88] sm:$0xff] %v2434_v56  ;;  %1852 = vst.msk [vmem:[#allocation3 + $0x60] sm:$0xff] %vm1839_vm1, %v1819_v7  ;;  %v3596_v23 = vpop.f32.mrb[36].mxu1  ;;  %v6076_v7 = vld [vmem:[#allocation63_spill] sm:$0xff]  ;;  %v2085_v44 = vmul.f32 %v5373_v4, %v1893_v46  ;;  %v1703_v46 = vmul.f32 %v5288_v28, %v1671_v47 }
 0x3d2   : > { %1849 = vst.msk [vmem:[#allocation3 + $0x48] sm:$0xff] %vm1839_vm1, %v1816_v42  ;;  %v3597_v5 = vpop.f32.mrb[37].mxu1  ;;  %v1755_v53 = vpop.xlane.xlu1 %1754  ;;  %v1694_v21 = vmul.f32 %v6076_v7, %v1662_v37  ;;  %v1668_v37 = vld [vmem:[#allocation3 + $0xa8] sm:$0xff]  ;;  %v1673_v7 = vld [vmem:[#allocation3 + $0xd0] sm:$0xff] }
 0x3d3   : > { %v3598_v43 = vadd.f32 %v3597_v5, %v3596_v23  ;;  %v1821_v20 = vadd.f32 %v1755_v53, %v1693_v38  ;;  %v3599_v58 = vpop.f32.mrb[38].mxu1  ;;  %v1746_v60 = vpop.xlane.xlu0 %1745  ;;  %v1897_v28 = vld [vmem:[#allocation4 + $0xc8] sm:$0xff] }
 0x3d4   : > { %v1818_v35 = vadd.f32 %v1746_v60, %v1690_v57  ;;  %v3600_v54 = vpop.f32.mrb[39].mxu1 }
 0x3d5   : > { %v2435_v6 = vadd.f32 %v3598_v43, %v2082_v62  ;;  %1854 = vst.msk [vmem:[#allocation3 + $0x70] sm:$0xff] %vm1839_vm1, %v1821_v20  ;;  %v3601_v25 = vadd.f32 %v3600_v54, %v3599_v58  ;;  %v6077_v43 = vld [vmem:[#allocation11_spill] sm:$0xff]  ;;  %v1669_v20 = vld [vmem:[#allocation3 + $0xb0] sm:$0xff] }
 0x3d6   : > { %1851 = vst.msk [vmem:[#allocation3 + $0x58] sm:$0xff] %vm1839_vm1, %v1818_v35  ;;  %v1761_v18 = vpop.xlane.xlu1 %1760  ;;  %v1696_v61 = vmul.f32 %v6077_v43, %v1664_v41  ;;  %v1666_v35 = vld [vmem:[#allocation3 + $0x98] sm:$0xff]  ;;  %v1894_v54 = vld [vmem:[#allocation4 + $0xb0] sm:$0xff] }
 0x3d7   : > { %2467 = vst [vmem:[#allocation4 + $0x90] sm:$0xff] %v2435_v6  ;;  %v2436_v52 = vadd.f32 %v3601_v25, %v2083_v22  ;;  %v1823_v27 = vadd.f32 %v1761_v18, %v1695_v55  ;;  %v1752_v32 = vpop.xlane.xlu0 %1751  ;;  %v1701_v6 = vmul.f32 %v5174_v50, %v1669_v20  ;;  %v6078_v55 = vld [vmem:[#allocation64_spill] sm:$0xff] }
 0x3d8   : > { %v1820_v2 = vadd.f32 %v1752_v32, %v1692_v34  ;;  %v1698_v18 = vmul.f32 %v6078_v55, %v1666_v35  ;;  %v2086_v34 = vmul.f32 %v5379_v48, %v1894_v54  ;;  %v1899_v55 = vld [vmem:[#allocation4 + $0xd8] sm:$0xff] }
 0x3d9   : > { %2468 = vst [vmem:[#allocation4 + $0x98] sm:$0xff] %v2436_v52  ;;  %1856 = vst.msk [vmem:[#allocation3 + $0x80] sm:$0xff] %vm1839_vm1, %v1823_v27  ;;  %v3602_v24 = vpop.f32.mrb[40].mxu1 }
 0x3da   : > { %1853 = vst.msk [vmem:[#allocation3 + $0x68] sm:$0xff] %vm1839_vm1, %v1820_v2  ;;  %v3603_v16 = vpop.f32.mrb[41].mxu1  ;;  %v1767_v56 = vpop.xlane.xlu1 %1766 }
 0x3db   : > { %v3604_v42 = vadd.f32 %v3603_v16, %v3602_v24  ;;  %v1825_v23 = vadd.f32 %v1767_v56, %v1697_v17  ;;  %v3605_v19 = vpop.f32.mrb[42].mxu1  ;;  %v1758_v38 = vpop.xlane.xlu0 %1757  ;;  %v2087_v24 = vmul.f32 %v5377_v45, %v1895_v30  ;;  %v6079_v56 = vld [vmem:[#allocation65_spill] sm:$0xff]  ;;  %v1898_v30 = vld [vmem:[#allocation4 + $0xd0] sm:$0xff] }
 0x3dc   : > { %v1822_v5 = vadd.f32 %v1758_v38, %v1694_v21  ;;  %v3606_v53 = vpop.f32.mrb[43].mxu1  ;;  %v1700_v48 = vmul.f32 %v6079_v56, %v1668_v37  ;;  %v1705_v38 = vmul.f32 %v5309_v0, %v1673_v7  ;;  %v1900_v56 = vld [vmem:[#allocation4 + $0xe0] sm:$0xff]  ;;  %v1901_v7 = vld [vmem:[#allocation4 + $0xe8] sm:$0xff] }
 0x3dd   : > { %v2437_v15 = vadd.f32 %v3604_v42, %v2084_v40  ;;  %1858 = vst.msk [vmem:[#allocation3 + $0x90] sm:$0xff] %vm1839_vm1, %v1825_v23  ;;  %v3607_v57 = vadd.f32 %v3606_v53, %v3605_v19  ;;  %v1670_v42 = vld [vmem:[#allocation3 + $0xb8] sm:$0xff]  ;;  %v1896_v23 = vld [vmem:[#allocation4 + $0xc0] sm:$0xff] }
 0x3de   : > { %1855 = vst.msk [vmem:[#allocation3 + $0x78] sm:$0xff] %vm1839_vm1, %v1822_v5  ;;  %v1773_v62 = vpop.xlane.xlu1 %1772  ;;  %v1702_v53 = vmul.f32 %v5178_v3, %v1670_v42 }
 0x3df   : > { %2469 = vst [vmem:[#allocation4 + $0xa0] sm:$0xff] %v2437_v15  ;;  %v2438_v58 = vadd.f32 %v3607_v57, %v2085_v44  ;;  %v1827_v60 = vadd.f32 %v1773_v62, %v1699_v31  ;;  %v1764_v11 = vpop.xlane.xlu0 %1763  ;;  %v1675_v44 = vld [vmem:[#allocation3 + $0xe0] sm:$0xff]  ;;  %v2088_v15 = vmul.f32 %v5383_v12, %v1896_v23 }
 0x3e0   : > { %v1824_v22 = vadd.f32 %v1764_v11, %v1696_v61  ;;  %v1672_v61 = vld [vmem:[#allocation3 + $0xc8] sm:$0xff]  ;;  %v1707_v35 = vmul.f32 %v5316_v39, %v1675_v44 }
 0x3e1   : > { %2470 = vst [vmem:[#allocation4 + $0xa8] sm:$0xff] %v2438_v58  ;;  %1860 = vst.msk [vmem:[#allocation3 + $0xa0] sm:$0xff] %vm1839_vm1, %v1827_v60  ;;  %v3608_v4 = vpop.f32.mrb[44].mxu1  ;;  %v2089_v60 = vmul.f32 %v5381_v49, %v1897_v28  ;;  %v1704_v12 = vmul.f32 %v5296_v33, %v1672_v61  ;;  %v2090_v33 = vmul.f32 %v5387_v8, %v1898_v30 }
 0x3e2   : > { %1857 = vst.msk [vmem:[#allocation3 + $0x88] sm:$0xff] %vm1839_vm1, %v1824_v22  ;;  %v3609_v25 = vpop.f32.mrb[45].mxu1  ;;  %v1779_v29 = vpop.xlane.xlu1 %1778 }
 0x3e3   : > { %v3610_v14 = vadd.f32 %v3609_v25, %v3608_v4  ;;  %v3611_v52 = vpop.f32.mrb[46].mxu1  ;;  %v1829_v27 = vadd.f32 %v1779_v29, %v1701_v6  ;;  %v1770_v32 = vpop.xlane.xlu0 %1769  ;;  %v1674_v6 = vld [vmem:[#allocation3 + $0xd8] sm:$0xff]  ;;  %v1677_v29 = vld [vmem:[#allocation3 + $0xf0] sm:$0xff] }
 0x3e4   : > { %v1826_v51 = vadd.f32 %v1770_v32, %v1698_v18  ;;  %v3612_v2 = vpop.f32.mrb[47].mxu1  ;;  %v1706_v18 = vmul.f32 %v5304_v13, %v1674_v6  ;;  %v1709_v37 = vmul.f32 %v5360_v59, %v1677_v29  ;;  %v2554_v6 = vld [vmem:[#allocation3 + $0x28] sm:$0xff] (!%p3464_p10) }
 0x3e5   : > { %v2439_v50 = vadd.f32 %v3610_v14, %v2086_v34  ;;  %1862 = vst.msk [vmem:[#allocation3 + $0xb0] sm:$0xff] %vm1839_vm1, %v1829_v27  ;;  %v3613_v17 = vadd.f32 %v3612_v2, %v3611_v52  ;;  %v1676_v52 = vld [vmem:[#allocation3 + $0xe8] sm:$0xff] }
 0x3e6   : > { %1859 = vst.msk [vmem:[#allocation3 + $0x98] sm:$0xff] %vm1839_vm1, %v1826_v51  ;;  %v1785_v16 = vpop.xlane.xlu1 %1784  ;;  %v2091_v51 = vmul.f32 %v5385_v9, %v1899_v55  ;;  %v1708_v13 = vmul.f32 %v5312_v26, %v1676_v52  ;;  %v4031_v29 = vld [vmem:[%s5769_s6 + $0x8] sm:$0xff] (!%p3464_p10)  }
 0x3e7   : > { %2471 = vst [vmem:[#allocation4 + $0xb0] sm:$0xff] %v2439_v50  ;;  %v2440_v21 = vadd.f32 %v3613_v17, %v2087_v24  ;;  %v1831_v36 = vadd.f32 %v1785_v16, %v1703_v46  ;;  %v1776_v40 = vpop.xlane.xlu0 %1775  ;;  %v1678_v16 = vld [vmem:[#allocation3 + $0xf8] sm:$0xff] }
 0x3e8   : > { %v1828_v19 = vadd.f32 %v1776_v40, %v1700_v48 }
 0x3e9   : > { %2472 = vst [vmem:[#allocation4 + $0xb8] sm:$0xff] %v2440_v21  ;;  %1864 = vst.msk [vmem:[#allocation3 + $0xc0] sm:$0xff] %vm1839_vm1, %v1831_v36  ;;  %v3614_v45 = vpop.f32.mrb[48].mxu1  ;;  %v1710_v21 = vmul.f32 %v5357_v1, %v1678_v16  ;;  %v2092_v36 = vmul.f32 %v5391_v10, %v1900_v56  ;;  %v1903_v1 = vld [vmem:[#allocation4 + $0xf8] sm:$0xff]  ;;  %v2558_v16 = vld [vmem:[#allocation3 + $0x48] sm:$0xff] (!%p3464_p10) }
 0x3ea   : > { %1861 = vst.msk [vmem:[#allocation3 + $0xa8] sm:$0xff] %vm1839_vm1, %v1828_v19  ;;  %v3615_v41 = vpop.f32.mrb[49].mxu1  ;;  %v1791_v5 = vpop.xlane.xlu1 %1790 }
 0x3eb   : > { %v3616_v57 = vadd.f32 %v3615_v41, %v3614_v45  ;;  %v3617_v31 = vpop.f32.mrb[50].mxu1  ;;  %v1833_v62 = vadd.f32 %v1791_v5, %v1705_v38  ;;  %v1782_v43 = vpop.xlane.xlu0 %1781  ;;  %v2093_v45 = vmul.f32 %v5389_v63, %v1901_v7  ;;  %v1902_v5 = vld [vmem:[#allocation4 + $0xf0] sm:$0xff] }
 0x3ec   : > { %v1830_v20 = vadd.f32 %v1782_v43, %v1702_v53  ;;  %v3618_v58 = vpop.f32.mrb[51].mxu1  ;;  %v4036_v7 = vld [vmem:[%s5769_s6 + $0x30] sm:$0xff] (!%p3464_p10)  }
 0x3ed   : > { %v2441_v0 = vadd.f32 %v3616_v57, %v2088_v15  ;;  %1866 = vst.msk [vmem:[#allocation3 + $0xd0] sm:$0xff] %vm1839_vm1, %v1833_v62  ;;  %v3619_v11 = vadd.f32 %v3618_v58, %v3617_v31 }
 0x3ee   : > { %1863 = vst.msk [vmem:[#allocation3 + $0xb8] sm:$0xff] %vm1839_vm1, %v1830_v20  ;;  %v1797_v3 = vpop.xlane.xlu1 %1796 }
 0x3ef   : > { %2473 = vst [vmem:[#allocation4 + $0xc0] sm:$0xff] %v2441_v0  ;;  %v2442_v54 = vadd.f32 %v3619_v11, %v2089_v60  ;;  %v1835_v22 = vadd.f32 %v1797_v3, %v1707_v35  ;;  %v1788_v4 = vpop.xlane.xlu0 %1787  ;;  %v2565_v60 = vld [vmem:[#allocation3 + $0x80] sm:$0xff] (!%p3464_p10)  ;;  %v2566_v11 = vld [vmem:[#allocation3 + $0x88] sm:$0xff] (!%p3464_p10)  ;;  %v4161_v35 = vmov (!%p3464_p10), 0  }
 0x3f0   : > { %v1832_v25 = vadd.f32 %v1788_v4, %v1704_v12  ;;  %v2549_v0 = vld [vmem:[#allocation3] sm:$0xff] (!%p3464_p10)  ;;  %4029 = vset.pattern.permute.xlu1 (!%p3464_p10), %v4161_v35  ;;  %4028 = vset.pattern.permute.xlu0 (!%p3464_p10), %v4161_v35  ;;  %4038 = vrcp.f32 (!%p3464_p10), %v2565_v60  ;;  %v2550_v3 = vld [vmem:[#allocation3 + $0x8] sm:$0xff] (!%p3464_p10)  ;;  %v2552_v12 = vld [vmem:[#allocation3 + $0x18] sm:$0xff] (!%p3464_p10) }
 0x3f1   : > { %2474 = vst [vmem:[#allocation4 + $0xc8] sm:$0xff] %v2442_v54  ;;  %1868 = vst.msk [vmem:[#allocation3 + $0xe0] sm:$0xff] %vm1839_vm1, %v1835_v22  ;;  %v3620_v49 = vpop.f32.mrb[52].mxu1  ;;  %4040 = vrcp.f32 (!%p3464_p10), %v2549_v0  ;;  %v2551_v54 = vld [vmem:[#allocation3 + $0x10] sm:$0xff] (!%p3464_p10)  ;;  %v2568_v22 = vld [vmem:[#allocation3 + $0x98] sm:$0xff] (!%p3464_p10) }
 0x3f2   : > { %1865 = vst.msk [vmem:[#allocation3 + $0xc8] sm:$0xff] %vm1839_vm1, %v1832_v25  ;;  %v3621_v39 = vpop.f32.mrb[53].mxu1  ;;  %4042 = vrcp.f32 (!%p3464_p10), %v2566_v11  ;;  %v2567_v4 = vld [vmem:[#allocation3 + $0x90] sm:$0xff] (!%p3464_p10)  ;;  %v4030_v25 = vld [vmem:[%s5769_s6] sm:$0xff] (!%p3464_p10)  }
 0x3f3   : > { %v3622_v47 = vadd.f32 %v3621_v39, %v3620_v49  ;;  %v3623_v34 = vpop.f32.mrb[54].mxu1  ;;  %v1794_v14 = vpop.xlane.xlu0 %1793  ;;  %4044 = vrcp.f32 (!%p3464_p10), %v2550_v3  ;;  %v2553_v39 = vld [vmem:[#allocation3 + $0x20] sm:$0xff] (!%p3464_p10)  ;;  %3662 = vmatprep.subr.bf16.mxu0 (!%p3464_p10), %v4030_v25  ;;  %3710 = vmatprep.subr.bf16.mxu1 (!%p3464_p10), %v4030_v25 }
 0x3f4   : > { %v1834_v27 = vadd.f32 %v1794_v14, %v1706_v18  ;;  %v3624_v32 = vpop.f32.mrb[55].mxu1  ;;  %4046 = vrcp.f32 (!%p3464_p10), %v2552_v12  ;;  %3663 = vmatpush3.bf16.msra.mxu0 (!%p3464_p10), %v4030_v25  ;;  %3718 = vmatpush3.bf16.msra.mxu1 (!%p3464_p10), %v4030_v25  ;;  %v2569_v14 = vld [vmem:[#allocation3 + $0xa0] sm:$0xff] (!%p3464_p10) }
 0x3f5   : > { %v2443_v2 = vadd.f32 %v3622_v47, %v2090_v33  ;;  %v3625_v24 = vadd.f32 %v3624_v32, %v3623_v34  ;;  %v1803_v50 = vpop.xlane.xlu1 %1802  ;;  %4048 = vrcp.f32 (!%p3464_p10), %v2551_v54  ;;  %3664 = vmatprep.subr.bf16.mxu0 (!%p3464_p10), %v4031_v29  ;;  %v4032_v33 = vld [vmem:[%s5769_s6 + $0x10] sm:$0xff] (!%p3464_p10)   ;;  %v2570_v47 = vld [vmem:[#allocation3 + $0xa8] sm:$0xff] (!%p3464_p10)  ;;  %3711 = vmatprep.subr.bf16.mxu1 (!%p3464_p10), %v4031_v29  ;;  %v2556_v32 = vld [vmem:[#allocation3 + $0x38] sm:$0xff] (!%p3464_p10) }
 0x3f6   : > { %1867 = vst.msk [vmem:[#allocation3 + $0xd8] sm:$0xff] %vm1839_vm1, %v1834_v27  ;;  %v1837_v17 = vadd.f32 %v1803_v50, %v1709_v37  ;;  %4050 = vrcp.f32 (!%p3464_p10), %v2568_v22  ;;  %v4033_v27 = vld [vmem:[%s5769_s6 + $0x18] sm:$0xff] (!%p3464_p10)   ;;  %v2533_v25 = vld [vmem:[#allocation4 + $0x80] sm:$0xff] (!%p3464_p10) }
 0x3f7   : > { %2475 = vst [vmem:[#allocation4 + $0xd0] sm:$0xff] %v2443_v2  ;;  %v2444_v8 = vadd.f32 %v3625_v24, %v2091_v51  ;;  %v1800_v46 = vpop.xlane.xlu0 %1799  ;;  %4052 = vrcp.f32 (!%p3464_p10), %v2567_v4  ;;  %v2555_v51 = vld [vmem:[#allocation3 + $0x30] sm:$0xff] (!%p3464_p10)  ;;  %v4034_v24 = vld [vmem:[%s5769_s6 + $0x20] sm:$0xff] (!%p3464_p10)   ;;  %v2572_v50 = vld [vmem:[#allocation3 + $0xb8] sm:$0xff] (!%p3464_p10) }
 0x3f8   : > { %1870 = vst.msk [vmem:[#allocation3 + $0xf0] sm:$0xff] %vm1839_vm1, %v1837_v17  ;;  %v1836_v48 = vadd.f32 %v1800_v46, %v1708_v13  ;;  %4054 = vrcp.f32 (!%p3464_p10), %v2554_v6  ;;  %3665 = vmatpush3.bf16.msra.mxu0 (!%p3464_p10), %v4031_v29  ;;  %3719 = vmatpush3.bf16.msra.mxu1 (!%p3464_p10), %v4031_v29  ;;  %v2571_v13 = vld [vmem:[#allocation3 + $0xb0] sm:$0xff] (!%p3464_p10)  ;;  %v4035_v46 = vld [vmem:[%s5769_s6 + $0x28] sm:$0xff] (!%p3464_p10)   ;;  %v2517_v29 = vld [vmem:[#allocation4] sm:$0xff] (!%p3464_p10) }
 0x3f9   : > { %2476 = vst [vmem:[#allocation4 + $0xd8] sm:$0xff] %v2444_v8  ;;  %v3626_v59 = vpop.f32.mrb[56].mxu1  ;;  %v2062_v15 = vpop.permute.xlu1 %2061  ;;  %4056 = vrcp.f32 (!%p3464_p10), %v2553_v39  ;;  %3666 = vmatprep.subr.bf16.mxu0 (!%p3464_p10), %v4032_v33  ;;  %3712 = vmatprep.subr.bf16.mxu1 (!%p3464_p10), %v4032_v33 }
 0x3fa   : > { %1869 = vst.msk [vmem:[#allocation3 + $0xe8] sm:$0xff] %vm1839_vm1, %v1836_v48  ;;  %v3627_v9 = vpop.f32.mrb[57].mxu1  ;;  %v2095_v61 = vmul.f32 %v2062_v15, %v1903_v1  ;;  %v4039_v30 = vpop.eup (!%p3464_p10), %4038  ;;  %4058 = vrcp.f32 (!%p3464_p10), %v2570_v47  ;;  %v2557_v48 = vld [vmem:[#allocation3 + $0x40] sm:$0xff] (!%p3464_p10) }
 0x3fb   : > { %v3628_v40 = vadd.f32 %v3627_v9, %v3626_v59  ;;  %v3629_v26 = vpop.f32.mrb[58].mxu1  ;;  %v1806_v42 = vpop.xlane.xlu0 %1805  ;;  %2695 = vperm.xlu1 (!%p3464_p10), %4029, %v4039_v30   ;;  %4060 = vrcp.f32 (!%p3464_p10), %v2569_v14  ;;  %v2574_v9 = vld [vmem:[#allocation3 + $0xc8] sm:$0xff] (!%p3464_p10)  ;;  %v2561_v1 = vld [vmem:[#allocation3 + $0x60] sm:$0xff] (!%p3464_p10) }
 0x3fc   : > { %v1838_v23 = vadd.f32 %v1806_v42, %v1710_v21  ;;  %v3630_v19 = vpop.f32.mrb[59].mxu1  ;;  %v4041_v49 = vpop.eup (!%p3464_p10), %4040  ;;  %3667 = vmatpush3.bf16.msra.mxu0 (!%p3464_p10), %v4032_v33  ;;  %4062 = vrcp.f32 (!%p3464_p10), %v2556_v32  ;;  %3720 = vmatpush3.bf16.msra.mxu1 (!%p3464_p10), %v4032_v33  ;;  %v2560_v42 = vld [vmem:[#allocation3 + $0x58] sm:$0xff] (!%p3464_p10) }
 0x3fd   : > { %v2445_v38 = vadd.f32 %v3628_v40, %v2092_v36  ;;  %v3631_v28 = vadd.f32 %v3630_v19, %v3629_v26  ;;  %v4043_v55 = vpop.eup (!%p3464_p10), %4042  ;;  %2615 = vperm.xlu0 (!%p3464_p10), %4028, %v4041_v49   ;;  %3668 = vmatprep.subr.bf16.mxu0 (!%p3464_p10), %v4033_v27  ;;  %4064 = vrcp.f32 (!%p3464_p10), %v2555_v51  ;;  %v2573_v36 = vld [vmem:[#allocation3 + $0xc0] sm:$0xff] (!%p3464_p10)  ;;  %v4037_v26 = vld [vmem:[%s5769_s6 + $0x38] sm:$0xff] (!%p3464_p10)   ;;  %v2559_v19 = vld [vmem:[#allocation3 + $0x50] sm:$0xff] (!%p3464_p10) }
 0x3fe   : > { %1871 = vst.msk [vmem:[#allocation3 + $0xf8] sm:$0xff] %vm1839_vm1, %v1838_v23  ;;  %v4045_v18 = vpop.eup (!%p3464_p10), %4044  ;;  %3713 = vmatprep.subr.bf16.mxu1 (!%p3464_p10), %v4033_v27  ;;  %4066 = vrcp.f32 (!%p3464_p10), %v2572_v50  ;;  %v2534_v49 = vld [vmem:[#allocation4 + $0x88] sm:$0xff] (!%p3464_p10) }
 0x3ff   : > { %2477 = vst [vmem:[#allocation4 + $0xe0] sm:$0xff] %v2445_v38  ;;  %v2446_v41 = vadd.f32 %v3631_v28, %v2093_v45  ;;  %2700 = vperm.xlu1 (!%p3464_p10), %4029, %v4043_v55   ;;  %v4047_v34 = vpop.eup (!%p3464_p10), %4046  ;;  %4068 = vrcp.f32 (!%p3464_p10), %v2571_v13  ;;  %v2576_v38 = vld [vmem:[#allocation3 + $0xd8] sm:$0xff] (!%p3464_p10)  ;;  %v2579_v0 = vld [vmem:[#allocation3 + $0xf0] sm:$0xff] (!%p3464_p10)  ;;  %v2518_v55 = vld [vmem:[#allocation4 + $0x8] sm:$0xff] (!%p3464_p10) }
 0x400   : > { %v4049_v52 = vpop.eup (!%p3464_p10), %4048  ;;  %3669 = vmatpush3.bf16.msra.mxu0 (!%p3464_p10), %v4033_v27  ;;  %3721 = vmatpush3.bf16.msra.mxu1 (!%p3464_p10), %v4033_v27  ;;  %4070 = vrcp.f32 (!%p3464_p10), %v2558_v16  ;;  %v2519_v27 = vld [vmem:[#allocation4 + $0x10] sm:$0xff] (!%p3464_p10) }
 0x401   : > { %2478 = vst [vmem:[#allocation4 + $0xe8] sm:$0xff] %v2446_v41  ;;  %2620 = vperm.xlu0 (!%p3464_p10), %4028, %v4045_v18   ;;  %v4051_v37 = vpop.eup (!%p3464_p10), %4050  ;;  %3670 = vmatprep.subr.bf16.mxu0 (!%p3464_p10), %v4034_v24  ;;  %4072 = vrcp.f32 (!%p3464_p10), %v2557_v48  ;;  %v2575_v41 = vld [vmem:[#allocation3 + $0xd0] sm:$0xff] (!%p3464_p10) }
 0x402   : > { %v2057_v53 = vpop.permute.xlu0 %2056  ;;  %v4053_v2 = vpop.eup (!%p3464_p10), %4052  ;;  %3714 = vmatprep.subr.bf16.mxu1 (!%p3464_p10), %v4034_v24  ;;  %4074 = vrcp.f32 (!%p3464_p10), %v2574_v9  ;;  %v2535_v13 = vld [vmem:[#allocation4 + $0x90] sm:$0xff] (!%p3464_p10) }
 0x403   : > { %v2094_v57 = vmul.f32 %v2057_v53, %v1902_v5  ;;  %2630 = vperm.xlu1 (!%p3464_p10), %4029, %v4047_v34   ;;  %v4055_v17 = vpop.eup (!%p3464_p10), %4054  ;;  %4076 = vrcp.f32 (!%p3464_p10), %v2573_v36  ;;  %v2562_v53 = vld [vmem:[#allocation3 + $0x68] sm:$0xff] (!%p3464_p10) }
 0x404   : > { %v4057_v8 = vpop.eup (!%p3464_p10), %4056  ;;  %3671 = vmatpush3.bf16.msra.mxu0 (!%p3464_p10), %v4034_v24  ;;  %3722 = vmatpush3.bf16.msra.mxu1 (!%p3464_p10), %v4034_v24  ;;  %4078 = vrcp.f32 (!%p3464_p10), %v2560_v42  ;;  %v2538_v42 = vld [vmem:[#allocation4 + $0xa8] sm:$0xff] (!%p3464_p10) }
 0x405   : > { %2625 = vperm.xlu0 (!%p3464_p10), %4028, %v4049_v52   ;;  %v4059_v56 = vpop.eup (!%p3464_p10), %4058  ;;  %3672 = vmatprep.subr.bf16.mxu0 (!%p3464_p10), %v4035_v46  ;;  %4080 = vrcp.f32 (!%p3464_p10), %v2559_v19  ;;  %v2520_v52 = vld [vmem:[#allocation4 + $0x18] sm:$0xff] (!%p3464_p10) }
 0x406   : > { %v4061_v59 = vpop.eup (!%p3464_p10), %4060  ;;  %3715 = vmatprep.subr.bf16.mxu1 (!%p3464_p10), %v4035_v46  ;;  %4082 = vrcp.f32 (!%p3464_p10), %v2576_v38 }
 0x407   : > { %2710 = vperm.xlu1 (!%p3464_p10), %4029, %v4051_v37   ;;  %v4063_v21 = vpop.eup (!%p3464_p10), %4062  ;;  %4084 = vrcp.f32 (!%p3464_p10), %v2575_v41 }
 0x408   : > { %v4065_v40 = vpop.eup (!%p3464_p10), %4064  ;;  %3673 = vmatpush3.bf16.msra.mxu0 (!%p3464_p10), %v4035_v46  ;;  %3723 = vmatpush3.bf16.msra.mxu1 (!%p3464_p10), %v4035_v46  ;;  %4086 = vrcp.f32 (!%p3464_p10), %v2562_v53  ;;  %v2523_v53 = vld [vmem:[#allocation4 + $0x30] sm:$0xff] (!%p3464_p10) }
 0x409   : > { %2705 = vperm.xlu0 (!%p3464_p10), %4028, %v4053_v2   ;;  %3674 = vmatprep.subr.bf16.mxu0 (!%p3464_p10), %v4036_v7  ;;  %v4067_v23 = vpop.eup (!%p3464_p10), %4066  ;;  %4088 = vrcp.f32 (!%p3464_p10), %v2561_v1 }
 0x40a   : > { %3716 = vmatprep.subr.bf16.mxu1 (!%p3464_p10), %v4036_v7  ;;  %v4069_v45 = vpop.eup (!%p3464_p10), %4068 }
 0x40b   : > { %2640 = vperm.xlu1 (!%p3464_p10), %4029, %v4055_v17   ;;  %v4071_v28 = vpop.eup (!%p3464_p10), %4070  ;;  %v2536_v17 = vld [vmem:[#allocation4 + $0x98] sm:$0xff] (!%p3464_p10) }
 0x40c   : > { %3675 = vmatpush3.bf16.msra.mxu0 (!%p3464_p10), %v4036_v7  ;;  %3724 = vmatpush3.bf16.msra.mxu1 (!%p3464_p10), %v4036_v7  ;;  %v4073_v5 = vpop.eup (!%p3464_p10), %4072  ;;  %v2521_v7 = vld [vmem:[#allocation4 + $0x20] sm:$0xff] (!%p3464_p10) }
 0x40d   : > { %2635 = vperm.xlu0 (!%p3464_p10), %4028, %v4057_v8   ;;  %3676 = vmatprep.subr.bf16.mxu0 (!%p3464_p10), %v4037_v26 }
 0x40e   : > { %3717 = vmatprep.subr.bf16.mxu1 (!%p3464_p10), %v4037_v26 }
 0x40f   : > { %2720 = vperm.xlu1 (!%p3464_p10), %4029, %v4059_v56  }
 0x410   : > { %3677 = vmatpush3.bf16.msra.mxu0 (!%p3464_p10), %v4037_v26  ;;  %3725 = vmatpush3.bf16.msra.mxu1 (!%p3464_p10), %v4037_v26 }
 0x411   : > { %2715 = vperm.xlu0 (!%p3464_p10), %4028, %v4061_v59   ;;  %v2522_v59 = vld [vmem:[#allocation4 + $0x28] sm:$0xff] (!%p3464_p10) }
 0x413   : > { %2650 = vperm.xlu1 (!%p3464_p10), %4029, %v4063_v21  }
 0x415   : > { %2645 = vperm.xlu0 (!%p3464_p10), %4028, %v4065_v40  }
 0x417   : > { %2730 = vperm.xlu1 (!%p3464_p10), %4029, %v4067_v23   ;;  %v2537_v23 = vld [vmem:[#allocation4 + $0xa0] sm:$0xff] (!%p3464_p10) }
 0x419   : > { %2725 = vperm.xlu0 (!%p3464_p10), %4028, %v4069_v45  }
 0x41b   : > { %2660 = vperm.xlu1 (!%p3464_p10), %4029, %v4071_v28  }
 0x41d   : > { %2655 = vperm.xlu0 (!%p3464_p10), %4028, %v4073_v5   ;;  %v2524_v5 = vld [vmem:[#allocation4 + $0x38] sm:$0xff] (!%p3464_p10) }
 0x43c   : > { %v3632_v44 = vpop.f32.mrb[60].mxu1 }
 0x43d   : > { %v3633_v10 = vpop.f32.mrb[61].mxu1 }
 0x43e   : > { %v3634_v31 = vadd.f32 %v3633_v10, %v3632_v44  ;;  %v3635_v62 = vpop.f32.mrb[62].mxu1  ;;  %2516 = sbr.rel (%p3464_p10) target bundleno = 1464 (0x5b8), region = 60  ;;  %v4075_v44 = vpop.eup (!%p3464_p10), %4074  ;;  %v2578_v10 = vld [vmem:[#allocation3 + $0xe8] sm:$0xff] (!%p3464_p10) }
 0x43f   : > { %v3636_v43 = vpop.f32.mrb[63].mxu1  ;;  %v4077_v15 = vpop.eup (!%p3464_p10), %4076  ;;  %2740 = vperm.xlu1 (!%p3464_p10), %4029, %v4075_v44   ;;  %4090 = vrcp.f32 (!%p3464_p10), %v2578_v10 }
 0x440   : > { %v2447_v20 = vadd.f32 %v3634_v31, %v2094_v57  ;;  %v3637_v63 = vadd.f32 %v3636_v43, %v3635_v62  ;;  %v4079_v57 = vpop.eup (!%p3464_p10), %4078  ;;  %2735 = vperm.xlu0 (!%p3464_p10), %4028, %v4077_v15   ;;  %v2577_v31 = vld [vmem:[#allocation3 + $0xe0] sm:$0xff] (!%p3464_p10)  ;;  %v2564_v43 = vld [vmem:[#allocation3 + $0x78] sm:$0xff] (!%p3464_p10) }
 0x441   : > { %v4081_v62 = vpop.eup (!%p3464_p10), %4080  ;;  %4092 = vrcp.f32 (!%p3464_p10), %v2577_v31  ;;  %v2540_v31 = vld [vmem:[#allocation4 + $0xb8] sm:$0xff] (!%p3464_p10) }
 0x442   : > { %2479 = vst [vmem:[#allocation4 + $0xf0] sm:$0xff] %v2447_v20  ;;  %v2448_v58 = vadd.f32 %v3637_v63, %v2095_v61  ;;  %v4083_v61 = vpop.eup (!%p3464_p10), %4082  ;;  %v2563_v20 = vld [vmem:[#allocation3 + $0x70] sm:$0xff] (!%p3464_p10)  ;;  %4094 = vrcp.f32 (!%p3464_p10), %v2564_v43 }
 0x443   : > { %2670 = vperm.xlu1 (!%p3464_p10), %4029, %v4079_v57   ;;  %v4085_v63 = vpop.eup (!%p3464_p10), %4084  ;;  %4096 = vrcp.f32 (!%p3464_p10), %v2563_v20 }
 0x444   : > { %2480 = vst [vmem:[#allocation4 + $0xf8] sm:$0xff] %v2448_v58  ;;  %2665 = vperm.xlu0 (!%p3464_p10), %4028, %v4081_v62   ;;  %v2580_v58 = vld [vmem:[#allocation3 + $0xf8] sm:$0xff] (!%p3464_p10)  ;;  %v4087_v60 = vpop.eup (!%p3464_p10), %4086  ;;  %v2539_v62 = vld [vmem:[#allocation4 + $0xb0] sm:$0xff] (!%p3464_p10) }
 0x445   : > { %v4089_v11 = vpop.eup %4088  ;;  %4098 = vrcp.f32 %v2580_v58 }
 0x446   : > { %4100 = vrcp.f32 %v2579_v0  ;;  %v2525_v0 = vld [vmem:[#allocation4 + $0x40] sm:$0xff] }
 0x447   : > { %2750 = vperm.xlu1 %4029, %v4083_v61  }
 0x448   : > { %2745 = vperm.xlu0 %4028, %v4085_v63  }
 0x449   : > { %v4091_v35 = vpop.eup %4090 }
 0x44b   : > { %2680 = vperm.xlu1 %4029, %v4087_v60   ;;  %v4093_v3 = vpop.eup %4092  ;;  %v2526_v60 = vld [vmem:[#allocation4 + $0x48] sm:$0xff] }
 0x44c   : > { %2675 = vperm.xlu0 %4028, %v4089_v11   ;;  %v4095_v12 = vpop.eup %4094 }
 0x44d   : > { %v4097_v54 = vpop.eup %4096 }
 0x44f   : > { %2760 = vperm.xlu1 %4029, %v4091_v35   ;;  %v4099_v22 = vpop.eup %4098 }
 0x450   : > { %2755 = vperm.xlu0 %4028, %v4093_v3   ;;  %v4101_v4 = vpop.eup %4100 }
 0x453   : > { %2690 = vperm.xlu1 %4029, %v4095_v12  }
 0x454   : > { %2685 = vperm.xlu0 %4028, %v4097_v54  }
 0x457   : > { %2770 = vperm.xlu1 %4029, %v4099_v22   ;;  %v2542_v22 = vld [vmem:[#allocation4 + $0xc8] sm:$0xff] }
 0x458   : > { %2765 = vperm.xlu0 %4028, %v4101_v4   ;;  %v2541_v4 = vld [vmem:[#allocation4 + $0xc0] sm:$0xff] }
 0x47a   : > { %v2696_v6 = vpop.permute.xlu1 %2695 }
 0x47b   : > { %v2789_v18 = vmul.f32 %v2696_v6, %v2533_v25 }
 0x47c   : > { %v2616_v30 = vpop.permute.xlu0 %2615 }
 0x47d   : > { %v2773_v34 = vmul.f32 %v2616_v30, %v2517_v29 }
 0x47e   : > { %v2701_v39 = vpop.permute.xlu1 %2700 }
 0x47f   : > { %v2790_v33 = vmul.f32 %v2701_v39, %v2534_v49  ;;  %v2527_v39 = vld [vmem:[#allocation4 + $0x50] sm:$0xff] }
 0x480   : > { %v2621_v47 = vpop.permute.xlu0 %2620 }
 0x481   : > { %v2774_v14 = vmul.f32 %v2621_v47, %v2518_v55  ;;  %v2923_v32 = vpack.c.bf16 %v2790_v33, %v2789_v18  ;;  %v2528_v55 = vld [vmem:[#allocation4 + $0x58] sm:$0xff] }
 0x482   : > { %v2631_v37 = vpop.permute.xlu1 %2630 }
 0x483   : > { %v2915_v51 = vpack.c.bf16 %v2774_v14, %v2773_v34  ;;  %v2776_v2 = vmul.f32 %v2631_v37, %v2520_v52  ;;  %3694 = vmatprep.mubr.bf16.mxu1 %v2923_v32  ;;  %v2544_v52 = vld [vmem:[#allocation4 + $0xd8] sm:$0xff] }
 0x484   : > { %v2626_v24 = vpop.permute.xlu0 %2625 }
 0x485   : > { %v2775_v50 = vmul.f32 %v2626_v24, %v2519_v27  ;;  %3678 = vmatprep.mubr.bf16.mxu0 %v2915_v51  ;;  %v2543_v27 = vld [vmem:[#allocation4 + $0xd0] sm:$0xff] }
 0x486   : > { %v2711_v46 = vpop.permute.xlu1 %2710 }
 0x487   : > { %v2916_v8 = vpack.c.bf16 %v2776_v2, %v2775_v50  ;;  %v2792_v16 = vmul.f32 %v2711_v46, %v2536_v17  ;;  %v2530_v50 = vld [vmem:[#allocation4 + $0x68] sm:$0xff]  ;;  %v2529_v17 = vld [vmem:[#allocation4 + $0x60] sm:$0xff] }
 0x488   : > { %v2706_v56 = vpop.permute.xlu0 %2705 }
 0x489   : > { %v2791_v48 = vmul.f32 %v2706_v56, %v2535_v13  ;;  %3679 = vmatmul.mubr.bf16.vlgmr.msra.gmra.mrb[0].mxu0 %v2916_v8 }
 0x48a   : > { %v2641_v21 = vpop.permute.xlu1 %2640 }
 0x48b   : > { %v2924_v9 = vpack.c.bf16 %v2792_v16, %v2791_v48  ;;  %v2778_v36 = vmul.f32 %v2641_v21, %v2522_v59  ;;  %v2546_v48 = vld [vmem:[#allocation4 + $0xe8] sm:$0xff]  ;;  %v2545_v59 = vld [vmem:[#allocation4 + $0xe0] sm:$0xff] }
 0x48c   : > { %v2636_v40 = vpop.permute.xlu0 %2635 }
 0x48d   : > { %v2777_v26 = vmul.f32 %v2636_v40, %v2521_v7  ;;  %3695 = vmatmul.mubr.bf16.vlgmr.msra.gmra.mrb[0].mxu1 %v2924_v9 }
 0x48e   : > { %v2721_v45 = vpop.permute.xlu1 %2720 }
 0x48f   : > { %v2917_v19 = vpack.c.bf16 %v2778_v36, %v2777_v26  ;;  %v2794_v38 = vmul.f32 %v2721_v45, %v2538_v42  ;;  %v2532_v26 = vld [vmem:[#allocation4 + $0x78] sm:$0xff]  ;;  %v2531_v42 = vld [vmem:[#allocation4 + $0x70] sm:$0xff] }
 0x490   : > { %v2716_v28 = vpop.permute.xlu0 %2715 }
 0x491   : > { %v2793_v41 = vmul.f32 %v2716_v28, %v2537_v23  ;;  %3682 = vmatprep.mubr.bf16.mxu0 %v2917_v19 }
 0x492   : > { %v2651_v1 = vpop.permute.xlu1 %2650 }
 0x493   : > { %v2925_v44 = vpack.c.bf16 %v2794_v38, %v2793_v41  ;;  %v2780_v15 = vmul.f32 %v2651_v1, %v2524_v5  ;;  %v2548_v41 = vld [vmem:[#allocation4 + $0xf8] sm:$0xff]  ;;  %v2547_v5 = vld [vmem:[#allocation4 + $0xf0] sm:$0xff] }
 0x494   : > { %v2646_v10 = vpop.permute.xlu0 %2645 }
 0x495   : > { %v2779_v57 = vmul.f32 %v2646_v10, %v2523_v53  ;;  %3698 = vmatprep.mubr.bf16.mxu1 %v2925_v44 }
 0x496   : > { %v2731_v61 = vpop.permute.xlu1 %2730 }
 0x497   : > { %v2918_v43 = vpack.c.bf16 %v2780_v15, %v2779_v57  ;;  %v2796_v20 = vmul.f32 %v2731_v61, %v2540_v31  ;;  %v2807_v31 = vld [vmem:[%s4266_s13 + $0x10] sm:$0xff]  ;;  %v2808_v61 = vld [vmem:[%s4266_s13 + $0x18] sm:$0xff] }
 0x498   : > { %v2726_v63 = vpop.permute.xlu0 %2725 }
 0x499   : > { %v2795_v58 = vmul.f32 %v2726_v63, %v2539_v62  ;;  %3683 = vmatmul.mubr.bf16.gmra.mrb[4].mxu0 %v2918_v43  ;;  %v5503_v62 = vld [vmem:[%s6080_s9] ss:$0 sm:$0xff]  ;;  %v2806_v63 = vld [vmem:[%s4266_s13 + $0x8] sm:$0xff] }
 0x49a   : > { %v2661_v35 = vpop.permute.xlu1 %2660  ;;  %v2805_v43 = vld [vmem:[%s4266_s13] sm:$0xff] }
 0x49b   : > { %v2926_v11 = vpack.c.bf16 %v2796_v20, %v2795_v58  ;;  %v2782_v3 = vmul.f32 %v2661_v35, %v2526_v60  ;;  %v2846_v20 = vmul.f32 %v5503_v62, %v2807_v31  ;;  %v5514_v58 = vld [vmem:[%s6081_s17] ss:$0 sm:$0xff]  ;;  %v2844_v60 = vmul.f32 %v5503_v62, %v2805_v43 }
 0x49c   : > { %v2656_v12 = vpop.permute.xlu0 %2655  ;;  %v2821_v35 = vld [vmem:[%s4266_s13 + $0x80] sm:$0xff] }
 0x49d   : > { %v2781_v54 = vmul.f32 %v2656_v12, %v2525_v0  ;;  %3699 = vmatmul.mubr.bf16.gmra.mrb[4].mxu1 %v2926_v11  ;;  %v2823_v0 = vld [vmem:[%s4266_s13 + $0x90] sm:$0xff]  ;;  %v2847_v11 = vmul.f32 %v5503_v62, %v2808_v61  ;;  %v2845_v12 = vmul.f32 %v5503_v62, %v2806_v63 }
 0x49f   : > { %v2919_v6 = vpack.c.bf16 %v2782_v3, %v2781_v54  ;;  %v5523_v3 = vld [vmem:[%s5770_s7] ss:$0 sm:$0xff]  ;;  %v2824_v54 = vld [vmem:[%s4266_s13 + $0x98] sm:$0xff] }
 0x4a1   : > { %3686 = vmatprep.mubr.bf16.mxu0 %v2919_v6  ;;  %v2822_v6 = vld [vmem:[%s4266_s13 + $0x88] sm:$0xff] }
 0x4be   : > { %v2741_v30 = vpop.permute.xlu1 %2740 }
 0x4bf   : > { %v2798_v25 = vmul.f32 %v2741_v30, %v2542_v22  ;;  %v2736_v49 = vpop.permute.xlu0 %2735  ;;  %v2885_v22 = vadd.f32 %v5514_v58, %v2846_v20 }
 0x4c0   : > { %v2797_v29 = vmul.f32 %v2736_v49, %v2541_v4  ;;  %v2862_v4 = vmul.f32 %v5503_v62, %v2823_v0  ;;  %v2860_v49 = vmul.f32 %v5503_v62, %v2821_v35 }
 0x4c2   : > { %v2927_v18 = vpack.c.bf16 %v2798_v25, %v2797_v29  ;;  %v2671_v33 = vpop.permute.xlu1 %2670  ;;  %v2883_v25 = vadd.f32 %v5514_v58, %v2844_v60  ;;  %v2811_v29 = vld [vmem:[%s4266_s13 + $0x30] sm:$0xff] }
 0x4c3   : > { %v2784_v47 = vmul.f32 %v2671_v33, %v2528_v55  ;;  %v2666_v34 = vpop.permute.xlu0 %2665  ;;  %v2809_v55 = vld [vmem:[%s4266_s13 + $0x20] sm:$0xff]  ;;  %v5541_v33 = vld [vmem:[%s4266_s13 + $0xb0] sm:$0xff] }
 0x4c4   : > { %v2783_v14 = vmul.f32 %v2666_v34, %v2527_v39  ;;  %3702 = vmatprep.mubr.bf16.mxu1 %v2927_v18  ;;  %v5535_v39 = vld [vmem:[%s4266_s13 + $0x38] sm:$0xff]  ;;  %v5538_v18 = vld [vmem:[%s4266_s13 + $0x28] sm:$0xff] }
 0x4c5   : > { %v5547_v34 = vld [vmem:[%s4266_s13 + $0xb8] sm:$0xff] }
 0x4c6   : > { %v2920_v32 = vpack.c.bf16 %v2784_v47, %v2783_v14  ;;  %v2751_v37 = vpop.permute.xlu1 %2750  ;;  %v5544_v47 = vld [vmem:[%s4266_s13 + $0xa0] sm:$0xff]  ;;  %v5550_v14 = vld [vmem:[%s4266_s13 + $0xa8] sm:$0xff] }
 0x4c7   : > { %v2800_v51 = vmul.f32 %v2751_v37, %v2544_v52  ;;  %v2746_v2 = vpop.permute.xlu0 %2745  ;;  %v5553_v52 = vld [vmem:[%s4266_s13 + $0x50] sm:$0xff]  ;;  %v5562_v37 = vld [vmem:[%s4266_s13 + $0x48] sm:$0xff] }
 0x4c8   : > { %v2799_v24 = vmul.f32 %v2746_v2, %v2543_v27  ;;  %3687 = vmatmul.mubr.bf16.gmra.mrb[8].mxu0 %v2920_v32  ;;  %v5556_v27 = vld [vmem:[%s4266_s13 + $0x40] sm:$0xff]  ;;  %v5559_v32 = vld [vmem:[%s4266_s13 + $0x58] sm:$0xff] }
 0x4c9   : > { %v5568_v2 = vld [vmem:[%s4266_s13 + $0xc0] sm:$0xff] }
 0x4ca   : > { %v2928_v13 = vpack.c.bf16 %v2800_v51, %v2799_v24  ;;  %v2681_v8 = vpop.permute.xlu1 %2680  ;;  %v5565_v51 = vld [vmem:[%s4266_s13 + $0xd0] sm:$0xff]  ;;  %v5571_v24 = vld [vmem:[%s4266_s13 + $0xd8] sm:$0xff] }
 0x4cb   : > { %v2786_v46 = vmul.f32 %v2681_v8, %v2530_v50  ;;  %v2676_v16 = vpop.permute.xlu0 %2675  ;;  %v5574_v50 = vld [vmem:[%s4266_s13 + $0xc8] sm:$0xff] }
 0x4cc   : > { %v2785_v56 = vmul.f32 %v2676_v16, %v2529_v17  ;;  %3703 = vmatmul.mubr.bf16.gmra.mrb[8].mxu1 %v2928_v13  ;;  %v5577_v17 = vld [vmem:[%s4266_s13 + $0x70] sm:$0xff]  ;;  %v5580_v13 = vld [vmem:[%s4266_s13 + $0x60] sm:$0xff]  ;;  %v2886_v16 = vadd.f32 %v5514_v58, %v2847_v11 }
 0x4ce   : > { %v2921_v7 = vpack.c.bf16 %v2786_v46, %v2785_v56  ;;  %v2761_v9 = vpop.permute.xlu1 %2760  ;;  %v2863_v56 = vmul.f32 %v5503_v62, %v2824_v54 }
 0x4cf   : > { %v2802_v21 = vmul.f32 %v2761_v9, %v2546_v48  ;;  %v2756_v36 = vpop.permute.xlu0 %2755  ;;  %v5586_v48 = vld [vmem:[%s4266_s13 + $0x78] sm:$0xff] }
 0x4d0   : > { %v2801_v40 = vmul.f32 %v2756_v36, %v2545_v59  ;;  %3690 = vmatprep.mubr.bf16.mxu0 %v2921_v7  ;;  %v5589_v59 = vld [vmem:[%s4266_s13 + $0x68] sm:$0xff]  ;;  %v5592_v7 = vld [vmem:[%s4266_s13 + $0xf0] sm:$0xff]  ;;  %v2884_v36 = vadd.f32 %v5514_v58, %v2845_v12 }
 0x4d2   : > { %v2929_v23 = vpack.c.bf16 %v2802_v21, %v2801_v40  ;;  %v2691_v19 = vpop.permute.xlu1 %2690  ;;  %v2861_v40 = vmul.f32 %v5503_v62, %v2822_v6  ;;  %v2851_v6 = vmul.f32 %v5503_v62, %v5535_v39  ;;  %v2867_v39 = vmul.f32 %v5503_v62, %v5547_v34 }
 0x4d3   : > { %v2788_v45 = vmul.f32 %v2691_v19, %v2532_v26  ;;  %v2686_v38 = vpop.permute.xlu0 %2685  ;;  %v5598_v26 = vld [vmem:[%s4266_s13 + $0xe0] sm:$0xff] }
 0x4d4   : > { %v2787_v28 = vmul.f32 %v2686_v38, %v2531_v42  ;;  %3706 = vmatprep.mubr.bf16.mxu1 %v2929_v23  ;;  %v5601_v42 = vld [vmem:[%s4266_s13 + $0xf8] sm:$0xff]  ;;  %v5604_v23 = vld [vmem:[%s4266_s13 + $0xe8] sm:$0xff]  ;;  %v2900_v20 = vadd.f32 %v5514_v58, %v2861_v40 }
 0x4d6   : > { %v2922_v53 = vpack.c.bf16 %v2788_v45, %v2787_v28  ;;  %v2771_v44 = vpop.permute.xlu1 %2770  ;;  %v2901_v28 = vadd.f32 %v5514_v58, %v2862_v4  ;;  %v2848_v4 = vmul.f32 %v5503_v62, %v2809_v55 }
 0x4d7   : > { %v2804_v1 = vmul.f32 %v2771_v44, %v2548_v41  ;;  %v2766_v15 = vpop.permute.xlu0 %2765  ;;  %v2899_v44 = vadd.f32 %v5514_v58, %v2860_v49  ;;  %v2866_v49 = vmul.f32 %v5503_v62, %v5541_v33 }
 0x4d8   : > { %v2803_v10 = vmul.f32 %v2766_v15, %v2547_v5  ;;  %3691 = vmatmul.mubr.bf16.gmra.mrb[12].mxu0 %v2922_v53 }
 0x4da   : > { %v2930_v57 = vpack.c.bf16 %v2804_v1, %v2803_v10 }
 0x4dc   : > { %3707 = vmatmul.mubr.bf16.gmra.mrb[12].mxu1 %v2930_v57  ;;  %v2902_v57 = vadd.f32 %v5514_v58, %v2863_v56  ;;  %v2890_v56 = vadd.f32 %v5514_v58, %v2851_v6 }
 0x55c   : > { %v3680_v30 = vpop.f32.mrb[0].mxu0 }
 0x55d   : > { %v3045_v8 = vadd.f32 %v3680_v30, %v5523_v3  ;;  %v3036_v46 = vpop.f32.mrb[1].mxu0  ;;  %v2849_v30 = vmul.f32 %v5503_v62, %v5538_v18 }
 0x55e   : > { %v3037_v9 = vadd.f32 %v5523_v3, %v3036_v46  ;;  %v3681_v21 = vpop.f32.mrb[2].mxu0  ;;  %v2887_v46 = vadd.f32 %v5514_v58, %v2848_v4 }
 0x55f   : > { %v3165_v19 = vadd.f32 %v3045_v8, %v2885_v22  ;;  %v3048_v45 = vadd.f32 %v3681_v21, %v5523_v3  ;;  %v3039_v38 = vpop.f32.mrb[3].mxu0  ;;  %v2850_v22 = vmul.f32 %v5503_v62, %v2811_v29  ;;  %v2864_v29 = vmul.f32 %v5503_v62, %v5544_v47 }
 0x560   : > { %v3163_v41 = vadd.f32 %v3037_v9, %v2883_v25  ;;  %v3040_v5 = vadd.f32 %v5523_v3, %v3039_v38  ;;  %v3696_v53 = vpop.f32.mrb[0].mxu1  ;;  %v2888_v33 = vadd.f32 %v5514_v58, %v2849_v30  ;;  %v2865_v21 = vmul.f32 %v5503_v62, %v5550_v14 }
 0x561   : > { %v3166_v1 = vadd.f32 %v3048_v45, %v2886_v16  ;;  %v3109_v15 = vadd.f32 %v3696_v53, %v5523_v3  ;;  %v3100_v10 = vpop.f32.mrb[1].mxu1  ;;  %3197 = vst [vmem:[%s4276_s15 + $0x10] sm:$0xff] %v3165_v19  ;;  %v2889_v25 = vadd.f32 %v5514_v58, %v2850_v22  ;;  %v2905_v19 = vadd.f32 %v5514_v58, %v2866_v49 }
 0x562   : > { %v3164_v31 = vadd.f32 %v3040_v5, %v2884_v36  ;;  %v3101_v43 = vadd.f32 %v5523_v3, %v3100_v10  ;;  %v3697_v61 = vpop.f32.mrb[2].mxu1  ;;  %3195 = vst [vmem:[%s4276_s15] sm:$0xff] %v3163_v41  ;;  %v2906_v14 = vadd.f32 %v5514_v58, %v2867_v39  ;;  %v2904_v10 = vadd.f32 %v5514_v58, %v2865_v21 }
 0x563   : > { %v3181_v63 = vadd.f32 %v3109_v15, %v2901_v28  ;;  %v3112_v60 = vadd.f32 %v3697_v61, %v5523_v3  ;;  %v3103_v0 = vpop.f32.mrb[3].mxu1  ;;  %3198 = vst [vmem:[%s4276_s15 + $0x18] sm:$0xff] %v3166_v1  ;;  %v2903_v28 = vadd.f32 %v5514_v58, %v2864_v29  ;;  %v2870_v22 = vmul.f32 %v5503_v62, %v5565_v51 }
 0x564   : > { %v3179_v11 = vadd.f32 %v3101_v43, %v2899_v44  ;;  %v3104_v35 = vadd.f32 %v5523_v3, %v3103_v0  ;;  %3196 = vst [vmem:[%s4276_s15 + $0x8] sm:$0xff] %v3164_v31  ;;  %v2854_v0 = vmul.f32 %v5503_v62, %v5553_v52  ;;  %v2868_v52 = vmul.f32 %v5503_v62, %v5568_v2 }
 0x565   : > { %v3182_v12 = vadd.f32 %v3112_v60, %v2902_v57  ;;  %3213 = vst [vmem:[%s4276_s15 + $0x90] sm:$0xff] %v3181_v63 }
 0x566   : > { %v3180_v54 = vadd.f32 %v3104_v35, %v2900_v20  ;;  %3211 = vst [vmem:[%s4276_s15 + $0x80] sm:$0xff] %v3179_v11  ;;  %v2852_v11 = vmul.f32 %v5503_v62, %v5556_v27  ;;  %v2855_v35 = vmul.f32 %v5503_v62, %v5559_v32  ;;  %v2871_v32 = vmul.f32 %v5503_v62, %v5571_v24 }
 0x567   : > { %3214 = vst [vmem:[%s4276_s15 + $0x98] sm:$0xff] %v3182_v12  ;;  %v2853_v12 = vmul.f32 %v5503_v62, %v5562_v37  ;;  %v2907_v39 = vadd.f32 %v5514_v58, %v2868_v52 }
 0x568   : > { %3212 = vst [vmem:[%s4276_s15 + $0x88] sm:$0xff] %v3180_v54  ;;  %v2893_v54 = vadd.f32 %v5514_v58, %v2854_v0  ;;  %v2891_v6 = vadd.f32 %v5514_v58, %v2852_v11 }
 0x569   : > { %v2892_v51 = vadd.f32 %v5514_v58, %v2853_v12 }
 0x56c   : > { %v3684_v8 = vpop.f32.mrb[4].mxu0 }
 0x56d   : > { %v3061_v55 = vadd.f32 %v3684_v8, %v5523_v3  ;;  %v3052_v16 = vpop.f32.mrb[5].mxu0  ;;  %v2869_v8 = vmul.f32 %v5503_v62, %v5574_v50  ;;  %v2910_v50 = vadd.f32 %v5514_v58, %v2871_v32 }
 0x56e   : > { %v3053_v18 = vadd.f32 %v5523_v3, %v3052_v16  ;;  %v3685_v9 = vpop.f32.mrb[6].mxu0 }
 0x56f   : > { %v3169_v36 = vadd.f32 %v3061_v55, %v2889_v25  ;;  %v3064_v47 = vadd.f32 %v3685_v9, %v5523_v3  ;;  %v3055_v40 = vpop.f32.mrb[7].mxu0  ;;  %v2894_v25 = vadd.f32 %v5514_v58, %v2855_v35  ;;  %v2909_v55 = vadd.f32 %v5514_v58, %v2870_v22 }
 0x570   : > { %v3167_v45 = vadd.f32 %v3053_v18, %v2887_v46  ;;  %v3056_v38 = vadd.f32 %v5523_v3, %v3055_v40  ;;  %v3700_v34 = vpop.f32.mrb[4].mxu1  ;;  %v2908_v40 = vadd.f32 %v5514_v58, %v2869_v8 }
 0x571   : > { %v3170_v41 = vadd.f32 %v3064_v47, %v2890_v56  ;;  %v3125_v5 = vadd.f32 %v3700_v34, %v5523_v3  ;;  %v3116_v53 = vpop.f32.mrb[5].mxu1  ;;  %3201 = vst [vmem:[%s4276_s15 + $0x30] sm:$0xff] %v3169_v36 }
 0x572   : > { %v3168_v44 = vadd.f32 %v3056_v38, %v2888_v33  ;;  %v3117_v1 = vadd.f32 %v5523_v3, %v3116_v53  ;;  %v3701_v15 = vpop.f32.mrb[6].mxu1  ;;  %3199 = vst [vmem:[%s4276_s15 + $0x20] sm:$0xff] %v3167_v45  ;;  %v2858_v53 = vmul.f32 %v5503_v62, %v5577_v17  ;;  %v2872_v17 = vmul.f32 %v5503_v62, %v5598_v26 }
 0x573   : > { %v3185_v57 = vadd.f32 %v3125_v5, %v2905_v19  ;;  %v3128_v31 = vadd.f32 %v3701_v15, %v5523_v3  ;;  %v3119_v43 = vpop.f32.mrb[7].mxu1  ;;  %3202 = vst [vmem:[%s4276_s15 + $0x38] sm:$0xff] %v3170_v41 }
 0x574   : > { %v3183_v61 = vadd.f32 %v3117_v1, %v2903_v28  ;;  %v3120_v20 = vadd.f32 %v5523_v3, %v3119_v43  ;;  %3200 = vst [vmem:[%s4276_s15 + $0x28] sm:$0xff] %v3168_v44  ;;  %v2859_v44 = vmul.f32 %v5503_v62, %v5586_v48  ;;  %v2857_v1 = vmul.f32 %v5503_v62, %v5589_v59 }
 0x575   : > { %v3186_v63 = vadd.f32 %v3128_v31, %v2906_v14  ;;  %3217 = vst [vmem:[%s4276_s15 + $0xb0] sm:$0xff] %v3185_v57  ;;  %v2856_v14 = vmul.f32 %v5503_v62, %v5580_v13  ;;  %v2897_v15 = vadd.f32 %v5514_v58, %v2858_v53  ;;  %v2875_v48 = vmul.f32 %v5503_v62, %v5601_v42 }
 0x576   : > { %v3184_v60 = vadd.f32 %v3120_v20, %v2904_v10  ;;  %3215 = vst [vmem:[%s4276_s15 + $0xa0] sm:$0xff] %v3183_v61  ;;  %v2874_v10 = vmul.f32 %v5503_v62, %v5592_v7  ;;  %v2898_v61 = vadd.f32 %v5514_v58, %v2859_v44  ;;  %v2896_v7 = vadd.f32 %v5514_v58, %v2857_v1 }
 0x577   : > { %3218 = vst [vmem:[%s4276_s15 + $0xb8] sm:$0xff] %v3186_v63  ;;  %v2895_v31 = vadd.f32 %v5514_v58, %v2856_v14  ;;  %v2873_v63 = vmul.f32 %v5503_v62, %v5604_v23  ;;  %v2914_v62 = vadd.f32 %v5514_v58, %v2875_v48 }
 0x578   : > { %3216 = vst [vmem:[%s4276_s15 + $0xa8] sm:$0xff] %v3184_v60  ;;  %v2913_v11 = vadd.f32 %v5514_v58, %v2874_v10 }
 0x59b   : > { %v3688_v4 = vpop.f32.mrb[8].mxu0 }
 0x59c   : > { %v3077_v27 = vadd.f32 %v3688_v4, %v5523_v3  ;;  %v3068_v30 = vpop.f32.mrb[9].mxu0 }
 0x59d   : > { %v3069_v37 = vadd.f32 %v5523_v3, %v3068_v30  ;;  %v3689_v49 = vpop.f32.mrb[10].mxu0  ;;  %v2912_v30 = vadd.f32 %v5514_v58, %v2873_v63 }
 0x59e   : > { %v3173_v46 = vadd.f32 %v3077_v27, %v2893_v54  ;;  %v3080_v2 = vadd.f32 %v3689_v49, %v5523_v3  ;;  %v3071_v29 = vpop.f32.mrb[11].mxu0  ;;  %v2911_v54 = vadd.f32 %v5514_v58, %v2872_v17 }
 0x59f   : > { %v3171_v16 = vadd.f32 %v3069_v37, %v2891_v6  ;;  %v3072_v56 = vadd.f32 %v5523_v3, %v3071_v29  ;;  %v3704_v24 = vpop.f32.mrb[8].mxu1 }
 0x5a0   : > { %v3174_v18 = vadd.f32 %v3080_v2, %v2894_v25  ;;  %v3141_v9 = vadd.f32 %v3704_v24, %v5523_v3  ;;  %v3132_v33 = vpop.f32.mrb[9].mxu1  ;;  %3205 = vst [vmem:[%s4276_s15 + $0x50] sm:$0xff] %v3173_v46 }
 0x5a1   : > { %v3172_v21 = vadd.f32 %v3072_v56, %v2892_v51  ;;  %v3133_v36 = vadd.f32 %v5523_v3, %v3132_v33  ;;  %v3705_v47 = vpop.f32.mrb[10].mxu1  ;;  %3203 = vst [vmem:[%s4276_s15 + $0x40] sm:$0xff] %v3171_v16 }
 0x5a2   : > { %v3189_v19 = vadd.f32 %v3141_v9, %v2909_v55  ;;  %v3144_v45 = vadd.f32 %v3705_v47, %v5523_v3  ;;  %v3135_v38 = vpop.f32.mrb[11].mxu1  ;;  %3206 = vst [vmem:[%s4276_s15 + $0x58] sm:$0xff] %v3174_v18 }
 0x5a3   : > { %v3187_v34 = vadd.f32 %v3133_v36, %v2907_v39  ;;  %v3136_v28 = vadd.f32 %v5523_v3, %v3135_v38  ;;  %3204 = vst [vmem:[%s4276_s15 + $0x48] sm:$0xff] %v3172_v21 }
 0x5a4   : > { %v3190_v41 = vadd.f32 %v3144_v45, %v2910_v50  ;;  %3221 = vst [vmem:[%s4276_s15 + $0xd0] sm:$0xff] %v3189_v19 }
 0x5a5   : > { %v3188_v5 = vadd.f32 %v3136_v28, %v2908_v40  ;;  %3219 = vst [vmem:[%s4276_s15 + $0xc0] sm:$0xff] %v3187_v34 }
 0x5a6   : > { %3222 = vst [vmem:[%s4276_s15 + $0xd8] sm:$0xff] %v3190_v41 }
 0x5a7   : > { %3220 = vst [vmem:[%s4276_s15 + $0xc8] sm:$0xff] %v3188_v5 }
 0x5ab   : > { %v3692_v57 = vpop.f32.mrb[12].mxu0 }
 0x5ac   : > { %v3093_v13 = vadd.f32 %v3692_v57, %v5523_v3  ;;  %v3084_v43 = vpop.f32.mrb[13].mxu0 }
 0x5ad   : > { %v3085_v59 = vadd.f32 %v5523_v3, %v3084_v43  ;;  %v3693_v20 = vpop.f32.mrb[14].mxu0 }
 0x5ae   : > { %v3177_v60 = vadd.f32 %v3093_v13, %v2897_v15  ;;  %v3096_v26 = vadd.f32 %v3693_v20, %v5523_v3  ;;  %v3087_v0 = vpop.f32.mrb[15].mxu0 }
 0x5af   : > { %v3175_v35 = vadd.f32 %v3085_v59, %v2895_v31  ;;  %v3088_v12 = vadd.f32 %v5523_v3, %v3087_v0  ;;  %v3708_v42 = vpop.f32.mrb[12].mxu1 }
 0x5b0   : > { %v3178_v22 = vadd.f32 %v3096_v26, %v2898_v61  ;;  %v3157_v4 = vadd.f32 %v3708_v42, %v5523_v3  ;;  %v3148_v6 = vpop.f32.mrb[13].mxu1  ;;  %3209 = vst [vmem:[%s4276_s15 + $0x70] sm:$0xff] %v3177_v60 }
 0x5b1   : > { %v3176_v23 = vadd.f32 %v3088_v12, %v2896_v7  ;;  %v3149_v52 = vadd.f32 %v5523_v3, %v3148_v6  ;;  %v3709_v27 = vpop.f32.mrb[14].mxu1  ;;  %3207 = vst [vmem:[%s4276_s15 + $0x60] sm:$0xff] %v3175_v35 }
 0x5b2   : > { %v3193_v25 = vadd.f32 %v3157_v4, %v2913_v11  ;;  %v3160_v32 = vadd.f32 %v3709_v27, %v5523_v3  ;;  %v3151_v37 = vpop.f32.mrb[15].mxu1  ;;  %3210 = vst [vmem:[%s4276_s15 + $0x78] sm:$0xff] %v3178_v22 }
 0x5b3   : > { %v3191_v49 = vadd.f32 %v3149_v52, %v2911_v54  ;;  %v3152_v51 = vadd.f32 %v5523_v3, %v3151_v37  ;;  %3208 = vst [vmem:[%s4276_s15 + $0x68] sm:$0xff] %v3176_v23 }
 0x5b4   : > { %v3194_v8 = vadd.f32 %v3160_v32, %v2914_v62  ;;  %3225 = vst [vmem:[%s4276_s15 + $0xf0] sm:$0xff] %v3193_v25 }
 0x5b5   : > { %v3192_v46 = vadd.f32 %v3152_v51, %v2912_v30  ;;  %3223 = vst [vmem:[%s4276_s15 + $0xe0] sm:$0xff] %v3191_v49 }
 0x5b6   : > { %3226 = vst [vmem:[%s4276_s15 + $0xf8] sm:$0xff] %v3194_v8 }
 0x5b7   : > { %3224 = vst [vmem:[%s4276_s15 + $0xe8] sm:$0xff] %v3192_v46 }
 0x5b8 PF: > { %s18_s11 = sadd.s32 1, %s4156_s11   ;;  %s6082_s28 = sld [smem:[#allocation5_spill]] }
 0x5b9   : > { %p15_p11 = scmp.ge.s32.totalorder %s18_s11, 34   ;;  %s6083_s29 = sld [smem:[#allocation6_spill]] }
 0x5ba   : > { %s6084_s13 = sld [smem:[#allocation7_spill]]  ;;  %s6085_s9 = sld [smem:[#allocation8_spill]] }
 0x5bb   : > { %s6086_s10 = sld [smem:[#allocation9_spill]]  ;;  %s6087_s27 = smov %s4144_s30 }
 0x5bc   :  { %17 = sbr.rel (!%p15_p11) target bundleno = 4 (0x4), region = 105 }
 0x5c0   : > { %s6088_s30 = smov %s6084_s13 }

</bundles_post_ra>
